<compile_context>
chip_gen: v5e
topology: v5e:2x2
jax: 0.10.0
libtpu: 0.0.40
codegen_flags: <defaults>
</compile_context>

<pallas_src>
import functools

import jax
import jax.numpy as jnp
from jax import lax
from jax.experimental import pallas as pl
from jax.experimental.pallas import tpu as pltpu


# ----------------------------------------------------------------------------
# Kernel 1: prelkb_bn + pw1 (1x1 conv) + pw1.bn + ReLU
#           == (M, Cin) @ (Cin, Cdw) bf16 MXU matmul + bias + ReLU (BN folded)
# ----------------------------------------------------------------------------
def _pw1_kernel(x_ref, w_ref, b_ref, o_ref):
    x = x_ref[...].astype(jnp.bfloat16)
    y = jnp.dot(x, w_ref[...], preferred_element_type=jnp.float32)
    o_ref[...] = jnp.maximum(y + b_ref[...], 0.0).astype(o_ref.dtype)


def pw1_matmul_relu(x_flat, w, b, tm=512):
    """x_flat: (M, Cin) f32, w: (Cin, Cdw) bf16, b: (1, Cdw) f32 -> (M, Cdw) bf16."""
    M, cin = x_flat.shape
    cout = w.shape[1]

    # Pick a row tile that divides M (avoids the previous host-side jnp.pad,
    # which was an extra HBM read+write of x).  Fall back to padding only for
    # pathological M.
    if M <= tm:
        tile, m_pad, xp = M, M, x_flat                  # single block == full dim
    else:
        t = (min(tm, M) // 8) * 8
        while t >= 8 and M % t:
            t -= 8
        if t >= 8:
            tile, m_pad, xp = t, M, x_flat
        else:  # rare ragged case: pad (one extra pass over x)
            tile = min(tm, ((M + 7) // 8) * 8)
            m_pad = pl.cdiv(M, tile) * tile
            xp = jnp.pad(x_flat, ((0, m_pad - M), (0, 0)))

    out = pl.pallas_call(
        _pw1_kernel,
        out_shape=jax.ShapeDtypeStruct((m_pad, cout), jnp.bfloat16),
        grid=(m_pad // tile,),
        in_specs=[
            pl.BlockSpec((tile, cin), lambda i: (i, 0)),
            pl.BlockSpec((cin, cout), lambda i: (0, 0)),
            pl.BlockSpec((1, cout), lambda i: (0, 0)),
        ],
        out_specs=pl.BlockSpec((tile, cout), lambda i: (i, 0)),
        compiler_params=pltpu.CompilerParams(dimension_semantics=("parallel",)),
    )(xp, w, b)
    return out if m_pad == M else out[:M]


# ----------------------------------------------------------------------------
# Kernel 2: merged large+small depthwise conv (BN folded) + bias + ReLU,
#           fused with pw2 (1x1 conv, BN folded) + residual add.
#   grid = (N,) ; one full image per grid step (tile_h == H).  The zero-padded
#   image is built once per step in a f32 VMEM scratch (in-kernel halo, no
#   host pad, cast hoisted out of the tap loop).
# ----------------------------------------------------------------------------
def _dw_pw2_kernel(t_ref, x_ref, wdw_ref, bdw_ref, w2_ref, b2_ref, o_ref,
                   pbuf, *, K):
    pad = K // 2
    H = t_ref.shape[1]
    W = t_ref.shape[2]
    Cdw = t_ref.shape[3]

    # Zero-padded f32 image in VMEM.  Zeroed every step (scratch is per-core;
    # do not rely on program_id==0 under megacore partitioning).
    pbuf[...] = jnp.zeros_like(pbuf)
    pbuf[pad:pad + H, pad:pad + W, :] = t_ref[0].astype(jnp.float32)

    # --- merged depthwise (large + small kernels folded into one eq_w) ------
    # NOTE: the kw slices below are sublane-offset reads of VMEM data; kept
    # simple here (correctness first) — see perf review re: pltpu.roll / full-Wp
    # accumulation if the Mosaic dump shows materialized copies.
    def row_contrib(kh):
        rows = pbuf[pl.ds(kh, H), :, :]          # (H, Wp, Cdw) f32, one load / kh
        wrow = wdw_ref[kh]                       # (K, Cdw)
        part = rows[:, 0:W, :] * wrow[0]
        for kw in range(1, K):                   # kw taps unrolled
            part = part + rows[:, kw:kw + W, :] * wrow[kw]
        return part

    acc = lax.fori_loop(1, K, lambda kh, a: a + row_contrib(kh), row_contrib(0))

    u = jnp.maximum(acc + bdw_ref[...], 0.0)     # lk_nonlinear ReLU (bias = folded BN)

    # --- fused pw2 (1x1 conv + BN folded) + residual (drop_path=0 -> Identity)
    y = jnp.dot(u.reshape(H * W, Cdw).astype(jnp.bfloat16), w2_ref[...],
                preferred_element_type=jnp.float32)
    y = y + b2_ref[...]
    o_ref[...] = (y.reshape(x_ref.shape) + x_ref[...]).astype(o_ref.dtype)


def dw_pw2_residual(t, x_nhwc, eq_w, eq_b, w2, b2):
    """t: (N,H,W,Cdw) bf16 activation, x_nhwc: (N,H,W,Cin) f32 residual."""
    N, H, W, Cdw = t.shape
    Cin = x_nhwc.shape[3]
    K = eq_w.shape[0]
    pad = K // 2
    Hp, Wp = H + 2 * pad, W + 2 * pad
    kern = functools.partial(_dw_pw2_kernel, K=K)
    return pl.pallas_call(
        kern,
        out_shape=jax.ShapeDtypeStruct((N, H, W, Cin), jnp.float32),
        grid=(N,),
        in_specs=[
            pl.BlockSpec((1, H, W, Cdw), lambda n: (n, 0, 0, 0)),
            pl.BlockSpec((1, H, W, Cin), lambda n: (n, 0, 0, 0)),
            pl.BlockSpec((K, K, Cdw), lambda n: (0, 0, 0)),
            pl.BlockSpec((1, Cdw), lambda n: (0, 0)),
            pl.BlockSpec((Cdw, Cin), lambda n: (0, 0)),
            pl.BlockSpec((1, Cin), lambda n: (0, 0)),
        ],
        out_specs=pl.BlockSpec((1, H, W, Cin), lambda n: (n, 0, 0, 0)),
        scratch_shapes=[pltpu.VMEM((Hp, Wp, Cdw), jnp.float32)],
        compiler_params=pltpu.CompilerParams(
            dimension_semantics=("parallel",),
            vmem_limit_bytes=48 * 1024 * 1024),
    )(t, x_nhwc, eq_w, eq_b, w2, b2)


# ----------------------------------------------------------------------------
# Parameter setup (deterministic, synthetic) + host-side BN folding + glue
# ----------------------------------------------------------------------------
def _bn_params(key, c):
    k1, k2, k3, k4 = jax.random.split(key, 4)
    gamma = jax.random.uniform(k1, (c,), minval=0.5, maxval=1.5)
    beta = 0.1 * jax.random.normal(k2, (c,))
    mean = 0.1 * jax.random.normal(k3, (c,))
    var = jax.random.uniform(k4, (c,), minval=0.5, maxval=1.5)
    return gamma, beta, mean, var


def _fold_bn(gamma, beta, mean, var, eps=1e-5):
    scale = gamma / jnp.sqrt(var + eps)
    shift = beta - mean * scale
    return scale, shift


def init_params(key, in_channels, dw_channels, K, small_k):
    ks = jax.random.split(key, 8)
    p = {}
    p["pre_scale"], p["pre_shift"] = _fold_bn(*_bn_params(ks[0], in_channels))
    # pw1: torch weight (dw, in, 1, 1) -> matmul (in, dw)
    w1_t = 0.2 * jax.random.normal(ks[1], (dw_channels, in_channels))
    p["w1"] = w1_t.T
    p["pw1_scale"], p["pw1_shift"] = _fold_bn(*_bn_params(ks[2], dw_channels))
    # depthwise large / small: torch (dw, 1, K, K) -> (K, K, dw)
    wl_t = 0.05 * jax.random.normal(ks[3], (dw_channels, 1, K, K))
    ws_t = 0.10 * jax.random.normal(ks[4], (dw_channels, 1, small_k, small_k))
    p["wl_kkc"] = jnp.transpose(wl_t[:, 0], (1, 2, 0))
    p["ws_kkc"] = jnp.transpose(ws_t[:, 0], (1, 2, 0))
    p["lk_scale"], p["lk_shift"] = _fold_bn(*_bn_params(ks[5], dw_channels))
    p["sk_scale"], p["sk_shift"] = _fold_bn(*_bn_params(ks[6], dw_channels))
    # pw2: torch weight (in, dw, 1, 1) -> matmul (dw, in)
    w2_t = 0.2 * jax.random.normal(ks[7], (in_channels, dw_channels))
    p["w2"] = w2_t.T
    kbn = jax.random.fold_in(key, 123)
    p["pw2_scale"], p["pw2_shift"] = _fold_bn(*_bn_params(kbn, in_channels))
    return jax.tree_util.tree_map(lambda a: a.astype(jnp.float32), p)


def fold_block_params(p, K, small_k):
    """Fold every inference-mode BN into the neighbouring conv (host, once)."""
    # prelkb_bn + pw1.conv + pw1.bn  ->  one matmul + bias
    w1 = p["pre_scale"][:, None] * p["w1"] * p["pw1_scale"][None, :]
    b1 = (p["pre_shift"] @ p["w1"]) * p["pw1_scale"] + p["pw1_shift"]
    # ReparamLargeKernelConv (stride=1, same padding): BN-fused large kernel +
    # zero-padded BN-fused small kernel == get_equivalent_kernel_bias().
    pad_d = (K - small_k) // 2
    eq_w = (p["wl_kkc"] * p["lk_scale"][None, None, :]
            + jnp.pad(p["ws_kkc"] * p["sk_scale"][None, None, :],
                      ((pad_d, pad_d), (pad_d, pad_d), (0, 0))))
    eq_b = p["lk_shift"] + p["sk_shift"]
    # pw2.conv + pw2.bn
    w2 = p["w2"] * p["pw2_scale"][None, :]
    b2 = p["pw2_shift"]
    cdw, cin = w1.shape[1], w2.shape[1]
    return {
        "w1": w1.astype(jnp.bfloat16),
        "b1": b1.reshape(1, cdw).astype(jnp.float32),
        "eq_w": eq_w.astype(jnp.float32),        # f32 taps (v5e has no bf16 VALU)
        "eq_b": eq_b.reshape(1, cdw).astype(jnp.float32),
        "w2": w2.astype(jnp.bfloat16),
        "b2": b2.reshape(1, cin).astype(jnp.float32),
    }


def replk_block_forward_nhwc(x_nhwc, fp):
    """RepLKBlock forward, NHWC in / NHWC out (channels on the lane dim)."""
    N, H, W, Cin = x_nhwc.shape
    Cdw = fp["w1"].shape[1]
    M = N * H * W

    # Stage 1: prelkb_bn + pw1 + bn + ReLU (bf16 MXU matmul, bf16 intermediate)
    t = pw1_matmul_relu(x_nhwc.reshape(M, Cin), fp["w1"], fp["b1"])
    t = t.reshape(N, H, W, Cdw)

    # Stage 2: merged large+small depthwise + ReLU + pw2 + bn + residual,
    # fused; halo/zero-padding handled inside the kernel.
    # TODO(synk): stochastic DropPath (drop_path > 0, training) not implemented;
    # drop_path=0.0 -> Identity, the module default / inference path.
    return dw_pw2_residual(t, x_nhwc, fp["eq_w"], fp["eq_b"], fp["w2"], fp["b2"])


def replk_block_forward(x_nchw, fp):
    """NCHW wrapper matching the PyTorch module interface.  A full network
    would stay NHWC between blocks and skip these two transposes."""
    x = jnp.transpose(x_nchw, (0, 2, 3, 1)).astype(jnp.float32)
    out = replk_block_forward_nhwc(x, fp)
    return jnp.transpose(out, (0, 3, 1, 2))


# ----------------------------------------------------------------------------
# Pure-JAX f32 reference (unmerged, mirrors the PyTorch forward op-by-op)
# ----------------------------------------------------------------------------
def reference_forward(x_nchw, p, K, small_k):
    x = jnp.transpose(x_nchw, (0, 2, 3, 1)).astype(jnp.float32)
    out = x * p["pre_scale"] + p["pre_shift"]
    out = jnp.einsum("nhwc,cd->nhwd", out, p["w1"])
    out = jnp.maximum(out * p["pw1_scale"] + p["pw1_shift"], 0.0)

    def dwconv(v, w_kkc, pad):
        w = w_kkc[:, :, None, :]
        return lax.conv_general_dilated(
            v, w, (1, 1), [(pad, pad), (pad, pad)],
            dimension_numbers=("NHWC", "HWIO", "NHWC"),
            feature_group_count=v.shape[-1])

    lk = dwconv(out, p["wl_kkc"], K // 2) * p["lk_scale"] + p["lk_shift"]
    sk = dwconv(out, p["ws_kkc"], small_k // 2) * p["sk_scale"] + p["sk_shift"]
    out = jnp.maximum(lk + sk, 0.0)
    out = jnp.einsum("nhwc,cd->nhwd", out, p["w2"])
    out = out * p["pw2_scale"] + p["pw2_shift"]
    return jnp.transpose(x + out, (0, 3, 1, 2))


if __name__ == "__main__":
    in_channels, dw_channels = 4, 8
    block_lk_size, small_kernel = 7, 3
    N, H, W = 2, 16, 16

    key = jax.random.PRNGKey(0)
    kx, kp = jax.random.split(key)
    x = jax.random.normal(kx, (N, in_channels, H, W), dtype=jnp.float32)
    raw = init_params(kp, in_channels, dw_channels, block_lk_size, small_kernel)
    folded = fold_block_params(raw, block_lk_size, small_kernel)

    fwd = jax.jit(replk_block_forward)
    out = jax.block_until_ready(fwd(x, folded))

    ref = reference_forward(x, raw, block_lk_size, small_kernel)
    assert out.shape == (N, in_channels, H, W)
    # bf16 matmul inputs / bf16 inter-kernel activation vs. a pure-f32 reference
    assert jnp.allclose(out, ref, atol=5e-2, rtol=5e-2), (
        float(jnp.max(jnp.abs(out - ref))))
    print("KERNEL_OK")
</pallas_src>

<mosaic_0001>
module attributes {stable_mosaic.version = 11 : i64} {
  func.func @_pw1_kernel(%arg0: i32, %arg1: memref<512x4xf32, #tpu.memory_space<vmem>>, %arg2: memref<4x8xbf16, #tpu.memory_space<vmem>>, %arg3: memref<1x8xf32, #tpu.memory_space<vmem>>, %arg4: memref<512x8xbf16, #tpu.memory_space<vmem>>) attributes {dimension_semantics = [#tpu.dimension_semantics<parallel>], iteration_bounds = array<i64: 1>, scalar_prefetch = 0 : i64, scratch_operands = 0 : i64, tpu.core_type = #tpu.core_type<tc>, window_params = [{transform_indices = @transform_0, window_bounds = array<i64: 512, 4>}, {pipeline_mode = #tpu.pipeline_mode<synchronous>, transform_indices = @transform_1, window_bounds = array<i64: 4, 8>}, {pipeline_mode = #tpu.pipeline_mode<synchronous>, transform_indices = @transform_2, window_bounds = array<i64: 1, 8>}, {transform_indices = @transform_3, window_bounds = array<i64: 512, 8>}]} {
    %c0 = arith.constant 0 : index
    %c0_0 = arith.constant 0 : index
    %0 = vector.load %arg1[%c0, %c0_0] : memref<512x4xf32, #tpu.memory_space<vmem>>, vector<512x4xf32>
    %1 = arith.truncf %0 : vector<512x4xf32> to vector<512x4xbf16>
    %c0_1 = arith.constant 0 : index
    %c0_2 = arith.constant 0 : index
    %2 = vector.load %arg2[%c0_1, %c0_2] : memref<4x8xbf16, #tpu.memory_space<vmem>>, vector<4x8xbf16>
    %cst = arith.constant dense<0.000000e+00> : vector<512x8xf32>
    %3 = tpu.matmul %1, %2, %cst {dimension_numbers = #tpu.dot_dimension_numbers<[1], [0], [0], [1], [0, 0, 1, 1], [], []>} : vector<512x4xbf16>, vector<4x8xbf16>, vector<512x8xf32> -> vector<512x8xf32>
    %c0_3 = arith.constant 0 : index
    %c0_4 = arith.constant 0 : index
    %4 = vector.load %arg3[%c0_3, %c0_4] : memref<1x8xf32, #tpu.memory_space<vmem>>, vector<1x8xf32>
    %5 = vector.broadcast %4 : vector<1x8xf32> to vector<512x8xf32>
    %6 = arith.addf %3, %5 : vector<512x8xf32>
    %cst_5 = arith.constant 0.000000e+00 : f32
    %7 = vector.broadcast %cst_5 : f32 to vector<512x8xf32>
    %8 = arith.maximumf %6, %7 : vector<512x8xf32>
    %9 = arith.truncf %8 : vector<512x8xf32> to vector<512x8xbf16>
    %c0_6 = arith.constant 0 : index
    %c0_7 = arith.constant 0 : index
    %10 = vector.load %arg4[%c0_6, %c0_7] : memref<512x8xbf16, #tpu.memory_space<vmem>>, vector<512x8xbf16>
    tpu.vector_store %arg4[%c0_6, %c0_7], %9 {strides = array<i32>} : memref<512x8xbf16, #tpu.memory_space<vmem>>, vector<512x8xbf16>,
    return
  }
  func.func @transform_0(%arg0: i32) -> (i32, i32) {
    %c0_i32 = arith.constant 0 : i32
    %c0_i32_0 = arith.constant 0 : i32
    return %arg0, %c0_i32 : i32, i32
  }
  func.func @transform_1(%arg0: i32) -> (i32, i32) {
    %c0_i32 = arith.constant 0 : i32
    %c0_i32_0 = arith.constant 0 : i32
    %c0_i32_1 = arith.constant 0 : i32
    return %c0_i32, %c0_i32_0 : i32, i32
  }
  func.func @transform_2(%arg0: i32) -> (i32, i32) {
    %c0_i32 = arith.constant 0 : i32
    %c0_i32_0 = arith.constant 0 : i32
    %c0_i32_1 = arith.constant 0 : i32
    return %c0_i32, %c0_i32_0 : i32, i32
  }
  func.func @transform_3(%arg0: i32) -> (i32, i32) {
    %c0_i32 = arith.constant 0 : i32
    %c0_i32_0 = arith.constant 0 : i32
    return %arg0, %c0_i32 : i32, i32
  }
}

module attributes {stable_mosaic.version = 11 : i64} {
  func.func @_dw_pw2_kernel(%arg0: i32, %arg1: memref<1x16x16x8xbf16, #tpu.memory_space<vmem>>, %arg2: memref<1x16x16x4xf32, #tpu.memory_space<vmem>>, %arg3: memref<7x7x8xf32, #tpu.memory_space<vmem>>, %arg4: memref<1x8xf32, #tpu.memory_space<vmem>>, %arg5: memref<8x4xbf16, #tpu.memory_space<vmem>>, %arg6: memref<1x4xf32, #tpu.memory_space<vmem>>, %arg7: memref<1x16x16x4xf32, #tpu.memory_space<vmem>>, %arg8: memref<22x22x8xf32, #tpu.memory_space<vmem>>) attributes {dimension_semantics = [#tpu.dimension_semantics<parallel>], iteration_bounds = array<i64: 2>, scalar_prefetch = 0 : i64, scratch_operands = 1 : i64, tpu.core_type = #tpu.core_type<tc>, window_params = [{transform_indices = @transform_0, window_bounds = array<i64: 1, 16, 16, 8>}, {transform_indices = @transform_1, window_bounds = array<i64: 1, 16, 16, 4>}, {pipeline_mode = #tpu.pipeline_mode<synchronous>, transform_indices = @transform_2, window_bounds = array<i64: 7, 7, 8>}, {pipeline_mode = #tpu.pipeline_mode<synchronous>, transform_indices = @transform_3, window_bounds = array<i64: 1, 8>}, {pipeline_mode = #tpu.pipeline_mode<synchronous>, transform_indices = @transform_4, window_bounds = array<i64: 8, 4>}, {pipeline_mode = #tpu.pipeline_mode<synchronous>, transform_indices = @transform_5, window_bounds = array<i64: 1, 4>}, {transform_indices = @transform_6, window_bounds = array<i64: 1, 16, 16, 4>}]} {
    %cst = arith.constant 0.000000e+00 : f32
    %0 = vector.broadcast %cst : f32 to vector<22x22x8xf32>
    %c0 = arith.constant 0 : index
    %c0_0 = arith.constant 0 : index
    %c0_1 = arith.constant 0 : index
    %1 = vector.load %arg8[%c0, %c0_0, %c0_1] : memref<22x22x8xf32, #tpu.memory_space<vmem>>, vector<22x22x8xf32>
    tpu.vector_store %arg8[%c0, %c0_0, %c0_1], %0 {strides = array<i32>} : memref<22x22x8xf32, #tpu.memory_space<vmem>>, vector<22x22x8xf32>,
    %c0_2 = arith.constant 0 : index
    %c0_3 = arith.constant 0 : index
    %c0_4 = arith.constant 0 : index
    %c0_5 = arith.constant 0 : index
    %2 = vector.load %arg1[%c0_2, %c0_3, %c0_4, %c0_5] : memref<1x16x16x8xbf16, #tpu.memory_space<vmem>>, vector<1x16x16x8xbf16>
    %3 = vector.shape_cast %2 : vector<1x16x16x8xbf16> to vector<16x16x8xbf16>
    %4 = arith.extf %3 : vector<16x16x8xbf16> to vector<16x16x8xf32>
    %c3 = arith.constant 3 : index
    %c3_6 = arith.constant 3 : index
    %c0_7 = arith.constant 0 : index
    %5 = vector.load %arg8[%c3, %c3_6, %c0_7] : memref<22x22x8xf32, #tpu.memory_space<vmem>>, vector<16x16x8xf32>
    tpu.vector_store %arg8[%c3, %c3_6, %c0_7], %4 {strides = array<i32>} : memref<22x22x8xf32, #tpu.memory_space<vmem>>, vector<16x16x8xf32>,
    %c0_8 = arith.constant 0 : index
    %c0_9 = arith.constant 0 : index
    %c0_10 = arith.constant 0 : index
    %6 = vector.load %arg8[%c0_8, %c0_9, %c0_10] : memref<22x22x8xf32, #tpu.memory_space<vmem>>, vector<16x22x8xf32>
    %c0_11 = arith.constant 0 : index
    %c0_12 = arith.constant 0 : index
    %c0_13 = arith.constant 0 : index
    %7 = vector.load %arg3[%c0_11, %c0_12, %c0_13] : memref<7x7x8xf32, #tpu.memory_space<vmem>>, vector<1x7x8xf32>
    %8 = vector.shape_cast %7 : vector<1x7x8xf32> to vector<7x8xf32>
    %9 = vector.extract_strided_slice %6 {offsets = [0, 0, 0], sizes = [16, 16, 8], strides = [1, 1, 1]} : vector<16x22x8xf32> to vector<16x16x8xf32>
    %10 = vector.extract_strided_slice %8 {offsets = [0, 0], sizes = [1, 8], strides = [1, 1]} : vector<7x8xf32> to vector<1x8xf32>
    %11 = vector.shape_cast %10 : vector<1x8xf32> to vector<8xf32>
    %12 = vector.shape_cast %11 : vector<8xf32> to vector<1x1x8xf32>
    %13 = vector.broadcast %12 : vector<1x1x8xf32> to vector<16x16x8xf32>
    %14 = arith.mulf %9, %13 : vector<16x16x8xf32>
    %15 = vector.extract_strided_slice %6 {offsets = [0, 1, 0], sizes = [16, 16, 8], strides = [1, 1, 1]} : vector<16x22x8xf32> to vector<16x16x8xf32>
    %16 = vector.extract_strided_slice %8 {offsets = [1, 0], sizes = [1, 8], strides = [1, 1]} : vector<7x8xf32> to vector<1x8xf32>
    %17 = vector.shape_cast %16 : vector<1x8xf32> to vector<8xf32>
    %18 = vector.shape_cast %17 : vector<8xf32> to vector<1x1x8xf32>
    %19 = vector.broadcast %18 : vector<1x1x8xf32> to vector<16x16x8xf32>
    %20 = arith.mulf %15, %19 : vector<16x16x8xf32>
    %21 = arith.addf %14, %20 : vector<16x16x8xf32>
    %22 = vector.extract_strided_slice %6 {offsets = [0, 2, 0], sizes = [16, 16, 8], strides = [1, 1, 1]} : vector<16x22x8xf32> to vector<16x16x8xf32>
    %23 = vector.extract_strided_slice %8 {offsets = [2, 0], sizes = [1, 8], strides = [1, 1]} : vector<7x8xf32> to vector<1x8xf32>
    %24 = vector.shape_cast %23 : vector<1x8xf32> to vector<8xf32>
    %25 = vector.shape_cast %24 : vector<8xf32> to vector<1x1x8xf32>
    %26 = vector.broadcast %25 : vector<1x1x8xf32> to vector<16x16x8xf32>
    %27 = arith.mulf %22, %26 : vector<16x16x8xf32>
    %28 = arith.addf %21, %27 : vector<16x16x8xf32>
    %29 = vector.extract_strided_slice %6 {offsets = [0, 3, 0], sizes = [16, 16, 8], strides = [1, 1, 1]} : vector<16x22x8xf32> to vector<16x16x8xf32>
    %30 = vector.extract_strided_slice %8 {offsets = [3, 0], sizes = [1, 8], strides = [1, 1]} : vector<7x8xf32> to vector<1x8xf32>
    %31 = vector.shape_cast %30 : vector<1x8xf32> to vector<8xf32>
    %32 = vector.shape_cast %31 : vector<8xf32> to vector<1x1x8xf32>
    %33 = vector.broadcast %32 : vector<1x1x8xf32> to vector<16x16x8xf32>
    %34 = arith.mulf %29, %33 : vector<16x16x8xf32>
    %35 = arith.addf %28, %34 : vector<16x16x8xf32>
    %36 = vector.extract_strided_slice %6 {offsets = [0, 4, 0], sizes = [16, 16, 8], strides = [1, 1, 1]} : vector<16x22x8xf32> to vector<16x16x8xf32>
    %37 = vector.extract_strided_slice %8 {offsets = [4, 0], sizes = [1, 8], strides = [1, 1]} : vector<7x8xf32> to vector<1x8xf32>
    %38 = vector.shape_cast %37 : vector<1x8xf32> to vector<8xf32>
    %39 = vector.shape_cast %38 : vector<8xf32> to vector<1x1x8xf32>
    %40 = vector.broadcast %39 : vector<1x1x8xf32> to vector<16x16x8xf32>
    %41 = arith.mulf %36, %40 : vector<16x16x8xf32>
    %42 = arith.addf %35, %41 : vector<16x16x8xf32>
    %43 = vector.extract_strided_slice %6 {offsets = [0, 5, 0], sizes = [16, 16, 8], strides = [1, 1, 1]} : vector<16x22x8xf32> to vector<16x16x8xf32>
    %44 = vector.extract_strided_slice %8 {offsets = [5, 0], sizes = [1, 8], strides = [1, 1]} : vector<7x8xf32> to vector<1x8xf32>
    %45 = vector.shape_cast %44 : vector<1x8xf32> to vector<8xf32>
    %46 = vector.shape_cast %45 : vector<8xf32> to vector<1x1x8xf32>
    %47 = vector.broadcast %46 : vector<1x1x8xf32> to vector<16x16x8xf32>
    %48 = arith.mulf %43, %47 : vector<16x16x8xf32>
    %49 = arith.addf %42, %48 : vector<16x16x8xf32>
    %50 = vector.extract_strided_slice %6 {offsets = [0, 6, 0], sizes = [16, 16, 8], strides = [1, 1, 1]} : vector<16x22x8xf32> to vector<16x16x8xf32>
    %51 = vector.extract_strided_slice %8 {offsets = [6, 0], sizes = [1, 8], strides = [1, 1]} : vector<7x8xf32> to vector<1x8xf32>
    %52 = vector.shape_cast %51 : vector<1x8xf32> to vector<8xf32>
    %53 = vector.shape_cast %52 : vector<8xf32> to vector<1x1x8xf32>
    %54 = vector.broadcast %53 : vector<1x1x8xf32> to vector<16x16x8xf32>
    %55 = arith.mulf %50, %54 : vector<16x16x8xf32>
    %56 = arith.addf %49, %55 : vector<16x16x8xf32>
    %c1_i32 = arith.constant 1 : i32
    %c6_i32 = arith.constant 6 : i32
    %57 = arith.addi %c1_i32, %c6_i32 : i32
    %c1_i32_14 = arith.constant 1 : i32
    %58 = scf.for %arg9 = %c1_i32 to %57 step %c1_i32_14 iter_args(%arg10 = %56) -> (vector<16x16x8xf32>)  : i32 {
      %76 = arith.index_cast %arg9 : i32 to index
      %c0_32 = arith.constant 0 : index
      %c0_33 = arith.constant 0 : index
      %77 = vector.load %arg8[%76, %c0_32, %c0_33] : memref<22x22x8xf32, #tpu.memory_space<vmem>>, vector<16x22x8xf32>
      %78 = arith.index_cast %arg9 : i32 to index
      %c0_34 = arith.constant 0 : index
      %c0_35 = arith.constant 0 : index
      %79 = vector.load %arg3[%78, %c0_34, %c0_35] : memref<7x7x8xf32, #tpu.memory_space<vmem>>, vector<1x7x8xf32>
      %80 = vector.shape_cast %79 : vector<1x7x8xf32> to vector<7x8xf32>
      %81 = vector.extract_strided_slice %77 {offsets = [0, 0, 0], sizes = [16, 16, 8], strides = [1, 1, 1]} : vector<16x22x8xf32> to vector<16x16x8xf32>
      %82 = vector.extract_strided_slice %80 {offsets = [0, 0], sizes = [1, 8], strides = [1, 1]} : vector<7x8xf32> to vector<1x8xf32>
      %83 = vector.shape_cast %82 : vector<1x8xf32> to vector<8xf32>
      %84 = vector.shape_cast %83 : vector<8xf32> to vector<1x1x8xf32>
      %85 = vector.broadcast %84 : vector<1x1x8xf32> to vector<16x16x8xf32>
      %86 = arith.mulf %81, %85 : vector<16x16x8xf32>
      %87 = vector.extract_strided_slice %77 {offsets = [0, 1, 0], sizes = [16, 16, 8], strides = [1, 1, 1]} : vector<16x22x8xf32> to vector<16x16x8xf32>
      %88 = vector.extract_strided_slice %80 {offsets = [1, 0], sizes = [1, 8], strides = [1, 1]} : vector<7x8xf32> to vector<1x8xf32>
      %89 = vector.shape_cast %88 : vector<1x8xf32> to vector<8xf32>
      %90 = vector.shape_cast %89 : vector<8xf32> to vector<1x1x8xf32>
      %91 = vector.broadcast %90 : vector<1x1x8xf32> to vector<16x16x8xf32>
      %92 = arith.mulf %87, %91 : vector<16x16x8xf32>
      %93 = arith.addf %86, %92 : vector<16x16x8xf32>
      %94 = vector.extract_strided_slice %77 {offsets = [0, 2, 0], sizes = [16, 16, 8], strides = [1, 1, 1]} : vector<16x22x8xf32> to vector<16x16x8xf32>
      %95 = vector.extract_strided_slice %80 {offsets = [2, 0], sizes = [1, 8], strides = [1, 1]} : vector<7x8xf32> to vector<1x8xf32>
      %96 = vector.shape_cast %95 : vector<1x8xf32> to vector<8xf32>
      %97 = vector.shape_cast %96 : vector<8xf32> to vector<1x1x8xf32>
      %98 = vector.broadcast %97 : vector<1x1x8xf32> to vector<16x16x8xf32>
      %99 = arith.mulf %94, %98 : vector<16x16x8xf32>
      %100 = arith.addf %93, %99 : vector<16x16x8xf32>
      %101 = vector.extract_strided_slice %77 {offsets = [0, 3, 0], sizes = [16, 16, 8], strides = [1, 1, 1]} : vector<16x22x8xf32> to vector<16x16x8xf32>
      %102 = vector.extract_strided_slice %80 {offsets = [3, 0], sizes = [1, 8], strides = [1, 1]} : vector<7x8xf32> to vector<1x8xf32>
      %103 = vector.shape_cast %102 : vector<1x8xf32> to vector<8xf32>
      %104 = vector.shape_cast %103 : vector<8xf32> to vector<1x1x8xf32>
      %105 = vector.broadcast %104 : vector<1x1x8xf32> to vector<16x16x8xf32>
      %106 = arith.mulf %101, %105 : vector<16x16x8xf32>
      %107 = arith.addf %100, %106 : vector<16x16x8xf32>
      %108 = vector.extract_strided_slice %77 {offsets = [0, 4, 0], sizes = [16, 16, 8], strides = [1, 1, 1]} : vector<16x22x8xf32> to vector<16x16x8xf32>
      %109 = vector.extract_strided_slice %80 {offsets = [4, 0], sizes = [1, 8], strides = [1, 1]} : vector<7x8xf32> to vector<1x8xf32>
      %110 = vector.shape_cast %109 : vector<1x8xf32> to vector<8xf32>
      %111 = vector.shape_cast %110 : vector<8xf32> to vector<1x1x8xf32>
      %112 = vector.broadcast %111 : vector<1x1x8xf32> to vector<16x16x8xf32>
      %113 = arith.mulf %108, %112 : vector<16x16x8xf32>
      %114 = arith.addf %107, %113 : vector<16x16x8xf32>
      %115 = vector.extract_strided_slice %77 {offsets = [0, 5, 0], sizes = [16, 16, 8], strides = [1, 1, 1]} : vector<16x22x8xf32> to vector<16x16x8xf32>
      %116 = vector.extract_strided_slice %80 {offsets = [5, 0], sizes = [1, 8], strides = [1, 1]} : vector<7x8xf32> to vector<1x8xf32>
      %117 = vector.shape_cast %116 : vector<1x8xf32> to vector<8xf32>
      %118 = vector.shape_cast %117 : vector<8xf32> to vector<1x1x8xf32>
      %119 = vector.broadcast %118 : vector<1x1x8xf32> to vector<16x16x8xf32>
      %120 = arith.mulf %115, %119 : vector<16x16x8xf32>
      %121 = arith.addf %114, %120 : vector<16x16x8xf32>
      %122 = vector.extract_strided_slice %77 {offsets = [0, 6, 0], sizes = [16, 16, 8], strides = [1, 1, 1]} : vector<16x22x8xf32> to vector<16x16x8xf32>
      %123 = vector.extract_strided_slice %80 {offsets = [6, 0], sizes = [1, 8], strides = [1, 1]} : vector<7x8xf32> to vector<1x8xf32>
      %124 = vector.shape_cast %123 : vector<1x8xf32> to vector<8xf32>
      %125 = vector.shape_cast %124 : vector<8xf32> to vector<1x1x8xf32>
      %126 = vector.broadcast %125 : vector<1x1x8xf32> to vector<16x16x8xf32>
      %127 = arith.mulf %122, %126 : vector<16x16x8xf32>
      %128 = arith.addf %121, %127 : vector<16x16x8xf32>
      %129 = arith.addf %arg10, %128 : vector<16x16x8xf32>
      scf.yield %129 : vector<16x16x8xf32>
    }
    %c6_i32_15 = arith.constant 6 : i32
    %c0_16 = arith.constant 0 : index
    %c0_17 = arith.constant 0 : index
    %59 = vector.load %arg4[%c0_16, %c0_17] : memref<1x8xf32, #tpu.memory_space<vmem>>, vector<1x8xf32>
    %60 = vector.shape_cast %59 : vector<1x8xf32> to vector<1x1x8xf32>
    %61 = vector.broadcast %60 : vector<1x1x8xf32> to vector<16x16x8xf32>
    %62 = arith.addf %58, %61 : vector<16x16x8xf32>
    %cst_18 = arith.constant 0.000000e+00 : f32
    %63 = vector.broadcast %cst_18 : f32 to vector<16x16x8xf32>
    %64 = arith.maximumf %62, %63 : vector<16x16x8xf32>
    %65 = vector.shape_cast %64 : vector<16x16x8xf32> to vector<256x8xf32>
    %66 = arith.truncf %65 : vector<256x8xf32> to vector<256x8xbf16>
    %c0_19 = arith.constant 0 : index
    %c0_20 = arith.constant 0 : index
    %67 = vector.load %arg5[%c0_19, %c0_20] : memref<8x4xbf16, #tpu.memory_space<vmem>>, vector<8x4xbf16>
    %cst_21 = arith.constant dense<0.000000e+00> : vector<256x4xf32>
    %68 = tpu.matmul %66, %67, %cst_21 {dimension_numbers = #tpu.dot_dimension_numbers<[1], [0], [0], [1], [0, 0, 1, 1], [], []>} : vector<256x8xbf16>, vector<8x4xbf16>, vector<256x4xf32> -> vector<256x4xf32>
    %c0_22 = arith.constant 0 : index
    %c0_23 = arith.constant 0 : index
    %69 = vector.load %arg6[%c0_22, %c0_23] : memref<1x4xf32, #tpu.memory_space<vmem>>, vector<1x4xf32>
    %70 = vector.broadcast %69 : vector<1x4xf32> to vector<256x4xf32>
    %71 = arith.addf %68, %70 : vector<256x4xf32>
    %72 = vector.shape_cast %71 : vector<256x4xf32> to vector<1x16x16x4xf32>
    %c0_24 = arith.constant 0 : index
    %c0_25 = arith.constant 0 : index
    %c0_26 = arith.constant 0 : index
    %c0_27 = arith.constant 0 : index
    %73 = vector.load %arg2[%c0_24, %c0_25, %c0_26, %c0_27] : memref<1x16x16x4xf32, #tpu.memory_space<vmem>>, vector<1x16x16x4xf32>
    %74 = arith.addf %72, %73 : vector<1x16x16x4xf32>
    %c0_28 = arith.constant 0 : index
    %c0_29 = arith.constant 0 : index
    %c0_30 = arith.constant 0 : index
    %c0_31 = arith.constant 0 : index
    %75 = vector.load %arg7[%c0_28, %c0_29, %c0_30, %c0_31] : memref<1x16x16x4xf32, #tpu.memory_space<vmem>>, vector<1x16x16x4xf32>
    tpu.vector_store %arg7[%c0_28, %c0_29, %c0_30, %c0_31], %74 {strides = array<i32>} : memref<1x16x16x4xf32, #tpu.memory_space<vmem>>, vector<1x16x16x4xf32>,
    return
  }
  func.func @transform_0(%arg0: i32) -> (i32, i32, i32, i32) {
    %c0_i32 = arith.constant 0 : i32
    %c0_i32_0 = arith.constant 0 : i32
    %c0_i32_1 = arith.constant 0 : i32
    %c0_i32_2 = arith.constant 0 : i32
    return %arg0, %c0_i32, %c0_i32_0, %c0_i32_1 : i32, i32, i32, i32
  }
  func.func @transform_1(%arg0: i32) -> (i32, i32, i32, i32) {
    %c0_i32 = arith.constant 0 : i32
    %c0_i32_0 = arith.constant 0 : i32
    %c0_i32_1 = arith.constant 0 : i32
    %c0_i32_2 = arith.constant 0 : i32
    return %arg0, %c0_i32, %c0_i32_0, %c0_i32_1 : i32, i32, i32, i32
  }
  func.func @transform_2(%arg0: i32) -> (i32, i32, i32) {
    %c0_i32 = arith.constant 0 : i32
    %c0_i32_0 = arith.constant 0 : i32
    %c0_i32_1 = arith.constant 0 : i32
    %c0_i32_2 = arith.constant 0 : i32
    return %c0_i32, %c0_i32_0, %c0_i32_1 : i32, i32, i32
  }
  func.func @transform_3(%arg0: i32) -> (i32, i32) {
    %c0_i32 = arith.constant 0 : i32
    %c0_i32_0 = arith.constant 0 : i32
    %c0_i32_1 = arith.constant 0 : i32
    return %c0_i32, %c0_i32_0 : i32, i32
  }
  func.func @transform_4(%arg0: i32) -> (i32, i32) {
    %c0_i32 = arith.constant 0 : i32
    %c0_i32_0 = arith.constant 0 : i32
    %c0_i32_1 = arith.constant 0 : i32
    return %c0_i32, %c0_i32_0 : i32, i32
  }
  func.func @transform_5(%arg0: i32) -> (i32, i32) {
    %c0_i32 = arith.constant 0 : i32
    %c0_i32_0 = arith.constant 0 : i32
    %c0_i32_1 = arith.constant 0 : i32
    return %c0_i32, %c0_i32_0 : i32, i32
  }
  func.func @transform_6(%arg0: i32) -> (i32, i32, i32, i32) {
    %c0_i32 = arith.constant 0 : i32
    %c0_i32_0 = arith.constant 0 : i32
    %c0_i32_1 = arith.constant 0 : i32
    %c0_i32_2 = arith.constant 0 : i32
    return %arg0, %c0_i32, %c0_i32_0, %c0_i32_1 : i32, i32, i32, i32
  }
}

</mosaic_0001>

<bundles_post_ra>
// kernel: replk_block_forward.2
= control target key start
LH: loop header
LB: loop body
LE: loop exit
PB: predicated region body
PF: predicated region fallthrough
CT: control target
= control target key end

     0   :  { %vm213_vm0 = vcmask 1041408   ;;  %vm116_vm1 = vcmask 31744   ;;  %vm514_vm2 = vcmask 60416   ;;  %s1191_s1 = inlined_call_operand.vmem [shape: bf16[4,8], index: 1, kind: input, shape index: {}]   ;;  %s1192_s0 = inlined_call_operand.vmem [shape: f32[512,4], index: 0, kind: input, shape index: {}]   ;;  %s1193_s2 = inlined_call_operand.vmem [shape: f32[1,8], index: 2, kind: input, shape index: {}]   ;;  %s1194_s3 = inlined_call_operand.vmem [shape: bf16[512,8], index: 3, kind: output, shape index: {}]  }
   0x1   :  { %v111_v0 = vld [vmem:[%s1191_s1] sm:$0x3]  ;;  %v16_v2 = vld [vmem:[%s1192_s0 + $0x8] sm:$0xff]  ;;  %v17_v14 = vld [vmem:[%s1192_s0 + $0x10] sm:$0xff] }
   0x2   :  { %v15_v1 = vld [vmem:[%s1192_s0] sm:$0xff]  ;;  %v215_v3 = vsel %vm213_vm0, %v111_v0, 0  ;;  %v32_v6 = vld [vmem:[%s1192_s0 + $0x88] sm:$0xff]  ;;  %v18_v15 = vld [vmem:[%s1192_s0 + $0x18] sm:$0xff] }
   0x3   :  { %v79_v4 = vpack.c.bf16 %v16_v2, %v15_v1  ;;  %v31_v5 = vld [vmem:[%s1192_s0 + $0x80] sm:$0xff]  ;;  %224 = vmatpush.bf16.msra.mxu0 %v215_v3  ;;  %615 = vmatpush.bf16.msra.mxu1 %v215_v3  ;;  %v48_v9 = vld [vmem:[%s1192_s0 + $0x108] sm:$0xff]  ;;  %v33_v16 = vld [vmem:[%s1192_s0 + $0x90] sm:$0xff]  ;;  %v80_v22 = vpack.c.bf16 %v18_v15, %v17_v14 }
   0x4   :  { %v47_v7 = vld [vmem:[%s1192_s0 + $0x100] sm:$0xff]  ;;  %v87_v8 = vpack.c.bf16 %v32_v6, %v31_v5  ;;  %v64_v11 = vld [vmem:[%s1192_s0 + $0x188] sm:$0xff]  ;;  %616 = vmatpush.bf16.msra.mxu2 %v215_v3  ;;  %617 = vmatpush.bf16.msra.mxu3 %v215_v3  ;;  %v34_v17 = vld [vmem:[%s1192_s0 + $0x98] sm:$0xff] }
   0x5   :  { %v63_v10 = vld [vmem:[%s1192_s0 + $0x180] sm:$0xff]  ;;  %v95_v12 = vpack.c.bf16 %v48_v9, %v47_v7  ;;  %v49_v18 = vld [vmem:[%s1192_s0 + $0x110] sm:$0xff]  ;;  %v50_v19 = vld [vmem:[%s1192_s0 + $0x118] sm:$0xff]  ;;  %v88_v23 = vpack.c.bf16 %v34_v17, %v33_v16 }
   0x6   :  { %v103_v13 = vpack.c.bf16 %v64_v11, %v63_v10  ;;  %583 = vmatmul.msk.bf16.vlgmr.msra.gmra.mxu0 %vm116_vm1, %v79_v4  ;;  %591 = vmatmul.msk.bf16.vlgmr.msra.gmra.mxu1 %vm116_vm1, %v87_v8  ;;  %v65_v20 = vld [vmem:[%s1192_s0 + $0x190] sm:$0xff]  ;;  %v66_v21 = vld [vmem:[%s1192_s0 + $0x198] sm:$0xff]  ;;  %v96_v24 = vpack.c.bf16 %v50_v19, %v49_v18  ;;  %v19_v26 = vld [vmem:[%s1192_s0 + $0x20] sm:$0xff] }
   0x7   :  { %599 = vmatmul.msk.bf16.vlgmr.msra.gmra.mxu2 %vm116_vm1, %v95_v12  ;;  %v104_v25 = vpack.c.bf16 %v66_v21, %v65_v20  ;;  %v20_v27 = vld [vmem:[%s1192_s0 + $0x28] sm:$0xff]  ;;  %v35_v28 = vld [vmem:[%s1192_s0 + $0xa0] sm:$0xff]  ;;  %v21_v38 = vld [vmem:[%s1192_s0 + $0x30] sm:$0xff] }
   0x8   :  { %607 = vmatmul.msk.bf16.vlgmr.msra.gmra.mxu3 %vm116_vm1, %v103_v13  ;;  %v36_v29 = vld [vmem:[%s1192_s0 + $0xa8] sm:$0xff]  ;;  %v51_v30 = vld [vmem:[%s1192_s0 + $0x120] sm:$0xff]  ;;  %v81_v34 = vpack.c.bf16 %v20_v27, %v19_v26  ;;  %v22_v39 = vld [vmem:[%s1192_s0 + $0x38] sm:$0xff] }
   0x9   :  { %v52_v31 = vld [vmem:[%s1192_s0 + $0x128] sm:$0xff]  ;;  %v67_v32 = vld [vmem:[%s1192_s0 + $0x1a0] sm:$0xff]  ;;  %v89_v35 = vpack.c.bf16 %v36_v29, %v35_v28  ;;  %v37_v40 = vld [vmem:[%s1192_s0 + $0xb0] sm:$0xff]  ;;  %v82_v46 = vpack.c.bf16 %v22_v39, %v21_v38 }
   0xa   :  { %v68_v33 = vld [vmem:[%s1192_s0 + $0x1a8] sm:$0xff]  ;;  %v97_v36 = vpack.c.bf16 %v52_v31, %v51_v30  ;;  %v38_v41 = vld [vmem:[%s1192_s0 + $0xb8] sm:$0xff]  ;;  %v53_v42 = vld [vmem:[%s1192_s0 + $0x130] sm:$0xff] }
   0xb   :  { %v105_v37 = vpack.c.bf16 %v68_v33, %v67_v32  ;;  %v54_v43 = vld [vmem:[%s1192_s0 + $0x138] sm:$0xff]  ;;  %v69_v44 = vld [vmem:[%s1192_s0 + $0x1b0] sm:$0xff]  ;;  %v90_v47 = vpack.c.bf16 %v38_v41, %v37_v40  ;;  %v23_v50 = vld [vmem:[%s1192_s0 + $0x40] sm:$0xff] }
   0xc   :  { %v70_v45 = vld [vmem:[%s1192_s0 + $0x1b8] sm:$0xff]  ;;  %v98_v48 = vpack.c.bf16 %v54_v43, %v53_v42  ;;  %v24_v51 = vld [vmem:[%s1192_s0 + $0x48] sm:$0xff]  ;;  %v39_v52 = vld [vmem:[%s1192_s0 + $0xc0] sm:$0xff] }
   0xd   :  { %v106_v49 = vpack.c.bf16 %v70_v45, %v69_v44  ;;  %v40_v53 = vld [vmem:[%s1192_s0 + $0xc8] sm:$0xff]  ;;  %v55_v54 = vld [vmem:[%s1192_s0 + $0x140] sm:$0xff]  ;;  %v83_v58 = vpack.c.bf16 %v24_v51, %v23_v50  ;;  %v25_v62 = vld [vmem:[%s1192_s0 + $0x50] sm:$0xff] }
   0xe   :  { %v56_v55 = vld [vmem:[%s1192_s0 + $0x148] sm:$0xff]  ;;  %v71_v56 = vld [vmem:[%s1192_s0 + $0x1c0] sm:$0xff]  ;;  %v91_v59 = vpack.c.bf16 %v40_v53, %v39_v52  ;;  %v26_v63 = vld [vmem:[%s1192_s0 + $0x58] sm:$0xff] }
   0xf   :  { %v72_v57 = vld [vmem:[%s1192_s0 + $0x1c8] sm:$0xff]  ;;  %v99_v60 = vpack.c.bf16 %v56_v55, %v55_v54  ;;  %v41_v0 = vld [vmem:[%s1192_s0 + $0xd0] sm:$0xff]  ;;  %v42_v1 = vld [vmem:[%s1192_s0 + $0xd8] sm:$0xff]  ;;  %v84_v6 = vpack.c.bf16 %v26_v63, %v25_v62 }
  0x10   :  { %v107_v61 = vpack.c.bf16 %v72_v57, %v71_v56  ;;  %v57_v2 = vld [vmem:[%s1192_s0 + $0x150] sm:$0xff]  ;;  %v58_v3 = vld [vmem:[%s1192_s0 + $0x158] sm:$0xff]  ;;  %v92_v7 = vpack.c.bf16 %v42_v1, %v41_v0  ;;  %v27_v10 = vld [vmem:[%s1192_s0 + $0x60] sm:$0xff] }
  0x11   :  { %v73_v4 = vld [vmem:[%s1192_s0 + $0x1d0] sm:$0xff]  ;;  %v74_v5 = vld [vmem:[%s1192_s0 + $0x1d8] sm:$0xff]  ;;  %v100_v8 = vpack.c.bf16 %v58_v3, %v57_v2  ;;  %v28_v11 = vld [vmem:[%s1192_s0 + $0x68] sm:$0xff] }
  0x12   :  { %v108_v9 = vpack.c.bf16 %v74_v5, %v73_v4  ;;  %v43_v12 = vld [vmem:[%s1192_s0 + $0xe0] sm:$0xff]  ;;  %v44_v13 = vld [vmem:[%s1192_s0 + $0xe8] sm:$0xff]  ;;  %v85_v18 = vpack.c.bf16 %v28_v11, %v27_v10  ;;  %v61_v26 = vld [vmem:[%s1192_s0 + $0x170] sm:$0xff] }
  0x13   :  { %v59_v14 = vld [vmem:[%s1192_s0 + $0x160] sm:$0xff]  ;;  %v60_v15 = vld [vmem:[%s1192_s0 + $0x168] sm:$0xff]  ;;  %v93_v19 = vpack.c.bf16 %v44_v13, %v43_v12  ;;  %v62_v27 = vld [vmem:[%s1192_s0 + $0x178] sm:$0xff] }
  0x14   :  { %v75_v16 = vld [vmem:[%s1192_s0 + $0x1e0] sm:$0xff]  ;;  %v76_v17 = vld [vmem:[%s1192_s0 + $0x1e8] sm:$0xff]  ;;  %v101_v20 = vpack.c.bf16 %v60_v15, %v59_v14  ;;  %v77_v28 = vld [vmem:[%s1192_s0 + $0x1f0] sm:$0xff]  ;;  %v102_v32 = vpack.c.bf16 %v62_v27, %v61_v26 }
  0x15   :  { %v109_v21 = vpack.c.bf16 %v76_v17, %v75_v16  ;;  %v78_v29 = vld [vmem:[%s1192_s0 + $0x1f8] sm:$0xff] }
  0x16   :  { %584 = vmatmul.msk.bf16.gmra.mxu0 %vm116_vm1, %v80_v22  ;;  %592 = vmatmul.msk.bf16.gmra.mxu1 %vm116_vm1, %v88_v23  ;;  %v29_v22 = vld [vmem:[%s1192_s0 + $0x70] sm:$0xff]  ;;  %v30_v23 = vld [vmem:[%s1192_s0 + $0x78] sm:$0xff]  ;;  %v110_v33 = vpack.c.bf16 %v78_v29, %v77_v28 }
  0x17   :  { %600 = vmatmul.msk.bf16.gmra.mxu2 %vm116_vm1, %v96_v24  ;;  %v45_v24 = vld [vmem:[%s1192_s0 + $0xf0] sm:$0xff]  ;;  %v86_v30 = vpack.c.bf16 %v30_v23, %v29_v22 }
  0x18   :  { %608 = vmatmul.msk.bf16.gmra.mxu3 %vm116_vm1, %v104_v25  ;;  %v46_v25 = vld [vmem:[%s1192_s0 + $0xf8] sm:$0xff] }
  0x19   :  { %v94_v31 = vpack.c.bf16 %v46_v25, %v45_v24 }
  0x26   :  { %585 = vmatmul.msk.bf16.gmra.mxu0 %vm116_vm1, %v81_v34  ;;  %593 = vmatmul.msk.bf16.gmra.mxu1 %vm116_vm1, %v89_v35  ;;  %v869_v34 = vld [vmem:[%s1193_s2] ss:$0 sm:$0xff] }
  0x27   :  { %601 = vmatmul.msk.bf16.gmra.mxu2 %vm116_vm1, %v97_v36 }
  0x28   :  { %609 = vmatmul.msk.bf16.gmra.mxu3 %vm116_vm1, %v105_v37 }
  0x36   :  { %586 = vmatmul.msk.bf16.gmra.mxu0 %vm116_vm1, %v82_v46  ;;  %594 = vmatmul.msk.bf16.gmra.mxu1 %vm116_vm1, %v90_v47 }
  0x37   :  { %602 = vmatmul.msk.bf16.gmra.mxu2 %vm116_vm1, %v98_v48 }
  0x38   :  { %610 = vmatmul.msk.bf16.gmra.mxu3 %vm116_vm1, %v106_v49 }
  0x46   :  { %587 = vmatmul.msk.bf16.gmra.mxu0 %vm116_vm1, %v83_v58  ;;  %595 = vmatmul.msk.bf16.gmra.mxu1 %vm116_vm1, %v91_v59 }
  0x47   :  { %603 = vmatmul.msk.bf16.gmra.mxu2 %vm116_vm1, %v99_v60 }
  0x48   :  { %611 = vmatmul.msk.bf16.gmra.mxu3 %vm116_vm1, %v107_v61 }
  0x56   :  { %588 = vmatmul.msk.bf16.gmra.mxu0 %vm116_vm1, %v84_v6  ;;  %596 = vmatmul.msk.bf16.gmra.mxu1 %vm116_vm1, %v92_v7 }
  0x57   :  { %604 = vmatmul.msk.bf16.gmra.mxu2 %vm116_vm1, %v100_v8 }
  0x58   :  { %612 = vmatmul.msk.bf16.gmra.mxu3 %vm116_vm1, %v108_v9 }
  0x66   :  { %589 = vmatmul.msk.bf16.gmra.mxu0 %vm116_vm1, %v85_v18  ;;  %597 = vmatmul.msk.bf16.gmra.mxu1 %vm116_vm1, %v93_v19 }
  0x67   :  { %605 = vmatmul.msk.bf16.gmra.mxu2 %vm116_vm1, %v101_v20 }
  0x68   :  { %613 = vmatmul.msk.bf16.gmra.mxu3 %vm116_vm1, %v109_v21 }
  0x76   :  { %590 = vmatmul.msk.bf16.gmra.mxu0 %vm116_vm1, %v86_v30  ;;  %598 = vmatmul.msk.bf16.gmra.mxu1 %vm116_vm1, %v94_v31 }
  0x77   :  { %606 = vmatmul.msk.bf16.gmra.mxu2 %vm116_vm1, %v102_v32 }
  0x78   :  { %614 = vmatmul.msk.bf16.gmra.mxu3 %vm116_vm1, %v110_v33 }
  0x83   :  { %v226_v35 = vpop.f32.mrf.mxu0  ;;  %v266_v36 = vpop.f32.mrf.mxu1 }
  0x84   :  { %v227_v37 = vadd.f32 %v869_v34, %v226_v35  ;;  %v267_v38 = vadd.f32 %v869_v34, %v266_v36 }
  0x86   :  { %v386_v39 = vmax.f32 %v227_v37, 0.0  ;;  %v402_v40 = vmax.f32 %v267_v38, 0.0 }
  0x88   :  { %v450_v41 = vpack.c.bf16 %v386_v39, %v386_v39  ;;  %v466_v42 = vpack.c.bf16 %v402_v40, %v402_v40 }
  0x8a   :  { %515 = vst.msk [vmem:[%s1194_s3] sm:$0xf] %vm514_vm2, %v450_v41  ;;  %v306_v43 = vpop.f32.mrf.mxu2 }
  0x8b   :  { %v346_v44 = vpop.f32.mrf.mxu3  ;;  %531 = vst.msk [vmem:[%s1194_s3 + $0x40] sm:$0xf] %vm514_vm2, %v466_v42  ;;  %v307_v45 = vadd.f32 %v869_v34, %v306_v43  ;;  %v228_v47 = vpop.f32.mrf.mxu0 }
  0x8c   :  { %v347_v46 = vadd.f32 %v869_v34, %v346_v44  ;;  %v268_v48 = vpop.f32.mrf.mxu1  ;;  %v229_v49 = vadd.f32 %v869_v34, %v228_v47 }
  0x8d   :  { %v269_v50 = vadd.f32 %v869_v34, %v268_v48  ;;  %v418_v51 = vmax.f32 %v307_v45, 0.0 }
  0x8e   :  { %v434_v52 = vmax.f32 %v347_v46, 0.0  ;;  %v387_v53 = vmax.f32 %v229_v49, 0.0 }
  0x8f   :  { %v403_v54 = vmax.f32 %v269_v50, 0.0  ;;  %v482_v55 = vpack.c.bf16 %v418_v51, %v418_v51 }
  0x90   :  { %v498_v56 = vpack.c.bf16 %v434_v52, %v434_v52  ;;  %v451_v57 = vpack.c.bf16 %v387_v53, %v387_v53 }
  0x91   :  { %v467_v58 = vpack.c.bf16 %v403_v54, %v403_v54  ;;  %547 = vst.msk [vmem:[%s1194_s3 + $0x80] sm:$0xf] %vm514_vm2, %v482_v55 }
  0x92   :  { %563 = vst.msk [vmem:[%s1194_s3 + $0xc0] sm:$0xf] %vm514_vm2, %v498_v56  ;;  %v308_v59 = vpop.f32.mrf.mxu2 }
  0x93   :  { %v348_v60 = vpop.f32.mrf.mxu3  ;;  %516 = vst.msk [vmem:[%s1194_s3 + $0x4] sm:$0xf] %vm514_vm2, %v451_v57  ;;  %v309_v61 = vadd.f32 %v869_v34, %v308_v59  ;;  %v231_v63 = vpop.f32.mrf.mxu0 }
  0x94   :  { %v349_v62 = vadd.f32 %v869_v34, %v348_v60  ;;  %v271_v0 = vpop.f32.mrf.mxu1  ;;  %532 = vst.msk [vmem:[%s1194_s3 + $0x44] sm:$0xf] %vm514_vm2, %v467_v58  ;;  %v232_v1 = vadd.f32 %v869_v34, %v231_v63 }
  0x95   :  { %v272_v2 = vadd.f32 %v869_v34, %v271_v0  ;;  %v419_v3 = vmax.f32 %v309_v61, 0.0 }
  0x96   :  { %v435_v4 = vmax.f32 %v349_v62, 0.0  ;;  %v388_v5 = vmax.f32 %v232_v1, 0.0 }
  0x97   :  { %v404_v6 = vmax.f32 %v272_v2, 0.0  ;;  %v483_v7 = vpack.c.bf16 %v419_v3, %v419_v3 }
  0x98   :  { %v499_v8 = vpack.c.bf16 %v435_v4, %v435_v4  ;;  %v452_v9 = vpack.c.bf16 %v388_v5, %v388_v5 }
  0x99   :  { %v468_v10 = vpack.c.bf16 %v404_v6, %v404_v6  ;;  %548 = vst.msk [vmem:[%s1194_s3 + $0x84] sm:$0xf] %vm514_vm2, %v483_v7 }
  0x9a   :  { %564 = vst.msk [vmem:[%s1194_s3 + $0xc4] sm:$0xf] %vm514_vm2, %v499_v8  ;;  %v311_v11 = vpop.f32.mrf.mxu2 }
  0x9b   :  { %v351_v12 = vpop.f32.mrf.mxu3  ;;  %517 = vst.msk [vmem:[%s1194_s3 + $0x8] sm:$0xf] %vm514_vm2, %v452_v9  ;;  %v312_v13 = vadd.f32 %v869_v34, %v311_v11  ;;  %v233_v15 = vpop.f32.mrf.mxu0 }
  0x9c   :  { %v352_v14 = vadd.f32 %v869_v34, %v351_v12  ;;  %v273_v16 = vpop.f32.mrf.mxu1  ;;  %533 = vst.msk [vmem:[%s1194_s3 + $0x48] sm:$0xf] %vm514_vm2, %v468_v10  ;;  %v234_v17 = vadd.f32 %v869_v34, %v233_v15 }
  0x9d   :  { %v274_v18 = vadd.f32 %v869_v34, %v273_v16  ;;  %v420_v19 = vmax.f32 %v312_v13, 0.0 }
  0x9e   :  { %v436_v20 = vmax.f32 %v352_v14, 0.0  ;;  %v389_v21 = vmax.f32 %v234_v17, 0.0 }
  0x9f   :  { %v405_v22 = vmax.f32 %v274_v18, 0.0  ;;  %v484_v23 = vpack.c.bf16 %v420_v19, %v420_v19 }
  0xa0   :  { %v500_v24 = vpack.c.bf16 %v436_v20, %v436_v20  ;;  %v453_v25 = vpack.c.bf16 %v389_v21, %v389_v21 }
  0xa1   :  { %v469_v26 = vpack.c.bf16 %v405_v22, %v405_v22  ;;  %549 = vst.msk [vmem:[%s1194_s3 + $0x88] sm:$0xf] %vm514_vm2, %v484_v23 }
  0xa2   :  { %565 = vst.msk [vmem:[%s1194_s3 + $0xc8] sm:$0xf] %vm514_vm2, %v500_v24  ;;  %v313_v27 = vpop.f32.mrf.mxu2 }
  0xa3   :  { %v353_v28 = vpop.f32.mrf.mxu3  ;;  %518 = vst.msk [vmem:[%s1194_s3 + $0xc] sm:$0xf] %vm514_vm2, %v453_v25  ;;  %v314_v29 = vadd.f32 %v869_v34, %v313_v27  ;;  %v236_v31 = vpop.f32.mrf.mxu0 }
  0xa4   :  { %v354_v30 = vadd.f32 %v869_v34, %v353_v28  ;;  %v276_v32 = vpop.f32.mrf.mxu1  ;;  %534 = vst.msk [vmem:[%s1194_s3 + $0x4c] sm:$0xf] %vm514_vm2, %v469_v26  ;;  %v237_v33 = vadd.f32 %v869_v34, %v236_v31 }
  0xa5   :  { %v277_v35 = vadd.f32 %v869_v34, %v276_v32  ;;  %v421_v36 = vmax.f32 %v314_v29, 0.0 }
  0xa6   :  { %v437_v37 = vmax.f32 %v354_v30, 0.0  ;;  %v390_v38 = vmax.f32 %v237_v33, 0.0 }
  0xa7   :  { %v406_v39 = vmax.f32 %v277_v35, 0.0  ;;  %v485_v40 = vpack.c.bf16 %v421_v36, %v421_v36 }
  0xa8   :  { %v501_v41 = vpack.c.bf16 %v437_v37, %v437_v37  ;;  %v454_v42 = vpack.c.bf16 %v390_v38, %v390_v38 }
  0xa9   :  { %v470_v43 = vpack.c.bf16 %v406_v39, %v406_v39  ;;  %550 = vst.msk [vmem:[%s1194_s3 + $0x8c] sm:$0xf] %vm514_vm2, %v485_v40 }
  0xaa   :  { %566 = vst.msk [vmem:[%s1194_s3 + $0xcc] sm:$0xf] %vm514_vm2, %v501_v41  ;;  %v316_v44 = vpop.f32.mrf.mxu2 }
  0xab   :  { %v356_v45 = vpop.f32.mrf.mxu3  ;;  %519 = vst.msk [vmem:[%s1194_s3 + $0x10] sm:$0xf] %vm514_vm2, %v454_v42  ;;  %v317_v46 = vadd.f32 %v869_v34, %v316_v44  ;;  %v238_v48 = vpop.f32.mrf.mxu0 }
  0xac   :  { %v357_v47 = vadd.f32 %v869_v34, %v356_v45  ;;  %v278_v49 = vpop.f32.mrf.mxu1  ;;  %535 = vst.msk [vmem:[%s1194_s3 + $0x50] sm:$0xf] %vm514_vm2, %v470_v43  ;;  %v239_v50 = vadd.f32 %v869_v34, %v238_v48 }
  0xad   :  { %v279_v51 = vadd.f32 %v869_v34, %v278_v49  ;;  %v422_v52 = vmax.f32 %v317_v46, 0.0 }
  0xae   :  { %v438_v53 = vmax.f32 %v357_v47, 0.0  ;;  %v391_v54 = vmax.f32 %v239_v50, 0.0 }
  0xaf   :  { %v407_v55 = vmax.f32 %v279_v51, 0.0  ;;  %v486_v56 = vpack.c.bf16 %v422_v52, %v422_v52 }
  0xb0   :  { %v502_v57 = vpack.c.bf16 %v438_v53, %v438_v53  ;;  %v455_v58 = vpack.c.bf16 %v391_v54, %v391_v54 }
  0xb1   :  { %v471_v59 = vpack.c.bf16 %v407_v55, %v407_v55  ;;  %551 = vst.msk [vmem:[%s1194_s3 + $0x90] sm:$0xf] %vm514_vm2, %v486_v56 }
  0xb2   :  { %567 = vst.msk [vmem:[%s1194_s3 + $0xd0] sm:$0xf] %vm514_vm2, %v502_v57  ;;  %v318_v60 = vpop.f32.mrf.mxu2 }
  0xb3   :  { %v358_v61 = vpop.f32.mrf.mxu3  ;;  %520 = vst.msk [vmem:[%s1194_s3 + $0x14] sm:$0xf] %vm514_vm2, %v455_v58  ;;  %v319_v62 = vadd.f32 %v869_v34, %v318_v60  ;;  %v241_v0 = vpop.f32.mrf.mxu0 }
  0xb4   :  { %v359_v63 = vadd.f32 %v869_v34, %v358_v61  ;;  %v281_v1 = vpop.f32.mrf.mxu1  ;;  %536 = vst.msk [vmem:[%s1194_s3 + $0x54] sm:$0xf] %vm514_vm2, %v471_v59  ;;  %v242_v2 = vadd.f32 %v869_v34, %v241_v0 }
  0xb5   :  { %v282_v3 = vadd.f32 %v869_v34, %v281_v1  ;;  %v423_v4 = vmax.f32 %v319_v62, 0.0 }
  0xb6   :  { %v439_v5 = vmax.f32 %v359_v63, 0.0  ;;  %v392_v6 = vmax.f32 %v242_v2, 0.0 }
  0xb7   :  { %v408_v7 = vmax.f32 %v282_v3, 0.0  ;;  %v487_v8 = vpack.c.bf16 %v423_v4, %v423_v4 }
  0xb8   :  { %v503_v9 = vpack.c.bf16 %v439_v5, %v439_v5  ;;  %v456_v10 = vpack.c.bf16 %v392_v6, %v392_v6 }
  0xb9   :  { %v472_v11 = vpack.c.bf16 %v408_v7, %v408_v7  ;;  %552 = vst.msk [vmem:[%s1194_s3 + $0x94] sm:$0xf] %vm514_vm2, %v487_v8 }
  0xba   :  { %568 = vst.msk [vmem:[%s1194_s3 + $0xd4] sm:$0xf] %vm514_vm2, %v503_v9  ;;  %v321_v12 = vpop.f32.mrf.mxu2 }
  0xbb   :  { %v361_v13 = vpop.f32.mrf.mxu3  ;;  %521 = vst.msk [vmem:[%s1194_s3 + $0x18] sm:$0xf] %vm514_vm2, %v456_v10  ;;  %v322_v14 = vadd.f32 %v869_v34, %v321_v12  ;;  %v243_v16 = vpop.f32.mrf.mxu0 }
  0xbc   :  { %v362_v15 = vadd.f32 %v869_v34, %v361_v13  ;;  %v283_v17 = vpop.f32.mrf.mxu1  ;;  %537 = vst.msk [vmem:[%s1194_s3 + $0x58] sm:$0xf] %vm514_vm2, %v472_v11  ;;  %v244_v18 = vadd.f32 %v869_v34, %v243_v16 }
  0xbd   :  { %v284_v19 = vadd.f32 %v869_v34, %v283_v17  ;;  %v424_v20 = vmax.f32 %v322_v14, 0.0 }
  0xbe   :  { %v440_v21 = vmax.f32 %v362_v15, 0.0  ;;  %v393_v22 = vmax.f32 %v244_v18, 0.0 }
  0xbf   :  { %v409_v23 = vmax.f32 %v284_v19, 0.0  ;;  %v488_v24 = vpack.c.bf16 %v424_v20, %v424_v20 }
  0xc0   :  { %v504_v25 = vpack.c.bf16 %v440_v21, %v440_v21  ;;  %v457_v26 = vpack.c.bf16 %v393_v22, %v393_v22 }
  0xc1   :  { %v473_v27 = vpack.c.bf16 %v409_v23, %v409_v23  ;;  %553 = vst.msk [vmem:[%s1194_s3 + $0x98] sm:$0xf] %vm514_vm2, %v488_v24 }
  0xc2   :  { %569 = vst.msk [vmem:[%s1194_s3 + $0xd8] sm:$0xf] %vm514_vm2, %v504_v25  ;;  %v323_v28 = vpop.f32.mrf.mxu2 }
  0xc3   :  { %v363_v29 = vpop.f32.mrf.mxu3  ;;  %522 = vst.msk [vmem:[%s1194_s3 + $0x1c] sm:$0xf] %vm514_vm2, %v457_v26  ;;  %v324_v30 = vadd.f32 %v869_v34, %v323_v28  ;;  %v246_v32 = vpop.f32.mrf.mxu0 }
  0xc4   :  { %v364_v31 = vadd.f32 %v869_v34, %v363_v29  ;;  %v286_v33 = vpop.f32.mrf.mxu1  ;;  %538 = vst.msk [vmem:[%s1194_s3 + $0x5c] sm:$0xf] %vm514_vm2, %v473_v27  ;;  %v247_v35 = vadd.f32 %v869_v34, %v246_v32 }
  0xc5   :  { %v287_v36 = vadd.f32 %v869_v34, %v286_v33  ;;  %v425_v37 = vmax.f32 %v324_v30, 0.0 }
  0xc6   :  { %v441_v38 = vmax.f32 %v364_v31, 0.0  ;;  %v394_v39 = vmax.f32 %v247_v35, 0.0 }
  0xc7   :  { %v410_v40 = vmax.f32 %v287_v36, 0.0  ;;  %v489_v41 = vpack.c.bf16 %v425_v37, %v425_v37 }
  0xc8   :  { %v505_v42 = vpack.c.bf16 %v441_v38, %v441_v38  ;;  %v458_v43 = vpack.c.bf16 %v394_v39, %v394_v39 }
  0xc9   :  { %v474_v44 = vpack.c.bf16 %v410_v40, %v410_v40  ;;  %554 = vst.msk [vmem:[%s1194_s3 + $0x9c] sm:$0xf] %vm514_vm2, %v489_v41 }
  0xca   :  { %570 = vst.msk [vmem:[%s1194_s3 + $0xdc] sm:$0xf] %vm514_vm2, %v505_v42  ;;  %v326_v45 = vpop.f32.mrf.mxu2 }
  0xcb   :  { %v366_v46 = vpop.f32.mrf.mxu3  ;;  %523 = vst.msk [vmem:[%s1194_s3 + $0x20] sm:$0xf] %vm514_vm2, %v458_v43  ;;  %v327_v47 = vadd.f32 %v869_v34, %v326_v45  ;;  %v248_v49 = vpop.f32.mrf.mxu0 }
  0xcc   :  { %v367_v48 = vadd.f32 %v869_v34, %v366_v46  ;;  %v288_v50 = vpop.f32.mrf.mxu1  ;;  %539 = vst.msk [vmem:[%s1194_s3 + $0x60] sm:$0xf] %vm514_vm2, %v474_v44  ;;  %v249_v51 = vadd.f32 %v869_v34, %v248_v49 }
  0xcd   :  { %v289_v52 = vadd.f32 %v869_v34, %v288_v50  ;;  %v426_v53 = vmax.f32 %v327_v47, 0.0 }
  0xce   :  { %v442_v54 = vmax.f32 %v367_v48, 0.0  ;;  %v395_v55 = vmax.f32 %v249_v51, 0.0 }
  0xcf   :  { %v411_v56 = vmax.f32 %v289_v52, 0.0  ;;  %v490_v57 = vpack.c.bf16 %v426_v53, %v426_v53 }
  0xd0   :  { %v506_v58 = vpack.c.bf16 %v442_v54, %v442_v54  ;;  %v459_v59 = vpack.c.bf16 %v395_v55, %v395_v55 }
  0xd1   :  { %v475_v60 = vpack.c.bf16 %v411_v56, %v411_v56  ;;  %555 = vst.msk [vmem:[%s1194_s3 + $0xa0] sm:$0xf] %vm514_vm2, %v490_v57 }
  0xd2   :  { %571 = vst.msk [vmem:[%s1194_s3 + $0xe0] sm:$0xf] %vm514_vm2, %v506_v58  ;;  %v328_v61 = vpop.f32.mrf.mxu2 }
  0xd3   :  { %v368_v62 = vpop.f32.mrf.mxu3  ;;  %524 = vst.msk [vmem:[%s1194_s3 + $0x24] sm:$0xf] %vm514_vm2, %v459_v59  ;;  %v329_v63 = vadd.f32 %v869_v34, %v328_v61  ;;  %v251_v1 = vpop.f32.mrf.mxu0 }
  0xd4   :  { %v369_v0 = vadd.f32 %v869_v34, %v368_v62  ;;  %v291_v2 = vpop.f32.mrf.mxu1  ;;  %540 = vst.msk [vmem:[%s1194_s3 + $0x64] sm:$0xf] %vm514_vm2, %v475_v60  ;;  %v252_v3 = vadd.f32 %v869_v34, %v251_v1 }
  0xd5   :  { %v292_v4 = vadd.f32 %v869_v34, %v291_v2  ;;  %v427_v5 = vmax.f32 %v329_v63, 0.0 }
  0xd6   :  { %v443_v6 = vmax.f32 %v369_v0, 0.0  ;;  %v396_v7 = vmax.f32 %v252_v3, 0.0 }
  0xd7   :  { %v412_v8 = vmax.f32 %v292_v4, 0.0  ;;  %v491_v9 = vpack.c.bf16 %v427_v5, %v427_v5 }
  0xd8   :  { %v507_v10 = vpack.c.bf16 %v443_v6, %v443_v6  ;;  %v460_v11 = vpack.c.bf16 %v396_v7, %v396_v7 }
  0xd9   :  { %v476_v12 = vpack.c.bf16 %v412_v8, %v412_v8  ;;  %556 = vst.msk [vmem:[%s1194_s3 + $0xa4] sm:$0xf] %vm514_vm2, %v491_v9 }
  0xda   :  { %572 = vst.msk [vmem:[%s1194_s3 + $0xe4] sm:$0xf] %vm514_vm2, %v507_v10  ;;  %v331_v13 = vpop.f32.mrf.mxu2 }
  0xdb   :  { %v371_v14 = vpop.f32.mrf.mxu3  ;;  %525 = vst.msk [vmem:[%s1194_s3 + $0x28] sm:$0xf] %vm514_vm2, %v460_v11  ;;  %v332_v15 = vadd.f32 %v869_v34, %v331_v13  ;;  %v253_v17 = vpop.f32.mrf.mxu0 }
  0xdc   :  { %v372_v16 = vadd.f32 %v869_v34, %v371_v14  ;;  %v293_v18 = vpop.f32.mrf.mxu1  ;;  %541 = vst.msk [vmem:[%s1194_s3 + $0x68] sm:$0xf] %vm514_vm2, %v476_v12  ;;  %v254_v19 = vadd.f32 %v869_v34, %v253_v17 }
  0xdd   :  { %v294_v20 = vadd.f32 %v869_v34, %v293_v18  ;;  %v428_v21 = vmax.f32 %v332_v15, 0.0 }
  0xde   :  { %v444_v22 = vmax.f32 %v372_v16, 0.0  ;;  %v397_v23 = vmax.f32 %v254_v19, 0.0 }
  0xdf   :  { %v413_v24 = vmax.f32 %v294_v20, 0.0  ;;  %v492_v25 = vpack.c.bf16 %v428_v21, %v428_v21 }
  0xe0   :  { %v508_v26 = vpack.c.bf16 %v444_v22, %v444_v22  ;;  %v461_v27 = vpack.c.bf16 %v397_v23, %v397_v23 }
  0xe1   :  { %v477_v28 = vpack.c.bf16 %v413_v24, %v413_v24  ;;  %557 = vst.msk [vmem:[%s1194_s3 + $0xa8] sm:$0xf] %vm514_vm2, %v492_v25 }
  0xe2   :  { %573 = vst.msk [vmem:[%s1194_s3 + $0xe8] sm:$0xf] %vm514_vm2, %v508_v26  ;;  %v333_v29 = vpop.f32.mrf.mxu2 }
  0xe3   :  { %v373_v30 = vpop.f32.mrf.mxu3  ;;  %526 = vst.msk [vmem:[%s1194_s3 + $0x2c] sm:$0xf] %vm514_vm2, %v461_v27  ;;  %v334_v31 = vadd.f32 %v869_v34, %v333_v29  ;;  %v256_v33 = vpop.f32.mrf.mxu0 }
  0xe4   :  { %v374_v32 = vadd.f32 %v869_v34, %v373_v30  ;;  %v296_v35 = vpop.f32.mrf.mxu1  ;;  %542 = vst.msk [vmem:[%s1194_s3 + $0x6c] sm:$0xf] %vm514_vm2, %v477_v28  ;;  %v257_v36 = vadd.f32 %v869_v34, %v256_v33 }
  0xe5   :  { %v297_v37 = vadd.f32 %v869_v34, %v296_v35  ;;  %v429_v38 = vmax.f32 %v334_v31, 0.0 }
  0xe6   :  { %v445_v39 = vmax.f32 %v374_v32, 0.0  ;;  %v398_v40 = vmax.f32 %v257_v36, 0.0 }
  0xe7   :  { %v414_v41 = vmax.f32 %v297_v37, 0.0  ;;  %v493_v42 = vpack.c.bf16 %v429_v38, %v429_v38 }
  0xe8   :  { %v509_v43 = vpack.c.bf16 %v445_v39, %v445_v39  ;;  %v462_v44 = vpack.c.bf16 %v398_v40, %v398_v40 }
  0xe9   :  { %v478_v45 = vpack.c.bf16 %v414_v41, %v414_v41  ;;  %558 = vst.msk [vmem:[%s1194_s3 + $0xac] sm:$0xf] %vm514_vm2, %v493_v42 }
  0xea   :  { %574 = vst.msk [vmem:[%s1194_s3 + $0xec] sm:$0xf] %vm514_vm2, %v509_v43  ;;  %v336_v46 = vpop.f32.mrf.mxu2 }
  0xeb   :  { %v376_v47 = vpop.f32.mrf.mxu3  ;;  %527 = vst.msk [vmem:[%s1194_s3 + $0x30] sm:$0xf] %vm514_vm2, %v462_v44  ;;  %v337_v48 = vadd.f32 %v869_v34, %v336_v46  ;;  %v258_v50 = vpop.f32.mrf.mxu0 }
  0xec   :  { %v377_v49 = vadd.f32 %v869_v34, %v376_v47  ;;  %v298_v51 = vpop.f32.mrf.mxu1  ;;  %543 = vst.msk [vmem:[%s1194_s3 + $0x70] sm:$0xf] %vm514_vm2, %v478_v45  ;;  %v259_v52 = vadd.f32 %v869_v34, %v258_v50 }
  0xed   :  { %v299_v53 = vadd.f32 %v869_v34, %v298_v51  ;;  %v430_v54 = vmax.f32 %v337_v48, 0.0 }
  0xee   :  { %v446_v55 = vmax.f32 %v377_v49, 0.0  ;;  %v399_v56 = vmax.f32 %v259_v52, 0.0 }
  0xef   :  { %v415_v57 = vmax.f32 %v299_v53, 0.0  ;;  %v494_v58 = vpack.c.bf16 %v430_v54, %v430_v54 }
  0xf0   :  { %v510_v59 = vpack.c.bf16 %v446_v55, %v446_v55  ;;  %v463_v60 = vpack.c.bf16 %v399_v56, %v399_v56 }
  0xf1   :  { %v479_v61 = vpack.c.bf16 %v415_v57, %v415_v57  ;;  %559 = vst.msk [vmem:[%s1194_s3 + $0xb0] sm:$0xf] %vm514_vm2, %v494_v58 }
  0xf2   :  { %575 = vst.msk [vmem:[%s1194_s3 + $0xf0] sm:$0xf] %vm514_vm2, %v510_v59  ;;  %v338_v62 = vpop.f32.mrf.mxu2 }
  0xf3   :  { %v378_v63 = vpop.f32.mrf.mxu3  ;;  %528 = vst.msk [vmem:[%s1194_s3 + $0x34] sm:$0xf] %vm514_vm2, %v463_v60  ;;  %v339_v0 = vadd.f32 %v869_v34, %v338_v62  ;;  %v261_v2 = vpop.f32.mrf.mxu0 }
  0xf4   :  { %v379_v1 = vadd.f32 %v869_v34, %v378_v63  ;;  %v301_v3 = vpop.f32.mrf.mxu1  ;;  %544 = vst.msk [vmem:[%s1194_s3 + $0x74] sm:$0xf] %vm514_vm2, %v479_v61  ;;  %v262_v4 = vadd.f32 %v869_v34, %v261_v2 }
  0xf5   :  { %v302_v5 = vadd.f32 %v869_v34, %v301_v3  ;;  %v431_v6 = vmax.f32 %v339_v0, 0.0 }
  0xf6   :  { %v447_v7 = vmax.f32 %v379_v1, 0.0  ;;  %v400_v8 = vmax.f32 %v262_v4, 0.0 }
  0xf7   :  { %v416_v9 = vmax.f32 %v302_v5, 0.0  ;;  %v495_v10 = vpack.c.bf16 %v431_v6, %v431_v6 }
  0xf8   :  { %v511_v11 = vpack.c.bf16 %v447_v7, %v447_v7  ;;  %v464_v12 = vpack.c.bf16 %v400_v8, %v400_v8 }
  0xf9   :  { %v480_v13 = vpack.c.bf16 %v416_v9, %v416_v9  ;;  %560 = vst.msk [vmem:[%s1194_s3 + $0xb4] sm:$0xf] %vm514_vm2, %v495_v10 }
  0xfa   :  { %576 = vst.msk [vmem:[%s1194_s3 + $0xf4] sm:$0xf] %vm514_vm2, %v511_v11  ;;  %v341_v14 = vpop.f32.mrf.mxu2 }
  0xfb   :  { %v381_v15 = vpop.f32.mrf.mxu3  ;;  %529 = vst.msk [vmem:[%s1194_s3 + $0x38] sm:$0xf] %vm514_vm2, %v464_v12  ;;  %v342_v16 = vadd.f32 %v869_v34, %v341_v14  ;;  %v263_v18 = vpop.f32.mrf.mxu0 }
  0xfc   :  { %v382_v17 = vadd.f32 %v869_v34, %v381_v15  ;;  %v303_v19 = vpop.f32.mrf.mxu1  ;;  %545 = vst.msk [vmem:[%s1194_s3 + $0x78] sm:$0xf] %vm514_vm2, %v480_v13  ;;  %v264_v20 = vadd.f32 %v869_v34, %v263_v18 }
  0xfd   :  { %v304_v21 = vadd.f32 %v869_v34, %v303_v19  ;;  %v432_v22 = vmax.f32 %v342_v16, 0.0 }
  0xfe   :  { %v448_v23 = vmax.f32 %v382_v17, 0.0  ;;  %v401_v24 = vmax.f32 %v264_v20, 0.0 }
  0xff   :  { %v417_v25 = vmax.f32 %v304_v21, 0.0  ;;  %v496_v26 = vpack.c.bf16 %v432_v22, %v432_v22 }
 0x100   :  { %v512_v27 = vpack.c.bf16 %v448_v23, %v448_v23  ;;  %v465_v28 = vpack.c.bf16 %v401_v24, %v401_v24 }
 0x101   :  { %v481_v29 = vpack.c.bf16 %v417_v25, %v417_v25  ;;  %561 = vst.msk [vmem:[%s1194_s3 + $0xb8] sm:$0xf] %vm514_vm2, %v496_v26 }
 0x102   :  { %577 = vst.msk [vmem:[%s1194_s3 + $0xf8] sm:$0xf] %vm514_vm2, %v512_v27  ;;  %v343_v30 = vpop.f32.mrf.mxu2 }
 0x103   :  { %v383_v31 = vpop.f32.mrf.mxu3  ;;  %530 = vst.msk [vmem:[%s1194_s3 + $0x3c] sm:$0xf] %vm514_vm2, %v465_v28  ;;  %v344_v32 = vadd.f32 %v869_v34, %v343_v30 }
 0x104   :  { %v384_v33 = vadd.f32 %v869_v34, %v383_v31  ;;  %546 = vst.msk [vmem:[%s1194_s3 + $0x7c] sm:$0xf] %vm514_vm2, %v481_v29 }
 0x105   :  { %v433_v35 = vmax.f32 %v344_v32, 0.0 }
 0x106   :  { %v449_v36 = vmax.f32 %v384_v33, 0.0 }
 0x107   :  { %v497_v37 = vpack.c.bf16 %v433_v35, %v433_v35 }
 0x108   :  { %v513_v38 = vpack.c.bf16 %v449_v36, %v449_v36 }
 0x109   :  { %562 = vst.msk [vmem:[%s1194_s3 + $0xbc] sm:$0xf] %vm514_vm2, %v497_v37 }
 0x10a   :  { %578 = vst.msk [vmem:[%s1194_s3 + $0xfc] sm:$0xf] %vm514_vm2, %v513_v38 }

// kernel: replk_block_forward.3
= control target key start
LH: loop header
LB: loop body
LE: loop exit
PB: predicated region body
PF: predicated region fallthrough
CT: control target
= control target key end

     0   :  { %s4819_s21 = smov 0   ;;  %s9032_s0 = inlined_call_operand.vmem [shape: bf16[2,16,16,8], index: 0, kind: input, shape index: {}]   ;;  %s9033_s1 = inlined_call_operand.vmem [shape: f32[2,16,16,4], index: 1, kind: input, shape index: {}]   ;;  %s9034_s2 = inlined_call_operand.vmem [shape: f32[7,7,8], index: 2, kind: input, shape index: {}]   ;;  %s9035_s3 = inlined_call_operand.vmem [shape: f32[1,8], index: 3, kind: input, shape index: {}]   ;;  %s9036_s4 = inlined_call_operand.vmem [shape: bf16[8,4], index: 4, kind: input, shape index: {}]   ;;  %s9037_s5 = inlined_call_operand.vmem [shape: f32[1,4], index: 5, kind: input, shape index: {}]   ;;  %s9038_s6 = inlined_call_operand.vmem [shape: f32[2,16,16,4], index: 6, kind: output, shape index: {}]  }
   0x1 LB: > { %s4072_s22 = sadd.s32 4294967295, %s4649_s21   ;;  %p4076_p0 = scmp.ge.s32.totalorder %s4649_s21, 1  ;;  %s4649_s21 = sphi %s4819_s21, %s16_s21  }
   0x2   : > { %p222_p1 = scmp.lt.s32.totalorder %s4649_s21, 3 }
   0x4   : > { %p223_p2 = pnand %p4076_p0, %p222_p1 }
   0x6   : > { %226 = sbr.rel (%p223_p2) target bundleno = 942 (0x3ae), region = 44 }
   0xb   : > { %vm273_vm0 = vcmask 64512   ;;  %p257_p3 = scmp.lt.s32.totalorder %s4072_s22, 1  ;;  %v4783_v0 = vmov 0.0   ;;  %v486_v1 = vld [vmem:[%s9034_s2] sm:$0x7f]  ;;  %vm617_vm1 = vcmask 1046528  }
   0xc   : > { %274 = vst.msk [vmem:[#allocation2] sm:$0xff] %vm273_vm0, %v4783_v0  ;;  %v4841_v2 = vperm.slane %v486_v1, 1  ;;  %v4843_v3 = vperm.slane %v486_v1, 2  ;;  %v4845_v4 = vperm.slane %v486_v1, 3  ;;  %v4854_v5 = vperm.slane %v486_v1, 4  ;;  %s5947_s12 = smov 1  }
   0xd   : > { %275 = vst.msk [vmem:[#allocation2 + $0x8] sm:$0xff] %vm273_vm0, %v4783_v0  ;;  %s10004_s22 = smov (!%p257_p3, %s4072_s22), 1  ;;  %v4856_v6 = vperm.slane %v486_v1, 5  ;;  %v4858_v7 = vperm.slane %v486_v1, 6  ;;  %v4867_v8 = vperm.slane %v486_v1, 0  ;;  %vm859_vm2 = vcmask 1045504  }
   0xe   : > { %278 = vst.msk [vmem:[#allocation2 + $0x18] sm:$0xff] %vm273_vm0, %v4783_v0  ;;  %s4103_s25 = sshll.u32 %s10004_s22, 8  ;;  %vm1101_vm3 = vcmask 1044480   ;;  %vm1343_vm4 = vcmask 1043456   ;;  %vm1585_vm5 = vcmask 1042432   ;;  %vm1827_vm6 = vcmask 1041408  }
   0xf   : > { %279 = vst.msk [vmem:[#allocation2 + $0x20] sm:$0xff] %vm273_vm0, %v4783_v0  ;;  %s4852_s28 = scalar_lea.vmem %s9033_s1, %s4103_s25  ;;  %s4865_s7 = scalar_lea.vmem %s9038_s6, %s4103_s25  ;;  %vm276_vm7 = vcmask 62464  }
  0x10   : > { %281 = vst.msk [vmem:[#allocation2 + $0x30] sm:$0xff] %vm273_vm0, %v4783_v0  ;;  %s4102_s8 = sshll.u32 %s10004_s22, 7 }
  0x11   : > { %282 = vst.msk [vmem:[#allocation2 + $0x38] sm:$0xff] %vm273_vm0, %v4783_v0  ;;  %s5168_s11 = scalar_lea.vmem %s9032_s0, %s4102_s8 }
  0x12   : > { %284 = vst.msk [vmem:[#allocation2 + $0x48] sm:$0xff] %vm273_vm0, %v4783_v0 }
  0x13   : > { %v438_v9 = vld [vmem:[#allocation2] sm:$0xff]  ;;  %285 = vst.msk [vmem:[#allocation2 + $0x50] sm:$0xff] %vm273_vm0, %v4783_v0 }
  0x14   : > { %v521_v10 = vmul.f32 %v4841_v2, %v438_v9  ;;  %v763_v11 = vmul.f32 %v4843_v3, %v438_v9  ;;  %v4876_v12 = vmul.f32 %v4845_v4, %v438_v9  ;;  %287 = vst.msk [vmem:[#allocation2 + $0x60] sm:$0xff] %vm273_vm0, %v4783_v0  ;;  %v4881_v13 = vmul.f32 %v4854_v5, %v438_v9  ;;  %v4891_v16 = vld [vmem:[#allocation2 + $0x8] sm:$0xff] }
  0x15   : > { %v4884_v14 = vmul.f32 %v4856_v6, %v438_v9  ;;  %v4887_v15 = vmul.f32 %v4858_v7, %v438_v9  ;;  %288 = vst.msk [vmem:[#allocation2 + $0x68] sm:$0xff] %vm273_vm0, %v4783_v0  ;;  %v4893_v17 = vld [vmem:[#allocation2 + $0x18] sm:$0xff]  ;;  %v488_v18 = vmul.f32 %v4867_v8, %v438_v9  ;;  %v4916_v29 = vmul.f32 %v4841_v2, %v4891_v16 }
  0x16   : > { %v618_v19 = vrot.slane %v521_v10, 1  ;;  %v860_v20 = vrot.slane %v763_v11, 2  ;;  %290 = vst.msk [vmem:[#allocation2 + $0x78] sm:$0xff] %vm273_vm0, %v4783_v0  ;;  %v4898_v21 = vld [vmem:[#allocation2 + $0x20] sm:$0xff]  ;;  %v1102_v22 = vrot.slane %v4876_v12, 3  ;;  %v1344_v23 = vrot.slane %v4881_v13, 4 }
  0x17   : > { %v1586_v24 = vrot.slane %v4884_v14, 5  ;;  %291 = vst.msk [vmem:[#allocation2 + $0x80] sm:$0xff] %vm273_vm0, %v4783_v0  ;;  %v4905_v25 = vld [vmem:[#allocation2 + $0x30] sm:$0xff]  ;;  %v490_v26 = vmul.f32 %v4867_v8, %v4893_v17  ;;  %v1828_v27 = vrot.slane %v4887_v15, 6  ;;  %v524_v30 = vmul.f32 %v4841_v2, %v4893_v17 }
  0x18   : > { %293 = vst.msk [vmem:[#allocation2 + $0x90] sm:$0xff] %vm273_vm0, %v4783_v0  ;;  %v4912_v28 = vld [vmem:[#allocation2 + $0x38] sm:$0xff]  ;;  %v4922_v31 = vmul.f32 %v4841_v2, %v4898_v21  ;;  %v492_v32 = vmul.f32 %v4867_v8, %v4905_v25  ;;  %v527_v33 = vmul.f32 %v4841_v2, %v4905_v25  ;;  %v4936_v35 = vmul.f32 %v4843_v3, %v4891_v16 }
  0x19   : > { %294 = vst.msk [vmem:[#allocation2 + $0x98] sm:$0xff] %vm273_vm0, %v4783_v0  ;;  %v4932_v34 = vmul.f32 %v4841_v2, %v4912_v28  ;;  %v619_v36 = vrot.slane %v4916_v29, 1  ;;  %v623_v37 = vrot.slane %v524_v30, 1  ;;  %v766_v39 = vmul.f32 %v4843_v3, %v4893_v17 }
  0x1a   : > { %296 = vst.msk [vmem:[#allocation2 + $0xa8] sm:$0xff] %vm273_vm0, %v4783_v0  ;;  %v624_v38 = vrot.slane %v4922_v31, 1  ;;  %v628_v40 = vrot.slane %v527_v33, 1  ;;  %v4949_v42 = vmul.f32 %v4843_v3, %v4898_v21  ;;  %v769_v43 = vmul.f32 %v4843_v3, %v4905_v25 }
  0x1b   : > { %297 = vst.msk [vmem:[#allocation2 + $0xb0] sm:$0xff] %vm273_vm0, %v4783_v0  ;;  %v629_v41 = vrot.slane %v4932_v34, 1  ;;  %v620_v44 = vsel %vm617_vm1, %v618_v19, %v619_v36  ;;  %v4963_v46 = vmul.f32 %v4843_v3, %v4912_v28  ;;  %v861_v47 = vrot.slane %v4936_v35, 2 }
  0x1c   : > { %299 = vst.msk [vmem:[#allocation2 + $0xc0] sm:$0xff] %vm273_vm0, %v4783_v0  ;;  %v625_v45 = vsel %vm617_vm1, %v623_v37, %v624_v38  ;;  %v730_v49 = vadd.f32 %v620_v44, %v488_v18  ;;  %v865_v51 = vrot.slane %v766_v39, 2  ;;  %v866_v54 = vrot.slane %v4949_v42, 2 }
  0x1d   : > { %300 = vst.msk [vmem:[#allocation2 + $0xc8] sm:$0xff] %vm273_vm0, %v4783_v0  ;;  %v630_v48 = vsel %vm617_vm1, %v628_v40, %v629_v41  ;;  %v732_v50 = vadd.f32 %v625_v45, %v490_v26  ;;  %v862_v53 = vsel %vm859_vm2, %v860_v20, %v861_v47  ;;  %v870_v55 = vrot.slane %v769_v43, 2 }
  0x1e   : > { %302 = vst.msk [vmem:[#allocation2 + $0xd8] sm:$0xff] %vm273_vm0, %v4783_v0  ;;  %v734_v52 = vadd.f32 %v630_v48, %v492_v32  ;;  %v871_v56 = vrot.slane %v4963_v46, 2  ;;  %v972_v57 = vadd.f32 %v862_v53, %v730_v49  ;;  %v4982_v58 = vmul.f32 %v4845_v4, %v4891_v16 }
  0x1f   : > { %303 = vst.msk [vmem:[#allocation2 + $0xe0] sm:$0xff] %vm273_vm0, %v4783_v0  ;;  %v1008_v59 = vmul.f32 %v4845_v4, %v4893_v17  ;;  %v867_v60 = vsel %vm859_vm2, %v865_v51, %v866_v54  ;;  %v4993_v61 = vmul.f32 %v4845_v4, %v4898_v21  ;;  %v1011_v62 = vmul.f32 %v4845_v4, %v4905_v25 }
  0x20   : > { %305 = vst.msk [vmem:[#allocation2 + $0xf0] sm:$0xff] %vm273_vm0, %v4783_v0  ;;  %v4999_v63 = vmul.f32 %v4845_v4, %v4912_v28  ;;  %v872_v1 = vsel %vm859_vm2, %v870_v55, %v871_v56  ;;  %v974_v9 = vadd.f32 %v867_v60, %v732_v50  ;;  %v1103_v10 = vrot.slane %v4982_v58, 3 }
  0x21   : > { %306 = vst.msk [vmem:[#allocation2 + $0xf8] sm:$0xff] %vm273_vm0, %v4783_v0  ;;  %v1107_v11 = vrot.slane %v1008_v59, 3  ;;  %v976_v18 = vadd.f32 %v872_v1, %v734_v52  ;;  %v1108_v19 = vrot.slane %v4993_v61, 3  ;;  %v1112_v20 = vrot.slane %v1011_v62, 3 }
  0x22   : > { %308 = vst.msk [vmem:[#allocation2 + $0x108] sm:$0xff] %vm273_vm0, %v4783_v0  ;;  %v9045_v26 = vrot.slane %v4999_v63, 3  ;;  %v1104_v30 = vsel %vm1101_vm3, %v1102_v22, %v1103_v10  ;;  %v5020_v32 = vmul.f32 %v4854_v5, %v4891_v16  ;;  %v1250_v33 = vmul.f32 %v4854_v5, %v4893_v17 }
  0x23   : > { %309 = vst.msk [vmem:[#allocation2 + $0x110] sm:$0xff] %vm273_vm0, %v4783_v0  ;;  %v5026_v37 = vmul.f32 %v4854_v5, %v4898_v21  ;;  %v1109_v12 = vsel %vm1101_vm3, %v1107_v11, %v1108_v19  ;;  %v1214_v39 = vadd.f32 %v1104_v30, %v972_v57  ;;  %v1253_v40 = vmul.f32 %v4854_v5, %v4905_v25 }
  0x24   : > { %311 = vst.msk [vmem:[#allocation2 + $0x120] sm:$0xff] %vm273_vm0, %v4783_v0  ;;  %v1114_v22 = vsel %vm1101_vm3, %v1112_v20, %v9045_v26  ;;  %v1216_v43 = vadd.f32 %v1109_v12, %v974_v9  ;;  %v5042_v45 = vmul.f32 %v4854_v5, %v4912_v28  ;;  %v1345_v48 = vrot.slane %v5020_v32, 4 }
  0x25   : > { %312 = vst.msk [vmem:[#allocation2 + $0x128] sm:$0xff] %vm273_vm0, %v4783_v0  ;;  %v1218_v44 = vadd.f32 %v1114_v22, %v976_v18  ;;  %v1349_v49 = vrot.slane %v1250_v33, 4  ;;  %v9044_v50 = vrot.slane %v5026_v37, 4  ;;  %v1354_v51 = vrot.slane %v1253_v40, 4 }
  0x26   : > { %314 = vst.msk [vmem:[#allocation2 + $0x138] sm:$0xff] %vm273_vm0, %v4783_v0  ;;  %v9043_v52 = vrot.slane %v5042_v45, 4  ;;  %v5053_v53 = vmul.f32 %v4856_v6, %v4891_v16  ;;  %v1492_v55 = vmul.f32 %v4856_v6, %v4893_v17  ;;  %v5059_v57 = vmul.f32 %v4856_v6, %v4898_v21 }
  0x27   : > { %315 = vst.msk [vmem:[#allocation2 + $0x140] sm:$0xff] %vm273_vm0, %v4783_v0  ;;  %v1346_v59 = vsel %vm1343_vm4, %v1344_v23, %v1345_v48  ;;  %v1351_v60 = vsel %vm1343_vm4, %v1349_v49, %v9044_v50  ;;  %v1495_v62 = vmul.f32 %v4856_v6, %v4905_v25  ;;  %v5075_v1 = vmul.f32 %v4856_v6, %v4912_v28 }
  0x28   : > { %317 = vst.msk [vmem:[#allocation2 + $0x150] sm:$0xff] %vm273_vm0, %v4783_v0  ;;  %v1356_v13 = vsel %vm1343_vm4, %v1354_v51, %v9043_v52  ;;  %v1456_v9 = vadd.f32 %v1346_v59, %v1214_v39  ;;  %v1458_v23 = vadd.f32 %v1351_v60, %v1216_v43  ;;  %v1587_v18 = vrot.slane %v5053_v53, 5 }
  0x29   : > { %318 = vst.msk [vmem:[#allocation2 + $0x158] sm:$0xff] %vm273_vm0, %v4783_v0  ;;  %v1460_v11 = vadd.f32 %v1356_v13, %v1218_v44  ;;  %v1591_v20 = vrot.slane %v1492_v55, 5  ;;  %v9042_v30 = vrot.slane %v5059_v57, 5  ;;  %v1596_v33 = vrot.slane %v1495_v62, 5 }
  0x2a   : > { %320 = vst.msk [vmem:[#allocation2 + $0x168] sm:$0xff] %vm273_vm0, %v4783_v0  ;;  %v9041_v12 = vrot.slane %v5075_v1, 5  ;;  %v5091_v22 = vmul.f32 %v4858_v7, %v4891_v16  ;;  %v1734_v39 = vmul.f32 %v4858_v7, %v4893_v17  ;;  %v1588_v40 = vsel %vm1585_vm5, %v1586_v24, %v1587_v18 }
  0x2b   : > { %321 = vst.msk [vmem:[#allocation2 + $0x170] sm:$0xff] %vm273_vm0, %v4783_v0  ;;  %v1593_v43 = vsel %vm1585_vm5, %v1591_v20, %v9042_v30  ;;  %v5107_v44 = vmul.f32 %v4858_v7, %v4898_v21  ;;  %v1737_v17 = vmul.f32 %v4858_v7, %v4905_v25  ;;  %v1698_v49 = vadd.f32 %v1588_v40, %v1456_v9 }
  0x2c   : > { %323 = vst.msk [vmem:[#allocation2 + $0x180] sm:$0xff] %vm273_vm0, %v4783_v0  ;;  %v1598_v14 = vsel %vm1585_vm5, %v1596_v33, %v9041_v12  ;;  %v1700_v24 = vadd.f32 %v1593_v43, %v1458_v23  ;;  %v5118_v51 = vmul.f32 %v4858_v7, %v4912_v28  ;;  %v1829_v25 = vrot.slane %v5091_v22, 6 }
  0x2d   : > { %324 = vst.msk [vmem:[#allocation2 + $0x188] sm:$0xff] %vm273_vm0, %v4783_v0  ;;  %v1702_v55 = vadd.f32 %v1598_v14, %v1460_v11  ;;  %v1833_v59 = vrot.slane %v1734_v39, 6  ;;  %v9040_v60 = vrot.slane %v5107_v44, 6  ;;  %v1838_v62 = vrot.slane %v1737_v17, 6  ;;  %v5180_v39 = vld [vmem:[%s5168_s11 + $0x8] sm:$0xff]  }
  0x2e   : > { %326 = vst.msk [vmem:[#allocation2 + $0x198] sm:$0xff] %vm273_vm0, %v4783_v0  ;;  %v9039_v13 = vrot.slane %v5118_v51, 6  ;;  %v1830_v9 = vsel %vm1827_vm6, %v1828_v27, %v1829_v25  ;;  %v5177_v27 = vld [vmem:[%s5168_s11] sm:$0xff]   ;;  %v489_v40 = vmul.f32 %v4867_v8, %v4891_v16  ;;  %v491_v43 = vmul.f32 %v4867_v8, %v4898_v21 }
  0x2f   : > { %327 = vst.msk [vmem:[#allocation2 + $0x1a0] sm:$0xff] %vm273_vm0, %v4783_v0  ;;  %v1835_v23 = vsel %vm1827_vm6, %v1833_v59, %v9040_v60  ;;  %v5142_v20 = vadd.f32 %v1830_v9, %v1698_v49   ;;  %v493_v17 = vmul.f32 %v4867_v8, %v4912_v28  ;;  %v9235_v46 = vrot.slane %v4999_v63, 3 }
  0x30   : > { %329 = vst.msk [vmem:[#allocation2 + $0x1b0] sm:$0xff] %vm273_vm0, %v4783_v0  ;;  %v1840_v11 = vsel %vm1827_vm6, %v1838_v62, %v9039_v13  ;;  %v5146_v33 = vadd.f32 %v1835_v23, %v1700_v24   ;;  %v9237_v61 = vrot.slane %v5042_v45, 4  ;;  %v9238_v45 = vunpack.c.l.bf16 %v5177_v27 }
  0x31   : > { %330 = vst.msk [vmem:[#allocation2 + $0x1b8] sm:$0xff] %vm273_vm0, %v4783_v0  ;;  %v5148_v15 = vadd.f32 %v1840_v11, %v1702_v55  }
  0x32   : > { %9232 = vst [vmem:[#allocation3_spill] sm:$0xff] %v5142_v20 }
  0x33   : > { %332 = vst.msk [vmem:[#allocation2 + $0x1c8] sm:$0xff] %vm273_vm0, %v4783_v0 }
  0x34   : > { %9233 = vst [vmem:[#allocation4_spill] sm:$0xff] %v5146_v33 }
  0x35   : > { %9234 = vst [vmem:[#allocation5_spill] sm:$0xff] %v5148_v15 }
  0x36   : > { %333 = vst.msk [vmem:[#allocation2 + $0x1d0] sm:$0xff] %vm273_vm0, %v4783_v0 }
  0x37   : > { %335 = vst.msk [vmem:[#allocation2 + $0x1e0] sm:$0xff] %vm273_vm0, %v4783_v0 }
  0x38   : > { %336 = vst.msk [vmem:[#allocation2 + $0x1e8] sm:$0xff] %vm273_vm0, %v4783_v0 }
  0x39   : > { %338 = vst.msk [vmem:[#allocation2 + $0x1f8] sm:$0xff] %vm273_vm0, %v4783_v0 }
  0x3a   : > { %339 = vst.msk [vmem:[#allocation2 + $0x200] sm:$0xff] %vm273_vm0, %v4783_v0 }
  0x3b   : > { %277 = vst.msk [vmem:[#allocation2 + $0x10] sm:$0x3f] %vm276_vm7, %v4783_v0 }
  0x3c   : > { %280 = vst.msk [vmem:[#allocation2 + $0x28] sm:$0x3f] %vm276_vm7, %v4783_v0 }
  0x3d   : > { %283 = vst.msk [vmem:[#allocation2 + $0x40] sm:$0x3f] %vm276_vm7, %v4783_v0 }
  0x3e   : > { %286 = vst.msk [vmem:[#allocation2 + $0x58] sm:$0x3f] %vm276_vm7, %v4783_v0 }
  0x3f   : > { %289 = vst.msk [vmem:[#allocation2 + $0x70] sm:$0x3f] %vm276_vm7, %v4783_v0 }
  0x40   : > { %292 = vst.msk [vmem:[#allocation2 + $0x88] sm:$0x3f] %vm276_vm7, %v4783_v0 }
  0x41   : > { %295 = vst.msk [vmem:[#allocation2 + $0xa0] sm:$0x3f] %vm276_vm7, %v4783_v0 }
  0x42   : > { %v440_v14 = vld [vmem:[#allocation2 + $0x10] sm:$0x3f]  ;;  %298 = vst.msk [vmem:[#allocation2 + $0xb8] sm:$0x3f] %vm276_vm7, %v4783_v0 }
  0x43   : > { %v523_v21 = vmul.f32 %v4841_v2, %v440_v14  ;;  %v765_v59 = vmul.f32 %v4843_v3, %v440_v14  ;;  %v1007_v28 = vmul.f32 %v4845_v4, %v440_v14  ;;  %v1249_v62 = vmul.f32 %v4854_v5, %v440_v14  ;;  %301 = vst.msk [vmem:[#allocation2 + $0xd0] sm:$0x3f] %vm276_vm7, %v4783_v0  ;;  %v5204_v9 = vld [vmem:[#allocation2 + $0x28] sm:$0x3f] }
  0x44   : > { %v1491_v23 = vmul.f32 %v4856_v6, %v440_v14  ;;  %v1733_v11 = vmul.f32 %v4858_v7, %v440_v14  ;;  %304 = vst.msk [vmem:[#allocation2 + $0xe8] sm:$0x3f] %vm276_vm7, %v4783_v0  ;;  %v5210_v13 = vld [vmem:[#allocation2 + $0x40] sm:$0x3f]  ;;  %v526_v60 = vmul.f32 %v4841_v2, %v5204_v9  ;;  %v768_v16 = vmul.f32 %v4843_v3, %v5204_v9 }
  0x45   : > { %v621_v12 = vrot.slane %v523_v21, 1  ;;  %v863_v55 = vrot.slane %v765_v59, 2  ;;  %v1105_v24 = vrot.slane %v1007_v28, 3  ;;  %v1347_v30 = vrot.slane %v1249_v62, 4  ;;  %307 = vst.msk [vmem:[#allocation2 + $0x100] sm:$0x3f] %vm276_vm7, %v4783_v0 }
  0x46   : > { %v1589_v49 = vrot.slane %v1491_v23, 5  ;;  %v1831_v14 = vrot.slane %v1733_v11, 6  ;;  %310 = vst.msk [vmem:[#allocation2 + $0x118] sm:$0x3f] %vm276_vm7, %v4783_v0  ;;  %v529_v52 = vmul.f32 %v4841_v2, %v5210_v13  ;;  %v626_v50 = vrot.slane %v526_v60, 1 }
  0x47   : > { %v622_v26 = vsel %vm617_vm1, %v619_v36, %v621_v12  ;;  %v864_v21 = vsel %vm859_vm2, %v861_v47, %v863_v55  ;;  %v1106_v59 = vsel %vm1101_vm3, %v1103_v10, %v1105_v24  ;;  %v1348_v28 = vsel %vm1343_vm4, %v1345_v48, %v1347_v30  ;;  %313 = vst.msk [vmem:[#allocation2 + $0x130] sm:$0x3f] %vm276_vm7, %v4783_v0  ;;  %v4170_v24 = vld [vmem:[%s5168_s11 + $0x10] sm:$0xff]  }
  0x48   : > { %v731_v60 = vadd.f32 %v622_v26, %v489_v40  ;;  %v1590_v29 = vsel %vm1585_vm5, %v1587_v18, %v1589_v49  ;;  %v1832_v35 = vsel %vm1827_vm6, %v1829_v25, %v1831_v14  ;;  %316 = vst.msk [vmem:[#allocation2 + $0x148] sm:$0x3f] %vm276_vm7, %v4783_v0  ;;  %v627_v36 = vsel %vm617_vm1, %v624_v38, %v626_v50 }
  0x49   : > { %319 = vst.msk [vmem:[#allocation2 + $0x160] sm:$0x3f] %vm276_vm7, %v4783_v0  ;;  %v631_v47 = vrot.slane %v529_v52, 1  ;;  %v733_v58 = vadd.f32 %v627_v36, %v491_v43  ;;  %v771_v10 = vmul.f32 %v4843_v3, %v5210_v13  ;;  %v868_v26 = vrot.slane %v768_v16, 2 }
  0x4a   : > { %v973_v32 = vadd.f32 %v864_v21, %v731_v60  ;;  %322 = vst.msk [vmem:[#allocation2 + $0x178] sm:$0x3f] %vm276_vm7, %v4783_v0  ;;  %v1010_v48 = vmul.f32 %v4845_v4, %v5204_v9  ;;  %v1013_v31 = vmul.f32 %v4845_v4, %v5210_v13  ;;  %v1252_v38 = vmul.f32 %v4854_v5, %v5204_v9 }
  0x4b   : > { %325 = vst.msk [vmem:[#allocation2 + $0x190] sm:$0x3f] %vm276_vm7, %v4783_v0  ;;  %v632_v50 = vsel %vm617_vm1, %v629_v41, %v631_v47  ;;  %v869_v52 = vsel %vm859_vm2, %v866_v54, %v868_v26  ;;  %v873_v53 = vrot.slane %v771_v10, 2  ;;  %v1255_v18 = vmul.f32 %v4854_v5, %v5210_v13 }
  0x4c   : > { %v1215_v30 = vadd.f32 %v1106_v59, %v973_v32  ;;  %328 = vst.msk [vmem:[#allocation2 + $0x1a8] sm:$0x3f] %vm276_vm7, %v4783_v0  ;;  %v735_v12 = vadd.f32 %v632_v50, %v493_v17  ;;  %v975_v22 = vadd.f32 %v869_v52, %v733_v58  ;;  %v1110_v25 = vrot.slane %v1010_v48, 3 }
  0x4d   : > { %331 = vst.msk [vmem:[#allocation2 + $0x1c0] sm:$0x3f] %vm276_vm7, %v4783_v0  ;;  %v874_v34 = vsel %vm859_vm2, %v871_v56, %v873_v53  ;;  %v1115_v41 = vrot.slane %v1013_v31, 3  ;;  %v1352_v42 = vrot.slane %v1252_v38, 4  ;;  %v1357_v54 = vrot.slane %v1255_v18, 4 }
  0x4e   : > { %v1457_v40 = vadd.f32 %v1348_v28, %v1215_v30  ;;  %334 = vst.msk [vmem:[#allocation2 + $0x1d8] sm:$0x3f] %vm276_vm7, %v4783_v0  ;;  %v977_v43 = vadd.f32 %v874_v34, %v735_v12  ;;  %v1111_v17 = vsel %vm1101_vm3, %v1108_v19, %v1110_v25  ;;  %v1494_v49 = vmul.f32 %v4856_v6, %v5204_v9 }
  0x4f   : > { %337 = vst.msk [vmem:[#allocation2 + $0x1f0] sm:$0x3f] %vm276_vm7, %v4783_v0  ;;  %v1116_v56 = vsel %vm1101_vm3, %v9235_v46, %v1115_v41  ;;  %v1217_v55 = vadd.f32 %v1111_v17, %v975_v22  ;;  %v9236_v16 = vrot.slane %v5026_v37, 4  ;;  %v1358_v19 = vsel %vm1343_vm4, %v9237_v61, %v1357_v54 }
  0x50   : > { %v1699_v23 = vadd.f32 %v1590_v29, %v1457_v40  ;;  %340 = vst.msk [vmem:[#allocation2 + $0x208] sm:$0x3f] %vm276_vm7, %v4783_v0  ;;  %v1219_v11 = vadd.f32 %v1116_v56, %v977_v43  ;;  %v1497_v14 = vmul.f32 %v4856_v6, %v5210_v13  ;;  %v1594_v63 = vrot.slane %v1494_v49, 5 }
  0x51   : > { %v1353_v62 = vsel %vm1343_vm4, %v9236_v16, %v1352_v42  ;;  %v1736_v59 = vmul.f32 %v4858_v7, %v5204_v9  ;;  %v1739_v37 = vmul.f32 %v4858_v7, %v5210_v13  ;;  %406 = vst.msk [vmem:[#allocation2 + $0x4b] sm:$0xff] %vm273_vm0, %v9238_v45  ;;  %v4115_v28 = vunpack.c.l.bf16 %v4170_v24 }
  0x52   : > { %v1459_v21 = vadd.f32 %v1353_v62, %v1217_v55  ;;  %v5306_v60 = vadd.f32 %v1832_v35, %v1699_v23   ;;  %v1461_v0 = vadd.f32 %v1358_v19, %v1219_v11  ;;  %v9240_v29 = vrot.slane %v5059_v57, 5 }
  0x53   : > { %v1599_v47 = vrot.slane %v1497_v14, 5  ;;  %v9241_v58 = vunpack.c.h.bf16 %v5177_v27  ;;  %v1836_v10 = vrot.slane %v1736_v59, 6  ;;  %v1841_v13 = vrot.slane %v1739_v37, 6  ;;  %410 = vst.msk [vmem:[#allocation2 + $0x7b] sm:$0xff] %vm273_vm0, %v4115_v28 }
  0x54   : > { %9239 = vst [vmem:[#allocation6_spill] sm:$0xff] %v5306_v60  ;;  %v1595_v36 = vsel %vm1585_vm5, %v9240_v29, %v1594_v63  ;;  %v9242_v26 = vunpack.c.l.bf16 %v5180_v39  ;;  %v4116_v32 = vunpack.c.h.bf16 %v4170_v24  ;;  %v9243_v35 = vrot.slane %v5075_v1, 5 }
  0x55   : > { %407 = vst.msk [vmem:[#allocation2 + $0x53] sm:$0xff] %vm273_vm0, %v9241_v58  ;;  %v1701_v9 = vadd.f32 %v1595_v36, %v1459_v21  ;;  %v9244_v57 = vunpack.c.h.bf16 %v5180_v39  ;;  %v9245_v27 = vrot.slane %v5107_v44, 6  ;;  %v9246_v50 = vrot.slane %v5118_v51, 6 }
  0x56   : > { %408 = vst.msk [vmem:[#allocation2 + $0x63] sm:$0xff] %vm273_vm0, %v9242_v26  ;;  %v1600_v48 = vsel %vm1585_vm5, %v9243_v35, %v1599_v47 }
  0x57   : > { %409 = vst.msk [vmem:[#allocation2 + $0x6b] sm:$0xff] %vm273_vm0, %v9244_v57  ;;  %v1703_v31 = vadd.f32 %v1600_v48, %v1461_v0  ;;  %v1837_v38 = vsel %vm1827_vm6, %v9245_v27, %v1836_v10  ;;  %v1842_v52 = vsel %vm1827_vm6, %v9246_v50, %v1841_v13 }
  0x58   : > { %v5330_v53 = vadd.f32 %v1837_v38, %v1701_v9   ;;  %411 = vst.msk [vmem:[#allocation2 + $0x83] sm:$0xff] %vm273_vm0, %v4116_v32  ;;  %v447_v39 = vld [vmem:[#allocation2 + $0x48] sm:$0xff] }
  0x59   : > { %v5333_v1 = vadd.f32 %v1842_v52, %v1703_v31   ;;  %v494_v18 = vmul.f32 %v4867_v8, %v447_v39  ;;  %v530_v30 = vmul.f32 %v4841_v2, %v447_v39  ;;  %v772_v44 = vmul.f32 %v4843_v3, %v447_v39 }
  0x5a   : > { %9247 = vst [vmem:[#allocation7_spill] sm:$0xff] %v5330_v53  ;;  %v1014_v12 = vmul.f32 %v4845_v4, %v447_v39  ;;  %v1256_v51 = vmul.f32 %v4854_v5, %v447_v39  ;;  %v1498_v34 = vmul.f32 %v4856_v6, %v447_v39  ;;  %v1740_v41 = vmul.f32 %v4858_v7, %v447_v39 }
  0x5b   : > { %v633_v54 = vrot.slane %v530_v30, 1  ;;  %v875_v40 = vrot.slane %v772_v44, 2 }
  0x5c   : > { %v448_v22 = vld [vmem:[#allocation2 + $0x50] sm:$0xff]  ;;  %v449_v25 = vld [vmem:[#allocation2 + $0x58] sm:$0x3f]  ;;  %v1117_v43 = vrot.slane %v1014_v12, 3  ;;  %v1359_v49 = vrot.slane %v1256_v51, 4  ;;  %v1601_v24 = vrot.slane %v1498_v34, 5 }
  0x5d   : > { %v495_v42 = vmul.f32 %v4867_v8, %v448_v22  ;;  %v531_v17 = vmul.f32 %v4841_v2, %v448_v22  ;;  %v1843_v46 = vrot.slane %v1740_v41, 6  ;;  %v532_v56 = vmul.f32 %v4841_v2, %v449_v25  ;;  %v450_v10 = vld [vmem:[#allocation2 + $0x60] sm:$0xff] }
  0x5e   : > { %v773_v16 = vmul.f32 %v4843_v3, %v448_v22  ;;  %v774_v62 = vmul.f32 %v4843_v3, %v449_v25  ;;  %v1015_v61 = vmul.f32 %v4845_v4, %v448_v22  ;;  %v1016_v23 = vmul.f32 %v4845_v4, %v449_v25 }
  0x5f   : > { %v634_v55 = vrot.slane %v531_v17, 1  ;;  %v636_v19 = vrot.slane %v532_v56, 1  ;;  %v1257_v11 = vmul.f32 %v4854_v5, %v448_v22  ;;  %v1258_v14 = vmul.f32 %v4854_v5, %v449_v25 }
  0x60   : > { %v876_v21 = vrot.slane %v773_v16, 2  ;;  %v878_v59 = vrot.slane %v774_v62, 2  ;;  %v1118_v37 = vrot.slane %v1015_v61, 3  ;;  %v1120_v0 = vrot.slane %v1016_v23, 3  ;;  %v452_v23 = vld [vmem:[#allocation2 + $0x70] sm:$0x3f] }
  0x61   : > { %v635_v63 = vsel %vm617_vm1, %v633_v54, %v634_v55  ;;  %v637_v45 = vsel %vm617_vm1, %v634_v55, %v636_v19  ;;  %v1360_v29 = vrot.slane %v1257_v11, 4  ;;  %v1362_v35 = vrot.slane %v1258_v14, 4 }
  0x62   : > { %v736_v28 = vadd.f32 %v635_v63, %v494_v18  ;;  %v737_v36 = vadd.f32 %v637_v45, %v495_v42  ;;  %v877_v47 = vsel %vm859_vm2, %v875_v40, %v876_v21  ;;  %v879_v58 = vsel %vm859_vm2, %v876_v21, %v878_v59 }
  0x63   : > { %v1119_v9 = vsel %vm1101_vm3, %v1117_v43, %v1118_v37  ;;  %v1121_v26 = vsel %vm1101_vm3, %v1118_v37, %v1120_v0  ;;  %v1361_v32 = vsel %vm1343_vm4, %v1359_v49, %v1360_v29  ;;  %v1499_v57 = vmul.f32 %v4856_v6, %v448_v22 }
  0x64   : > { %v978_v13 = vadd.f32 %v877_v47, %v736_v28  ;;  %v979_v48 = vadd.f32 %v879_v58, %v737_v36  ;;  %v1500_v31 = vmul.f32 %v4856_v6, %v449_v25  ;;  %v1741_v27 = vmul.f32 %v4858_v7, %v448_v22 }
  0x65   : > { %v1363_v50 = vsel %vm1343_vm4, %v1360_v29, %v1362_v35  ;;  %v1742_v52 = vmul.f32 %v4858_v7, %v449_v25  ;;  %v496_v39 = vmul.f32 %v4867_v8, %v450_v10  ;;  %v1602_v30 = vrot.slane %v1499_v57, 5  ;;  %v451_v25 = vld [vmem:[#allocation2 + $0x68] sm:$0xff] }
  0x66   : > { %v1220_v38 = vadd.f32 %v1119_v9, %v978_v13  ;;  %v1221_v18 = vadd.f32 %v1121_v26, %v979_v48  ;;  %v1604_v44 = vrot.slane %v1500_v31, 5  ;;  %v1844_v12 = vrot.slane %v1741_v27, 6 }
  0x67   : > { %v1846_v34 = vrot.slane %v1742_v52, 6  ;;  %v533_v41 = vmul.f32 %v4841_v2, %v450_v10  ;;  %v775_v42 = vmul.f32 %v4843_v3, %v450_v10  ;;  %v1603_v22 = vsel %vm1585_vm5, %v1601_v24, %v1602_v30 }
  0x68   : > { %v1462_v51 = vadd.f32 %v1361_v32, %v1220_v38  ;;  %v1463_v54 = vadd.f32 %v1363_v50, %v1221_v18  ;;  %v1605_v40 = vsel %vm1585_vm5, %v1602_v30, %v1604_v44  ;;  %v1845_v43 = vsel %vm1827_vm6, %v1843_v46, %v1844_v12 }
  0x69   : > { %v1847_v49 = vsel %vm1827_vm6, %v1844_v12, %v1846_v34  ;;  %v638_v56 = vrot.slane %v533_v41, 1  ;;  %v880_v55 = vrot.slane %v775_v42, 2  ;;  %v1017_v62 = vmul.f32 %v4845_v4, %v450_v10 }
  0x6a   : > { %v1704_v17 = vadd.f32 %v1603_v22, %v1462_v51  ;;  %v1705_v16 = vadd.f32 %v1605_v40, %v1463_v54  ;;  %v1259_v61 = vmul.f32 %v4854_v5, %v450_v10  ;;  %v1501_v19 = vmul.f32 %v4856_v6, %v450_v10  ;;  %v453_v51 = vld [vmem:[#allocation2 + $0x78] sm:$0xff] }
  0x6b   : > { %v1743_v24 = vmul.f32 %v4858_v7, %v450_v10  ;;  %v497_v46 = vmul.f32 %v4867_v8, %v451_v25  ;;  %v534_v14 = vmul.f32 %v4841_v2, %v451_v25  ;;  %v1122_v21 = vrot.slane %v1017_v62, 3 }
  0x6c   : > { %v5373_v11 = vadd.f32 %v1845_v43, %v1704_v17   ;;  %v5378_v63 = vadd.f32 %v1847_v49, %v1705_v16   ;;  %v1364_v59 = vrot.slane %v1259_v61, 4  ;;  %v1606_v37 = vrot.slane %v1501_v19, 5 }
  0x6d   : > { %v1848_v45 = vrot.slane %v1743_v24, 6  ;;  %v535_v28 = vmul.f32 %v4841_v2, %v452_v23  ;;  %v639_v0 = vrot.slane %v534_v14, 1  ;;  %v776_v29 = vmul.f32 %v4843_v3, %v451_v25 }
  0x6e   : > { %v777_v36 = vmul.f32 %v4843_v3, %v452_v23  ;;  %v1018_v47 = vmul.f32 %v4845_v4, %v451_v25  ;;  %v1019_v58 = vmul.f32 %v4845_v4, %v452_v23  ;;  %v1260_v9 = vmul.f32 %v4854_v5, %v451_v25 }
  0x6f   : > { %v640_v10 = vsel %vm617_vm1, %v638_v56, %v639_v0  ;;  %v641_v13 = vrot.slane %v535_v28, 1  ;;  %v881_v26 = vrot.slane %v776_v29, 2  ;;  %v1261_v32 = vmul.f32 %v4854_v5, %v452_v23 }
  0x70   : > { %v738_v35 = vadd.f32 %v640_v10, %v496_v39  ;;  %v883_v48 = vrot.slane %v777_v36, 2  ;;  %v1123_v57 = vrot.slane %v1018_v47, 3  ;;  %v1125_v31 = vrot.slane %v1019_v58, 3 }
  0x71   : > { %v642_v27 = vsel %vm617_vm1, %v639_v0, %v641_v13  ;;  %v882_v38 = vsel %vm859_vm2, %v880_v55, %v881_v26  ;;  %v1365_v50 = vrot.slane %v1260_v9, 4  ;;  %v1367_v52 = vrot.slane %v1261_v32, 4  ;;  %v454_v0 = vld [vmem:[#allocation2 + $0x80] sm:$0xff]  ;;  %v455_v9 = vld [vmem:[#allocation2 + $0x88] sm:$0x3f] }
  0x72   : > { %v739_v18 = vadd.f32 %v642_v27, %v497_v46  ;;  %v884_v30 = vsel %vm859_vm2, %v881_v26, %v883_v48  ;;  %v980_v44 = vadd.f32 %v882_v38, %v738_v35  ;;  %v1124_v12 = vsel %vm1101_vm3, %v1122_v21, %v1123_v57 }
  0x73   : > { %v1126_v34 = vsel %vm1101_vm3, %v1123_v57, %v1125_v31  ;;  %v1366_v39 = vsel %vm1343_vm4, %v1364_v59, %v1365_v50  ;;  %v1368_v41 = vsel %vm1343_vm4, %v1365_v50, %v1367_v52  ;;  %v1502_v42 = vmul.f32 %v4856_v6, %v451_v25 }
  0x74   : > { %v981_v54 = vadd.f32 %v884_v30, %v739_v18  ;;  %v1222_v22 = vadd.f32 %v1124_v12, %v980_v44  ;;  %v1503_v40 = vmul.f32 %v4856_v6, %v452_v23  ;;  %v1744_v43 = vmul.f32 %v4858_v7, %v451_v25 }
  0x75   : > { %v1607_v17 = vrot.slane %v1502_v42, 5  ;;  %v1745_v49 = vmul.f32 %v4858_v7, %v452_v23  ;;  %v498_v56 = vmul.f32 %v4867_v8, %v453_v51  ;;  %v536_v55 = vmul.f32 %v4841_v2, %v453_v51 }
  0x76   : > { %v1223_v16 = vadd.f32 %v1126_v34, %v981_v54  ;;  %v1464_v62 = vadd.f32 %v1366_v39, %v1222_v22  ;;  %v1609_v61 = vrot.slane %v1503_v40, 5  ;;  %v1849_v19 = vrot.slane %v1744_v43, 6 }
  0x77   : > { %v1608_v24 = vsel %vm1585_vm5, %v1606_v37, %v1607_v17  ;;  %v1851_v46 = vrot.slane %v1745_v49, 6  ;;  %v643_v14 = vrot.slane %v536_v55, 1  ;;  %v778_v21 = vmul.f32 %v4843_v3, %v453_v51 }
  0x78   : > { %v1465_v59 = vadd.f32 %v1368_v41, %v1223_v16  ;;  %v1610_v25 = vsel %vm1585_vm5, %v1607_v17, %v1609_v61  ;;  %v1706_v28 = vadd.f32 %v1608_v24, %v1464_v62  ;;  %v1850_v23 = vsel %vm1827_vm6, %v1848_v45, %v1849_v19  ;;  %v4171_v61 = vld [vmem:[%s5168_s11 + $0x18] sm:$0xff]  }
  0x79   : > { %v1852_v29 = vsel %vm1827_vm6, %v1849_v19, %v1851_v46  ;;  %v885_v36 = vrot.slane %v778_v21, 2  ;;  %v1020_v47 = vmul.f32 %v4845_v4, %v453_v51  ;;  %v1262_v58 = vmul.f32 %v4854_v5, %v453_v51 }
  0x7a   : > { %v1707_v37 = vadd.f32 %v1610_v25, %v1465_v59  ;;  %v5408_v10 = vadd.f32 %v1850_v23, %v1706_v28   ;;  %v1504_v13 = vmul.f32 %v4856_v6, %v453_v51  ;;  %v5412_v26 = vmul.f32 %v4858_v7, %v453_v51  ;;  %v4172_v28 = vld [vmem:[%s5168_s11 + $0x20] sm:$0xff]  }
  0x7b   : > { %v1127_v32 = vrot.slane %v1020_v47, 3  ;;  %v1369_v35 = vrot.slane %v1262_v58, 4  ;;  %v499_v45 = vmul.f32 %v4867_v8, %v454_v0  ;;  %v537_v48 = vmul.f32 %v4841_v2, %v454_v0 }
  0x7c   : > { %v5416_v57 = vadd.f32 %v1852_v29, %v1707_v37   ;;  %v1611_v31 = vrot.slane %v1504_v13, 5  ;;  %v1853_v27 = vrot.slane %v5412_v26, 6  ;;  %v538_v38 = vmul.f32 %v4841_v2, %v455_v9 }
  0x7d   : > { %v644_v50 = vrot.slane %v537_v48, 1  ;;  %v779_v52 = vmul.f32 %v4843_v3, %v454_v0  ;;  %v780_v18 = vmul.f32 %v4843_v3, %v455_v9  ;;  %v1021_v30 = vmul.f32 %v4845_v4, %v454_v0 }
  0x7e   : > { %v646_v44 = vrot.slane %v538_v38, 1  ;;  %v1022_v12 = vmul.f32 %v4845_v4, %v455_v9  ;;  %v1263_v51 = vmul.f32 %v4854_v5, %v454_v0  ;;  %v1264_v34 = vmul.f32 %v4854_v5, %v455_v9 }
  0x7f   : > { %v645_v39 = vsel %vm617_vm1, %v643_v14, %v644_v50  ;;  %v886_v41 = vrot.slane %v779_v52, 2  ;;  %v888_v42 = vrot.slane %v780_v18, 2  ;;  %v1128_v54 = vrot.slane %v1021_v30, 3 }
  0x80   : > { %v647_v22 = vsel %vm617_vm1, %v644_v50, %v646_v44  ;;  %v740_v40 = vadd.f32 %v645_v39, %v498_v56  ;;  %v1130_v43 = vrot.slane %v1022_v12, 3  ;;  %v1370_v17 = vrot.slane %v1263_v51, 4 }
  0x81   : > { %v741_v49 = vadd.f32 %v647_v22, %v499_v45  ;;  %v887_v55 = vsel %vm859_vm2, %v885_v36, %v886_v41  ;;  %v889_v16 = vsel %vm859_vm2, %v886_v41, %v888_v42  ;;  %v1129_v62 = vsel %vm1101_vm3, %v1127_v32, %v1128_v54  ;;  %v4173_v32 = vld [vmem:[%s5168_s11 + $0x28] sm:$0xff]   ;;  %v5456_v42 = vld [vmem:[%s5168_s11 + $0x30] sm:$0xff]  }
  0x82   : > { %v982_v19 = vadd.f32 %v887_v55, %v740_v40  ;;  %v1131_v24 = vsel %vm1101_vm3, %v1128_v54, %v1130_v43  ;;  %v1371_v46 = vsel %vm1343_vm4, %v1369_v35, %v1370_v17  ;;  %v1372_v14 = vrot.slane %v1264_v34, 4 }
  0x83   : > { %v983_v21 = vadd.f32 %v889_v16, %v741_v49  ;;  %v1505_v56 = vmul.f32 %v4856_v6, %v454_v0  ;;  %v1506_v59 = vmul.f32 %v4856_v6, %v455_v9  ;;  %v1747_v25 = vmul.f32 %v4858_v7, %v454_v0 }
  0x84   : > { %v1224_v23 = vadd.f32 %v1129_v62, %v982_v19  ;;  %v1373_v29 = vsel %vm1343_vm4, %v1370_v17, %v1372_v14  ;;  %v1748_v36 = vmul.f32 %v4858_v7, %v455_v9  ;;  %v4119_v47 = vunpack.c.l.bf16 %v4171_v61 }
  0x85   : > { %v1225_v58 = vadd.f32 %v1131_v24, %v983_v21  ;;  %v1612_v37 = vrot.slane %v1505_v56, 5  ;;  %v1614_v13 = vrot.slane %v1506_v59, 5  ;;  %v1854_v26 = vrot.slane %v1747_v25, 6 }
  0x86   : > { %v1466_v35 = vadd.f32 %v1371_v46, %v1224_v23  ;;  %v1856_v45 = vrot.slane %v1748_v36, 6  ;;  %412 = vst.msk [vmem:[#allocation2 + $0x93] sm:$0xff] %vm273_vm0, %v4119_v47  ;;  %v4120_v48 = vunpack.c.h.bf16 %v4171_v61  ;;  %v4123_v38 = vunpack.c.l.bf16 %v4172_v28 }
  0x87   : > { %v1467_v50 = vadd.f32 %v1373_v29, %v1225_v58  ;;  %v1613_v0 = vsel %vm1585_vm5, %v1611_v31, %v1612_v37  ;;  %v1615_v52 = vsel %vm1585_vm5, %v1612_v37, %v1614_v13  ;;  %v4124_v9 = vunpack.c.h.bf16 %v4172_v28 }
  0x88   : > { %v1708_v18 = vadd.f32 %v1613_v0, %v1466_v35  ;;  %413 = vst.msk [vmem:[#allocation2 + $0x9b] sm:$0xff] %vm273_vm0, %v4120_v48  ;;  %v4127_v30 = vunpack.c.l.bf16 %v4173_v32  ;;  %v1855_v12 = vsel %vm1827_vm6, %v1853_v27, %v1854_v26  ;;  %v4128_v51 = vunpack.c.h.bf16 %v4173_v32 }
  0x89   : > { %v1709_v44 = vadd.f32 %v1615_v52, %v1467_v50  ;;  %414 = vst.msk [vmem:[#allocation2 + $0xab] sm:$0xff] %vm273_vm0, %v4123_v38  ;;  %v1857_v34 = vsel %vm1827_vm6, %v1854_v26, %v1856_v45  ;;  %v4131_v55 = vunpack.c.l.bf16 %v5456_v42 }
  0x8a   : > { %v5448_v39 = vadd.f32 %v1855_v12, %v1708_v18   ;;  %415 = vst.msk [vmem:[#allocation2 + $0xb3] sm:$0xff] %vm273_vm0, %v4124_v9 }
  0x8b   : > { %v5451_v31 = vadd.f32 %v1857_v34, %v1709_v44   ;;  %416 = vst.msk [vmem:[#allocation2 + $0xc3] sm:$0xff] %vm273_vm0, %v4127_v30 }
  0x8c   : > { %417 = vst.msk [vmem:[#allocation2 + $0xcb] sm:$0xff] %vm273_vm0, %v4128_v51 }
  0x8d   : > { %v456_v41 = vld [vmem:[#allocation2 + $0x90] sm:$0xff]  ;;  %418 = vst.msk [vmem:[#allocation2 + $0xdb] sm:$0xff] %vm273_vm0, %v4131_v55 }
  0x8e   : > { %v539_v27 = vmul.f32 %v4841_v2, %v456_v41  ;;  %v781_v54 = vmul.f32 %v4843_v3, %v456_v41  ;;  %v1023_v22 = vmul.f32 %v4845_v4, %v456_v41  ;;  %v500_v40 = vmul.f32 %v4867_v8, %v456_v41 }
  0x8f   : > { %v1265_v43 = vmul.f32 %v4854_v5, %v456_v41  ;;  %v457_v17 = vld [vmem:[#allocation2 + $0x98] sm:$0xff]  ;;  %v458_v49 = vld [vmem:[#allocation2 + $0xa0] sm:$0x3f]  ;;  %v1507_v61 = vmul.f32 %v4856_v6, %v456_v41  ;;  %v1749_v19 = vmul.f32 %v4858_v7, %v456_v41 }
  0x90   : > { %v648_v16 = vrot.slane %v539_v27, 1  ;;  %v890_v62 = vrot.slane %v781_v54, 2  ;;  %v1132_v24 = vrot.slane %v1023_v22, 3  ;;  %v501_v14 = vmul.f32 %v4867_v8, %v457_v17  ;;  %v459_v12 = vld [vmem:[#allocation2 + $0xa8] sm:$0xff] }
  0x91   : > { %v1374_v46 = vrot.slane %v1265_v43, 4  ;;  %v540_v21 = vmul.f32 %v4841_v2, %v457_v17  ;;  %v541_v56 = vmul.f32 %v4841_v2, %v458_v49  ;;  %v782_v59 = vmul.f32 %v4843_v3, %v457_v17 }
  0x92   : > { %v783_v25 = vmul.f32 %v4843_v3, %v458_v49  ;;  %v1024_v28 = vmul.f32 %v4845_v4, %v457_v17  ;;  %v1025_v29 = vmul.f32 %v4845_v4, %v458_v49  ;;  %v1266_v36 = vmul.f32 %v4854_v5, %v457_v17 }
  0x93   : > { %v649_v23 = vrot.slane %v540_v21, 1  ;;  %v1267_v47 = vmul.f32 %v4854_v5, %v458_v49  ;;  %v651_v58 = vrot.slane %v541_v56, 1  ;;  %v891_v37 = vrot.slane %v782_v59, 2 }
  0x94   : > { %v893_v13 = vrot.slane %v783_v25, 2  ;;  %v1133_v26 = vrot.slane %v1024_v28, 3  ;;  %v1616_v32 = vrot.slane %v1507_v61, 5  ;;  %v1135_v45 = vrot.slane %v1025_v29, 3 }
  0x95   : > { %v650_v35 = vsel %vm617_vm1, %v648_v16, %v649_v23  ;;  %v1375_v48 = vrot.slane %v1266_v36, 4  ;;  %v1858_v38 = vrot.slane %v1749_v19, 6  ;;  %v652_v50 = vsel %vm617_vm1, %v649_v23, %v651_v58 }
  0x96   : > { %v742_v0 = vadd.f32 %v650_v35, %v500_v40  ;;  %v1377_v52 = vrot.slane %v1267_v47, 4  ;;  %v743_v18 = vadd.f32 %v652_v50, %v501_v14  ;;  %v892_v9 = vsel %vm859_vm2, %v890_v62, %v891_v37 }
  0x97   : > { %v894_v30 = vsel %vm859_vm2, %v891_v37, %v893_v13  ;;  %v1134_v44 = vsel %vm1101_vm3, %v1132_v24, %v1133_v26  ;;  %v1136_v34 = vsel %vm1101_vm3, %v1133_v26, %v1135_v45  ;;  %v1508_v41 = vmul.f32 %v4856_v6, %v457_v17  ;;  %v461_v13 = vld [vmem:[#allocation2 + $0xb8] sm:$0x3f] }
  0x98   : > { %v984_v51 = vadd.f32 %v892_v9, %v742_v0  ;;  %v1509_v27 = vmul.f32 %v4856_v6, %v458_v49  ;;  %v985_v54 = vadd.f32 %v894_v30, %v743_v18  ;;  %v1376_v22 = vsel %vm1343_vm4, %v1374_v46, %v1375_v48 }
  0x99   : > { %v1750_v40 = vmul.f32 %v4858_v7, %v457_v17  ;;  %v1751_v43 = vmul.f32 %v4858_v7, %v458_v49  ;;  %v1617_v16 = vrot.slane %v1508_v41, 5  ;;  %v542_v61 = vmul.f32 %v4841_v2, %v459_v12  ;;  %v460_v17 = vld [vmem:[#allocation2 + $0xb0] sm:$0xff] }
  0x9a   : > { %v1226_v55 = vadd.f32 %v1134_v44, %v984_v51  ;;  %v1619_v62 = vrot.slane %v1509_v27, 5  ;;  %v1227_v19 = vadd.f32 %v1136_v34, %v985_v54  ;;  %v784_v21 = vmul.f32 %v4843_v3, %v459_v12 }
  0x9b   : > { %v1859_v24 = vrot.slane %v1750_v40, 6  ;;  %v1861_v14 = vrot.slane %v1751_v43, 6  ;;  %v1378_v56 = vsel %vm1343_vm4, %v1375_v48, %v1377_v52  ;;  %v1618_v25 = vsel %vm1585_vm5, %v1616_v32, %v1617_v16 }
  0x9c   : > { %v1468_v59 = vadd.f32 %v1376_v22, %v1226_v55  ;;  %v502_v46 = vmul.f32 %v4867_v8, %v459_v12  ;;  %v1469_v28 = vadd.f32 %v1378_v56, %v1227_v19  ;;  %v1620_v49 = vsel %vm1585_vm5, %v1617_v16, %v1619_v62 }
  0x9d   : > { %v1860_v23 = vsel %vm1827_vm6, %v1858_v38, %v1859_v24  ;;  %v653_v29 = vrot.slane %v542_v61, 1  ;;  %v1862_v47 = vsel %vm1827_vm6, %v1859_v24, %v1861_v14  ;;  %v1026_v58 = vmul.f32 %v4845_v4, %v459_v12 }
  0x9e   : > { %v1710_v36 = vadd.f32 %v1618_v25, %v1468_v59  ;;  %v1268_v37 = vmul.f32 %v4854_v5, %v459_v12  ;;  %v1711_v26 = vadd.f32 %v1620_v49, %v1469_v28  ;;  %v895_v35 = vrot.slane %v784_v21, 2  ;;  %v462_v25 = vld [vmem:[#allocation2 + $0xc0] sm:$0xff] }
  0x9f   : > { %v1510_v32 = vmul.f32 %v4856_v6, %v459_v12  ;;  %v543_v45 = vmul.f32 %v4841_v2, %v460_v17  ;;  %v1137_v50 = vrot.slane %v1026_v58, 3  ;;  %v1752_v38 = vmul.f32 %v4858_v7, %v459_v12 }
  0xa0   : > { %v5499_v48 = vadd.f32 %v1860_v23, %v1710_v36   ;;  %v503_v0 = vmul.f32 %v4867_v8, %v460_v17  ;;  %v5503_v52 = vadd.f32 %v1862_v47, %v1711_v26   ;;  %v1379_v18 = vrot.slane %v1268_v37, 4 }
  0xa1   : > { %v544_v9 = vmul.f32 %v4841_v2, %v461_v13  ;;  %v654_v30 = vrot.slane %v543_v45, 1  ;;  %v785_v44 = vmul.f32 %v4843_v3, %v460_v17  ;;  %v786_v51 = vmul.f32 %v4843_v3, %v461_v13 }
  0xa2   : > { %v1027_v34 = vmul.f32 %v4845_v4, %v460_v17  ;;  %v1028_v41 = vmul.f32 %v4845_v4, %v461_v13  ;;  %v1269_v12 = vmul.f32 %v4854_v5, %v460_v17  ;;  %v1270_v22 = vmul.f32 %v4854_v5, %v461_v13 }
  0xa3   : > { %v655_v27 = vsel %vm617_vm1, %v653_v29, %v654_v30  ;;  %v656_v54 = vrot.slane %v544_v9, 1  ;;  %v896_v43 = vrot.slane %v785_v44, 2  ;;  %v898_v55 = vrot.slane %v786_v51, 2 }
  0xa4   : > { %v744_v40 = vadd.f32 %v655_v27, %v502_v46  ;;  %v1138_v16 = vrot.slane %v1027_v34, 3  ;;  %v1621_v62 = vrot.slane %v1510_v32, 5  ;;  %v1140_v19 = vrot.slane %v1028_v41, 3 }
  0xa5   : > { %v657_v61 = vsel %vm617_vm1, %v654_v30, %v656_v54  ;;  %v1380_v24 = vrot.slane %v1269_v12, 4  ;;  %v1863_v14 = vrot.slane %v1752_v38, 6  ;;  %v897_v56 = vsel %vm859_vm2, %v895_v35, %v896_v43 }
  0xa6   : > { %v745_v21 = vadd.f32 %v657_v61, %v503_v0  ;;  %v1382_v59 = vrot.slane %v1270_v22, 4  ;;  %v899_v28 = vsel %vm859_vm2, %v896_v43, %v898_v55  ;;  %v986_v49 = vadd.f32 %v897_v56, %v744_v40 }
  0xa7   : > { %v1139_v23 = vsel %vm1101_vm3, %v1137_v50, %v1138_v16  ;;  %v1141_v46 = vsel %vm1101_vm3, %v1138_v16, %v1140_v19  ;;  %v1511_v36 = vmul.f32 %v4856_v6, %v460_v17  ;;  %v1512_v47 = vmul.f32 %v4856_v6, %v461_v13  ;;  %v464_v16 = vld [vmem:[#allocation2 + $0xd0] sm:$0x3f] }
  0xa8   : > { %v987_v29 = vadd.f32 %v899_v28, %v745_v21  ;;  %v1753_v58 = vmul.f32 %v4858_v7, %v460_v17  ;;  %v1228_v37 = vadd.f32 %v1139_v23, %v986_v49  ;;  %v1381_v26 = vsel %vm1343_vm4, %v1379_v18, %v1380_v24  ;;  %v463_v18 = vld [vmem:[#allocation2 + $0xc8] sm:$0xff] }
  0xa9   : > { %v1754_v35 = vmul.f32 %v4858_v7, %v461_v13  ;;  %v545_v32 = vmul.f32 %v4841_v2, %v462_v25  ;;  %v1622_v38 = vrot.slane %v1511_v36, 5  ;;  %v1624_v0 = vrot.slane %v1512_v47, 5 }
  0xaa   : > { %v1229_v45 = vadd.f32 %v1141_v46, %v987_v29  ;;  %v1864_v50 = vrot.slane %v1753_v58, 6  ;;  %v1383_v9 = vsel %vm1343_vm4, %v1380_v24, %v1382_v59  ;;  %v1470_v30 = vadd.f32 %v1381_v26, %v1228_v37 }
  0xab   : > { %v1866_v44 = vrot.slane %v1754_v35, 6  ;;  %v787_v51 = vmul.f32 %v4843_v3, %v462_v25  ;;  %v1623_v17 = vsel %vm1585_vm5, %v1621_v62, %v1622_v38  ;;  %v504_v41 = vmul.f32 %v4867_v8, %v462_v25 }
  0xac   : > { %v1471_v34 = vadd.f32 %v1383_v9, %v1229_v45  ;;  %v1625_v13 = vsel %vm1585_vm5, %v1622_v38, %v1624_v0  ;;  %v1712_v27 = vadd.f32 %v1623_v17, %v1470_v30  ;;  %v658_v54 = vrot.slane %v545_v32, 1 }
  0xad   : > { %v1029_v12 = vmul.f32 %v4845_v4, %v462_v25  ;;  %v1865_v40 = vsel %vm1827_vm6, %v1863_v14, %v1864_v50  ;;  %v1867_v43 = vsel %vm1827_vm6, %v1864_v50, %v1866_v44  ;;  %v900_v55 = vrot.slane %v787_v51, 2 }
  0xae   : > { %v1713_v22 = vadd.f32 %v1625_v13, %v1471_v34  ;;  %v5532_v61 = vadd.f32 %v1865_v40, %v1712_v27   ;;  %v1271_v62 = vmul.f32 %v4854_v5, %v462_v25  ;;  %v1513_v19 = vmul.f32 %v4856_v6, %v462_v25 }
  0xaf   : > { %v546_v24 = vmul.f32 %v4841_v2, %v463_v18  ;;  %v1142_v56 = vrot.slane %v1029_v12, 3  ;;  %v1755_v59 = vmul.f32 %v4858_v7, %v462_v25  ;;  %v505_v28 = vmul.f32 %v4867_v8, %v463_v18 }
  0xb0   : > { %v5537_v21 = vadd.f32 %v1867_v43, %v1713_v22   ;;  %v547_v14 = vmul.f32 %v4841_v2, %v464_v16  ;;  %v788_v23 = vmul.f32 %v4843_v3, %v463_v18  ;;  %v789_v46 = vmul.f32 %v4843_v3, %v464_v16 }
  0xb1   : > { %v659_v49 = vrot.slane %v546_v24, 1  ;;  %v1030_v29 = vmul.f32 %v4845_v4, %v463_v18  ;;  %v1031_v36 = vmul.f32 %v4845_v4, %v464_v16  ;;  %v1272_v47 = vmul.f32 %v4854_v5, %v463_v18 }
  0xb2   : > { %v1273_v58 = vmul.f32 %v4854_v5, %v464_v16  ;;  %v661_v25 = vrot.slane %v547_v14, 1  ;;  %v901_v26 = vrot.slane %v788_v23, 2  ;;  %v903_v35 = vrot.slane %v789_v46, 2 }
  0xb3   : > { %v660_v37 = vsel %vm617_vm1, %v658_v54, %v659_v49  ;;  %v1384_v32 = vrot.slane %v1271_v62, 4  ;;  %v1626_v45 = vrot.slane %v1513_v19, 5  ;;  %v1143_v0 = vrot.slane %v1030_v29, 3 }
  0xb4   : > { %v746_v38 = vadd.f32 %v660_v37, %v504_v41  ;;  %v662_v50 = vsel %vm617_vm1, %v659_v49, %v661_v25  ;;  %v902_v9 = vsel %vm859_vm2, %v900_v55, %v901_v26  ;;  %v1145_v30 = vrot.slane %v1031_v36, 3 }
  0xb5   : > { %v1385_v44 = vrot.slane %v1272_v47, 4  ;;  %v1868_v51 = vrot.slane %v1755_v59, 6  ;;  %v747_v34 = vadd.f32 %v662_v50, %v505_v28  ;;  %v904_v17 = vsel %vm859_vm2, %v901_v26, %v903_v35 }
  0xb6   : > { %v988_v13 = vadd.f32 %v902_v9, %v746_v38  ;;  %v1144_v27 = vsel %vm1101_vm3, %v1142_v56, %v1143_v0  ;;  %v1387_v54 = vrot.slane %v1273_v58, 4  ;;  %v1514_v12 = vmul.f32 %v4856_v6, %v463_v18  ;;  %v4176_v58 = vld [vmem:[%s5168_s11 + $0x40] sm:$0xff]  }
  0xb7   : > { %v1515_v22 = vmul.f32 %v4856_v6, %v464_v16  ;;  %v989_v41 = vadd.f32 %v904_v17, %v747_v34  ;;  %v1756_v43 = vmul.f32 %v4858_v7, %v463_v18  ;;  %v1757_v55 = vmul.f32 %v4858_v7, %v464_v16  ;;  %v4175_v18 = vld [vmem:[%s5168_s11 + $0x38] sm:$0xff]   ;;  %v5580_v34 = vld [vmem:[%s5168_s11 + $0x48] sm:$0xff]  }
  0xb8   : > { %v1230_v40 = vadd.f32 %v1144_v27, %v988_v13  ;;  %v1146_v62 = vsel %vm1101_vm3, %v1143_v0, %v1145_v30  ;;  %v1386_v19 = vsel %vm1343_vm4, %v1384_v32, %v1385_v44  ;;  %v1627_v24 = vrot.slane %v1514_v12, 5  ;;  %v465_v32 = vld [vmem:[#allocation2 + $0xd8] sm:$0xff] }
  0xb9   : > { %v1629_v59 = vrot.slane %v1515_v22, 5  ;;  %v1231_v56 = vadd.f32 %v1146_v62, %v989_v41  ;;  %v1869_v14 = vrot.slane %v1756_v43, 6  ;;  %v1388_v49 = vsel %vm1343_vm4, %v1385_v44, %v1387_v54 }
  0xba   : > { %v1472_v28 = vadd.f32 %v1386_v19, %v1230_v40  ;;  %v1628_v23 = vsel %vm1585_vm5, %v1626_v45, %v1627_v24  ;;  %v1871_v46 = vrot.slane %v1757_v55, 6  ;;  %v4132_v26 = vunpack.c.h.bf16 %v5456_v42 }
  0xbb   : > { %v1473_v29 = vadd.f32 %v1388_v49, %v1231_v56  ;;  %v1630_v16 = vsel %vm1585_vm5, %v1627_v24, %v1629_v59  ;;  %v1870_v47 = vsel %vm1827_vm6, %v1868_v51, %v1869_v14  ;;  %v4135_v38 = vunpack.c.l.bf16 %v4175_v18 }
  0xbc   : > { %v1714_v36 = vadd.f32 %v1628_v23, %v1472_v28  ;;  %v1872_v35 = vsel %vm1827_vm6, %v1869_v14, %v1871_v46  ;;  %419 = vst.msk [vmem:[#allocation2 + $0xe3] sm:$0xff] %vm273_vm0, %v4132_v26  ;;  %v4136_v0 = vunpack.c.h.bf16 %v4175_v18  ;;  %v4139_v50 = vunpack.c.l.bf16 %v4176_v58 }
  0xbd   : > { %v1715_v37 = vadd.f32 %v1630_v16, %v1473_v29  ;;  %420 = vst.msk [vmem:[#allocation2 + $0xf3] sm:$0xff] %vm273_vm0, %v4135_v38  ;;  %v4140_v9 = vunpack.c.h.bf16 %v4176_v58  ;;  %v548_v30 = vmul.f32 %v4841_v2, %v465_v32  ;;  %v790_v42 = vmul.f32 %v4843_v3, %v465_v32 }
  0xbe   : > { %v5565_v25 = vadd.f32 %v1870_v47, %v1714_v36   ;;  %421 = vst.msk [vmem:[#allocation2 + $0xfb] sm:$0xff] %vm273_vm0, %v4136_v0  ;;  %v1032_v44 = vmul.f32 %v4845_v4, %v465_v32  ;;  %v1274_v51 = vmul.f32 %v4854_v5, %v465_v32  ;;  %v1516_v17 = vmul.f32 %v4856_v6, %v465_v32 }
  0xbf   : > { %v5569_v45 = vadd.f32 %v1872_v35, %v1715_v37   ;;  %422 = vst.msk [vmem:[#allocation2 + $0x10b] sm:$0xff] %vm273_vm0, %v4139_v50  ;;  %v4143_v13 = vunpack.c.l.bf16 %v5580_v34  ;;  %v506_v27 = vmul.f32 %v4867_v8, %v465_v32  ;;  %v663_v54 = vrot.slane %v548_v30, 1 }
  0xc0   : > { %423 = vst.msk [vmem:[#allocation2 + $0x113] sm:$0xff] %vm273_vm0, %v4140_v9  ;;  %v905_v12 = vrot.slane %v790_v42, 2  ;;  %v1147_v22 = vrot.slane %v1032_v44, 3  ;;  %v1389_v41 = vrot.slane %v1274_v51, 4  ;;  %v1758_v40 = vmul.f32 %v4858_v7, %v465_v32 }
  0xc1   : > { %424 = vst.msk [vmem:[#allocation2 + $0x123] sm:$0xff] %vm273_vm0, %v4143_v13  ;;  %v1631_v62 = vrot.slane %v1516_v17, 5 }
  0xc2   : > { %v1873_v37 = vrot.slane %v1758_v40, 6 }
  0xc3   : > { %v466_v43 = vld [vmem:[#allocation2 + $0xe0] sm:$0xff]  ;;  %v467_v55 = vld [vmem:[#allocation2 + $0xe8] sm:$0x3f] }
  0xc4   : > { %v549_v19 = vmul.f32 %v4841_v2, %v466_v43  ;;  %v550_v24 = vmul.f32 %v4841_v2, %v467_v55  ;;  %v791_v59 = vmul.f32 %v4843_v3, %v466_v43  ;;  %v792_v56 = vmul.f32 %v4843_v3, %v467_v55  ;;  %v468_v30 = vld [vmem:[#allocation2 + $0xf0] sm:$0xff] }
  0xc5   : > { %v1033_v28 = vmul.f32 %v4845_v4, %v466_v43  ;;  %v1034_v14 = vmul.f32 %v4845_v4, %v467_v55  ;;  %v1275_v49 = vmul.f32 %v4854_v5, %v466_v43  ;;  %v1276_v36 = vmul.f32 %v4854_v5, %v467_v55 }
  0xc6   : > { %v664_v23 = vrot.slane %v549_v19, 1  ;;  %v666_v46 = vrot.slane %v550_v24, 1  ;;  %v906_v29 = vrot.slane %v791_v59, 2  ;;  %v507_v18 = vmul.f32 %v4867_v8, %v466_v43 }
  0xc7   : > { %v908_v16 = vrot.slane %v792_v56, 2  ;;  %v1148_v47 = vrot.slane %v1033_v28, 3  ;;  %v1150_v58 = vrot.slane %v1034_v14, 3  ;;  %v1390_v32 = vrot.slane %v1275_v49, 4 }
  0xc8   : > { %v665_v26 = vsel %vm617_vm1, %v663_v54, %v664_v23  ;;  %v667_v35 = vsel %vm617_vm1, %v664_v23, %v666_v46  ;;  %v907_v50 = vsel %vm859_vm2, %v905_v12, %v906_v29  ;;  %v1392_v9 = vrot.slane %v1276_v36, 4 }
  0xc9   : > { %v748_v38 = vadd.f32 %v665_v26, %v506_v27  ;;  %v749_v0 = vadd.f32 %v667_v35, %v507_v18  ;;  %v909_v42 = vsel %vm859_vm2, %v906_v29, %v908_v16  ;;  %v1149_v44 = vsel %vm1101_vm3, %v1147_v22, %v1148_v47  ;;  %v469_v16 = vld [vmem:[#allocation2 + $0xf8] sm:$0xff] }
  0xca   : > { %v1151_v51 = vsel %vm1101_vm3, %v1148_v47, %v1150_v58  ;;  %v1517_v17 = vmul.f32 %v4856_v6, %v466_v43  ;;  %v1518_v54 = vmul.f32 %v4856_v6, %v467_v55  ;;  %v1759_v19 = vmul.f32 %v4858_v7, %v466_v43 }
  0xcb   : > { %v990_v13 = vadd.f32 %v907_v50, %v748_v38  ;;  %v991_v40 = vadd.f32 %v909_v42, %v749_v0  ;;  %v1391_v27 = vsel %vm1343_vm4, %v1389_v41, %v1390_v32  ;;  %v1760_v12 = vmul.f32 %v4858_v7, %v467_v55  ;;  %v470_v50 = vld [vmem:[#allocation2 + $0x100] sm:$0x3f] }
  0xcc   : > { %v1632_v24 = vrot.slane %v1517_v17, 5  ;;  %v551_v59 = vmul.f32 %v4841_v2, %v468_v30  ;;  %v1634_v22 = vrot.slane %v1518_v54, 5  ;;  %v1874_v14 = vrot.slane %v1759_v19, 6 }
  0xcd   : > { %v1232_v56 = vadd.f32 %v1149_v44, %v990_v13  ;;  %v1233_v28 = vadd.f32 %v1151_v51, %v991_v40  ;;  %v1393_v49 = vsel %vm1343_vm4, %v1390_v32, %v1392_v9  ;;  %v1876_v23 = vrot.slane %v1760_v12, 6 }
  0xce   : > { %v508_v46 = vmul.f32 %v4867_v8, %v468_v30  ;;  %v793_v29 = vmul.f32 %v4843_v3, %v468_v30  ;;  %v1633_v41 = vsel %vm1585_vm5, %v1631_v62, %v1632_v24  ;;  %v668_v18 = vrot.slane %v551_v59, 1 }
  0xcf   : > { %v1474_v36 = vadd.f32 %v1391_v27, %v1232_v56  ;;  %v1475_v43 = vadd.f32 %v1393_v49, %v1233_v28  ;;  %v1635_v55 = vsel %vm1585_vm5, %v1632_v24, %v1634_v22  ;;  %v1875_v47 = vsel %vm1827_vm6, %v1873_v37, %v1874_v14 }
  0xd0   : > { %v1035_v58 = vmul.f32 %v4845_v4, %v468_v30  ;;  %v1277_v26 = vmul.f32 %v4854_v5, %v468_v30  ;;  %v1877_v38 = vsel %vm1827_vm6, %v1874_v14, %v1876_v23  ;;  %v910_v0 = vrot.slane %v793_v29, 2 }
  0xd1   : > { %v1716_v35 = vadd.f32 %v1633_v41, %v1474_v36  ;;  %v1717_v32 = vadd.f32 %v1635_v55, %v1475_v43  ;;  %v1519_v42 = vmul.f32 %v4856_v6, %v468_v30  ;;  %v1761_v62 = vmul.f32 %v4858_v7, %v468_v30 }
  0xd2   : > { %v1152_v9 = vrot.slane %v1035_v58, 3  ;;  %v552_v44 = vmul.f32 %v4841_v2, %v469_v16  ;;  %v1394_v17 = vrot.slane %v1277_v26, 4  ;;  %v509_v13 = vmul.f32 %v4867_v8, %v469_v16 }
  0xd3   : > { %v5621_v51 = vadd.f32 %v1875_v47, %v1716_v35   ;;  %v5623_v37 = vadd.f32 %v1877_v38, %v1717_v32   ;;  %v553_v40 = vmul.f32 %v4841_v2, %v470_v50  ;;  %v794_v19 = vmul.f32 %v4843_v3, %v469_v16  ;;  %v471_v38 = vld [vmem:[#allocation2 + $0x108] sm:$0xff] }
  0xd4   : > { %v669_v54 = vrot.slane %v552_v44, 1  ;;  %v795_v27 = vmul.f32 %v4843_v3, %v470_v50  ;;  %v1036_v24 = vmul.f32 %v4845_v4, %v469_v16  ;;  %v1037_v30 = vmul.f32 %v4845_v4, %v470_v50 }
  0xd5   : > { %v1278_v12 = vmul.f32 %v4854_v5, %v469_v16  ;;  %v1279_v59 = vmul.f32 %v4854_v5, %v470_v50  ;;  %v671_v28 = vrot.slane %v553_v40, 1  ;;  %v911_v22 = vrot.slane %v794_v19, 2 }
  0xd6   : > { %v670_v56 = vsel %vm617_vm1, %v668_v18, %v669_v54  ;;  %v913_v14 = vrot.slane %v795_v27, 2  ;;  %v1636_v49 = vrot.slane %v1519_v42, 5  ;;  %v1153_v29 = vrot.slane %v1036_v24, 3 }
  0xd7   : > { %v750_v23 = vadd.f32 %v670_v56, %v508_v46  ;;  %v1155_v36 = vrot.slane %v1037_v30, 3  ;;  %v1878_v43 = vrot.slane %v1761_v62, 6  ;;  %v672_v41 = vsel %vm617_vm1, %v669_v54, %v671_v28 }
  0xd8   : > { %v912_v55 = vsel %vm859_vm2, %v910_v0, %v911_v22  ;;  %v1395_v47 = vrot.slane %v1278_v12, 4  ;;  %v751_v58 = vadd.f32 %v672_v41, %v509_v13  ;;  %v914_v26 = vsel %vm859_vm2, %v911_v22, %v913_v14 }
  0xd9   : > { %v992_v35 = vadd.f32 %v912_v55, %v750_v23  ;;  %v1397_v32 = vrot.slane %v1279_v59, 4  ;;  %v1154_v18 = vsel %vm1101_vm3, %v1152_v9, %v1153_v29  ;;  %v1156_v44 = vsel %vm1101_vm3, %v1153_v29, %v1155_v36  ;;  %v472_v23 = vld [vmem:[#allocation2 + $0x110] sm:$0xff] }
  0xda   : > { %v1520_v46 = vmul.f32 %v4856_v6, %v469_v16  ;;  %v1521_v42 = vmul.f32 %v4856_v6, %v470_v50  ;;  %v993_v62 = vadd.f32 %v914_v26, %v751_v58  ;;  %v1762_v54 = vmul.f32 %v4858_v7, %v469_v16  ;;  %v473_v58 = vld [vmem:[#allocation2 + $0x118] sm:$0x3f] }
  0xdb   : > { %v1234_v40 = vadd.f32 %v1154_v18, %v992_v35  ;;  %v1763_v0 = vmul.f32 %v4858_v7, %v470_v50  ;;  %v1396_v13 = vsel %vm1343_vm4, %v1394_v17, %v1395_v47  ;;  %v554_v24 = vmul.f32 %v4841_v2, %v471_v38 }
  0xdc   : > { %v1637_v19 = vrot.slane %v1520_v46, 5  ;;  %v1639_v27 = vrot.slane %v1521_v42, 5  ;;  %v1235_v30 = vadd.f32 %v1156_v44, %v993_v62  ;;  %v1879_v12 = vrot.slane %v1762_v54, 6 }
  0xdd   : > { %v1476_v9 = vadd.f32 %v1396_v13, %v1234_v40  ;;  %v1881_v59 = vrot.slane %v1763_v0, 6  ;;  %v1398_v56 = vsel %vm1343_vm4, %v1395_v47, %v1397_v32  ;;  %v796_v22 = vmul.f32 %v4843_v3, %v471_v38 }
  0xde   : > { %v1638_v28 = vsel %vm1585_vm5, %v1636_v49, %v1637_v19  ;;  %v1477_v14 = vadd.f32 %v1398_v56, %v1235_v30  ;;  %v1640_v16 = vsel %vm1585_vm5, %v1637_v19, %v1639_v27  ;;  %v510_v17 = vmul.f32 %v4867_v8, %v471_v38 }
  0xdf   : > { %v1718_v50 = vadd.f32 %v1638_v28, %v1476_v9  ;;  %v1880_v29 = vsel %vm1827_vm6, %v1878_v43, %v1879_v12  ;;  %v1882_v36 = vsel %vm1827_vm6, %v1879_v12, %v1881_v59  ;;  %v673_v41 = vrot.slane %v554_v24, 1 }
  0xe0   : > { %v1038_v55 = vmul.f32 %v4845_v4, %v471_v38  ;;  %v1719_v47 = vadd.f32 %v1640_v16, %v1477_v14  ;;  %v915_v49 = vrot.slane %v796_v22, 2  ;;  %v1280_v35 = vmul.f32 %v4854_v5, %v471_v38 }
  0xe1   : > { %v5653_v26 = vadd.f32 %v1880_v29, %v1718_v50   ;;  %v1522_v32 = vmul.f32 %v4856_v6, %v471_v38  ;;  %v1764_v18 = vmul.f32 %v4858_v7, %v471_v38  ;;  %v511_v44 = vmul.f32 %v4867_v8, %v472_v23 }
  0xe2   : > { %v555_v43 = vmul.f32 %v4841_v2, %v472_v23  ;;  %v5660_v46 = vadd.f32 %v1882_v36, %v1719_v47   ;;  %v1157_v42 = vrot.slane %v1038_v55, 3  ;;  %v556_v62 = vmul.f32 %v4841_v2, %v473_v58 }
  0xe3   : > { %v797_v40 = vmul.f32 %v4843_v3, %v472_v23  ;;  %v798_v0 = vmul.f32 %v4843_v3, %v473_v58  ;;  %v1039_v13 = vmul.f32 %v4845_v4, %v472_v23  ;;  %v1040_v19 = vmul.f32 %v4845_v4, %v473_v58 }
  0xe4   : > { %v674_v54 = vrot.slane %v555_v43, 1  ;;  %v676_v27 = vrot.slane %v556_v62, 1  ;;  %v1281_v24 = vmul.f32 %v4854_v5, %v472_v23  ;;  %v1282_v30 = vmul.f32 %v4854_v5, %v473_v58 }
  0xe5   : > { %v916_v38 = vrot.slane %v797_v40, 2  ;;  %v1399_v9 = vrot.slane %v1280_v35, 4  ;;  %v918_v59 = vrot.slane %v798_v0, 2  ;;  %v1158_v56 = vrot.slane %v1039_v13, 3 }
  0xe6   : > { %v675_v12 = vsel %vm617_vm1, %v673_v41, %v674_v54  ;;  %v1641_v28 = vrot.slane %v1522_v32, 5  ;;  %v677_v22 = vsel %vm617_vm1, %v674_v54, %v676_v27  ;;  %v1160_v16 = vrot.slane %v1040_v19, 3 }
  0xe7   : > { %v752_v14 = vadd.f32 %v675_v12, %v510_v17  ;;  %v753_v50 = vadd.f32 %v677_v22, %v511_v44  ;;  %v917_v29 = vsel %vm859_vm2, %v915_v49, %v916_v38  ;;  %v919_v36 = vsel %vm859_vm2, %v916_v38, %v918_v59  ;;  %v4178_v59 = vld [vmem:[%s5168_s11 + $0x50] sm:$0xff]  }
  0xe8   : > { %v1400_v55 = vrot.slane %v1281_v24, 4  ;;  %v1159_v43 = vsel %vm1101_vm3, %v1157_v42, %v1158_v56  ;;  %v1402_v62 = vrot.slane %v1282_v30, 4  ;;  %v1523_v35 = vmul.f32 %v4856_v6, %v472_v23 }
  0xe9   : > { %v994_v47 = vadd.f32 %v917_v29, %v752_v14  ;;  %v995_v41 = vadd.f32 %v919_v36, %v753_v50  ;;  %v1524_v40 = vmul.f32 %v4856_v6, %v473_v58  ;;  %v1765_v32 = vmul.f32 %v4858_v7, %v472_v23  ;;  %v4179_v14 = vld [vmem:[%s5168_s11 + $0x58] sm:$0xff]  }
  0xea   : > { %v1766_v17 = vmul.f32 %v4858_v7, %v473_v58  ;;  %v1883_v44 = vrot.slane %v1764_v18, 6  ;;  %v1161_v49 = vsel %vm1101_vm3, %v1158_v56, %v1160_v16  ;;  %v1642_v0 = vrot.slane %v1523_v35, 5 }
  0xeb   : > { %v1236_v54 = vadd.f32 %v1159_v43, %v994_v47  ;;  %v1237_v13 = vadd.f32 %v1161_v49, %v995_v41  ;;  %v1401_v42 = vsel %vm1343_vm4, %v1399_v9, %v1400_v55  ;;  %v1644_v19 = vrot.slane %v1524_v40, 5  ;;  %v5701_v40 = vld [vmem:[%s5168_s11 + $0x60] sm:$0xff]  }
  0xec   : > { %v1884_v27 = vrot.slane %v1765_v32, 6  ;;  %v1403_v38 = vsel %vm1343_vm4, %v1400_v55, %v1402_v62  ;;  %v1886_v30 = vrot.slane %v1766_v17, 6  ;;  %v1643_v23 = vsel %vm1585_vm5, %v1641_v28, %v1642_v0  ;;  %v474_v55 = vld [vmem:[#allocation2 + $0x120] sm:$0xff] }
  0xed   : > { %v1478_v24 = vadd.f32 %v1401_v42, %v1236_v54  ;;  %v1479_v12 = vadd.f32 %v1403_v38, %v1237_v13  ;;  %v1645_v58 = vsel %vm1585_vm5, %v1642_v0, %v1644_v19  ;;  %v4144_v50 = vunpack.c.h.bf16 %v5580_v34 }
  0xee   : > { %v1885_v22 = vsel %vm1827_vm6, %v1883_v44, %v1884_v27  ;;  %v1887_v16 = vsel %vm1827_vm6, %v1884_v27, %v1886_v30  ;;  %v4147_v29 = vunpack.c.l.bf16 %v4178_v59  ;;  %v4148_v28 = vunpack.c.h.bf16 %v4178_v59 }
  0xef   : > { %v1720_v18 = vadd.f32 %v1643_v23, %v1478_v24  ;;  %v1721_v56 = vadd.f32 %v1645_v58, %v1479_v12  ;;  %425 = vst.msk [vmem:[#allocation2 + $0x12b] sm:$0xff] %vm273_vm0, %v4144_v50  ;;  %v4151_v47 = vunpack.c.l.bf16 %v4179_v14  ;;  %v4152_v43 = vunpack.c.h.bf16 %v4179_v14 }
  0xf0   : > { %426 = vst.msk [vmem:[#allocation2 + $0x13b] sm:$0xff] %vm273_vm0, %v4147_v29  ;;  %v557_v62 = vmul.f32 %v4841_v2, %v474_v55  ;;  %v799_v35 = vmul.f32 %v4843_v3, %v474_v55  ;;  %v1041_v41 = vmul.f32 %v4845_v4, %v474_v55  ;;  %v1283_v34 = vmul.f32 %v4854_v5, %v474_v55 }
  0xf1   : > { %v5687_v9 = vadd.f32 %v1885_v22, %v1720_v18   ;;  %v5690_v36 = vadd.f32 %v1887_v16, %v1721_v56   ;;  %427 = vst.msk [vmem:[#allocation2 + $0x143] sm:$0xff] %vm273_vm0, %v4148_v28  ;;  %v1525_v32 = vmul.f32 %v4856_v6, %v474_v55  ;;  %v4155_v17 = vunpack.c.l.bf16 %v5701_v40 }
  0xf2   : > { %428 = vst.msk [vmem:[#allocation2 + $0x153] sm:$0xff] %vm273_vm0, %v4151_v47  ;;  %v512_v44 = vmul.f32 %v4867_v8, %v474_v55  ;;  %v678_v49 = vrot.slane %v557_v62, 1  ;;  %v920_v54 = vrot.slane %v799_v35, 2  ;;  %v1162_v0 = vrot.slane %v1041_v41, 3 }
  0xf3   : > { %429 = vst.msk [vmem:[#allocation2 + $0x15b] sm:$0xff] %vm273_vm0, %v4152_v43  ;;  %v1404_v13 = vrot.slane %v1283_v34, 4  ;;  %v1767_v42 = vmul.f32 %v4858_v7, %v474_v55  ;;  %v1646_v38 = vrot.slane %v1525_v32, 5 }
  0xf4   : > { %430 = vst.msk [vmem:[#allocation2 + $0x16b] sm:$0xff] %vm273_vm0, %v4155_v17 }
  0xf5   : > { %v1888_v47 = vrot.slane %v1767_v42, 6 }
  0xf6   : > { %v475_v19 = vld [vmem:[#allocation2 + $0x128] sm:$0xff]  ;;  %v476_v27 = vld [vmem:[#allocation2 + $0x130] sm:$0x3f] }
  0xf7   : > { %v558_v24 = vmul.f32 %v4841_v2, %v475_v19  ;;  %v559_v30 = vmul.f32 %v4841_v2, %v476_v27  ;;  %v800_v12 = vmul.f32 %v4843_v3, %v475_v19  ;;  %v801_v23 = vmul.f32 %v4843_v3, %v476_v27 }
  0xf8   : > { %v1042_v59 = vmul.f32 %v4845_v4, %v475_v19  ;;  %v1043_v58 = vmul.f32 %v4845_v4, %v476_v27  ;;  %v1284_v18 = vmul.f32 %v4854_v5, %v475_v19  ;;  %v1285_v16 = vmul.f32 %v4854_v5, %v476_v27 }
  0xf9   : > { %v679_v56 = vrot.slane %v558_v24, 1  ;;  %v681_v22 = vrot.slane %v559_v30, 1  ;;  %v921_v14 = vrot.slane %v800_v12, 2  ;;  %v513_v50 = vmul.f32 %v4867_v8, %v475_v19  ;;  %v477_v24 = vld [vmem:[#allocation2 + $0x138] sm:$0xff]  ;;  %v480_v15 = vld [vmem:[#allocation2 + $0x150] sm:$0xff] }
  0xfa   : > { %v923_v29 = vrot.slane %v801_v23, 2  ;;  %v1163_v55 = vrot.slane %v1042_v59, 3  ;;  %v1165_v28 = vrot.slane %v1043_v58, 3  ;;  %v1405_v35 = vrot.slane %v1284_v18, 4 }
  0xfb   : > { %v680_v43 = vsel %vm617_vm1, %v678_v49, %v679_v56  ;;  %v682_v62 = vsel %vm617_vm1, %v679_v56, %v681_v22  ;;  %v922_v32 = vsel %vm859_vm2, %v920_v54, %v921_v14  ;;  %v1407_v17 = vrot.slane %v1285_v16, 4 }
  0xfc   : > { %v754_v41 = vadd.f32 %v680_v43, %v512_v44  ;;  %v755_v34 = vadd.f32 %v682_v62, %v513_v50  ;;  %v924_v30 = vsel %vm859_vm2, %v921_v14, %v923_v29  ;;  %v1164_v12 = vsel %vm1101_vm3, %v1162_v0, %v1163_v55 }
  0xfd   : > { %v1166_v23 = vsel %vm1101_vm3, %v1163_v55, %v1165_v28  ;;  %v1526_v59 = vmul.f32 %v4856_v6, %v475_v19  ;;  %v1527_v49 = vmul.f32 %v4856_v6, %v476_v27  ;;  %v1768_v18 = vmul.f32 %v4858_v7, %v475_v19 }
  0xfe   : > { %v996_v42 = vadd.f32 %v922_v32, %v754_v41  ;;  %v997_v58 = vadd.f32 %v924_v30, %v755_v34  ;;  %v1406_v44 = vsel %vm1343_vm4, %v1404_v13, %v1405_v35  ;;  %v1769_v54 = vmul.f32 %v4858_v7, %v476_v27  ;;  %v478_v34 = vld [vmem:[#allocation2 + $0x140] sm:$0xff] }
  0xff   : > { %v1647_v56 = vrot.slane %v1526_v59, 5  ;;  %v560_v22 = vmul.f32 %v4841_v2, %v477_v24  ;;  %v1649_v0 = vrot.slane %v1527_v49, 5  ;;  %v1889_v50 = vrot.slane %v1768_v18, 6 }
 0x100   : > { %v1238_v14 = vadd.f32 %v1164_v12, %v996_v42  ;;  %v1239_v16 = vadd.f32 %v1166_v23, %v997_v58  ;;  %v1408_v29 = vsel %vm1343_vm4, %v1405_v35, %v1407_v17  ;;  %v1891_v55 = vrot.slane %v1769_v54, 6  ;;  %v479_v42 = vld [vmem:[#allocation2 + $0x148] sm:$0x3f] }
 0x101   : > { %v514_v28 = vmul.f32 %v4867_v8, %v477_v24  ;;  %v802_v43 = vmul.f32 %v4843_v3, %v477_v24  ;;  %v1648_v13 = vsel %vm1585_vm5, %v1646_v38, %v1647_v56  ;;  %v683_v41 = vrot.slane %v560_v22, 1 }
 0x102   : > { %v1480_v62 = vadd.f32 %v1406_v44, %v1238_v14  ;;  %v1481_v19 = vadd.f32 %v1408_v29, %v1239_v16  ;;  %v1650_v27 = vsel %vm1585_vm5, %v1647_v56, %v1649_v0  ;;  %v1890_v32 = vsel %vm1827_vm6, %v1888_v47, %v1889_v50 }
 0x103   : > { %v1044_v30 = vmul.f32 %v4845_v4, %v477_v24  ;;  %v1286_v12 = vmul.f32 %v4854_v5, %v477_v24  ;;  %v1892_v23 = vsel %vm1827_vm6, %v1889_v50, %v1891_v55  ;;  %v925_v59 = vrot.slane %v802_v43, 2 }
 0x104   : > { %v1722_v35 = vadd.f32 %v1648_v13, %v1480_v62  ;;  %v1723_v17 = vadd.f32 %v1650_v27, %v1481_v19  ;;  %v1528_v49 = vmul.f32 %v4856_v6, %v477_v24  ;;  %v1770_v38 = vmul.f32 %v4858_v7, %v477_v24 }
 0x105   : > { %v1167_v58 = vrot.slane %v1044_v30, 3  ;;  %v561_v18 = vmul.f32 %v4841_v2, %v478_v34  ;;  %v1409_v56 = vrot.slane %v1286_v12, 4  ;;  %v515_v54 = vmul.f32 %v4867_v8, %v478_v34 }
 0x106   : > { %v5742_v44 = vadd.f32 %v1890_v32, %v1722_v35   ;;  %v5744_v47 = vadd.f32 %v1892_v23, %v1723_v17   ;;  %v562_v22 = vmul.f32 %v4841_v2, %v479_v42  ;;  %v803_v16 = vmul.f32 %v4843_v3, %v478_v34 }
 0x107   : > { %v684_v14 = vrot.slane %v561_v18, 1  ;;  %v804_v0 = vmul.f32 %v4843_v3, %v479_v42  ;;  %v1045_v50 = vmul.f32 %v4845_v4, %v478_v34  ;;  %v1046_v24 = vmul.f32 %v4845_v4, %v479_v42 }
 0x108   : > { %v1287_v29 = vmul.f32 %v4854_v5, %v478_v34  ;;  %v1288_v55 = vmul.f32 %v4854_v5, %v479_v42  ;;  %v686_v62 = vrot.slane %v562_v22, 1  ;;  %v926_v19 = vrot.slane %v803_v16, 2 }
 0x109   : > { %v685_v43 = vsel %vm617_vm1, %v683_v41, %v684_v14  ;;  %v928_v13 = vrot.slane %v804_v0, 2  ;;  %v1651_v27 = vrot.slane %v1528_v49, 5  ;;  %v1168_v30 = vrot.slane %v1045_v50, 3 }
 0x10a   : > { %v756_v32 = vadd.f32 %v685_v43, %v514_v28  ;;  %v1170_v12 = vrot.slane %v1046_v24, 3  ;;  %v1893_v35 = vrot.slane %v1770_v38, 6  ;;  %v687_v17 = vsel %vm617_vm1, %v684_v14, %v686_v62 }
 0x10b   : > { %v927_v23 = vsel %vm859_vm2, %v925_v59, %v926_v19  ;;  %v1410_v18 = vrot.slane %v1287_v29, 4  ;;  %v757_v20 = vadd.f32 %v687_v17, %v515_v54  ;;  %v929_v60 = vsel %vm859_vm2, %v926_v19, %v928_v13  ;;  %v482_v17 = vld [vmem:[#allocation2 + $0x160] sm:$0x3f] }
 0x10c   : > { %v998_v33 = vadd.f32 %v927_v23, %v756_v32  ;;  %v1412_v53 = vrot.slane %v1288_v55, 4  ;;  %v1169_v41 = vsel %vm1101_vm3, %v1167_v58, %v1168_v30  ;;  %v1171_v22 = vsel %vm1101_vm3, %v1168_v30, %v1170_v12 }
 0x10d   : > { %v1529_v28 = vmul.f32 %v4856_v6, %v478_v34  ;;  %v1530_v49 = vmul.f32 %v4856_v6, %v479_v42  ;;  %v999_v38 = vadd.f32 %v929_v60, %v757_v20  ;;  %v1771_v14 = vmul.f32 %v4858_v7, %v478_v34 }
 0x10e   : > { %v1240_v16 = vadd.f32 %v1169_v41, %v998_v33  ;;  %v1772_v59 = vmul.f32 %v4858_v7, %v479_v42  ;;  %v1411_v54 = vsel %vm1343_vm4, %v1409_v56, %v1410_v18  ;;  %v563_v24 = vmul.f32 %v4841_v2, %v480_v15  ;;  %v481_v56 = vld [vmem:[#allocation2 + $0x158] sm:$0xff] }
 0x10f   : > { %v1652_v0 = vrot.slane %v1529_v28, 5  ;;  %v1654_v50 = vrot.slane %v1530_v49, 5  ;;  %v1241_v29 = vadd.f32 %v1171_v22, %v999_v38  ;;  %v1894_v55 = vrot.slane %v1771_v14, 6 }
 0x110   : > { %v1482_v58 = vadd.f32 %v1411_v54, %v1240_v16  ;;  %v1896_v43 = vrot.slane %v1772_v59, 6  ;;  %v1413_v62 = vsel %vm1343_vm4, %v1410_v18, %v1412_v53  ;;  %v805_v20 = vmul.f32 %v4843_v3, %v480_v15 }
 0x111   : > { %v1653_v19 = vsel %vm1585_vm5, %v1651_v27, %v1652_v0  ;;  %v1483_v33 = vadd.f32 %v1413_v62, %v1241_v29  ;;  %v1655_v60 = vsel %vm1585_vm5, %v1652_v0, %v1654_v50  ;;  %v516_v42 = vmul.f32 %v4867_v8, %v480_v15 }
 0x112   : > { %v1724_v34 = vadd.f32 %v1653_v19, %v1482_v58  ;;  %v1895_v13 = vsel %vm1827_vm6, %v1893_v35, %v1894_v55  ;;  %v1897_v32 = vsel %vm1827_vm6, %v1894_v55, %v1896_v43  ;;  %v688_v30 = vrot.slane %v563_v24, 1 }
 0x113   : > { %v1047_v12 = vmul.f32 %v4845_v4, %v480_v15  ;;  %v1725_v53 = vadd.f32 %v1655_v60, %v1483_v33  ;;  %v930_v27 = vrot.slane %v805_v20, 2  ;;  %v1289_v18 = vmul.f32 %v4854_v5, %v480_v15 }
 0x114   : > { %v5774_v23 = vadd.f32 %v1895_v13, %v1724_v34   ;;  %v1531_v41 = vmul.f32 %v4856_v6, %v480_v15  ;;  %v1773_v22 = vmul.f32 %v4858_v7, %v480_v15  ;;  %v517_v28 = vmul.f32 %v4867_v8, %v481_v56 }
 0x115   : > { %v564_v35 = vmul.f32 %v4841_v2, %v481_v56  ;;  %v5781_v49 = vadd.f32 %v1897_v32, %v1725_v53   ;;  %v1172_v38 = vrot.slane %v1047_v12, 3  ;;  %v565_v16 = vmul.f32 %v4841_v2, %v482_v17 }
 0x116   : > { %v806_v14 = vmul.f32 %v4843_v3, %v481_v56  ;;  %v807_v54 = vmul.f32 %v4843_v3, %v482_v17  ;;  %v1048_v0 = vmul.f32 %v4845_v4, %v481_v56  ;;  %v1049_v50 = vmul.f32 %v4845_v4, %v482_v17 }
 0x117   : > { %v689_v59 = vrot.slane %v564_v35, 1  ;;  %v691_v24 = vrot.slane %v565_v16, 1  ;;  %v1290_v29 = vmul.f32 %v4854_v5, %v481_v56  ;;  %v1291_v58 = vmul.f32 %v4854_v5, %v482_v17 }
 0x118   : > { %v931_v15 = vrot.slane %v806_v14, 2  ;;  %v1414_v55 = vrot.slane %v1289_v18, 4  ;;  %v933_v62 = vrot.slane %v807_v54, 2  ;;  %v1173_v19 = vrot.slane %v1048_v0, 3 }
 0x119   : > { %v690_v43 = vsel %vm617_vm1, %v688_v30, %v689_v59  ;;  %v1656_v20 = vrot.slane %v1531_v41, 5  ;;  %v692_v33 = vsel %vm617_vm1, %v689_v59, %v691_v24  ;;  %v1175_v34 = vrot.slane %v1049_v50, 3 }
 0x11a   : > { %v758_v60 = vadd.f32 %v690_v43, %v516_v42  ;;  %v759_v13 = vadd.f32 %v692_v33, %v517_v28  ;;  %v932_v32 = vsel %vm859_vm2, %v930_v27, %v931_v15  ;;  %v934_v12 = vsel %vm859_vm2, %v931_v15, %v933_v62 }
 0x11b   : > { %v1415_v53 = vrot.slane %v1290_v29, 4  ;;  %v1174_v16 = vsel %vm1101_vm3, %v1172_v38, %v1173_v19  ;;  %v1417_v14 = vrot.slane %v1291_v58, 4  ;;  %v1532_v18 = vmul.f32 %v4856_v6, %v481_v56 }
 0x11c   : > { %v1000_v35 = vadd.f32 %v932_v32, %v758_v60  ;;  %v1001_v30 = vadd.f32 %v934_v12, %v759_v13  ;;  %v1533_v54 = vmul.f32 %v4856_v6, %v482_v17  ;;  %v1774_v41 = vmul.f32 %v4858_v7, %v481_v56 }
 0x11d   : > { %v1775_v42 = vmul.f32 %v4858_v7, %v482_v17  ;;  %v1898_v28 = vrot.slane %v1773_v22, 6  ;;  %v1176_v27 = vsel %vm1101_vm3, %v1173_v19, %v1175_v34  ;;  %v1657_v0 = vrot.slane %v1532_v18, 5  ;;  %v4181_v17 = vld [vmem:[%s5168_s11 + $0x68] sm:$0xff]   ;;  %v4182_v34 = vld [vmem:[%s5168_s11 + $0x70] sm:$0xff]  }
 0x11e   : > { %v1242_v59 = vadd.f32 %v1174_v16, %v1000_v35  ;;  %v1243_v50 = vadd.f32 %v1176_v27, %v1001_v30  ;;  %v1416_v38 = vsel %vm1343_vm4, %v1414_v55, %v1415_v53  ;;  %v1659_v24 = vrot.slane %v1533_v54, 5  ;;  %v483_v16 = vld [vmem:[#allocation2 + $0x168] sm:$0xff] }
 0x11f   : > { %v1899_v15 = vrot.slane %v1774_v41, 6  ;;  %v1418_v29 = vsel %vm1343_vm4, %v1415_v53, %v1417_v14  ;;  %v1901_v43 = vrot.slane %v1775_v42, 6  ;;  %v1658_v56 = vsel %vm1585_vm5, %v1656_v20, %v1657_v0  ;;  %v4183_v53 = vld [vmem:[%s5168_s11 + $0x78] sm:$0xff]  }
 0x120   : > { %v1484_v58 = vadd.f32 %v1416_v38, %v1242_v59  ;;  %v1485_v62 = vadd.f32 %v1418_v29, %v1243_v50  ;;  %v1660_v22 = vsel %vm1585_vm5, %v1657_v0, %v1659_v24  ;;  %v4156_v32 = vunpack.c.h.bf16 %v5701_v40 }
 0x121   : > { %v1900_v60 = vsel %vm1827_vm6, %v1898_v28, %v1899_v15  ;;  %v1902_v55 = vsel %vm1827_vm6, %v1899_v15, %v1901_v43  ;;  %v4159_v12 = vunpack.c.l.bf16 %v4181_v17  ;;  %v4160_v20 = vunpack.c.h.bf16 %v4181_v17 }
 0x122   : > { %v1726_v19 = vadd.f32 %v1658_v56, %v1484_v58  ;;  %v1727_v33 = vadd.f32 %v1660_v22, %v1485_v62  ;;  %431 = vst.msk [vmem:[#allocation2 + $0x173] sm:$0xff] %vm273_vm0, %v4156_v32  ;;  %v4163_v14 = vunpack.c.l.bf16 %v4182_v34  ;;  %v4164_v18 = vunpack.c.h.bf16 %v4182_v34 }
 0x123   : > { %432 = vst.msk [vmem:[#allocation2 + $0x183] sm:$0xff] %vm273_vm0, %v4159_v12  ;;  %v4167_v30 = vunpack.c.l.bf16 %v4183_v53  ;;  %v566_v54 = vmul.f32 %v4841_v2, %v483_v16  ;;  %v4168_v41 = vunpack.c.h.bf16 %v4183_v53  ;;  %v808_v40 = vmul.f32 %v4843_v3, %v483_v16 }
 0x124   : > { %v5808_v13 = vadd.f32 %v1900_v60, %v1726_v19   ;;  %v5812_v35 = vadd.f32 %v1902_v55, %v1727_v33   ;;  %433 = vst.msk [vmem:[#allocation2 + $0x18b] sm:$0xff] %vm273_vm0, %v4160_v20  ;;  %v518_v42 = vmul.f32 %v4867_v8, %v483_v16  ;;  %v1050_v59 = vmul.f32 %v4845_v4, %v483_v16 }
 0x125   : > { %434 = vst.msk [vmem:[#allocation2 + $0x19b] sm:$0xff] %vm273_vm0, %v4163_v14  ;;  %v693_v28 = vrot.slane %v566_v54, 1  ;;  %v935_v27 = vrot.slane %v808_v40, 2  ;;  %v1292_v0 = vmul.f32 %v4854_v5, %v483_v16  ;;  %v1534_v50 = vmul.f32 %v4856_v6, %v483_v16 }
 0x126   : > { %435 = vst.msk [vmem:[#allocation2 + $0x1a3] sm:$0xff] %vm273_vm0, %v4164_v18  ;;  %v1776_v15 = vmul.f32 %v4858_v7, %v483_v16  ;;  %v1177_v55 = vrot.slane %v1050_v59, 3 }
 0x127   : > { %436 = vst.msk [vmem:[#allocation2 + $0x1b3] sm:$0xff] %vm273_vm0, %v4167_v30  ;;  %v1419_v32 = vrot.slane %v1292_v0, 4  ;;  %v1661_v14 = vrot.slane %v1534_v50, 5 }
 0x128   : > { %437 = vst.msk [vmem:[#allocation2 + $0x1bb] sm:$0xff] %vm273_vm0, %v4168_v41 }
 0x129   : > { %v484_v38 = vld [vmem:[#allocation2 + $0x170] sm:$0xff]  ;;  %v485_v24 = vld [vmem:[#allocation2 + $0x178] sm:$0x3f] }
 0x12a   : > { %v567_v29 = vmul.f32 %v4841_v2, %v484_v38  ;;  %v568_v58 = vmul.f32 %v4841_v2, %v485_v24  ;;  %v809_v43 = vmul.f32 %v4843_v3, %v484_v38  ;;  %v810_v62 = vmul.f32 %v4843_v3, %v485_v24 }
 0x12b   : > { %v1051_v56 = vmul.f32 %v4845_v4, %v484_v38  ;;  %v1052_v17 = vmul.f32 %v4845_v4, %v485_v24  ;;  %v1293_v22 = vmul.f32 %v4854_v5, %v484_v38  ;;  %v1294_v34 = vmul.f32 %v4854_v5, %v485_v24 }
 0x12c   : > { %v694_v19 = vrot.slane %v567_v29, 1  ;;  %v696_v33 = vrot.slane %v568_v58, 1  ;;  %v936_v60 = vrot.slane %v809_v43, 2  ;;  %v519_v12 = vmul.f32 %v4867_v8, %v484_v38 }
 0x12d   : > { %v938_v2 = vrot.slane %v810_v62, 2  ;;  %v1178_v16 = vrot.slane %v1051_v56, 3  ;;  %v1180_v20 = vrot.slane %v1052_v17, 3  ;;  %v1420_v30 = vrot.slane %v1293_v22, 4 }
 0x12e   : > { %v695_v53 = vsel %vm617_vm1, %v693_v28, %v694_v19  ;;  %v697_v3 = vsel %vm617_vm1, %v694_v19, %v696_v33  ;;  %v937_v54 = vsel %vm859_vm2, %v935_v27, %v936_v60  ;;  %v1422_v5 = vrot.slane %v1294_v34, 4 }
 0x12f   : > { %v760_v4 = vadd.f32 %v695_v53, %v518_v42  ;;  %v761_v18 = vadd.f32 %v697_v3, %v519_v12  ;;  %v939_v41 = vsel %vm859_vm2, %v936_v60, %v938_v2  ;;  %v1535_v40 = vmul.f32 %v4856_v6, %v484_v38  ;;  %v9249_v53 = vld [vmem:[#allocation7_spill] sm:$0xff]  ;;  %v9250_v3 = vld [vmem:[#allocation4_spill] sm:$0xff] }
 0x130   : > { %v1536_v0 = vmul.f32 %v4856_v6, %v485_v24  ;;  %v1777_v28 = vmul.f32 %v4858_v7, %v484_v38  ;;  %v1179_v29 = vsel %vm1101_vm3, %v1177_v55, %v1178_v16  ;;  %v1181_v50 = vsel %vm1101_vm3, %v1178_v16, %v1180_v20  ;;  %v9251_v16 = vld [vmem:[#allocation6_spill] sm:$0xff]  ;;  %v9252_v20 = vld [vmem:[#allocation3_spill] sm:$0xff] }
 0x131   : > { %v1002_v59 = vadd.f32 %v937_v54, %v760_v4  ;;  %v1003_v8 = vadd.f32 %v939_v41, %v761_v18  ;;  %v1662_v42 = vrot.slane %v1535_v40, 5  ;;  %v1778_v58 = vmul.f32 %v4858_v7, %v485_v24 }
 0x132   : > { %v1903_v43 = vrot.slane %v1776_v15, 6  ;;  %v1664_v56 = vrot.slane %v1536_v0, 5  ;;  %v1421_v17 = vsel %vm1343_vm4, %v1419_v32, %v1420_v30  ;;  %v1423_v22 = vsel %vm1343_vm4, %v1420_v30, %v1422_v5  ;;  %v9248_v32 = vld [vmem:[#allocation5_spill] sm:$0xff] }
 0x133   : > { %v1244_v27 = vadd.f32 %v1179_v29, %v1002_v59  ;;  %v1245_v62 = vadd.f32 %v1181_v50, %v1003_v8  ;;  %v1904_v19 = vrot.slane %v1777_v28, 6  ;;  %v1906_v33 = vrot.slane %v1778_v58, 6 }
 0x134   : > { %v1663_v38 = vsel %vm1585_vm5, %v1661_v14, %v1662_v42  ;;  %v1665_v34 = vsel %vm1585_vm5, %v1662_v42, %v1664_v56 }
 0x135   : > { %v1486_v6 = vadd.f32 %v1421_v17, %v1244_v27  ;;  %v1487_v60 = vadd.f32 %v1423_v22, %v1245_v62  ;;  %v1905_v7 = vsel %vm1827_vm6, %v1903_v43, %v1904_v19  ;;  %v1907_v24 = vsel %vm1827_vm6, %v1904_v19, %v1906_v33 }
 0x137   : > { %v1728_v55 = vadd.f32 %v1663_v38, %v1486_v6  ;;  %v1729_v12 = vadd.f32 %v1665_v34, %v1487_v60 }
 0x139   : > { %v1970_v15 = vadd.f32 %v1905_v7, %v1728_v55   ;;  %v1971_v2 = vadd.f32 %v1907_v24, %v1729_v12  }
 0x13a LB: >> { %9253 = vst [vmem:[#allocation8_spill] sm:$0xff] %v4653_v2  ;;  %s4083_s13 = sshll.u32 %s4781_s12, 3  ;;  %s2010_s14 = smul.u32 24, %s4781_s12  ;;  %s4781_s12 = sphi %s5947_s12, %s9996_s12   ;;  %v4777_v20 = vphi %v9252_v20, %v9995_v20   ;;  %v4773_v16 = vphi %v9251_v16, %v9994_v16   ;;  %v4769_v3 = vphi %v9250_v3, %v9993_v3   ;;  %v4765_v53 = vphi %v9249_v53, %v9992_v53   ;;  %v4761_v32 = vphi %v9248_v32, %v9991_v32   ;;  %v4757_v1 = vphi %v5333_v1, %v9990_v1   ;;  %v4753_v11 = vphi %v5373_v11, %v9989_v11   ;;  %v4749_v63 = vphi %v5378_v63, %v9988_v63   ;;  %v4745_v10 = vphi %v5408_v10, %v9987_v10   ;;  %v4741_v57 = vphi %v5416_v57, %v9986_v57   ;;  %v4737_v39 = vphi %v5448_v39, %v9985_v39   ;;  %v4733_v31 = vphi %v5451_v31, %v9984_v31   ;;  %v4729_v48 = vphi %v5499_v48, %v9983_v48   ;;  %v4725_v52 = vphi %v5503_v52, %v9982_v52   ;;  %v4721_v61 = vphi %v5532_v61, %v9981_v61   ;;  %v4717_v21 = vphi %v5537_v21, %v9980_v21   ;;  %v4713_v25 = vphi %v5565_v25, %v9979_v25   ;;  %v4709_v45 = vphi %v5569_v45, %v9978_v45   ;;  %v4705_v51 = vphi %v5621_v51, %v9977_v51   ;;  %v4701_v37 = vphi %v5623_v37, %v9976_v37   ;;  %v4697_v26 = vphi %v5653_v26, %v9975_v26   ;;  %v4693_v46 = vphi %v5660_v46, %v9974_v46   ;;  %v4689_v9 = vphi %v5687_v9, %v9973_v9   ;;  %v4685_v36 = vphi %v5690_v36, %v9972_v36   ;;  %v4681_v44 = vphi %v5742_v44, %v9971_v44   ;;  %v4677_v47 = vphi %v5744_v47, %v9970_v47   ;;  %v4673_v23 = vphi %v5774_v23, %v9969_v23   ;;  %v4669_v49 = vphi %v5781_v49, %v9968_v49   ;;  %v4665_v13 = vphi %v5808_v13, %v9967_v13   ;;  %v4661_v35 = vphi %v5812_v35, %v9966_v35   ;;  %v4657_v15 = vphi %v1970_v15, %v9965_v15   ;;  %v4653_v2 = vphi %v1971_v2, %v9963_v2  }
 0x13b   : >> { %9254 = vst [vmem:[#allocation9_spill] sm:$0xff] %v4657_v15  ;;  %s6053_s17 = scalar_lea.vmem %s9034_s2, %s4083_s13  ;;  %s1977_s19 = sadd.s32 1, %s4781_s12  }
 0x13c   : >> { %9255 = vst [vmem:[#allocation10_spill] sm:$0xff] %v4661_v35  ;;  %v6056_v14 = vld [vmem:[%s6053_s17] sm:$0x7f]  ;;  %s6061_s18 = scalar_lea.vmem [#allocation2], %s2010_s14  ;;  %p8703_p4 = scmp.ge.s32.totalorder %s1977_s19, 7  }
 0x13d   : >> { %9256 = vst [vmem:[#allocation11_spill] sm:$0xff] %v4665_v13  ;;  %v6059_v4 = vperm.slane %v6056_v14, 0  ;;  %v6064_v18 = vld [vmem:[%s6061_s18] sm:$0xff]  ;;  %v6067_v30 = vld [vmem:[%s6061_s18 + $0x8] sm:$0xff]  ;;  %v6070_v54 = vld [vmem:[%s6061_s18 + $0x18] sm:$0xff]  ;;  %v6101_v42 = vperm.slane %v6056_v14, 1  ;;  %s9996_s12 = smov %s1977_s19 }
 0x13e   : >> { %9257 = vst [vmem:[#allocation12_spill] sm:$0xff] %v4669_v49  ;;  %v6073_v41 = vld [vmem:[%s6061_s18 + $0x20] sm:$0xff]  ;;  %v6076_v5 = vld [vmem:[%s6061_s18 + $0x30] sm:$0xff]  ;;  %v6079_v40 = vld [vmem:[%s6061_s18 + $0x38] sm:$0xff]  ;;  %vm3867_vm8 = vcmask (%p8703_p4), 31744  }
 0x13f   : >> { %9258 = vst [vmem:[#allocation13_spill] sm:$0xff] %v4673_v23  ;;  %v6082_v59 = vld [vmem:[%s6061_s18 + $0x48] sm:$0xff]  ;;  %v6085_v8 = vld [vmem:[%s6061_s18 + $0x50] sm:$0xff]  ;;  %v6088_v0 = vld [vmem:[%s6061_s18 + $0x60] sm:$0xff]  ;;  %v6098_v50 = vmul.f32 %v6059_v4, %v6064_v18  ;;  %v6114_v62 = vmul.f32 %v6059_v4, %v6067_v30  ;;  %v6118_v56 = vmul.f32 %v6059_v4, %v6070_v54  ;;  %v6122_v17 = vmul.f32 %v6059_v4, %v6073_v41 }
 0x140   : >> { %9259 = vst [vmem:[#allocation14_spill] sm:$0xff] %v4677_v47  ;;  %v6091_v28 = vld [vmem:[%s6061_s18 + $0x68] sm:$0xff]  ;;  %v6094_v29 = vld [vmem:[%s6061_s18 + $0x78] sm:$0xff]  ;;  %v6104_v58 = vld [vmem:[%s6061_s18 + $0x80] sm:$0xff]  ;;  %v6126_v22 = vmul.f32 %v6059_v4, %v6076_v5  ;;  %v6139_v60 = vmul.f32 %v6059_v4, %v6079_v40  ;;  %v6143_v38 = vmul.f32 %v6059_v4, %v6082_v59  ;;  %v6147_v34 = vmul.f32 %v6059_v4, %v6085_v8 }
 0x141   : >> { %9260 = vst [vmem:[#allocation15_spill] sm:$0xff] %v4681_v44  ;;  %v6107_v43 = vld [vmem:[%s6061_s18 + $0x90] sm:$0xff]  ;;  %v6110_v27 = vld [vmem:[%s6061_s18 + $0x98] sm:$0xff]  ;;  %v6129_v19 = vld [vmem:[%s6061_s18 + $0xa8] sm:$0xff]  ;;  %v6151_v55 = vmul.f32 %v6059_v4, %v6088_v0  ;;  %v6164_v2 = vmul.f32 %v6059_v4, %v6091_v28  ;;  %v6168_v15 = vmul.f32 %v6059_v4, %v6094_v29  ;;  %v6172_v35 = vmul.f32 %v6059_v4, %v6104_v58 }
 0x142   : >> { %9261 = vst [vmem:[#allocation16_spill] sm:$0xff] %v4685_v36  ;;  %v6132_v33 = vld [vmem:[%s6061_s18 + $0xb0] sm:$0xff]  ;;  %v6135_v6 = vld [vmem:[%s6061_s18 + $0xc0] sm:$0xff]  ;;  %v6154_v12 = vld [vmem:[%s6061_s18 + $0xc8] sm:$0xff]  ;;  %v6176_v13 = vmul.f32 %v6059_v4, %v6107_v43  ;;  %v6192_v36 = vmul.f32 %v6059_v4, %v6110_v27 }
 0x143   : >> { %9262 = vst [vmem:[#allocation17_spill] sm:$0xff] %v4689_v9  ;;  %v6157_v7 = vld [vmem:[%s6061_s18 + $0xd8] sm:$0xff]  ;;  %v6160_v24 = vld [vmem:[%s6061_s18 + $0xe0] sm:$0xff]  ;;  %v6179_v49 = vld [vmem:[%s6061_s18 + $0x10] sm:$0x3f]  ;;  %v6196_v9 = vmul.f32 %v6059_v4, %v6129_v19 }
 0x144   : >> { %9263 = vst [vmem:[#allocation18_spill] sm:$0xff] %v4693_v46  ;;  %v6182_v23 = vld [vmem:[%s6061_s18 + $0xf0] sm:$0xff]  ;;  %v6185_v47 = vld [vmem:[%s6061_s18 + $0xf8] sm:$0xff]  ;;  %v6188_v44 = vld [vmem:[%s6061_s18 + $0x108] sm:$0xff]  ;;  %v6200_v46 = vmul.f32 %v6059_v4, %v6132_v33 }
 0x145   : >> { %9264 = vst [vmem:[#allocation19_spill] sm:$0xff] %v4697_v26  ;;  %v6204_v26 = vmul.f32 %v6059_v4, %v6135_v6 }
 0x146   : >> { %9265 = vst [vmem:[#allocation20_spill] sm:$0xff] %v4701_v37  ;;  %v6207_v37 = vld [vmem:[%s6061_s18 + $0x28] sm:$0x3f] }
 0x147   : >> { %9266 = vst [vmem:[#allocation21_spill] sm:$0xff] %v4705_v51  ;;  %v6210_v51 = vld [vmem:[%s6061_s18 + $0x40] sm:$0x3f] }
 0x148   : >> { %9267 = vst [vmem:[#allocation22_spill] sm:$0xff] %v4709_v45  ;;  %v6213_v45 = vld [vmem:[%s6061_s18 + $0x110] sm:$0xff] }
 0x149   : >> { %9268 = vst [vmem:[#allocation23_spill] sm:$0xff] %v4713_v25  ;;  %v6216_v25 = vld [vmem:[%s6061_s18 + $0x120] sm:$0xff] }
 0x14a   : >> { %9269 = vst [vmem:[#allocation24_spill] sm:$0xff] %v4717_v21  ;;  %v6219_v21 = vld [vmem:[%s6061_s18 + $0x128] sm:$0xff] }
 0x14b   : >> { %9270 = vst [vmem:[#allocation25_spill] sm:$0xff] %v4721_v61  ;;  %v6223_v61 = vmul.f32 %v6059_v4, %v6154_v12 }
 0x14c   : >> { %9271 = vst [vmem:[#allocation26_spill] sm:$0xff] %v4725_v52  ;;  %v6227_v52 = vmul.f32 %v6059_v4, %v6157_v7 }
 0x14d   : >> { %9272 = vst [vmem:[#allocation27_spill] sm:$0xff] %v4729_v48  ;;  %v6231_v48 = vmul.f32 %v6059_v4, %v6160_v24 }
 0x14e   : >> { %9273 = vst [vmem:[#allocation28_spill] sm:$0xff] %v4733_v31  ;;  %v6235_v31 = vmul.f32 %v6059_v4, %v6182_v23 }
 0x14f   : >> { %9274 = vst [vmem:[#allocation29_spill] sm:$0xff] %v4737_v39  ;;  %v6238_v39 = vld [vmem:[%s6061_s18 + $0x138] sm:$0xff] }
 0x150   : >> { %9275 = vst [vmem:[#allocation30_spill] sm:$0xff] %v4741_v57  ;;  %v6241_v57 = vld [vmem:[%s6061_s18 + $0x140] sm:$0xff] }
 0x151   : >> { %9276 = vst [vmem:[#allocation31_spill] sm:$0xff] %v4745_v10  ;;  %v6244_v10 = vld [vmem:[%s6061_s18 + $0x150] sm:$0xff] }
 0x152   : >> { %9277 = vst [vmem:[#allocation32_spill] sm:$0xff] %v4749_v63  ;;  %v6248_v63 = vmul.f32 %v6059_v4, %v6185_v47 }
 0x153   : >> { %9278 = vst [vmem:[#allocation33_spill] sm:$0xff] %v4753_v11  ;;  %v6252_v11 = vmul.f32 %v6059_v4, %v6188_v44 }
 0x154   : >> { %9279 = vst [vmem:[#allocation34_spill] sm:$0xff] %v4757_v1  ;;  %v6256_v1 = vmul.f32 %v6059_v4, %v6213_v45 }
 0x155   : >> { %9280 = vst [vmem:[#allocation35_spill] sm:$0xff] %v4761_v32  ;;  %v6260_v32 = vmul.f32 %v6059_v4, %v6216_v25 }
 0x156   : >> { %9281 = vst [vmem:[#allocation36_spill] sm:$0xff] %v4765_v53  ;;  %v6263_v53 = vld [vmem:[%s6061_s18 + $0x158] sm:$0xff] }
 0x157   : >> { %9282 = vst [vmem:[#allocation37_spill] sm:$0xff] %v4769_v3  ;;  %v6266_v3 = vld [vmem:[%s6061_s18 + $0x168] sm:$0xff] }
 0x158   : >> { %9283 = vst [vmem:[#allocation38_spill] sm:$0xff] %v4773_v16  ;;  %v6269_v16 = vld [vmem:[%s6061_s18 + $0x170] sm:$0xff] }
 0x159   : >> { %9284 = vst [vmem:[#allocation39_spill] sm:$0xff] %v4777_v20  ;;  %v6273_v20 = vmul.f32 %v6059_v4, %v6219_v21 }
 0x15a   : >> { %9285 = vst [vmem:[#allocation40_spill] sm:$0xff] %v6056_v14  ;;  %v6311_v14 = vmul.f32 %v6101_v42, %v6067_v30 }
 0x15b   : >> { %9286 = vst [vmem:[#allocation41_spill] sm:$0xff] %v6064_v18 }
 0x15c   : >> { %9287 = vst [vmem:[#allocation42_spill] sm:$0xff] %v6067_v30  ;;  %v6333_v30 = vmul.f32 %v6101_v42, %v6207_v37 }
 0x15d   : >> { %9288 = vst [vmem:[#allocation43_spill] sm:$0xff] %v6070_v54 }
 0x15e   : >> { %9289 = vst [vmem:[#allocation44_spill] sm:$0xff] %v6073_v41 }
 0x15f   : >> { %9290 = vst [vmem:[#allocation45_spill] sm:$0xff] %v6076_v5 }
 0x160   : >> { %9291 = vst [vmem:[#allocation46_spill] sm:$0xff] %v6079_v40 }
 0x161   : >> { %9292 = vst [vmem:[#allocation47_spill] sm:$0xff] %v6082_v59 }
 0x162   : >> { %9293 = vst [vmem:[#allocation48_spill] sm:$0xff] %v6085_v8 }
 0x163   : >> { %9294 = vst [vmem:[#allocation49_spill] sm:$0xff] %v6088_v0 }
 0x164   : >> { %9295 = vst [vmem:[#allocation50_spill] sm:$0xff] %v6091_v28 }
 0x165   : >> { %9296 = vst [vmem:[#allocation51_spill] sm:$0xff] %v6094_v29 }
 0x166   : >> { %9297 = vst [vmem:[#allocation52_spill] sm:$0xff] %v6104_v58 }
 0x167   : >> { %9298 = vst [vmem:[#allocation53_spill] sm:$0xff] %v6107_v43 }
 0x168   : >> { %9299 = vst [vmem:[#allocation54_spill] sm:$0xff] %v6110_v27 }
 0x169   : >> { %9300 = vst [vmem:[#allocation55_spill] sm:$0xff] %v6129_v19 }
 0x16a   : >> { %9301 = vst [vmem:[#allocation56_spill] sm:$0xff] %v6132_v33 }
 0x16b   : >> { %9302 = vst [vmem:[#allocation57_spill] sm:$0xff] %v6135_v6 }
 0x16c   : >> { %9303 = vst [vmem:[#allocation58_spill] sm:$0xff] %v6143_v38 }
 0x16d   : >> { %9304 = vst [vmem:[#allocation59_spill] sm:$0xff] %v6147_v34 }
 0x16e   : >> { %9305 = vst [vmem:[#allocation60_spill] sm:$0xff] %v6151_v55 }
 0x16f   : >> { %9306 = vst [vmem:[#allocation61_spill] sm:$0xff] %v6154_v12 }
 0x170   : >> { %9307 = vst [vmem:[#allocation62_spill] sm:$0xff] %v6157_v7 }
 0x171   : >> { %9308 = vst [vmem:[#allocation63_spill] sm:$0xff] %v6160_v24 }
 0x172   : >> { %9309 = vst [vmem:[#allocation64_spill] sm:$0xff] %v6164_v2  ;;  %v2194_v2 = vrot.slane %v6311_v14, 1 }
 0x173   : >> { %9310 = vst [vmem:[#allocation65_spill] sm:$0xff] %v6168_v15  ;;  %v6488_v15 = vmul.f32 %v6101_v42, %v6219_v21 }
 0x174   : >> { %9311 = vst [vmem:[#allocation66_spill] sm:$0xff] %v6172_v35  ;;  %v6469_v35 = vmul.f32 %v6101_v42, %v6188_v44 }
 0x175   : >> { %9312 = vst [vmem:[#allocation67_spill] sm:$0xff] %v6176_v13 }
 0x176   : >> { %9313 = vst [vmem:[#allocation68_spill] sm:$0xff] %v6179_v49 }
 0x177   : >> { %9314 = vst [vmem:[#allocation69_spill] sm:$0xff] %v6182_v23 }
 0x178   : >> { %9315 = vst [vmem:[#allocation70_spill] sm:$0xff] %v6185_v47 }
 0x179   : >> { %9316 = vst [vmem:[#allocation71_spill] sm:$0xff] %v6188_v44 }
 0x17a   : >> { %9317 = vst [vmem:[#allocation72_spill] sm:$0xff] %v6192_v36  ;;  %v6431_v36 = vmul.f32 %v6101_v42, %v6154_v12  ;;  %v6454_v12 = vmul.f32 %v6101_v42, %v6182_v23 }
 0x17b   : >> { %9318 = vst [vmem:[#allocation73_spill] sm:$0xff] %v6196_v9  ;;  %v6412_v9 = vmul.f32 %v6101_v42, %v6129_v19 }
 0x17c   : >> { %9319 = vst [vmem:[#allocation74_spill] sm:$0xff] %v6200_v46  ;;  %v6408_v46 = vld [vmem:[%s6061_s18 + $0x118] sm:$0x3f] }
 0x17d   : >> { %9320 = vst [vmem:[#allocation75_spill] sm:$0xff] %v6204_v26  ;;  %v6389_v26 = vld [vmem:[%s6061_s18 + $0x100] sm:$0x3f]  ;;  %v6477_v23 = vmul.f32 %v6101_v42, %v6408_v46 }
 0x17e   : >> { %9321 = vst [vmem:[#allocation76_spill] sm:$0xff] %v6207_v37  ;;  %v6356_v37 = vmul.f32 %v6101_v42, %v6085_v8  ;;  %v6379_v8 = vmul.f32 %v6101_v42, %v6094_v29  ;;  %v6401_v29 = vmul.f32 %v6101_v42, %v6110_v27  ;;  %v6424_v27 = vmul.f32 %v6101_v42, %v6135_v6  ;;  %v6446_v6 = vld [vmem:[%s6061_s18 + $0x148] sm:$0x3f] }
 0x17f   : >> { %9322 = vst [vmem:[#allocation77_spill] sm:$0xff] %v6210_v51 }
 0x180   : >> { %9323 = vst [vmem:[#allocation78_spill] sm:$0xff] %v6213_v45 }
 0x181   : >> { %9324 = vst [vmem:[#allocation79_spill] sm:$0xff] %v6216_v25 }
 0x182   : >> { %9325 = vst [vmem:[#allocation80_spill] sm:$0xff] %v6219_v21  ;;  %v6506_v21 = vmul.f32 %v6101_v42, %v6446_v6 }
 0x183   : >> { %9326 = vst [vmem:[#allocation81_spill] sm:$0xff] %v6223_v61  ;;  %v6371_v61 = vmul.f32 %v6101_v42, %v6091_v28 }
 0x184   : >> { %9327 = vst [vmem:[#allocation82_spill] sm:$0xff] %v6227_v52  ;;  %v6352_v52 = vmul.f32 %v6101_v42, %v6082_v59 }
 0x185   : >> { %9328 = vst [vmem:[#allocation83_spill] sm:$0xff] %v6231_v48  ;;  %v6348_v48 = vld [vmem:[%s6061_s18 + $0xb8] sm:$0x3f] }
 0x186   : >> { %9329 = vst [vmem:[#allocation84_spill] sm:$0xff] %v6235_v31  ;;  %v6292_v31 = vmul.f32 %v6059_v4, %v6263_v53 }
 0x187   : >> { %9330 = vst [vmem:[#allocation85_spill] sm:$0xff] %v6238_v39 }
 0x188   : >> { %9331 = vst [vmem:[#allocation86_spill] sm:$0xff] %v6241_v57 }
 0x189   : >> { %9332 = vst [vmem:[#allocation87_spill] sm:$0xff] %v6244_v10 }
 0x18a   : >> { %9333 = vst [vmem:[#allocation88_spill] sm:$0xff] %v6248_v63  ;;  %v6288_v63 = vld [vmem:[%s6061_s18 + $0x58] sm:$0x3f] }
 0x18b   : >> { %9334 = vst [vmem:[#allocation89_spill] sm:$0xff] %v6252_v11  ;;  %v6277_v11 = vmul.f32 %v6059_v4, %v6238_v39 }
 0x18c   : >> { %9335 = vst [vmem:[#allocation90_spill] sm:$0xff] %v6256_v1  ;;  %v6281_v1 = vmul.f32 %v6059_v4, %v6241_v57 }
 0x18d   : >> { %9336 = vst [vmem:[#allocation91_spill] sm:$0xff] %v6260_v32  ;;  %v6285_v32 = vmul.f32 %v6059_v4, %v6244_v10 }
 0x18e   : >> { %9337 = vst [vmem:[#allocation92_spill] sm:$0xff] %v6263_v53 }
 0x18f   : >> { %9338 = vst [vmem:[#allocation93_spill] sm:$0xff] %v6266_v3 }
 0x190   : >> { %9339 = vst [vmem:[#allocation94_spill] sm:$0xff] %v6269_v16 }
 0x191   : >> { %9340 = vst [vmem:[#allocation95_spill] sm:$0xff] %v6273_v20  ;;  %v6296_v20 = vmul.f32 %v6059_v4, %v6266_v3 }
 0x192   : >> { %9341 = vst [vmem:[#allocation96_spill] sm:$0xff] %v6277_v11  ;;  %v6300_v11 = vmul.f32 %v6059_v4, %v6269_v16  ;;  %v6323_v4 = vmul.f32 %v6101_v42, %v6073_v41  ;;  %v6345_v41 = vmul.f32 %v6101_v42, %v6210_v51  ;;  %v6367_v51 = vld [vmem:[%s6061_s18 + $0xd0] sm:$0x3f] }
 0x193   : >> { %9342 = vst [vmem:[#allocation97_spill] sm:$0xff] %v6281_v1  ;;  %v6304_v1 = vmul.f32 %v6101_v42, %v6064_v18  ;;  %v6326_v18 = vld [vmem:[%s6061_s18 + $0x88] sm:$0x3f]  ;;  %v6435_v19 = vmul.f32 %v6101_v42, %v6367_v51 }
 0x194   : >> { %9343 = vst [vmem:[#allocation98_spill] sm:$0xff] %v6285_v32  ;;  %v6307_v32 = vld [vmem:[%s6061_s18 + $0x70] sm:$0x3f]  ;;  %v6393_v28 = vmul.f32 %v6101_v42, %v6326_v18  ;;  %v2206_v38 = vrot.slane %v6345_v41, 1 }
 0x195   : >> { %9344 = vst [vmem:[#allocation99_spill] sm:$0xff] %v6288_v63  ;;  %v6375_v59 = vmul.f32 %v6101_v42, %v6307_v32 }
 0x196   : >> { %9345 = vst [vmem:[#allocation100_spill] sm:$0xff] %v6292_v31  ;;  %v6315_v31 = vmul.f32 %v6101_v42, %v6179_v49  ;;  %v6337_v49 = vmul.f32 %v6101_v42, %v6076_v5  ;;  %v6360_v5 = vmul.f32 %v6101_v42, %v6288_v63  ;;  %v6383_v63 = vmul.f32 %v6101_v42, %v6104_v58 }
 0x197   : >> { %9346 = vst [vmem:[#allocation101_spill] sm:$0xff] %v6296_v20  ;;  %v6319_v20 = vmul.f32 %v6101_v42, %v6070_v54  ;;  %v6341_v54 = vmul.f32 %v6101_v42, %v6079_v40  ;;  %v6364_v40 = vmul.f32 %v6101_v42, %v6088_v0  ;;  %v6386_v0 = vld [vmem:[%s6061_s18 + $0xe8] sm:$0x3f] }
 0x198   : >> { %9347 = vst [vmem:[#allocation102_spill] sm:$0xff] %v6300_v11  ;;  %v6329_v11 = vld [vmem:[%s6061_s18 + $0xa0] sm:$0x3f]  ;;  %v6450_v13 = vmul.f32 %v6101_v42, %v6386_v0  ;;  %v2196_v55 = vrot.slane %v6315_v31, 1 }
 0x199   : >> { %9348 = vst [vmem:[#allocation103_spill] sm:$0xff] %v6307_v32  ;;  %v6397_v32 = vmul.f32 %v6101_v42, %v6107_v43  ;;  %v6405_v58 = vmul.f32 %v6101_v42, %v6329_v11  ;;  %v6420_v43 = vmul.f32 %v6101_v42, %v6348_v48  ;;  %v2204_v34 = vrot.slane %v6341_v54, 1 }
 0x19a   : >> { %9349 = vst [vmem:[#allocation104_spill] sm:$0xff] %v6326_v18  ;;  %v6416_v18 = vmul.f32 %v6101_v42, %v6132_v33  ;;  %v6439_v33 = vmul.f32 %v6101_v42, %v6157_v7  ;;  %v6462_v7 = vmul.f32 %v6101_v42, %v6389_v26  ;;  %v2219_v54 = vrot.slane %v6383_v63, 1 }
 0x19b   : >> { %9350 = vst [vmem:[#allocation105_spill] sm:$0xff] %v6329_v11  ;;  %v6427_v11 = vld [vmem:[%s6061_s18 + $0x130] sm:$0x3f]  ;;  %v2223_v41 = vrot.slane %v6397_v32, 1  ;;  %v2234_v63 = vrot.slane %v6431_v36, 1 }
 0x19c   : >> { %9351 = vst [vmem:[#allocation106_spill] sm:$0xff] %v6348_v48  ;;  %v6443_v48 = vmul.f32 %v6101_v42, %v6160_v24  ;;  %v6465_v24 = vld [vmem:[%s6061_s18 + $0x160] sm:$0x3f]  ;;  %v6492_v44 = vmul.f32 %v6101_v42, %v6427_v11 }
 0x19d   : >> { %9352 = vst [vmem:[#allocation107_spill] sm:$0xff] %v6367_v51  ;;  %v6458_v51 = vmul.f32 %v6101_v42, %v6185_v47  ;;  %v6481_v47 = vmul.f32 %v6101_v42, %v6216_v25  ;;  %v6502_v25 = vmul.f32 %v6101_v42, %v6241_v57  ;;  %v6519_v14 = vmul.f32 %v6101_v42, %v6465_v24 }
 0x19e   : >> { %9353 = vst [vmem:[#allocation108_spill] sm:$0xff] %v6386_v0  ;;  %v6473_v0 = vmul.f32 %v6101_v42, %v6213_v45  ;;  %v2193_v45 = vrot.slane %v6304_v1, 1  ;;  %v6515_v1 = vmul.f32 %v6101_v42, %v6263_v53  ;;  %v6523_v57 = vmul.f32 %v6101_v42, %v6266_v3 }
 0x19f   : >> { %9354 = vst [vmem:[#allocation109_spill] sm:$0xff] %v6389_v26  ;;  %v6484_v26 = vld [vmem:[%s6061_s18 + $0x178] sm:$0x3f]  ;;  %v2199_v53 = vrot.slane %v6323_v4, 1  ;;  %v2203_v3 = vrot.slane %v6337_v49, 1  ;;  %v2211_v4 = vrot.slane %v6360_v5, 1 }
 0x1a0   : >> { %9355 = vst [vmem:[#allocation110_spill] sm:$0xff] %v6408_v46  ;;  %v6498_v46 = vmul.f32 %v6101_v42, %v6238_v39  ;;  %v6531_v31 = vmul.f32 %v6101_v42, %v6484_v26  ;;  %v6536_v39 = vsel %vm617_vm1, %v2193_v45, %v2194_v2  ;;  %v2213_v45 = vrot.slane %v6364_v40, 1 }
 0x1a1   : >> { %9356 = vst [vmem:[#allocation111_spill] sm:$0xff] %v6427_v11  ;;  %v6511_v11 = vmul.f32 %v6101_v42, %v6244_v10  ;;  %v2198_v10 = vrot.slane %v6319_v20, 1  ;;  %v2209_v20 = vrot.slane %v6356_v37, 1  ;;  %v2218_v49 = vrot.slane %v6379_v8, 1 }
 0x1a2   : >> { %9357 = vst [vmem:[#allocation112_spill] sm:$0xff] %v6446_v6  ;;  %v6527_v6 = vmul.f32 %v6101_v42, %v6269_v16  ;;  %v6542_v16 = vsel %vm617_vm1, %v2194_v2, %v2196_v55  ;;  %v2208_v42 = vrot.slane %v6352_v52, 1  ;;  %v2221_v2 = vrot.slane %v6393_v28, 1 }
 0x1a3   : >> { %9358 = vst [vmem:[#allocation113_spill] sm:$0xff] %v6465_v24  ;;  %v2201_v24 = vrot.slane %v6333_v30, 1  ;;  %v2216_v30 = vrot.slane %v6375_v59, 1  ;;  %v2224_v52 = vrot.slane %v6401_v29, 1  ;;  %v2226_v37 = vrot.slane %v6405_v58, 1 }
 0x1a4   : >> { %9359 = vst [vmem:[#allocation114_spill] sm:$0xff] %v6484_v26  ;;  %v2214_v26 = vrot.slane %v6371_v61, 1  ;;  %v2228_v5 = vrot.slane %v6412_v9, 1  ;;  %v2229_v40 = vrot.slane %v6416_v18, 1  ;;  %v2200_v61 = vsel %vm617_vm1, %v2198_v10, %v2199_v53 }
 0x1a5   : >> { %v2231_v59 = vrot.slane %v6420_v43, 1  ;;  %v2233_v8 = vrot.slane %v6424_v27, 1  ;;  %v2202_v28 = vsel %vm617_vm1, %v2199_v53, %v2201_v24  ;;  %v2205_v32 = vsel %vm617_vm1, %v2203_v3, %v2204_v34 }
 0x1a6   : >> { %v2207_v29 = vsel %vm617_vm1, %v2204_v34, %v2206_v38  ;;  %v2210_v58 = vsel %vm617_vm1, %v2208_v42, %v2209_v20  ;;  %v2212_v9 = vsel %vm617_vm1, %v2209_v20, %v2211_v4  ;;  %v2215_v18 = vsel %vm617_vm1, %v2213_v45, %v2214_v26 }
 0x1a7   : >> { %v2217_v10 = vsel %vm617_vm1, %v2214_v26, %v2216_v30  ;;  %v2220_v43 = vsel %vm617_vm1, %v2218_v49, %v2219_v54  ;;  %v2222_v27 = vsel %vm617_vm1, %v2219_v54, %v2221_v2  ;;  %v2225_v36 = vsel %vm617_vm1, %v2223_v41, %v2224_v52 }
 0x1a8   : >> { %v2227_v53 = vsel %vm617_vm1, %v2224_v52, %v2226_v37  ;;  %v2230_v3 = vsel %vm617_vm1, %v2228_v5, %v2229_v40  ;;  %v2232_v38 = vsel %vm617_vm1, %v2229_v40, %v2231_v59  ;;  %v2235_v34 = vsel %vm617_vm1, %v2233_v8, %v2234_v63 }
 0x1a9   : >> { %v2236_v55 = vrot.slane %v6435_v19, 1  ;;  %v2238_v24 = vrot.slane %v6439_v33, 1  ;;  %v2239_v26 = vrot.slane %v6443_v48, 1  ;;  %v2241_v42 = vrot.slane %v6450_v13, 1 }
 0x1aa   : >> { %v2243_v20 = vrot.slane %v6454_v12, 1  ;;  %v2244_v4 = vrot.slane %v6458_v51, 1  ;;  %v2246_v45 = vrot.slane %v6462_v7, 1  ;;  %v2248_v30 = vrot.slane %v6469_v35, 1 }
 0x1ab   : >> { %v2249_v49 = vrot.slane %v6473_v0, 1  ;;  %v2251_v54 = vrot.slane %v6477_v23, 1  ;;  %v2253_v19 = vrot.slane %v6481_v47, 1  ;;  %v2254_v33 = vrot.slane %v6488_v15, 1 }
 0x1ac   : >> { %v2256_v48 = vrot.slane %v6492_v44, 1  ;;  %v2258_v13 = vrot.slane %v6498_v46, 1  ;;  %v2259_v12 = vrot.slane %v6502_v25, 1  ;;  %v2261_v51 = vrot.slane %v6506_v21, 1 }
 0x1ad   : >> { %v2263_v7 = vrot.slane %v6511_v11, 1  ;;  %v2264_v35 = vrot.slane %v6515_v1, 1  ;;  %v2237_v0 = vsel %vm617_vm1, %v2234_v63, %v2236_v55  ;;  %v2266_v23 = vrot.slane %v6519_v14, 1 }
 0x1ae   : >> { %v2268_v47 = vrot.slane %v6523_v57, 1  ;;  %v2269_v15 = vrot.slane %v6527_v6, 1  ;;  %v2240_v44 = vsel %vm617_vm1, %v2238_v24, %v2239_v26  ;;  %v2242_v46 = vsel %vm617_vm1, %v2239_v26, %v2241_v42  ;;  %v9361_v26 = vld [vmem:[#allocation59_spill] sm:$0xff] }
 0x1af   : >> { %v2245_v25 = vsel %vm617_vm1, %v2243_v20, %v2244_v4  ;;  %v2271_v21 = vrot.slane %v6531_v31, 1  ;;  %v2247_v11 = vsel %vm617_vm1, %v2244_v4, %v2246_v45  ;;  %v2250_v1 = vsel %vm617_vm1, %v2248_v30, %v2249_v49 }
 0x1b0   : >> { %v2252_v2 = vsel %vm617_vm1, %v2249_v49, %v2251_v54  ;;  %v2255_v14 = vsel %vm617_vm1, %v2253_v19, %v2254_v33  ;;  %v2257_v57 = vsel %vm617_vm1, %v2254_v33, %v2256_v48  ;;  %v2260_v6 = vsel %vm617_vm1, %v2258_v13, %v2259_v12 }
 0x1b1   : >> { %v2262_v41 = vsel %vm617_vm1, %v2259_v12, %v2261_v51  ;;  %v2265_v52 = vsel %vm617_vm1, %v2263_v7, %v2264_v35  ;;  %v2267_v37 = vsel %vm617_vm1, %v2264_v35, %v2266_v23  ;;  %v2270_v31 = vsel %vm617_vm1, %v2268_v47, %v2269_v15  ;;  %v9394_v51 = vld [vmem:[#allocation90_spill] sm:$0xff]  ;;  %v9396_v35 = vld [vmem:[#allocation91_spill] sm:$0xff] }
 0x1b2   : >> { %v6615_v5 = vadd.f32 %v6536_v39, %v6098_v50  ;;  %v6619_v40 = vadd.f32 %v6542_v16, %v6114_v62  ;;  %v2272_v59 = vsel %vm617_vm1, %v2269_v15, %v2271_v21  ;;  %v6623_v8 = vadd.f32 %v2200_v61, %v6118_v56  ;;  %v9360_v39 = vld [vmem:[#allocation58_spill] sm:$0xff]  ;;  %v9363_v62 = vld [vmem:[#allocation60_spill] sm:$0xff]  ;;  %v9398_v23 = vld [vmem:[#allocation95_spill] sm:$0xff] }
 0x1b3   : >> { %v6626_v63 = vadd.f32 %v2202_v28, %v6122_v17  ;;  %v6629_v55 = vadd.f32 %v2205_v32, %v6126_v22  ;;  %v6632_v24 = vadd.f32 %v2207_v29, %v6139_v60  ;;  %v6635_v50 = vadd.f32 %v2210_v58, %v9360_v39  ;;  %v9365_v56 = vld [vmem:[#allocation64_spill] sm:$0xff]  ;;  %v9367_v17 = vld [vmem:[#allocation65_spill] sm:$0xff]  ;;  %v9369_v22 = vld [vmem:[#allocation66_spill] sm:$0xff] }
 0x1b4   : >> { %v6638_v16 = vadd.f32 %v2212_v9, %v9361_v26  ;;  %v6641_v42 = vadd.f32 %v2215_v18, %v9363_v62  ;;  %v6644_v61 = vadd.f32 %v2217_v10, %v9365_v56  ;;  %v6647_v28 = vadd.f32 %v2220_v43, %v9367_v17  ;;  %v9371_v60 = vld [vmem:[#allocation67_spill] sm:$0xff]  ;;  %v9373_v58 = vld [vmem:[#allocation72_spill] sm:$0xff]  ;;  %v9375_v9 = vld [vmem:[#allocation73_spill] sm:$0xff] }
 0x1b5   : >> { %v6650_v32 = vadd.f32 %v2222_v27, %v9369_v22  ;;  %v6653_v29 = vadd.f32 %v2225_v36, %v9371_v60  ;;  %v6656_v20 = vadd.f32 %v2227_v53, %v9373_v58  ;;  %v6659_v4 = vadd.f32 %v2230_v3, %v9375_v9  ;;  %v9377_v18 = vld [vmem:[#allocation74_spill] sm:$0xff]  ;;  %v9379_v10 = vld [vmem:[#allocation75_spill] sm:$0xff]  ;;  %v9381_v43 = vld [vmem:[#allocation81_spill] sm:$0xff] }
 0x1b6   : >> { %9362 = vst [vmem:[#allocation58_spill] sm:$0xff] %v6638_v16  ;;  %v6662_v45 = vadd.f32 %v2232_v38, %v9377_v18  ;;  %v6665_v30 = vadd.f32 %v2235_v34, %v9379_v10  ;;  %v6668_v49 = vadd.f32 %v2237_v0, %v9381_v43  ;;  %v9383_v27 = vld [vmem:[#allocation82_spill] sm:$0xff]  ;;  %v9385_v36 = vld [vmem:[#allocation83_spill] sm:$0xff]  ;;  %v9387_v53 = vld [vmem:[#allocation40_spill] sm:$0xff]  ;;  %v6689_v7 = vadd.f32 %v2252_v2, %v9394_v51 }
 0x1b7   : >> { %9364 = vst [vmem:[#allocation59_spill] sm:$0xff] %v6641_v42  ;;  %v6671_v54 = vadd.f32 %v2240_v44, %v9383_v27  ;;  %v6674_v19 = vadd.f32 %v2242_v46, %v9385_v36  ;;  %v6677_v33 = vperm.slane %v9387_v53, 2  ;;  %v9388_v3 = vld [vmem:[#allocation84_spill] sm:$0xff]  ;;  %v9392_v34 = vld [vmem:[#allocation89_spill] sm:$0xff]  ;;  %v6692_v0 = vadd.f32 %v2255_v14, %v9396_v35  ;;  %v9404_v21 = vld [vmem:[#allocation98_spill] sm:$0xff] }
 0x1b8   : >> { %9366 = vst [vmem:[#allocation60_spill] sm:$0xff] %v6644_v61  ;;  %v6680_v48 = vadd.f32 %v2245_v25, %v9388_v3  ;;  %v9390_v38 = vld [vmem:[#allocation88_spill] sm:$0xff]  ;;  %v6686_v12 = vadd.f32 %v2250_v1, %v9392_v34  ;;  %v6695_v47 = vadd.f32 %v2257_v57, %v9398_v23  ;;  %v9402_v46 = vld [vmem:[#allocation97_spill] sm:$0xff]  ;;  %v9410_v14 = vld [vmem:[#allocation102_spill] sm:$0xff] }
 0x1b9   : >> { %9368 = vst [vmem:[#allocation64_spill] sm:$0xff] %v6647_v28  ;;  %v6683_v13 = vadd.f32 %v2247_v11, %v9390_v38  ;;  %v9400_v15 = vld [vmem:[#allocation96_spill] sm:$0xff]  ;;  %v6701_v25 = vadd.f32 %v2262_v41, %v9402_v46  ;;  %v6704_v11 = vadd.f32 %v2265_v52, %v9404_v21  ;;  %v9408_v2 = vld [vmem:[#allocation101_spill] sm:$0xff]  ;;  %v6713_v62 = vadd.f32 %v2272_v59, %v9410_v14  ;;  %v9415_v52 = vld [vmem:[#allocation43_spill] sm:$0xff] }
 0x1ba   : >> { %9370 = vst [vmem:[#allocation65_spill] sm:$0xff] %v6650_v32  ;;  %v6698_v44 = vadd.f32 %v2260_v6, %v9400_v15  ;;  %v9406_v1 = vld [vmem:[#allocation100_spill] sm:$0xff]  ;;  %v6710_v26 = vadd.f32 %v2270_v31, %v9408_v2  ;;  %v9412_v57 = vld [vmem:[#allocation41_spill] sm:$0xff]  ;;  %v9413_v6 = vld [vmem:[#allocation42_spill] sm:$0xff]  ;;  %v2341_v60 = vmul.f32 %v6677_v33, %v9415_v52 }
 0x1bb   : >> { %9372 = vst [vmem:[#allocation66_spill] sm:$0xff] %v6653_v29  ;;  %v6707_v39 = vadd.f32 %v2267_v37, %v9406_v1  ;;  %v2338_v56 = vmul.f32 %v6677_v33, %v9412_v57  ;;  %v2339_v17 = vmul.f32 %v6677_v33, %v9413_v6  ;;  %v9414_v41 = vld [vmem:[#allocation68_spill] sm:$0xff]  ;;  %v9418_v59 = vld [vmem:[#allocation45_spill] sm:$0xff]  ;;  %v9419_v10 = vld [vmem:[#allocation46_spill] sm:$0xff] }
 0x1bc   : >> { %9374 = vst [vmem:[#allocation67_spill] sm:$0xff] %v6656_v20  ;;  %v2340_v22 = vmul.f32 %v6677_v33, %v9414_v41  ;;  %v9416_v37 = vld [vmem:[#allocation44_spill] sm:$0xff]  ;;  %v6729_v18 = vmul.f32 %v6677_v33, %v9418_v59  ;;  %v6733_v43 = vmul.f32 %v6677_v33, %v9419_v10  ;;  %v9420_v27 = vld [vmem:[#allocation77_spill] sm:$0xff]  ;;  %v9421_v3 = vld [vmem:[#allocation47_spill] sm:$0xff] }
 0x1bd   : >> { %9376 = vst [vmem:[#allocation72_spill] sm:$0xff] %v6659_v4  ;;  %v2342_v58 = vmul.f32 %v6677_v33, %v9416_v37  ;;  %v9417_v31 = vld [vmem:[#allocation76_spill] sm:$0xff]  ;;  %v6737_v36 = vmul.f32 %v6677_v33, %v9420_v27  ;;  %v6741_v38 = vmul.f32 %v6677_v33, %v9421_v3  ;;  %v9423_v35 = vld [vmem:[#allocation99_spill] sm:$0xff]  ;;  %v9424_v15 = vld [vmem:[#allocation49_spill] sm:$0xff] }
 0x1be   : >> { %9378 = vst [vmem:[#allocation73_spill] sm:$0xff] %v6662_v45  ;;  %v2343_v9 = vmul.f32 %v6677_v33, %v9417_v31  ;;  %v9422_v34 = vld [vmem:[#allocation48_spill] sm:$0xff]  ;;  %v6749_v23 = vmul.f32 %v6677_v33, %v9423_v35  ;;  %v6753_v46 = vmul.f32 %v6677_v33, %v9424_v15  ;;  %v9425_v21 = vld [vmem:[#allocation50_spill] sm:$0xff]  ;;  %v9426_v2 = vld [vmem:[#allocation103_spill] sm:$0xff]  ;;  %v2435_v45 = vrot.slane %v2339_v17, 2 }
 0x1bf   : >> { %9380 = vst [vmem:[#allocation74_spill] sm:$0xff] %v6665_v30  ;;  %v6745_v51 = vmul.f32 %v6677_v33, %v9422_v34  ;;  %v6757_v1 = vmul.f32 %v6677_v33, %v9425_v21  ;;  %v6761_v14 = vmul.f32 %v6677_v33, %v9426_v2  ;;  %v9427_v3 = vld [vmem:[#allocation51_spill] sm:$0xff]  ;;  %v9428_v27 = vld [vmem:[#allocation52_spill] sm:$0xff]  ;;  %v9430_v59 = vld [vmem:[#allocation53_spill] sm:$0xff]  ;;  %v2434_v30 = vrot.slane %v2338_v56, 2 }
 0x1c0   : >> { %9382 = vst [vmem:[#allocation75_spill] sm:$0xff] %v6668_v49  ;;  %v6765_v34 = vmul.f32 %v6677_v33, %v9427_v3  ;;  %v6769_v35 = vmul.f32 %v6677_v33, %v9428_v27  ;;  %v9429_v10 = vld [vmem:[#allocation104_spill] sm:$0xff]  ;;  %v6777_v21 = vmul.f32 %v6677_v33, %v9430_v59  ;;  %v9431_v31 = vld [vmem:[#allocation54_spill] sm:$0xff]  ;;  %v9432_v37 = vld [vmem:[#allocation105_spill] sm:$0xff]  ;;  %v2440_v29 = vrot.slane %v2342_v58, 2 }
 0x1c1   : >> { %9384 = vst [vmem:[#allocation81_spill] sm:$0xff] %v6671_v54  ;;  %v6773_v15 = vmul.f32 %v6677_v33, %v9429_v10  ;;  %v6781_v2 = vmul.f32 %v6677_v33, %v9431_v31  ;;  %v6785_v3 = vmul.f32 %v6677_v33, %v9432_v37  ;;  %v9433_v52 = vld [vmem:[#allocation55_spill] sm:$0xff]  ;;  %v9434_v41 = vld [vmem:[#allocation56_spill] sm:$0xff]  ;;  %v9435_v6 = vld [vmem:[#allocation106_spill] sm:$0xff]  ;;  %v2442_v32 = vrot.slane %v2343_v9, 2 }
 0x1c2   : >> { %9386 = vst [vmem:[#allocation82_spill] sm:$0xff] %v6674_v19  ;;  %v6789_v27 = vmul.f32 %v6677_v33, %v9433_v52  ;;  %v6793_v10 = vmul.f32 %v6677_v33, %v9434_v41  ;;  %v6797_v59 = vmul.f32 %v6677_v33, %v9435_v6  ;;  %v9436_v57 = vld [vmem:[#allocation57_spill] sm:$0xff]  ;;  %v9449_v19 = vld [vmem:[#allocation80_spill] sm:$0xff]  ;;  %v9450_v53 = vld [vmem:[#allocation111_spill] sm:$0xff]  ;;  %v6898_v42 = vsel %vm859_vm2, %v2434_v30, %v2435_v45 }
 0x1c3   : >> { %9389 = vst [vmem:[#allocation83_spill] sm:$0xff] %v6680_v48  ;;  %v6801_v31 = vmul.f32 %v6677_v33, %v9436_v57  ;;  %v9448_v48 = vld [vmem:[#allocation79_spill] sm:$0xff]  ;;  %v9451_v54 = vld [vmem:[#allocation85_spill] sm:$0xff]  ;;  %v9452_v49 = vld [vmem:[#allocation86_spill] sm:$0xff]  ;;  %v2449_v16 = vrot.slane %v6741_v38, 2  ;;  %v2454_v30 = vrot.slane %v6753_v46, 2 }
 0x1c4   : >> { %9391 = vst [vmem:[#allocation84_spill] sm:$0xff] %v6683_v13  ;;  %v9447_v13 = vld [vmem:[#allocation110_spill] sm:$0xff]  ;;  %v9453_v4 = vld [vmem:[#allocation112_spill] sm:$0xff]  ;;  %v9457_v17 = vld [vmem:[#allocation93_spill] sm:$0xff]  ;;  %v2464_v38 = vrot.slane %v6777_v21, 2  ;;  %v2472_v46 = vrot.slane %v6797_v59, 2 }
 0x1c5   : >> { %9393 = vst [vmem:[#allocation88_spill] sm:$0xff] %v6686_v12  ;;  %v9446_v12 = vld [vmem:[#allocation78_spill] sm:$0xff]  ;;  %v6869_v20 = vmul.f32 %v6677_v33, %v9453_v4 }
 0x1c6   : >> { %9395 = vst [vmem:[#allocation89_spill] sm:$0xff] %v6689_v7  ;;  %v9445_v7 = vld [vmem:[#allocation71_spill] sm:$0xff]  ;;  %v9458_v4 = vld [vmem:[#allocation94_spill] sm:$0xff] }
 0x1c7   : >> { %9397 = vst [vmem:[#allocation90_spill] sm:$0xff] %v6692_v0  ;;  %v9444_v0 = vld [vmem:[#allocation109_spill] sm:$0xff]  ;;  %v9459_v58 = vld [vmem:[#allocation114_spill] sm:$0xff] }
 0x1c8   : >> { %9399 = vst [vmem:[#allocation91_spill] sm:$0xff] %v6695_v47  ;;  %v9443_v47 = vld [vmem:[#allocation70_spill] sm:$0xff]  ;;  %v6893_v9 = vmul.f32 %v6677_v33, %v9459_v58  ;;  %v2455_v58 = vrot.slane %v6757_v1, 2 }
 0x1c9   : >> { %9401 = vst [vmem:[#allocation95_spill] sm:$0xff] %v6698_v44  ;;  %v9442_v44 = vld [vmem:[#allocation69_spill] sm:$0xff] }
 0x1ca   : >> { %9403 = vst [vmem:[#allocation96_spill] sm:$0xff] %v6701_v25  ;;  %v9441_v25 = vld [vmem:[#allocation108_spill] sm:$0xff] }
 0x1cb   : >> { %9405 = vst [vmem:[#allocation97_spill] sm:$0xff] %v6704_v11  ;;  %v9440_v11 = vld [vmem:[#allocation63_spill] sm:$0xff]  ;;  %v6821_v57 = vmul.f32 %v6677_v33, %v9441_v25  ;;  %v6841_v25 = vmul.f32 %v6677_v33, %v9446_v12  ;;  %v6861_v12 = vmul.f32 %v6677_v33, %v9451_v54  ;;  %v9455_v54 = vld [vmem:[#allocation92_spill] sm:$0xff] }
 0x1cc   : >> { %9407 = vst [vmem:[#allocation98_spill] sm:$0xff] %v6707_v39  ;;  %v9439_v39 = vld [vmem:[#allocation62_spill] sm:$0xff]  ;;  %v6817_v6 = vmul.f32 %v6677_v33, %v9440_v11  ;;  %v6837_v11 = vmul.f32 %v6677_v33, %v9445_v7  ;;  %v6857_v7 = vmul.f32 %v6677_v33, %v9450_v53  ;;  %v9454_v53 = vld [vmem:[#allocation87_spill] sm:$0xff]  ;;  %v6877_v61 = vmul.f32 %v6677_v33, %v9455_v54 }
 0x1cd   : >> { %9409 = vst [vmem:[#allocation100_spill] sm:$0xff] %v6710_v26  ;;  %v9438_v26 = vld [vmem:[#allocation107_spill] sm:$0xff]  ;;  %v6813_v41 = vmul.f32 %v6677_v33, %v9439_v39  ;;  %v6833_v39 = vmul.f32 %v6677_v33, %v9444_v0  ;;  %v6853_v0 = vmul.f32 %v6677_v33, %v9449_v19  ;;  %v2439_v19 = vrot.slane %v2341_v60, 2 }
 0x1ce   : >> { %9411 = vst [vmem:[#allocation101_spill] sm:$0xff] %v6713_v62  ;;  %v9437_v62 = vld [vmem:[#allocation61_spill] sm:$0xff]  ;;  %v6809_v52 = vmul.f32 %v6677_v33, %v9438_v26  ;;  %v6829_v26 = vmul.f32 %v6677_v33, %v9443_v47  ;;  %v6849_v47 = vmul.f32 %v6677_v33, %v9448_v48  ;;  %v2437_v48 = vrot.slane %v2340_v22, 2 }
 0x1cf   : >> { %v6805_v37 = vmul.f32 %v6677_v33, %v9437_v62  ;;  %v6825_v62 = vmul.f32 %v6677_v33, %v9442_v44  ;;  %v6845_v44 = vmul.f32 %v6677_v33, %v9447_v13  ;;  %v6865_v13 = vmul.f32 %v6677_v33, %v9452_v49  ;;  %v9456_v49 = vld [vmem:[#allocation113_spill] sm:$0xff] }
 0x1d0   : >> { %v6873_v28 = vmul.f32 %v6677_v33, %v9454_v53  ;;  %v6881_v56 = vmul.f32 %v6677_v33, %v9456_v49  ;;  %v6885_v22 = vmul.f32 %v6677_v33, %v9457_v17  ;;  %v6889_v60 = vmul.f32 %v6677_v33, %v9458_v4 }
 0x1d1   : >> { %v2444_v53 = vrot.slane %v6729_v18, 2  ;;  %v2445_v54 = vrot.slane %v6733_v43, 2  ;;  %v6901_v49 = vsel %vm859_vm2, %v2435_v45, %v2437_v48  ;;  %v2447_v17 = vrot.slane %v6737_v36, 2 }
 0x1d2   : >> { %v6906_v4 = vsel %vm859_vm2, %v2439_v19, %v2440_v29  ;;  %v6909_v33 = vsel %vm859_vm2, %v2440_v29, %v2442_v32  ;;  %v2450_v18 = vrot.slane %v6745_v51, 2  ;;  %v2452_v43 = vrot.slane %v6749_v23, 2 }
 0x1d3   : >> { %v2457_v45 = vrot.slane %v6761_v14, 2  ;;  %v2459_v48 = vrot.slane %v6765_v34, 2  ;;  %v2460_v36 = vrot.slane %v6769_v35, 2  ;;  %v2462_v19 = vrot.slane %v6773_v15, 2 }
 0x1d4   : >> { %v2465_v32 = vrot.slane %v6781_v2, 2  ;;  %v2467_v29 = vrot.slane %v6785_v3, 2  ;;  %v2469_v51 = vrot.slane %v6789_v27, 2  ;;  %v2470_v23 = vrot.slane %v6793_v10, 2 }
 0x1d5   : >> { %v2446_v1 = vsel %vm859_vm2, %v2444_v53, %v2445_v54  ;;  %v2448_v34 = vsel %vm859_vm2, %v2445_v54, %v2447_v17  ;;  %v2474_v35 = vrot.slane %v6801_v31, 2  ;;  %v2475_v15 = vrot.slane %v6805_v37, 2 }
 0x1d6   : >> { %v2451_v21 = vsel %vm859_vm2, %v2449_v16, %v2450_v18  ;;  %v2453_v2 = vsel %vm859_vm2, %v2450_v18, %v2452_v43  ;;  %v2456_v3 = vsel %vm859_vm2, %v2454_v30, %v2455_v58  ;;  %v2477_v27 = vrot.slane %v6809_v52, 2 }
 0x1d7   : >> { %v2458_v10 = vsel %vm859_vm2, %v2455_v58, %v2457_v45  ;;  %v2461_v59 = vsel %vm859_vm2, %v2459_v48, %v2460_v36  ;;  %v2463_v53 = vsel %vm859_vm2, %v2460_v36, %v2462_v19  ;;  %v2466_v54 = vsel %vm859_vm2, %v2464_v38, %v2465_v32 }
 0x1d8   : >> { %v2468_v31 = vsel %vm859_vm2, %v2465_v32, %v2467_v29  ;;  %v2471_v37 = vsel %vm859_vm2, %v2469_v51, %v2470_v23  ;;  %v2473_v16 = vsel %vm859_vm2, %v2470_v23, %v2472_v46  ;;  %v2479_v14 = vrot.slane %v6813_v41, 2 }
 0x1d9   : >> { %v2476_v17 = vsel %vm859_vm2, %v2474_v35, %v2475_v15  ;;  %v2480_v52 = vrot.slane %v6817_v6, 2  ;;  %v2482_v58 = vrot.slane %v6821_v57, 2  ;;  %v2484_v18 = vrot.slane %v6825_v62, 2 }
 0x1da   : >> { %v2478_v43 = vsel %vm859_vm2, %v2475_v15, %v2477_v27  ;;  %v2485_v30 = vrot.slane %v6829_v26, 2  ;;  %v2487_v45 = vrot.slane %v6833_v39, 2  ;;  %v2489_v48 = vrot.slane %v6837_v11, 2 }
 0x1db   : >> { %v2490_v36 = vrot.slane %v6841_v25, 2  ;;  %v2492_v41 = vrot.slane %v6845_v44, 2  ;;  %v2494_v19 = vrot.slane %v6849_v47, 2  ;;  %v2495_v6 = vrot.slane %v6853_v0, 2 }
 0x1dc   : >> { %v2497_v57 = vrot.slane %v6857_v7, 2  ;;  %v2499_v62 = vrot.slane %v6861_v12, 2  ;;  %v2500_v38 = vrot.slane %v6865_v13, 2  ;;  %v2502_v26 = vrot.slane %v6869_v20, 2 }
 0x1dd   : >> { %v2481_v39 = vsel %vm859_vm2, %v2479_v14, %v2480_v52  ;;  %v2504_v11 = vrot.slane %v6873_v28, 2  ;;  %v2505_v25 = vrot.slane %v6877_v61, 2  ;;  %v2507_v44 = vrot.slane %v6881_v56, 2 }
 0x1de   : >> { %v2483_v47 = vsel %vm859_vm2, %v2480_v52, %v2482_v58  ;;  %v2509_v0 = vrot.slane %v6885_v22, 2  ;;  %v2510_v7 = vrot.slane %v6889_v60, 2  ;;  %v2512_v12 = vrot.slane %v6893_v9, 2  ;;  %v9462_v52 = vld [vmem:[#allocation59_spill] sm:$0xff] }
 0x1df   : >> { %v2486_v13 = vsel %vm859_vm2, %v2484_v18, %v2485_v30  ;;  %v2488_v20 = vsel %vm859_vm2, %v2485_v30, %v2487_v45  ;;  %v2491_v32 = vsel %vm859_vm2, %v2489_v48, %v2490_v36  ;;  %v2493_v28 = vsel %vm859_vm2, %v2490_v36, %v2492_v41 }
 0x1e0   : >> { %v2496_v61 = vsel %vm859_vm2, %v2494_v19, %v2495_v6  ;;  %v2498_v56 = vsel %vm859_vm2, %v2495_v6, %v2497_v57  ;;  %v2501_v29 = vsel %vm859_vm2, %v2499_v62, %v2500_v38  ;;  %v2503_v22 = vsel %vm859_vm2, %v2500_v38, %v2502_v26  ;;  %v9495_v26 = vld [vmem:[#allocation90_spill] sm:$0xff] }
 0x1e1   : >> { %v2506_v60 = vsel %vm859_vm2, %v2504_v11, %v2505_v25  ;;  %v2508_v9 = vsel %vm859_vm2, %v2505_v25, %v2507_v44  ;;  %v6977_v51 = vadd.f32 %v6898_v42, %v6615_v5  ;;  %v6981_v23 = vadd.f32 %v6901_v49, %v6619_v40  ;;  %v9460_v42 = vld [vmem:[#allocation58_spill] sm:$0xff]  ;;  %v9497_v11 = vld [vmem:[#allocation91_spill] sm:$0xff] }
 0x1e2   : >> { %v2511_v46 = vsel %vm859_vm2, %v2509_v0, %v2510_v7  ;;  %v2513_v35 = vsel %vm859_vm2, %v2510_v7, %v2512_v12  ;;  %v6987_v15 = vadd.f32 %v6906_v4, %v6623_v8  ;;  %v6991_v27 = vadd.f32 %v6909_v33, %v6626_v63  ;;  %v9464_v8 = vld [vmem:[#allocation60_spill] sm:$0xff]  ;;  %v9499_v44 = vld [vmem:[#allocation95_spill] sm:$0xff]  ;;  %v9503_v12 = vld [vmem:[#allocation97_spill] sm:$0xff] }
 0x1e3   : >> { %v6994_v14 = vadd.f32 %v2446_v1, %v6629_v55  ;;  %v6997_v5 = vadd.f32 %v2448_v34, %v6632_v24  ;;  %v7000_v40 = vadd.f32 %v2451_v21, %v6635_v50  ;;  %v7003_v49 = vadd.f32 %v2453_v2, %v9460_v42  ;;  %v9466_v63 = vld [vmem:[#allocation64_spill] sm:$0xff]  ;;  %v9468_v55 = vld [vmem:[#allocation65_spill] sm:$0xff]  ;;  %v9470_v24 = vld [vmem:[#allocation66_spill] sm:$0xff] }
 0x1e4   : >> { %v7006_v58 = vadd.f32 %v2456_v3, %v9462_v52  ;;  %v7009_v4 = vadd.f32 %v2458_v10, %v9464_v8  ;;  %v7012_v33 = vadd.f32 %v2461_v59, %v9466_v63  ;;  %v7015_v1 = vadd.f32 %v2463_v53, %v9468_v55  ;;  %v9472_v50 = vld [vmem:[#allocation67_spill] sm:$0xff]  ;;  %v9474_v2 = vld [vmem:[#allocation72_spill] sm:$0xff]  ;;  %v9476_v3 = vld [vmem:[#allocation73_spill] sm:$0xff] }
 0x1e5   : >> { %9461 = vst [vmem:[#allocation102_spill] sm:$0xff] %v7003_v49  ;;  %v7018_v34 = vadd.f32 %v2466_v54, %v9470_v24  ;;  %v7021_v21 = vadd.f32 %v2468_v31, %v9472_v50  ;;  %v7024_v18 = vadd.f32 %v2471_v37, %v9474_v2  ;;  %v7027_v30 = vadd.f32 %v2473_v16, %v9476_v3  ;;  %v9478_v10 = vld [vmem:[#allocation74_spill] sm:$0xff]  ;;  %v9480_v59 = vld [vmem:[#allocation75_spill] sm:$0xff]  ;;  %v9482_v53 = vld [vmem:[#allocation81_spill] sm:$0xff] }
 0x1e6   : >> { %9463 = vst [vmem:[#allocation58_spill] sm:$0xff] %v7006_v58  ;;  %v7030_v45 = vadd.f32 %v2476_v17, %v9478_v10  ;;  %v7033_v48 = vadd.f32 %v2478_v43, %v9480_v59  ;;  %v7036_v36 = vadd.f32 %v2481_v39, %v9482_v53  ;;  %v9484_v54 = vld [vmem:[#allocation40_spill] sm:$0xff]  ;;  %v9485_v31 = vld [vmem:[#allocation82_spill] sm:$0xff]  ;;  %v9487_v37 = vld [vmem:[#allocation83_spill] sm:$0xff]  ;;  %v7057_v39 = vadd.f32 %v2496_v61, %v9495_v26 }
 0x1e7   : >> { %9465 = vst [vmem:[#allocation59_spill] sm:$0xff] %v7009_v4  ;;  %v7039_v41 = vperm.slane %v9484_v54, 3  ;;  %v7042_v19 = vadd.f32 %v2483_v47, %v9485_v31  ;;  %v7045_v6 = vadd.f32 %v2486_v13, %v9487_v37  ;;  %v9489_v16 = vld [vmem:[#allocation84_spill] sm:$0xff]  ;;  %v9493_v43 = vld [vmem:[#allocation89_spill] sm:$0xff]  ;;  %v7060_v25 = vadd.f32 %v2498_v56, %v9497_v11  ;;  %v9518_v10 = vld [vmem:[#allocation46_spill] sm:$0xff] }
 0x1e8   : >> { %9467 = vst [vmem:[#allocation60_spill] sm:$0xff] %v7012_v33  ;;  %v7048_v57 = vadd.f32 %v2488_v20, %v9489_v16  ;;  %v9491_v17 = vld [vmem:[#allocation88_spill] sm:$0xff]  ;;  %v7054_v38 = vadd.f32 %v2493_v28, %v9493_v43  ;;  %v7063_v47 = vadd.f32 %v2501_v29, %v9499_v44  ;;  %v7069_v13 = vadd.f32 %v2506_v60, %v9503_v12  ;;  %v9505_v20 = vld [vmem:[#allocation98_spill] sm:$0xff]  ;;  %v9509_v61 = vld [vmem:[#allocation101_spill] sm:$0xff] }
 0x1e9   : >> { %9469 = vst [vmem:[#allocation64_spill] sm:$0xff] %v7015_v1  ;;  %v7051_v62 = vadd.f32 %v2491_v32, %v9491_v17  ;;  %v9501_v0 = vld [vmem:[#allocation96_spill] sm:$0xff]  ;;  %v7072_v32 = vadd.f32 %v2508_v9, %v9505_v20  ;;  %v7078_v52 = vadd.f32 %v2513_v35, %v9509_v61  ;;  %v9511_v56 = vld [vmem:[#allocation41_spill] sm:$0xff]  ;;  %v9512_v29 = vld [vmem:[#allocation42_spill] sm:$0xff]  ;;  %v7102_v59 = vmul.f32 %v7039_v41, %v9518_v10 }
 0x1ea   : >> { %9471 = vst [vmem:[#allocation65_spill] sm:$0xff] %v7018_v34  ;;  %v7066_v7 = vadd.f32 %v2503_v22, %v9501_v0  ;;  %v9507_v28 = vld [vmem:[#allocation100_spill] sm:$0xff]  ;;  %v2579_v8 = vmul.f32 %v7039_v41, %v9511_v56  ;;  %v2580_v63 = vmul.f32 %v7039_v41, %v9512_v29  ;;  %v9514_v60 = vld [vmem:[#allocation43_spill] sm:$0xff]  ;;  %v9517_v2 = vld [vmem:[#allocation45_spill] sm:$0xff] }
 0x1eb   : >> { %9473 = vst [vmem:[#allocation66_spill] sm:$0xff] %v7021_v21  ;;  %v7075_v42 = vadd.f32 %v2511_v46, %v9507_v28  ;;  %v9513_v22 = vld [vmem:[#allocation68_spill] sm:$0xff]  ;;  %v2582_v24 = vmul.f32 %v7039_v41, %v9514_v60  ;;  %v7098_v3 = vmul.f32 %v7039_v41, %v9517_v2  ;;  %v9519_v53 = vld [vmem:[#allocation77_spill] sm:$0xff]  ;;  %v9520_v31 = vld [vmem:[#allocation47_spill] sm:$0xff] }
 0x1ec   : >> { %9475 = vst [vmem:[#allocation67_spill] sm:$0xff] %v7024_v18  ;;  %v2581_v55 = vmul.f32 %v7039_v41, %v9513_v22  ;;  %v9515_v9 = vld [vmem:[#allocation44_spill] sm:$0xff]  ;;  %v7106_v54 = vmul.f32 %v7039_v41, %v9519_v53  ;;  %v7110_v37 = vmul.f32 %v7039_v41, %v9520_v31  ;;  %v9522_v43 = vld [vmem:[#allocation99_spill] sm:$0xff]  ;;  %v9523_v11 = vld [vmem:[#allocation49_spill] sm:$0xff] }
 0x1ed   : >> { %9477 = vst [vmem:[#allocation72_spill] sm:$0xff] %v7027_v30  ;;  %v7090_v50 = vmul.f32 %v7039_v41, %v9515_v9  ;;  %v9516_v46 = vld [vmem:[#allocation76_spill] sm:$0xff]  ;;  %v7118_v26 = vmul.f32 %v7039_v41, %v9522_v43  ;;  %v7122_v44 = vmul.f32 %v7039_v41, %v9523_v11  ;;  %v9524_v0 = vld [vmem:[#allocation50_spill] sm:$0xff]  ;;  %v9525_v20 = vld [vmem:[#allocation103_spill] sm:$0xff] }
 0x1ee   : >> { %9479 = vst [vmem:[#allocation73_spill] sm:$0xff] %v7030_v45  ;;  %v7094_v35 = vmul.f32 %v7039_v41, %v9516_v46  ;;  %v9521_v16 = vld [vmem:[#allocation48_spill] sm:$0xff]  ;;  %v7126_v12 = vmul.f32 %v7039_v41, %v9524_v0  ;;  %v7130_v28 = vmul.f32 %v7039_v41, %v9525_v20  ;;  %v9526_v61 = vld [vmem:[#allocation51_spill] sm:$0xff]  ;;  %v9529_v46 = vld [vmem:[#allocation53_spill] sm:$0xff]  ;;  %v2676_v45 = vrot.slane %v2580_v63, 3 }
 0x1ef   : >> { %9481 = vst [vmem:[#allocation74_spill] sm:$0xff] %v7033_v48  ;;  %v7114_v17 = vmul.f32 %v7039_v41, %v9521_v16  ;;  %v7134_v56 = vmul.f32 %v7039_v41, %v9526_v61  ;;  %v9527_v29 = vld [vmem:[#allocation52_spill] sm:$0xff]  ;;  %v7146_v2 = vmul.f32 %v7039_v41, %v9529_v46  ;;  %v9530_v10 = vld [vmem:[#allocation54_spill] sm:$0xff]  ;;  %v9531_v31 = vld [vmem:[#allocation105_spill] sm:$0xff]  ;;  %v2675_v48 = vrot.slane %v2579_v8, 3 }
 0x1f0   : >> { %9483 = vst [vmem:[#allocation75_spill] sm:$0xff] %v7036_v36  ;;  %v7138_v22 = vmul.f32 %v7039_v41, %v9527_v29  ;;  %v9528_v60 = vld [vmem:[#allocation104_spill] sm:$0xff]  ;;  %v7150_v53 = vmul.f32 %v7039_v41, %v9530_v10  ;;  %v7154_v16 = vmul.f32 %v7039_v41, %v9531_v31  ;;  %v9532_v11 = vld [vmem:[#allocation55_spill] sm:$0xff]  ;;  %v9535_v20 = vld [vmem:[#allocation57_spill] sm:$0xff]  ;;  %v2681_v34 = vrot.slane %v7090_v50, 3 }
 0x1f1   : >> { %9486 = vst [vmem:[#allocation81_spill] sm:$0xff] %v7042_v19  ;;  %v7142_v9 = vmul.f32 %v7039_v41, %v9528_v60  ;;  %v7158_v0 = vmul.f32 %v7039_v41, %v9532_v11  ;;  %v9533_v61 = vld [vmem:[#allocation56_spill] sm:$0xff]  ;;  %v9534_v60 = vld [vmem:[#allocation106_spill] sm:$0xff]  ;;  %v7170_v10 = vmul.f32 %v7039_v41, %v9535_v20  ;;  %v9536_v43 = vld [vmem:[#allocation61_spill] sm:$0xff]  ;;  %v2683_v4 = vrot.slane %v7094_v35, 3 }
 0x1f2   : >> { %9488 = vst [vmem:[#allocation40_spill] sm:$0xff] %v7045_v6  ;;  %v7162_v29 = vmul.f32 %v7039_v41, %v9533_v61  ;;  %v7166_v46 = vmul.f32 %v7039_v41, %v9534_v60  ;;  %v7174_v31 = vmul.f32 %v7039_v41, %v9536_v43  ;;  %v9548_v6 = vld [vmem:[#allocation80_spill] sm:$0xff]  ;;  %v9549_v19 = vld [vmem:[#allocation111_spill] sm:$0xff]  ;;  %v9550_v36 = vld [vmem:[#allocation85_spill] sm:$0xff]  ;;  %v7268_v58 = vsel %vm1101_vm3, %v2675_v48, %v2676_v45 }
 0x1f3   : >> { %9490 = vst [vmem:[#allocation82_spill] sm:$0xff] %v7048_v57  ;;  %v9547_v57 = vld [vmem:[#allocation79_spill] sm:$0xff]  ;;  %v9551_v30 = vld [vmem:[#allocation86_spill] sm:$0xff]  ;;  %v9555_v63 = vld [vmem:[#allocation113_spill] sm:$0xff]  ;;  %v2688_v49 = vrot.slane %v7106_v54, 3  ;;  %v2693_v35 = vrot.slane %v7118_v26, 3 }
 0x1f4   : >> { %9492 = vst [vmem:[#allocation83_spill] sm:$0xff] %v7051_v62  ;;  %v9546_v62 = vld [vmem:[#allocation110_spill] sm:$0xff]  ;;  %v7234_v18 = vmul.f32 %v7039_v41, %v9551_v30  ;;  %v9556_v30 = vld [vmem:[#allocation93_spill] sm:$0xff]  ;;  %v2696_v48 = vrot.slane %v7126_v12, 3  ;;  %v2703_v54 = vrot.slane %v7142_v9, 3  ;;  %v2710_v26 = vrot.slane %v7158_v0, 3 }
 0x1f5   : >> { %9494 = vst [vmem:[#allocation84_spill] sm:$0xff] %v7054_v38  ;;  %v9545_v38 = vld [vmem:[#allocation78_spill] sm:$0xff]  ;;  %v7255_v33 = vmul.f32 %v7039_v41, %v9556_v30  ;;  %v2686_v30 = vrot.slane %v7102_v59, 3  ;;  %v2701_v59 = vrot.slane %v7138_v22, 3  ;;  %v2713_v12 = vrot.slane %v7166_v46, 3 }
 0x1f6   : >> { %9496 = vst [vmem:[#allocation88_spill] sm:$0xff] %v7057_v39  ;;  %v9544_v39 = vld [vmem:[#allocation71_spill] sm:$0xff]  ;;  %v9558_v50 = vld [vmem:[#allocation114_spill] sm:$0xff]  ;;  %v2715_v22 = vrot.slane %v7170_v10, 3  ;;  %v2716_v9 = vrot.slane %v7174_v31, 3 }
 0x1f7   : >> { %9498 = vst [vmem:[#allocation89_spill] sm:$0xff] %v7060_v25  ;;  %v9543_v25 = vld [vmem:[#allocation109_spill] sm:$0xff] }
 0x1f8   : >> { %9500 = vst [vmem:[#allocation90_spill] sm:$0xff] %v7063_v47  ;;  %v9542_v47 = vld [vmem:[#allocation70_spill] sm:$0xff] }
 0x1f9   : >> { %9502 = vst [vmem:[#allocation91_spill] sm:$0xff] %v7066_v7  ;;  %v9541_v7 = vld [vmem:[#allocation69_spill] sm:$0xff] }
 0x1fa   : >> { %9504 = vst [vmem:[#allocation95_spill] sm:$0xff] %v7069_v13  ;;  %v9540_v13 = vld [vmem:[#allocation108_spill] sm:$0xff]  ;;  %v7194_v43 = vmul.f32 %v7039_v41, %v9541_v7  ;;  %v7214_v7 = vmul.f32 %v7039_v41, %v9546_v62  ;;  %v2678_v62 = vrot.slane %v2581_v55, 3  ;;  %v7251_v55 = vmul.f32 %v7039_v41, %v9555_v63 }
 0x1fb   : >> { %9506 = vst [vmem:[#allocation96_spill] sm:$0xff] %v7072_v32  ;;  %v9539_v32 = vld [vmem:[#allocation63_spill] sm:$0xff]  ;;  %v7190_v20 = vmul.f32 %v7039_v41, %v9540_v13  ;;  %v7210_v13 = vmul.f32 %v7039_v41, %v9545_v38  ;;  %v7230_v38 = vmul.f32 %v7039_v41, %v9550_v36  ;;  %v9554_v36 = vld [vmem:[#allocation92_spill] sm:$0xff] }
 0x1fc   : >> { %9508 = vst [vmem:[#allocation97_spill] sm:$0xff] %v7075_v42  ;;  %v9538_v42 = vld [vmem:[#allocation62_spill] sm:$0xff]  ;;  %v7186_v60 = vmul.f32 %v7039_v41, %v9539_v32  ;;  %v7206_v32 = vmul.f32 %v7039_v41, %v9544_v39  ;;  %v7226_v39 = vmul.f32 %v7039_v41, %v9549_v19  ;;  %v9553_v19 = vld [vmem:[#allocation87_spill] sm:$0xff]  ;;  %v7247_v8 = vmul.f32 %v7039_v41, %v9554_v36 }
 0x1fd   : >> { %9510 = vst [vmem:[#allocation98_spill] sm:$0xff] %v7078_v52  ;;  %v9537_v52 = vld [vmem:[#allocation107_spill] sm:$0xff]  ;;  %v7182_v61 = vmul.f32 %v7039_v41, %v9538_v42  ;;  %v7202_v42 = vmul.f32 %v7039_v41, %v9543_v25  ;;  %v7222_v25 = vmul.f32 %v7039_v41, %v9548_v6  ;;  %v2680_v6 = vrot.slane %v2582_v24, 3 }
 0x1fe   : >> { %v7178_v11 = vmul.f32 %v7039_v41, %v9537_v52  ;;  %v7198_v52 = vmul.f32 %v7039_v41, %v9542_v47  ;;  %v7218_v47 = vmul.f32 %v7039_v41, %v9547_v57  ;;  %v9552_v57 = vld [vmem:[#allocation112_spill] sm:$0xff]  ;;  %v7243_v1 = vmul.f32 %v7039_v41, %v9553_v19 }
 0x1ff   : >> { %v7238_v21 = vmul.f32 %v7039_v41, %v9552_v57  ;;  %v9557_v57 = vld [vmem:[#allocation94_spill] sm:$0xff]  ;;  %v7263_v19 = vmul.f32 %v7039_v41, %v9558_v50  ;;  %v2685_v36 = vrot.slane %v7098_v3, 3  ;;  %v7271_v63 = vsel %vm1101_vm3, %v2676_v45, %v2678_v62 }
 0x200   : >> { %v7259_v24 = vmul.f32 %v7039_v41, %v9557_v57  ;;  %v7276_v57 = vsel %vm1101_vm3, %v2680_v6, %v2681_v34  ;;  %v2690_v41 = vrot.slane %v7110_v37, 3  ;;  %v2691_v50 = vrot.slane %v7114_v17, 3 }
 0x201   : >> { %v2695_v3 = vrot.slane %v7122_v44, 3  ;;  %v2698_v45 = vrot.slane %v7130_v28, 3  ;;  %v2700_v62 = vrot.slane %v7134_v56, 3  ;;  %v2705_v6 = vrot.slane %v7146_v2, 3 }
 0x202   : >> { %v2706_v37 = vrot.slane %v7150_v53, 3  ;;  %v2708_v17 = vrot.slane %v7154_v16, 3  ;;  %v2711_v44 = vrot.slane %v7162_v29, 3  ;;  %v2684_v28 = vsel %vm1101_vm3, %v2681_v34, %v2683_v4 }
 0x203   : >> { %v2687_v56 = vsel %vm1101_vm3, %v2685_v36, %v2686_v30  ;;  %v2689_v2 = vsel %vm1101_vm3, %v2686_v30, %v2688_v49  ;;  %v2692_v53 = vsel %vm1101_vm3, %v2690_v41, %v2691_v50  ;;  %v2694_v16 = vsel %vm1101_vm3, %v2691_v50, %v2693_v35 }
 0x204   : >> { %v2718_v0 = vrot.slane %v7178_v11, 3  ;;  %v2697_v29 = vsel %vm1101_vm3, %v2695_v3, %v2696_v48  ;;  %v2699_v46 = vsel %vm1101_vm3, %v2696_v48, %v2698_v45  ;;  %v2702_v4 = vsel %vm1101_vm3, %v2700_v62, %v2701_v59 }
 0x205   : >> { %v2704_v34 = vsel %vm1101_vm3, %v2701_v59, %v2703_v54  ;;  %v2707_v10 = vsel %vm1101_vm3, %v2705_v6, %v2706_v37  ;;  %v2709_v31 = vsel %vm1101_vm3, %v2706_v37, %v2708_v17  ;;  %v2712_v49 = vsel %vm1101_vm3, %v2710_v26, %v2711_v44 }
 0x206   : >> { %v2714_v36 = vsel %vm1101_vm3, %v2711_v44, %v2713_v12  ;;  %v2717_v50 = vsel %vm1101_vm3, %v2715_v22, %v2716_v9  ;;  %v2720_v11 = vrot.slane %v7182_v61, 3  ;;  %v2721_v30 = vrot.slane %v7186_v60, 3 }
 0x207   : >> { %v2723_v41 = vrot.slane %v7190_v20, 3  ;;  %v2719_v35 = vsel %vm1101_vm3, %v2716_v9, %v2718_v0  ;;  %v2725_v3 = vrot.slane %v7194_v43, 3  ;;  %v2726_v48 = vrot.slane %v7198_v52, 3 }
 0x208   : >> { %v2728_v45 = vrot.slane %v7202_v42, 3  ;;  %v2730_v62 = vrot.slane %v7206_v32, 3  ;;  %v2731_v59 = vrot.slane %v7210_v13, 3  ;;  %v2733_v54 = vrot.slane %v7214_v7, 3 }
 0x209   : >> { %v2735_v61 = vrot.slane %v7218_v47, 3  ;;  %v2736_v60 = vrot.slane %v7222_v25, 3  ;;  %v2738_v20 = vrot.slane %v7226_v39, 3  ;;  %v2740_v6 = vrot.slane %v7230_v38, 3 }
 0x20a   : >> { %v2741_v43 = vrot.slane %v7234_v18, 3  ;;  %v2743_v52 = vrot.slane %v7238_v21, 3  ;;  %v2745_v42 = vrot.slane %v7243_v1, 3  ;;  %v2746_v32 = vrot.slane %v7247_v8, 3 }
 0x20b   : >> { %v2748_v13 = vrot.slane %v7251_v55, 3  ;;  %v2722_v7 = vsel %vm1101_vm3, %v2720_v11, %v2721_v30  ;;  %v2750_v47 = vrot.slane %v7255_v33, 3  ;;  %v2751_v25 = vrot.slane %v7259_v24, 3 }
 0x20c   : >> { %v2753_v39 = vrot.slane %v7263_v19, 3  ;;  %v2724_v38 = vsel %vm1101_vm3, %v2721_v30, %v2723_v41  ;;  %v2727_v18 = vsel %vm1101_vm3, %v2725_v3, %v2726_v48  ;;  %v2729_v21 = vsel %vm1101_vm3, %v2726_v48, %v2728_v45  ;;  %v9560_v30 = vld [vmem:[#allocation102_spill] sm:$0xff] }
 0x20d   : >> { %v2732_v1 = vsel %vm1101_vm3, %v2730_v62, %v2731_v59  ;;  %v2734_v8 = vsel %vm1101_vm3, %v2731_v59, %v2733_v54  ;;  %v2737_v55 = vsel %vm1101_vm3, %v2735_v61, %v2736_v60  ;;  %v2739_v37 = vsel %vm1101_vm3, %v2736_v60, %v2738_v20  ;;  %v9591_v60 = vld [vmem:[#allocation83_spill] sm:$0xff] }
 0x20e   : >> { %v2742_v33 = vsel %vm1101_vm3, %v2740_v6, %v2741_v43  ;;  %v2744_v24 = vsel %vm1101_vm3, %v2741_v43, %v2743_v52  ;;  %v2747_v19 = vsel %vm1101_vm3, %v2745_v42, %v2746_v32  ;;  %v2749_v17 = vsel %vm1101_vm3, %v2746_v32, %v2748_v13  ;;  %v9593_v6 = vld [vmem:[#allocation84_spill] sm:$0xff]  ;;  %v9597_v32 = vld [vmem:[#allocation89_spill] sm:$0xff] }
 0x20f   : >> { %v7346_v26 = vadd.f32 %v7268_v58, %v6977_v51  ;;  %v2752_v44 = vsel %vm1101_vm3, %v2750_v47, %v2751_v25  ;;  %v2754_v12 = vsel %vm1101_vm3, %v2751_v25, %v2753_v39  ;;  %v7352_v22 = vadd.f32 %v7271_v63, %v6981_v23  ;;  %v9562_v63 = vld [vmem:[#allocation58_spill] sm:$0xff]  ;;  %v9595_v52 = vld [vmem:[#allocation88_spill] sm:$0xff]  ;;  %v9601_v25 = vld [vmem:[#allocation91_spill] sm:$0xff] }
 0x210   : >> { %v7356_v9 = vadd.f32 %v7276_v57, %v6987_v15  ;;  %v7359_v0 = vadd.f32 %v2684_v28, %v6991_v27  ;;  %v7362_v11 = vadd.f32 %v2687_v56, %v6994_v14  ;;  %v7365_v51 = vadd.f32 %v2689_v2, %v6997_v5  ;;  %v9564_v15 = vld [vmem:[#allocation59_spill] sm:$0xff]  ;;  %v9566_v27 = vld [vmem:[#allocation60_spill] sm:$0xff]  ;;  %v9570_v5 = vld [vmem:[#allocation65_spill] sm:$0xff] }
 0x211   : >> { %v7368_v58 = vadd.f32 %v2692_v53, %v7000_v40  ;;  %v7371_v23 = vadd.f32 %v2694_v16, %v9560_v30  ;;  %v7374_v41 = vadd.f32 %v2697_v29, %v9562_v63  ;;  %v7377_v57 = vadd.f32 %v2699_v46, %v9564_v15  ;;  %v9568_v14 = vld [vmem:[#allocation64_spill] sm:$0xff]  ;;  %v9572_v40 = vld [vmem:[#allocation66_spill] sm:$0xff]  ;;  %v9574_v16 = vld [vmem:[#allocation67_spill] sm:$0xff] }
 0x212   : >> { %v7380_v28 = vadd.f32 %v2702_v4, %v9566_v27  ;;  %v7383_v56 = vadd.f32 %v2704_v34, %v9568_v14  ;;  %v7386_v2 = vadd.f32 %v2707_v10, %v9570_v5  ;;  %v7389_v53 = vadd.f32 %v2709_v31, %v9572_v40  ;;  %v9576_v29 = vld [vmem:[#allocation72_spill] sm:$0xff]  ;;  %v9578_v46 = vld [vmem:[#allocation73_spill] sm:$0xff]  ;;  %v9580_v4 = vld [vmem:[#allocation74_spill] sm:$0xff] }
 0x213   : >> { %9559 = vst [vmem:[#allocation100_spill] sm:$0xff] %v7368_v58  ;;  %v7392_v3 = vadd.f32 %v2712_v49, %v9574_v16  ;;  %v7395_v48 = vadd.f32 %v2714_v36, %v9576_v29  ;;  %v7398_v45 = vadd.f32 %v2717_v50, %v9578_v46  ;;  %v7401_v62 = vadd.f32 %v2719_v35, %v9580_v4  ;;  %v7404_v34 = vld [vmem:[%s6053_s17] sm:$0x7f]  ;;  %v9583_v31 = vld [vmem:[#allocation75_spill] sm:$0xff]  ;;  %v9585_v49 = vld [vmem:[#allocation81_spill] sm:$0xff] }
 0x214   : >> { %9561 = vst [vmem:[#allocation101_spill] sm:$0xff] %v7371_v23  ;;  %v7407_v10 = vperm.slane %v7404_v34, 4  ;;  %v7410_v59 = vadd.f32 %v2722_v7, %v9583_v31  ;;  %v7413_v54 = vadd.f32 %v2724_v38, %v9585_v49  ;;  %v9587_v36 = vld [vmem:[#allocation40_spill] sm:$0xff]  ;;  %v9589_v50 = vld [vmem:[#allocation82_spill] sm:$0xff]  ;;  %v7422_v20 = vadd.f32 %v2732_v1, %v9591_v60  ;;  %v9603_v38 = vld [vmem:[#allocation95_spill] sm:$0xff] }
 0x215   : >> { %9563 = vst [vmem:[#allocation41_spill] sm:$0xff] %v7374_v41  ;;  %v7416_v61 = vadd.f32 %v2727_v18, %v9587_v36  ;;  %v7419_v35 = vadd.f32 %v2729_v21, %v9589_v50  ;;  %v7425_v43 = vadd.f32 %v2734_v8, %v9593_v6  ;;  %v7428_v42 = vadd.f32 %v2737_v55, %v9595_v52  ;;  %v9599_v7 = vld [vmem:[#allocation90_spill] sm:$0xff]  ;;  %v9605_v21 = vld [vmem:[#allocation96_spill] sm:$0xff]  ;;  %v9607_v8 = vld [vmem:[#allocation97_spill] sm:$0xff] }
 0x216   : >> { %9565 = vst [vmem:[#allocation42_spill] sm:$0xff] %v7377_v57  ;;  %v7431_v13 = vadd.f32 %v2739_v37, %v9597_v32  ;;  %v7434_v47 = vadd.f32 %v2742_v33, %v9599_v7  ;;  %v7437_v39 = vadd.f32 %v2744_v24, %v9601_v25  ;;  %v7440_v18 = vadd.f32 %v2747_v19, %v9603_v38  ;;  %v9609_v30 = vld [vmem:[#allocation98_spill] sm:$0xff]  ;;  %v7452_v33 = vld [vmem:[%s6061_s18] sm:$0xff]  ;;  %v7459_v19 = vld [vmem:[%s6061_s18 + $0x8] sm:$0xff] }
 0x217   : >> { %9567 = vst [vmem:[#allocation68_spill] sm:$0xff] %v7380_v28  ;;  %v7443_v1 = vadd.f32 %v2749_v17, %v9605_v21  ;;  %v7446_v55 = vadd.f32 %v2752_v44, %v9607_v8  ;;  %v7449_v37 = vadd.f32 %v2754_v12, %v9609_v30  ;;  %v7456_v24 = vmul.f32 %v7452_v33, %v7407_v10  ;;  %v7466_v44 = vld [vmem:[%s6061_s18 + $0x10] sm:$0x3f]  ;;  %v7473_v63 = vld [vmem:[%s6061_s18 + $0x18] sm:$0xff]  ;;  %v7480_v27 = vld [vmem:[%s6061_s18 + $0x20] sm:$0xff] }
 0x218   : >> { %9569 = vst [vmem:[#allocation43_spill] sm:$0xff] %v7383_v56  ;;  %v7463_v17 = vmul.f32 %v7459_v19, %v7407_v10  ;;  %v7470_v12 = vmul.f32 %v7466_v44, %v7407_v10  ;;  %v7477_v15 = vmul.f32 %v7473_v63, %v7407_v10  ;;  %v7484_v14 = vmul.f32 %v7480_v27, %v7407_v10  ;;  %v7487_v5 = vld [vmem:[%s6061_s18 + $0x28] sm:$0x3f]  ;;  %v7494_v16 = vld [vmem:[%s6061_s18 + $0x30] sm:$0xff]  ;;  %v7501_v46 = vld [vmem:[%s6061_s18 + $0x38] sm:$0xff] }
 0x219   : >> { %9571 = vst [vmem:[#allocation44_spill] sm:$0xff] %v7386_v2  ;;  %v7491_v40 = vmul.f32 %v7487_v5, %v7407_v10  ;;  %v7498_v29 = vmul.f32 %v7494_v16, %v7407_v10  ;;  %v7505_v4 = vmul.f32 %v7501_v46, %v7407_v10  ;;  %v7508_v31 = vld [vmem:[%s6061_s18 + $0x40] sm:$0x3f]  ;;  %v7515_v36 = vld [vmem:[%s6061_s18 + $0x48] sm:$0xff]  ;;  %v7522_v60 = vld [vmem:[%s6061_s18 + $0x50] sm:$0xff] }
 0x21a   : >> { %9573 = vst [vmem:[#allocation76_spill] sm:$0xff] %v7389_v53  ;;  %v7512_v49 = vmul.f32 %v7508_v31, %v7407_v10  ;;  %v7519_v50 = vmul.f32 %v7515_v36, %v7407_v10  ;;  %v7526_v6 = vmul.f32 %v7522_v60, %v7407_v10  ;;  %v9622_v52 = vld [vmem:[#allocation99_spill] sm:$0xff]  ;;  %v7533_v7 = vld [vmem:[%s6061_s18 + $0x60] sm:$0xff]  ;;  %v7540_v38 = vld [vmem:[%s6061_s18 + $0x68] sm:$0xff]  ;;  %v2921_v28 = vrot.slane %v7477_v15, 4 }
 0x21b   : >> { %9575 = vst [vmem:[#allocation45_spill] sm:$0xff] %v7392_v3  ;;  %v7530_v32 = vmul.f32 %v7407_v10, %v9622_v52  ;;  %v7537_v25 = vmul.f32 %v7533_v7, %v7407_v10  ;;  %v7544_v21 = vmul.f32 %v7540_v38, %v7407_v10  ;;  %v9625_v8 = vld [vmem:[#allocation103_spill] sm:$0xff]  ;;  %v9655_v3 = vld [vmem:[#allocation113_spill] sm:$0xff]  ;;  %v7741_v2 = vld [vmem:[%s6061_s18 + $0x170] sm:$0xff]  ;;  %v2924_v57 = vrot.slane %v7491_v40, 4 }
 0x21c   : >> { %9577 = vst [vmem:[#allocation46_spill] sm:$0xff] %v7395_v48  ;;  %v7548_v30 = vmul.f32 %v7407_v10, %v9625_v8  ;;  %v7551_v52 = vld [vmem:[%s6061_s18 + $0x78] sm:$0xff]  ;;  %v7569_v8 = vld [vmem:[%s6061_s18 + $0x90] sm:$0xff]  ;;  %v7734_v53 = vld [vmem:[%s6061_s18 + $0x168] sm:$0xff]  ;;  %v2926_v23 = vrot.slane %v7498_v29, 4  ;;  %v2929_v58 = vrot.slane %v7512_v49, 4 }
 0x21d   : >> { %9579 = vst [vmem:[#allocation77_spill] sm:$0xff] %v7398_v45  ;;  %v7705_v45 = vld [vmem:[%s6061_s18 + $0x140] sm:$0xff]  ;;  %v9658_v56 = vld [vmem:[#allocation114_spill] sm:$0xff]  ;;  %v2934_v15 = vrot.slane %v7530_v32, 4  ;;  %v2937_v40 = vrot.slane %v7544_v21, 4 }
 0x21e   : >> { %9581 = vst [vmem:[#allocation47_spill] sm:$0xff] %v7401_v62 }
 0x21f   : >> { %9582 = vst [vmem:[#allocation48_spill] sm:$0xff] %v7404_v34 }
 0x220   : >> { %9584 = vst [vmem:[#allocation49_spill] sm:$0xff] %v7410_v59  ;;  %v2919_v59 = vrot.slane %v7470_v12, 4  ;;  %v7723_v12 = vld [vmem:[%s6061_s18 + $0x158] sm:$0xff] }
 0x221   : >> { %9586 = vst [vmem:[#allocation50_spill] sm:$0xff] %v7413_v54  ;;  %v2917_v54 = vrot.slane %v7463_v17, 4 }
 0x222   : >> { %9588 = vst [vmem:[#allocation51_spill] sm:$0xff] %v7416_v61 }
 0x223   : >> { %9590 = vst [vmem:[#allocation52_spill] sm:$0xff] %v7419_v35 }
 0x224   : >> { %9592 = vst [vmem:[#allocation53_spill] sm:$0xff] %v7422_v20 }
 0x225   : >> { %9594 = vst [vmem:[#allocation54_spill] sm:$0xff] %v7425_v43 }
 0x226   : >> { %9596 = vst [vmem:[#allocation55_spill] sm:$0xff] %v7428_v42 }
 0x227   : >> { %9598 = vst [vmem:[#allocation56_spill] sm:$0xff] %v7431_v13  ;;  %v9643_v13 = vld [vmem:[#allocation109_spill] sm:$0xff] }
 0x228   : >> { %9600 = vst [vmem:[#allocation57_spill] sm:$0xff] %v7434_v47  ;;  %v7648_v47 = vld [vmem:[%s6061_s18 + $0xf8] sm:$0xff] }
 0x229   : >> { %9602 = vst [vmem:[#allocation61_spill] sm:$0xff] %v7437_v39 }
 0x22a   : >> { %9604 = vst [vmem:[#allocation62_spill] sm:$0xff] %v7440_v18 }
 0x22b   : >> { %9606 = vst [vmem:[#allocation63_spill] sm:$0xff] %v7443_v1 }
 0x22c   : >> { %9608 = vst [vmem:[#allocation69_spill] sm:$0xff] %v7446_v55 }
 0x22d   : >> { %9610 = vst [vmem:[#allocation70_spill] sm:$0xff] %v7449_v37 }
 0x22e   : >> { %9611 = vst [vmem:[#allocation71_spill] sm:$0xff] %v7452_v33 }
 0x22f   : >> { %9612 = vst [vmem:[#allocation78_spill] sm:$0xff] %v7459_v19 }
 0x230   : >> { %9613 = vst [vmem:[#allocation79_spill] sm:$0xff] %v7466_v44 }
 0x231   : >> { %9614 = vst [vmem:[#allocation80_spill] sm:$0xff] %v7473_v63 }
 0x232   : >> { %9615 = vst [vmem:[#allocation85_spill] sm:$0xff] %v7480_v27 }
 0x233   : >> { %9616 = vst [vmem:[#allocation86_spill] sm:$0xff] %v7487_v5 }
 0x234   : >> { %9617 = vst [vmem:[#allocation87_spill] sm:$0xff] %v7494_v16 }
 0x235   : >> { %9618 = vst [vmem:[#allocation92_spill] sm:$0xff] %v7501_v46  ;;  %v7573_v46 = vmul.f32 %v7569_v8, %v7407_v10 }
 0x236   : >> { %9619 = vst [vmem:[#allocation93_spill] sm:$0xff] %v7508_v31 }
 0x237   : >> { %9620 = vst [vmem:[#allocation94_spill] sm:$0xff] %v7515_v36 }
 0x238   : >> { %9621 = vst [vmem:[#allocation102_spill] sm:$0xff] %v7522_v60  ;;  %v7555_v60 = vmul.f32 %v7551_v52, %v7407_v10 }
 0x239   : >> { %9623 = vst [vmem:[#allocation58_spill] sm:$0xff] %v7533_v7  ;;  %v7558_v7 = vld [vmem:[%s6061_s18 + $0x80] sm:$0xff] }
 0x23a   : >> { %9624 = vst [vmem:[#allocation59_spill] sm:$0xff] %v7540_v38  ;;  %v7562_v36 = vmul.f32 %v7558_v7, %v7407_v10  ;;  %v9628_v38 = vld [vmem:[#allocation104_spill] sm:$0xff] }
 0x23b   : >> { %9626 = vst [vmem:[#allocation60_spill] sm:$0xff] %v7551_v52  ;;  %v7566_v31 = vmul.f32 %v7407_v10, %v9628_v38  ;;  %v7576_v52 = vld [vmem:[%s6061_s18 + $0x98] sm:$0xff]  ;;  %v7587_v38 = vld [vmem:[%s6061_s18 + $0xa8] sm:$0xff] }
 0x23c   : >> { %9627 = vst [vmem:[#allocation64_spill] sm:$0xff] %v7558_v7  ;;  %v7580_v16 = vmul.f32 %v7576_v52, %v7407_v10  ;;  %v9631_v7 = vld [vmem:[#allocation105_spill] sm:$0xff]  ;;  %v7591_v27 = vmul.f32 %v7587_v38, %v7407_v10 }
 0x23d   : >> { %9629 = vst [vmem:[#allocation65_spill] sm:$0xff] %v7569_v8  ;;  %v7584_v5 = vmul.f32 %v7407_v10, %v9631_v7  ;;  %v7594_v8 = vld [vmem:[%s6061_s18 + $0xb0] sm:$0xff]  ;;  %v7605_v7 = vld [vmem:[%s6061_s18 + $0xc0] sm:$0xff]  ;;  %v2944_v29 = vrot.slane %v7566_v31, 4 }
 0x23e   : >> { %9630 = vst [vmem:[#allocation66_spill] sm:$0xff] %v7576_v52  ;;  %v7598_v63 = vmul.f32 %v7594_v8, %v7407_v10  ;;  %v9634_v52 = vld [vmem:[#allocation106_spill] sm:$0xff]  ;;  %v7609_v19 = vmul.f32 %v7605_v7, %v7407_v10  ;;  %v2947_v49 = vrot.slane %v7580_v16, 4 }
 0x23f   : >> { %9632 = vst [vmem:[#allocation67_spill] sm:$0xff] %v7587_v38  ;;  %v7602_v44 = vmul.f32 %v7407_v10, %v9634_v52  ;;  %v7612_v38 = vld [vmem:[%s6061_s18 + $0xc8] sm:$0xff]  ;;  %v7623_v52 = vld [vmem:[%s6061_s18 + $0xd8] sm:$0xff] }
 0x240   : >> { %9633 = vst [vmem:[#allocation72_spill] sm:$0xff] %v7594_v8  ;;  %v7616_v33 = vmul.f32 %v7612_v38, %v7407_v10  ;;  %v9637_v8 = vld [vmem:[#allocation107_spill] sm:$0xff]  ;;  %v7627_v55 = vmul.f32 %v7623_v52, %v7407_v10  ;;  %v2952_v32 = vrot.slane %v7598_v63, 4 }
 0x241   : >> { %9635 = vst [vmem:[#allocation73_spill] sm:$0xff] %v7605_v7  ;;  %v7620_v37 = vmul.f32 %v7407_v10, %v9637_v8  ;;  %v7630_v7 = vld [vmem:[%s6061_s18 + $0xe0] sm:$0xff]  ;;  %v7641_v8 = vld [vmem:[%s6061_s18 + $0xf0] sm:$0xff] }
 0x242   : >> { %9636 = vst [vmem:[#allocation74_spill] sm:$0xff] %v7612_v38  ;;  %v7634_v1 = vmul.f32 %v7630_v7, %v7407_v10  ;;  %v9640_v38 = vld [vmem:[#allocation108_spill] sm:$0xff]  ;;  %v7645_v39 = vmul.f32 %v7641_v8, %v7407_v10  ;;  %v2957_v31 = vrot.slane %v7616_v33, 4 }
 0x243   : >> { %9638 = vst [vmem:[#allocation75_spill] sm:$0xff] %v7623_v52  ;;  %v7638_v18 = vmul.f32 %v7407_v10, %v9640_v38  ;;  %v7652_v52 = vmul.f32 %v7648_v47, %v7407_v10  ;;  %v7659_v38 = vld [vmem:[%s6061_s18 + $0x108] sm:$0xff] }
 0x244   : >> { %9639 = vst [vmem:[#allocation81_spill] sm:$0xff] %v7630_v7  ;;  %v7656_v7 = vmul.f32 %v7407_v10, %v9643_v13  ;;  %v7663_v42 = vmul.f32 %v7659_v38, %v7407_v10  ;;  %v7677_v13 = vld [vmem:[%s6061_s18 + $0x120] sm:$0xff] }
 0x245   : >> { %9641 = vst [vmem:[#allocation40_spill] sm:$0xff] %v7641_v8  ;;  %v7666_v8 = vld [vmem:[%s6061_s18 + $0x110] sm:$0xff]  ;;  %v7681_v35 = vmul.f32 %v7677_v13, %v7407_v10 }
 0x246   : >> { %9642 = vst [vmem:[#allocation82_spill] sm:$0xff] %v7648_v47  ;;  %v7670_v43 = vmul.f32 %v7666_v8, %v7407_v10  ;;  %v9646_v47 = vld [vmem:[#allocation110_spill] sm:$0xff] }
 0x247   : >> { %9644 = vst [vmem:[#allocation83_spill] sm:$0xff] %v7659_v38  ;;  %v7674_v20 = vmul.f32 %v7407_v10, %v9646_v47  ;;  %v7684_v38 = vld [vmem:[%s6061_s18 + $0x128] sm:$0xff]  ;;  %v2916_v47 = vrot.slane %v7456_v24, 4  ;;  %v7716_v24 = vld [vmem:[%s6061_s18 + $0x150] sm:$0xff] }
 0x248   : >> { %9645 = vst [vmem:[#allocation84_spill] sm:$0xff] %v7666_v8  ;;  %v7688_v34 = vmul.f32 %v7684_v38, %v7407_v10  ;;  %v9649_v8 = vld [vmem:[#allocation111_spill] sm:$0xff]  ;;  %v7720_v17 = vmul.f32 %v7716_v24, %v7407_v10 }
 0x249   : >> { %9647 = vst [vmem:[#allocation88_spill] sm:$0xff] %v7677_v13  ;;  %v7692_v61 = vmul.f32 %v7407_v10, %v9649_v8  ;;  %v7698_v13 = vld [vmem:[%s6061_s18 + $0x138] sm:$0xff]  ;;  %v9652_v8 = vld [vmem:[#allocation112_spill] sm:$0xff]  ;;  %v7755_v41 = vsel %vm1343_vm4, %v2916_v47, %v2917_v54  ;;  %v2939_v47 = vrot.slane %v7548_v30, 4  ;;  %v2959_v30 = vrot.slane %v7620_v37, 4 }
 0x24a   : >> { %9648 = vst [vmem:[#allocation89_spill] sm:$0xff] %v7684_v38  ;;  %v7702_v62 = vmul.f32 %v7698_v13, %v7407_v10  ;;  %v7709_v38 = vmul.f32 %v7705_v45, %v7407_v10  ;;  %v7713_v48 = vmul.f32 %v7407_v10, %v9652_v8  ;;  %v7738_v8 = vmul.f32 %v7734_v53, %v7407_v10 }
 0x24b   : >> { %9650 = vst [vmem:[#allocation90_spill] sm:$0xff] %v7698_v13  ;;  %v7727_v13 = vmul.f32 %v7723_v12, %v7407_v10  ;;  %v2976_v37 = vrot.slane %v7681_v35, 4 }
 0x24c   : >> { %9651 = vst [vmem:[#allocation91_spill] sm:$0xff] %v7705_v45  ;;  %v7731_v45 = vmul.f32 %v7407_v10, %v9655_v3  ;;  %v2922_v3 = vrot.slane %v7484_v14, 4  ;;  %v2936_v14 = vrot.slane %v7537_v25, 4  ;;  %v2954_v25 = vrot.slane %v7602_v44, 4 }
 0x24d   : >> { %9653 = vst [vmem:[#allocation95_spill] sm:$0xff] %v7716_v24  ;;  %v7745_v24 = vmul.f32 %v7741_v2, %v7407_v10  ;;  %v2940_v44 = vsel %vm1343_vm4, %v2937_v40, %v2939_v47  ;;  %v2971_v47 = vrot.slane %v7663_v42, 4  ;;  %v2987_v42 = vrot.slane %v7727_v13, 4 }
 0x24e   : >> { %9654 = vst [vmem:[#allocation96_spill] sm:$0xff] %v7723_v12  ;;  %v7749_v12 = vmul.f32 %v7407_v10, %v9658_v56  ;;  %v2931_v56 = vrot.slane %v7519_v50, 4  ;;  %v2932_v10 = vrot.slane %v7526_v6, 4  ;;  %v2949_v50 = vrot.slane %v7584_v5, 4 }
 0x24f   : >> { %9656 = vst [vmem:[#allocation97_spill] sm:$0xff] %v7734_v53  ;;  %v7758_v53 = vsel %vm1343_vm4, %v2917_v54, %v2919_v59  ;;  %v2941_v59 = vrot.slane %v7555_v60, 4  ;;  %v2942_v54 = vrot.slane %v7562_v36, 4  ;;  %v2951_v6 = vrot.slane %v7591_v27, 4 }
 0x250   : >> { %9657 = vst [vmem:[#allocation98_spill] sm:$0xff] %v7741_v2  ;;  %v2927_v2 = vrot.slane %v7505_v4, 4  ;;  %v2946_v4 = vrot.slane %v7573_v46, 4  ;;  %v2923_v21 = vsel %vm1343_vm4, %v2921_v28, %v2922_v3  ;;  %v2925_v60 = vsel %vm1343_vm4, %v2922_v3, %v2924_v57 }
 0x251   : >> { %v2956_v36 = vrot.slane %v7609_v19, 4  ;;  %v2933_v5 = vsel %vm1343_vm4, %v2931_v56, %v2932_v10  ;;  %v2935_v27 = vsel %vm1343_vm4, %v2932_v10, %v2934_v15  ;;  %v2938_v63 = vsel %vm1343_vm4, %v2936_v14, %v2937_v40 }
 0x252   : >> { %v2928_v46 = vsel %vm1343_vm4, %v2926_v23, %v2927_v2  ;;  %v2930_v16 = vsel %vm1343_vm4, %v2927_v2, %v2929_v58  ;;  %v2943_v28 = vsel %vm1343_vm4, %v2941_v59, %v2942_v54  ;;  %v2945_v57 = vsel %vm1343_vm4, %v2942_v54, %v2944_v29 }
 0x253   : >> { %v2948_v19 = vsel %vm1343_vm4, %v2946_v4, %v2947_v49  ;;  %v2950_v33 = vsel %vm1343_vm4, %v2947_v49, %v2949_v50  ;;  %v2953_v23 = vsel %vm1343_vm4, %v2951_v6, %v2952_v32  ;;  %v2955_v58 = vsel %vm1343_vm4, %v2952_v32, %v2954_v25 }
 0x254   : >> { %v2958_v2 = vsel %vm1343_vm4, %v2956_v36, %v2957_v31  ;;  %v2961_v3 = vrot.slane %v7627_v55, 4  ;;  %v2962_v56 = vrot.slane %v7634_v1, 4  ;;  %v2964_v10 = vrot.slane %v7638_v18, 4 }
 0x255   : >> { %v2966_v15 = vrot.slane %v7645_v39, 4  ;;  %v2967_v14 = vrot.slane %v7652_v52, 4  ;;  %v2969_v40 = vrot.slane %v7656_v7, 4  ;;  %v2972_v59 = vrot.slane %v7670_v43, 4 }
 0x256   : >> { %v2974_v54 = vrot.slane %v7674_v20, 4  ;;  %v2977_v55 = vrot.slane %v7688_v34, 4  ;;  %v2979_v1 = vrot.slane %v7692_v61, 4  ;;  %v2981_v18 = vrot.slane %v7702_v62, 4 }
 0x257   : >> { %v2982_v39 = vrot.slane %v7709_v38, 4  ;;  %v2984_v52 = vrot.slane %v7713_v48, 4  ;;  %v2986_v7 = vrot.slane %v7720_v17, 4  ;;  %v2989_v43 = vrot.slane %v7731_v45, 4 }
 0x258   : >> { %v2960_v20 = vsel %vm1343_vm4, %v2957_v31, %v2959_v30  ;;  %v2991_v35 = vrot.slane %v7738_v8, 4  ;;  %v2992_v34 = vrot.slane %v7745_v24, 4  ;;  %v2994_v61 = vrot.slane %v7749_v12, 4 }
 0x259   : >> { %v2963_v62 = vsel %vm1343_vm4, %v2961_v3, %v2962_v56  ;;  %v2965_v38 = vsel %vm1343_vm4, %v2962_v56, %v2964_v10  ;;  %v2968_v48 = vsel %vm1343_vm4, %v2966_v15, %v2967_v14  ;;  %v2970_v17 = vsel %vm1343_vm4, %v2967_v14, %v2969_v40  ;;  %v9659_v56 = vld [vmem:[#allocation100_spill] sm:$0xff] }
 0x25a   : >> { %v2973_v13 = vsel %vm1343_vm4, %v2971_v47, %v2972_v59  ;;  %v2975_v45 = vsel %vm1343_vm4, %v2972_v59, %v2974_v54  ;;  %v2978_v29 = vsel %vm1343_vm4, %v2976_v37, %v2977_v55  ;;  %v2980_v8 = vsel %vm1343_vm4, %v2977_v55, %v2979_v1 }
 0x25b   : >> { %v2983_v24 = vsel %vm1343_vm4, %v2981_v18, %v2982_v39  ;;  %v2985_v12 = vsel %vm1343_vm4, %v2982_v39, %v2984_v52  ;;  %v2988_v4 = vsel %vm1343_vm4, %v2986_v7, %v2987_v42  ;;  %v2990_v49 = vsel %vm1343_vm4, %v2987_v42, %v2989_v43  ;;  %v9693_v52 = vld [vmem:[#allocation54_spill] sm:$0xff]  ;;  %v9695_v42 = vld [vmem:[#allocation55_spill] sm:$0xff] }
 0x25c   : >> { %v2993_v50 = vsel %vm1343_vm4, %v2991_v35, %v2992_v34  ;;  %v2995_v6 = vsel %vm1343_vm4, %v2992_v34, %v2994_v61  ;;  %v7834_v32 = vadd.f32 %v7755_v41, %v7346_v26  ;;  %v7838_v25 = vadd.f32 %v7758_v53, %v7352_v22  ;;  %v9660_v26 = vld [vmem:[#allocation101_spill] sm:$0xff] }
 0x25d   : >> { %v7841_v36 = vadd.f32 %v2923_v21, %v7356_v9  ;;  %v7844_v31 = vadd.f32 %v2925_v60, %v7359_v0  ;;  %v7847_v30 = vadd.f32 %v2928_v46, %v7362_v11  ;;  %v7850_v3 = vadd.f32 %v2930_v16, %v7365_v51  ;;  %v9662_v22 = vld [vmem:[#allocation41_spill] sm:$0xff]  ;;  %v9664_v9 = vld [vmem:[#allocation42_spill] sm:$0xff]  ;;  %v9666_v0 = vld [vmem:[#allocation68_spill] sm:$0xff] }
 0x25e   : >> { %v7853_v10 = vadd.f32 %v2933_v5, %v9659_v56  ;;  %v7856_v41 = vadd.f32 %v2935_v27, %v9660_v26  ;;  %v7859_v53 = vadd.f32 %v2938_v63, %v9662_v22  ;;  %v7862_v21 = vadd.f32 %v2940_v44, %v9664_v9  ;;  %v9668_v11 = vld [vmem:[#allocation43_spill] sm:$0xff]  ;;  %v9670_v51 = vld [vmem:[#allocation44_spill] sm:$0xff]  ;;  %v9674_v27 = vld [vmem:[#allocation45_spill] sm:$0xff] }
 0x25f   : >> { %v7865_v60 = vadd.f32 %v2943_v28, %v9666_v0  ;;  %v7868_v46 = vadd.f32 %v2945_v57, %v9668_v11  ;;  %v7871_v16 = vadd.f32 %v2948_v19, %v9670_v51  ;;  %v9672_v5 = vld [vmem:[#allocation76_spill] sm:$0xff]  ;;  %v7877_v14 = vadd.f32 %v2953_v23, %v9674_v27  ;;  %v9676_v63 = vld [vmem:[#allocation46_spill] sm:$0xff]  ;;  %v9678_v44 = vld [vmem:[#allocation77_spill] sm:$0xff] }
 0x260   : >> { %9661 = vst [vmem:[#allocation99_spill] sm:$0xff] %v7856_v41  ;;  %v7874_v15 = vadd.f32 %v2950_v33, %v9672_v5  ;;  %v7880_v40 = vadd.f32 %v2955_v58, %v9676_v63  ;;  %v7883_v47 = vadd.f32 %v2958_v2, %v9678_v44  ;;  %v9680_v28 = vld [vmem:[#allocation47_spill] sm:$0xff]  ;;  %v9682_v57 = vld [vmem:[#allocation49_spill] sm:$0xff]  ;;  %v9684_v19 = vld [vmem:[#allocation50_spill] sm:$0xff]  ;;  %v7907_v7 = vadd.f32 %v2975_v45, %v9693_v52 }
 0x261   : >> { %9663 = vst [vmem:[#allocation103_spill] sm:$0xff] %v7859_v53  ;;  %v7886_v59 = vadd.f32 %v2960_v20, %v9680_v28  ;;  %v7889_v54 = vadd.f32 %v2963_v62, %v9682_v57  ;;  %v7892_v37 = vadd.f32 %v2965_v38, %v9684_v19  ;;  %v9686_v33 = vld [vmem:[#allocation51_spill] sm:$0xff]  ;;  %v9688_v23 = vld [vmem:[#allocation48_spill] sm:$0xff]  ;;  %v9691_v2 = vld [vmem:[#allocation53_spill] sm:$0xff]  ;;  %v7910_v43 = vadd.f32 %v2978_v29, %v9695_v42 }
 0x262   : >> { %9665 = vst [vmem:[#allocation104_spill] sm:$0xff] %v7862_v21  ;;  %v7895_v55 = vadd.f32 %v2968_v48, %v9686_v33  ;;  %v7898_v1 = vperm.slane %v9688_v23, 5  ;;  %v9689_v58 = vld [vmem:[#allocation52_spill] sm:$0xff]  ;;  %v7904_v39 = vadd.f32 %v2973_v13, %v9691_v2  ;;  %v9699_v34 = vld [vmem:[#allocation57_spill] sm:$0xff]  ;;  %v9703_v48 = vld [vmem:[#allocation62_spill] sm:$0xff] }
 0x263   : >> { %9667 = vst [vmem:[#allocation105_spill] sm:$0xff] %v7865_v60  ;;  %v7901_v18 = vadd.f32 %v2970_v17, %v9689_v58  ;;  %v9697_v20 = vld [vmem:[#allocation56_spill] sm:$0xff]  ;;  %v7916_v61 = vadd.f32 %v2983_v24, %v9699_v34  ;;  %v9701_v62 = vld [vmem:[#allocation61_spill] sm:$0xff]  ;;  %v7922_v17 = vadd.f32 %v2988_v4, %v9703_v48  ;;  %v9705_v13 = vld [vmem:[#allocation63_spill] sm:$0xff] }
 0x264   : >> { %9669 = vst [vmem:[#allocation106_spill] sm:$0xff] %v7868_v46  ;;  %v7913_v35 = vadd.f32 %v2980_v8, %v9697_v20  ;;  %v7919_v38 = vadd.f32 %v2985_v12, %v9701_v62  ;;  %v7925_v56 = vadd.f32 %v2990_v49, %v9705_v13  ;;  %v9707_v45 = vld [vmem:[#allocation69_spill] sm:$0xff]  ;;  %v9709_v29 = vld [vmem:[#allocation70_spill] sm:$0xff]  ;;  %v9711_v8 = vld [vmem:[#allocation71_spill] sm:$0xff] }
 0x265   : >> { %9671 = vst [vmem:[#allocation107_spill] sm:$0xff] %v7871_v16  ;;  %v7928_v26 = vadd.f32 %v2993_v50, %v9707_v45  ;;  %v7931_v22 = vadd.f32 %v2995_v6, %v9709_v29  ;;  %v7935_v24 = vmul.f32 %v9711_v8, %v7898_v1  ;;  %v9712_v12 = vld [vmem:[#allocation78_spill] sm:$0xff]  ;;  %v9713_v4 = vld [vmem:[#allocation79_spill] sm:$0xff]  ;;  %v9714_v49 = vld [vmem:[#allocation80_spill] sm:$0xff] }
 0x266   : >> { %9673 = vst [vmem:[#allocation108_spill] sm:$0xff] %v7874_v15  ;;  %v7939_v9 = vmul.f32 %v9712_v12, %v7898_v1  ;;  %v7943_v0 = vmul.f32 %v9713_v4, %v7898_v1  ;;  %v7947_v50 = vmul.f32 %v9714_v49, %v7898_v1  ;;  %v9715_v6 = vld [vmem:[#allocation85_spill] sm:$0xff]  ;;  %v9716_v51 = vld [vmem:[#allocation86_spill] sm:$0xff]  ;;  %v9717_v27 = vld [vmem:[#allocation87_spill] sm:$0xff] }
 0x267   : >> { %9675 = vst [vmem:[#allocation109_spill] sm:$0xff] %v7877_v14  ;;  %v7951_v11 = vmul.f32 %v9715_v6, %v7898_v1  ;;  %v7955_v5 = vmul.f32 %v9716_v51, %v7898_v1  ;;  %v7959_v63 = vmul.f32 %v9717_v27, %v7898_v1  ;;  %v9718_v44 = vld [vmem:[#allocation92_spill] sm:$0xff]  ;;  %v9719_v57 = vld [vmem:[#allocation93_spill] sm:$0xff]  ;;  %v9720_v33 = vld [vmem:[#allocation94_spill] sm:$0xff] }
 0x268   : >> { %9677 = vst [vmem:[#allocation110_spill] sm:$0xff] %v7880_v40  ;;  %v7963_v28 = vmul.f32 %v9718_v44, %v7898_v1  ;;  %v7967_v19 = vmul.f32 %v9719_v57, %v7898_v1  ;;  %v7971_v58 = vmul.f32 %v9720_v33, %v7898_v1  ;;  %v9721_v2 = vld [vmem:[#allocation102_spill] sm:$0xff]  ;;  %v7978_v42 = vld [vmem:[%s6061_s18 + $0x58] sm:$0x3f]  ;;  %v9729_v44 = vld [vmem:[#allocation65_spill] sm:$0xff]  ;;  %v3162_v40 = vrot.slane %v7947_v50, 5 }
 0x269   : >> { %9679 = vst [vmem:[#allocation111_spill] sm:$0xff] %v7883_v47  ;;  %v7975_v52 = vmul.f32 %v9721_v2, %v7898_v1  ;;  %v7982_v20 = vmul.f32 %v7978_v42, %v7898_v1  ;;  %v9723_v34 = vld [vmem:[#allocation58_spill] sm:$0xff]  ;;  %v9724_v48 = vld [vmem:[#allocation59_spill] sm:$0xff]  ;;  %v9726_v2 = vld [vmem:[#allocation60_spill] sm:$0xff]  ;;  %v8016_v27 = vmul.f32 %v9729_v44, %v7898_v1  ;;  %v3160_v47 = vrot.slane %v7943_v0, 5 }
 0x26a   : >> { %9681 = vst [vmem:[#allocation112_spill] sm:$0xff] %v7886_v59  ;;  %v7986_v62 = vmul.f32 %v9723_v34, %v7898_v1  ;;  %v7990_v13 = vmul.f32 %v9724_v48, %v7898_v1  ;;  %v7993_v45 = vld [vmem:[%s6061_s18 + $0x70] sm:$0x3f]  ;;  %v8001_v33 = vmul.f32 %v9726_v2, %v7898_v1  ;;  %v8008_v34 = vld [vmem:[%s6061_s18 + $0x88] sm:$0x3f]  ;;  %v9732_v6 = vld [vmem:[#allocation67_spill] sm:$0xff] }
 0x26b   : >> { %9683 = vst [vmem:[#allocation113_spill] sm:$0xff] %v7889_v54  ;;  %v7997_v29 = vmul.f32 %v7993_v45, %v7898_v1  ;;  %v8012_v48 = vmul.f32 %v8008_v34, %v7898_v1  ;;  %v8023_v2 = vld [vmem:[%s6061_s18 + $0xa0] sm:$0x3f]  ;;  %v8031_v49 = vmul.f32 %v9732_v6, %v7898_v1  ;;  %v8038_v44 = vld [vmem:[%s6061_s18 + $0xb8] sm:$0x3f]  ;;  %v9735_v12 = vld [vmem:[#allocation73_spill] sm:$0xff] }
 0x26c   : >> { %9685 = vst [vmem:[#allocation114_spill] sm:$0xff] %v7892_v37  ;;  %v8046_v8 = vmul.f32 %v9735_v12, %v7898_v1  ;;  %v8053_v6 = vld [vmem:[%s6061_s18 + $0xd0] sm:$0x3f]  ;;  %v8068_v12 = vld [vmem:[%s6061_s18 + $0xe8] sm:$0x3f]  ;;  %v9741_v23 = vld [vmem:[#allocation40_spill] sm:$0xff] }
 0x26d   : >> { %9687 = vst [vmem:[#allocation100_spill] sm:$0xff] %v7895_v55  ;;  %v9750_v37 = vld [vmem:[#allocation90_spill] sm:$0xff]  ;;  %v3157_v59 = vrot.slane %v7935_v24, 5  ;;  %v8132_v14 = vld [vmem:[%s6061_s18 + $0x148] sm:$0x3f]  ;;  %v3165_v24 = vrot.slane %v7955_v5, 5 }
 0x26e   : >> { %9690 = vst [vmem:[#allocation101_spill] sm:$0xff] %v7901_v18  ;;  %v8121_v54 = vmul.f32 %v9750_v37, %v7898_v1  ;;  %v9753_v37 = vld [vmem:[#allocation95_spill] sm:$0xff]  ;;  %v8149_v0 = vld [vmem:[%s6061_s18 + $0x160] sm:$0x3f]  ;;  %v3168_v21 = vrot.slane %v7963_v28, 5  ;;  %v3172_v41 = vrot.slane %v7971_v58, 5 }
 0x26f   : >> { %9692 = vst [vmem:[#allocation41_spill] sm:$0xff] %v7904_v39  ;;  %v9747_v39 = vld [vmem:[#allocation88_spill] sm:$0xff]  ;;  %v8140_v15 = vmul.f32 %v9753_v37, %v7898_v1  ;;  %v8153_v50 = vmul.f32 %v8149_v0, %v7898_v1  ;;  %v9757_v37 = vld [vmem:[#allocation98_spill] sm:$0xff]  ;;  %v3178_v28 = vrot.slane %v7990_v13, 5  ;;  %v3187_v58 = vrot.slane %v8016_v27, 5 }
 0x270   : >> { %9694 = vst [vmem:[#allocation42_spill] sm:$0xff] %v7907_v7  ;;  %v8106_v18 = vmul.f32 %v9747_v39, %v7898_v1  ;;  %v8161_v60 = vmul.f32 %v9757_v37, %v7898_v1  ;;  %v3170_v37 = vrot.slane %v7967_v19, 5  ;;  %v3185_v19 = vrot.slane %v8012_v48, 5 }
 0x271   : >> { %9696 = vst [vmem:[#allocation68_spill] sm:$0xff] %v7910_v43  ;;  %v3197_v48 = vrot.slane %v8046_v8, 5 }
 0x272   : >> { %9698 = vst [vmem:[#allocation43_spill] sm:$0xff] %v7913_v35  ;;  %v9744_v35 = vld [vmem:[#allocation83_spill] sm:$0xff] }
 0x273   : >> { %9700 = vst [vmem:[#allocation44_spill] sm:$0xff] %v7916_v61  ;;  %v8091_v43 = vmul.f32 %v9744_v35, %v7898_v1  ;;  %v8113_v35 = vld [vmem:[%s6061_s18 + $0x130] sm:$0x3f] }
 0x274   : >> { %9702 = vst [vmem:[#allocation76_spill] sm:$0xff] %v7919_v38  ;;  %v8076_v38 = vmul.f32 %v9741_v23, %v7898_v1  ;;  %v8098_v23 = vld [vmem:[%s6061_s18 + $0x118] sm:$0x3f] }
 0x275   : >> { %9704 = vst [vmem:[#allocation45_spill] sm:$0xff] %v7922_v17 }
 0x276   : >> { %9706 = vst [vmem:[#allocation46_spill] sm:$0xff] %v7925_v56 }
 0x277   : >> { %9708 = vst [vmem:[#allocation77_spill] sm:$0xff] %v7928_v26  ;;  %v9738_v26 = vld [vmem:[#allocation75_spill] sm:$0xff] }
 0x278   : >> { %9710 = vst [vmem:[#allocation47_spill] sm:$0xff] %v7931_v22  ;;  %v8061_v56 = vmul.f32 %v9738_v26, %v7898_v1  ;;  %v8083_v26 = vld [vmem:[%s6061_s18 + $0x100] sm:$0x3f] }
 0x279   : >> { %9722 = vst [vmem:[#allocation49_spill] sm:$0xff] %v7978_v42  ;;  %v9727_v42 = vld [vmem:[#allocation64_spill] sm:$0xff] }
 0x27a   : >> { %9725 = vst [vmem:[#allocation50_spill] sm:$0xff] %v7993_v45  ;;  %v8005_v57 = vmul.f32 %v9727_v42, %v7898_v1  ;;  %v9730_v45 = vld [vmem:[#allocation66_spill] sm:$0xff]  ;;  %v8027_v42 = vmul.f32 %v8023_v2, %v7898_v1 }
 0x27b   : >> { %9728 = vst [vmem:[#allocation51_spill] sm:$0xff] %v8008_v34  ;;  %v8020_v51 = vmul.f32 %v9730_v45, %v7898_v1  ;;  %v9733_v34 = vld [vmem:[#allocation72_spill] sm:$0xff]  ;;  %v8042_v45 = vmul.f32 %v8038_v44, %v7898_v1 }
 0x27c   : >> { %9731 = vst [vmem:[#allocation52_spill] sm:$0xff] %v8023_v2  ;;  %v8035_v4 = vmul.f32 %v9733_v34, %v7898_v1  ;;  %v9736_v2 = vld [vmem:[#allocation74_spill] sm:$0xff]  ;;  %v8057_v34 = vmul.f32 %v8053_v6, %v7898_v1 }
 0x27d   : >> { %9734 = vst [vmem:[#allocation53_spill] sm:$0xff] %v8038_v44  ;;  %v8050_v22 = vmul.f32 %v9736_v2, %v7898_v1  ;;  %v9739_v44 = vld [vmem:[#allocation81_spill] sm:$0xff]  ;;  %v8072_v2 = vmul.f32 %v8068_v12, %v7898_v1 }
 0x27e   : >> { %9737 = vst [vmem:[#allocation54_spill] sm:$0xff] %v8053_v6  ;;  %v8065_v17 = vmul.f32 %v9739_v44, %v7898_v1  ;;  %v9742_v6 = vld [vmem:[#allocation82_spill] sm:$0xff]  ;;  %v8087_v44 = vmul.f32 %v8083_v26, %v7898_v1  ;;  %v3193_v13 = vrot.slane %v8035_v4, 5 }
 0x27f   : >> { %9740 = vst [vmem:[#allocation55_spill] sm:$0xff] %v8068_v12  ;;  %v8080_v61 = vmul.f32 %v9742_v6, %v7898_v1  ;;  %v9745_v12 = vld [vmem:[#allocation84_spill] sm:$0xff]  ;;  %v8102_v6 = vmul.f32 %v8098_v23, %v7898_v1  ;;  %v3198_v27 = vrot.slane %v8050_v22, 5 }
 0x280   : >> { %9743 = vst [vmem:[#allocation56_spill] sm:$0xff] %v8083_v26  ;;  %v8095_v7 = vmul.f32 %v9745_v12, %v7898_v1  ;;  %v9748_v26 = vld [vmem:[#allocation89_spill] sm:$0xff]  ;;  %v8117_v12 = vmul.f32 %v8113_v35, %v7898_v1 }
 0x281   : >> { %9746 = vst [vmem:[#allocation57_spill] sm:$0xff] %v8098_v23  ;;  %v8110_v55 = vmul.f32 %v9748_v26, %v7898_v1  ;;  %v9751_v23 = vld [vmem:[#allocation91_spill] sm:$0xff]  ;;  %v3158_v26 = vrot.slane %v7939_v9, 5  ;;  %v9754_v9 = vld [vmem:[#allocation96_spill] sm:$0xff]  ;;  %v3199_v8 = vsel %vm1585_vm5, %v3197_v48, %v3198_v27 }
 0x282   : >> { %9749 = vst [vmem:[#allocation61_spill] sm:$0xff] %v8113_v35  ;;  %v8125_v39 = vmul.f32 %v9751_v23, %v7898_v1  ;;  %v8136_v35 = vmul.f32 %v8132_v14, %v7898_v1  ;;  %v3163_v23 = vrot.slane %v7951_v11, 5  ;;  %v8146_v16 = vmul.f32 %v9754_v9, %v7898_v1  ;;  %v8164_v11 = vld [vmem:[%s6061_s18 + $0x178] sm:$0x3f] }
 0x283   : >> { %9752 = vst [vmem:[#allocation62_spill] sm:$0xff] %v8132_v14  ;;  %v9756_v14 = vld [vmem:[#allocation97_spill] sm:$0xff]  ;;  %v8168_v5 = vmul.f32 %v8164_v11, %v7898_v1  ;;  %v8171_v9 = vsel %vm1585_vm5, %v3157_v59, %v3158_v26  ;;  %v3173_v59 = vrot.slane %v7975_v52, 5  ;;  %v3190_v52 = vrot.slane %v8027_v42, 5 }
 0x284   : >> { %9755 = vst [vmem:[#allocation63_spill] sm:$0xff] %v8149_v0  ;;  %v8157_v46 = vmul.f32 %v9756_v14, %v7898_v1  ;;  %v3167_v0 = vrot.slane %v7959_v63, 5  ;;  %v8176_v14 = vsel %vm1585_vm5, %v3158_v26, %v3160_v47  ;;  %v8179_v53 = vsel %vm1585_vm5, %v3162_v40, %v3163_v23 }
 0x285   : >> { %9758 = vst [vmem:[#allocation69_spill] sm:$0xff] %v8164_v11  ;;  %v8184_v1 = vsel %vm1585_vm5, %v3163_v23, %v3165_v24  ;;  %v3175_v11 = vrot.slane %v7982_v20, 5  ;;  %v3177_v63 = vrot.slane %v7986_v62, 5  ;;  %v3180_v47 = vrot.slane %v7997_v29, 5 }
 0x286   : >> { %v3182_v40 = vrot.slane %v8001_v33, 5  ;;  %v3183_v26 = vrot.slane %v8005_v57, 5  ;;  %v3188_v23 = vrot.slane %v8020_v51, 5  ;;  %v3169_v20 = vsel %vm1585_vm5, %v3167_v0, %v3168_v21 }
 0x287   : >> { %v3192_v62 = vrot.slane %v8031_v49, 5  ;;  %v3195_v29 = vrot.slane %v8042_v45, 5  ;;  %v3171_v33 = vsel %vm1585_vm5, %v3168_v21, %v3170_v37  ;;  %v3174_v57 = vsel %vm1585_vm5, %v3172_v41, %v3173_v59 }
 0x288   : >> { %v3176_v51 = vsel %vm1585_vm5, %v3173_v59, %v3175_v11  ;;  %v3179_v42 = vsel %vm1585_vm5, %v3177_v63, %v3178_v28  ;;  %v3181_v24 = vsel %vm1585_vm5, %v3178_v28, %v3180_v47  ;;  %v3200_v49 = vrot.slane %v8057_v34, 5 }
 0x289   : >> { %v3184_v4 = vsel %vm1585_vm5, %v3182_v40, %v3183_v26  ;;  %v3186_v45 = vsel %vm1585_vm5, %v3183_v26, %v3185_v19  ;;  %v3189_v21 = vsel %vm1585_vm5, %v3187_v58, %v3188_v23  ;;  %v3191_v41 = vsel %vm1585_vm5, %v3188_v23, %v3190_v52 }
 0x28a   : >> { %v3194_v37 = vsel %vm1585_vm5, %v3192_v62, %v3193_v13  ;;  %v3196_v22 = vsel %vm1585_vm5, %v3193_v13, %v3195_v29  ;;  %v3202_v0 = vrot.slane %v8061_v56, 5  ;;  %v3201_v11 = vsel %vm1585_vm5, %v3198_v27, %v3200_v49 }
 0x28b   : >> { %v3203_v34 = vrot.slane %v8065_v17, 5  ;;  %v3205_v59 = vrot.slane %v8072_v2, 5  ;;  %v3207_v63 = vrot.slane %v8076_v38, 5  ;;  %v3208_v28 = vrot.slane %v8080_v61, 5 }
 0x28c   : >> { %v3210_v47 = vrot.slane %v8087_v44, 5  ;;  %v3212_v40 = vrot.slane %v8091_v43, 5  ;;  %v3213_v26 = vrot.slane %v8095_v7, 5  ;;  %v3215_v19 = vrot.slane %v8102_v6, 5 }
 0x28d   : >> { %v3217_v56 = vrot.slane %v8106_v18, 5  ;;  %v3218_v58 = vrot.slane %v8110_v55, 5  ;;  %v3220_v17 = vrot.slane %v8117_v12, 5  ;;  %v3222_v2 = vrot.slane %v8121_v54, 5 }
 0x28e   : >> { %v3223_v38 = vrot.slane %v8125_v39, 5  ;;  %v3225_v61 = vrot.slane %v8136_v35, 5  ;;  %v3227_v44 = vrot.slane %v8140_v15, 5  ;;  %v3204_v43 = vsel %vm1585_vm5, %v3202_v0, %v3203_v34 }
 0x28f   : >> { %v3228_v7 = vrot.slane %v8146_v16, 5  ;;  %v3230_v6 = vrot.slane %v8153_v50, 5  ;;  %v3232_v18 = vrot.slane %v8157_v46, 5  ;;  %v3206_v55 = vsel %vm1585_vm5, %v3203_v34, %v3205_v59  ;;  %v9767_v34 = vld [vmem:[#allocation103_spill] sm:$0xff] }
 0x290   : >> { %v3209_v12 = vsel %vm1585_vm5, %v3207_v63, %v3208_v28  ;;  %v3233_v54 = vrot.slane %v8161_v60, 5  ;;  %v3235_v39 = vrot.slane %v8168_v5, 5  ;;  %v3211_v35 = vsel %vm1585_vm5, %v3208_v28, %v3210_v47 }
 0x291   : >> { %v3214_v15 = vsel %vm1585_vm5, %v3212_v40, %v3213_v26  ;;  %v3216_v23 = vsel %vm1585_vm5, %v3213_v26, %v3215_v19  ;;  %v3219_v16 = vsel %vm1585_vm5, %v3217_v56, %v3218_v58  ;;  %v3221_v50 = vsel %vm1585_vm5, %v3218_v58, %v3220_v17 }
 0x292   : >> { %v3224_v46 = vsel %vm1585_vm5, %v3222_v2, %v3223_v38  ;;  %v3226_v52 = vsel %vm1585_vm5, %v3223_v38, %v3225_v61  ;;  %v3229_v62 = vsel %vm1585_vm5, %v3227_v44, %v3228_v7  ;;  %v3231_v60 = vsel %vm1585_vm5, %v3228_v7, %v3230_v6  ;;  %v9801_v61 = vld [vmem:[#allocation43_spill] sm:$0xff]  ;;  %v9805_v6 = vld [vmem:[#allocation76_spill] sm:$0xff] }
 0x293   : >> { %v3234_v5 = vsel %vm1585_vm5, %v3232_v18, %v3233_v54  ;;  %v8253_v13 = vadd.f32 %v8171_v9, %v7834_v32  ;;  %v8257_v29 = vadd.f32 %v8176_v14, %v7838_v25  ;;  %v3236_v48 = vsel %vm1585_vm5, %v3233_v54, %v3235_v39  ;;  %v9765_v25 = vld [vmem:[#allocation99_spill] sm:$0xff]  ;;  %v9808_v54 = vld [vmem:[#allocation45_spill] sm:$0xff] }
 0x294   : >> { %v8262_v27 = vadd.f32 %v8179_v53, %v7841_v36  ;;  %v8266_v49 = vadd.f32 %v8184_v1, %v7844_v31  ;;  %v8269_v0 = vadd.f32 %v3169_v20, %v7847_v30  ;;  %v8272_v32 = vadd.f32 %v3171_v33, %v7850_v3  ;;  %v9769_v36 = vld [vmem:[#allocation104_spill] sm:$0xff]  ;;  %v9771_v31 = vld [vmem:[#allocation105_spill] sm:$0xff]  ;;  %v9773_v30 = vld [vmem:[#allocation106_spill] sm:$0xff] }
 0x295   : >> { %9759 = vst [vmem:[#allocation70_spill] sm:$0xff] %v8257_v29  ;;  %v8275_v9 = vadd.f32 %v3174_v57, %v7853_v10  ;;  %v8278_v14 = vadd.f32 %v3176_v51, %v9765_v25  ;;  %v8281_v59 = vadd.f32 %v3179_v42, %v9767_v34  ;;  %v8284_v53 = vadd.f32 %v3181_v24, %v9769_v36  ;;  %v9775_v3 = vld [vmem:[#allocation107_spill] sm:$0xff]  ;;  %v9777_v10 = vld [vmem:[#allocation108_spill] sm:$0xff]  ;;  %v9779_v51 = vld [vmem:[#allocation109_spill] sm:$0xff] }
 0x296   : >> { %9760 = vst [vmem:[#allocation115_spill] sm:$0xff] %v8262_v27  ;;  %v8287_v1 = vadd.f32 %v3184_v4, %v9771_v31  ;;  %v8290_v20 = vadd.f32 %v3186_v45, %v9773_v30  ;;  %v8293_v33 = vadd.f32 %v3189_v21, %v9775_v3  ;;  %v8296_v57 = vadd.f32 %v3191_v41, %v9777_v10  ;;  %v9781_v42 = vld [vmem:[#allocation110_spill] sm:$0xff]  ;;  %v9783_v24 = vld [vmem:[#allocation111_spill] sm:$0xff]  ;;  %v9785_v4 = vld [vmem:[#allocation112_spill] sm:$0xff] }
 0x297   : >> { %9761 = vst [vmem:[#allocation116_spill] sm:$0xff] %v8266_v49  ;;  %v8299_v63 = vadd.f32 %v3194_v37, %v9779_v51  ;;  %v8302_v28 = vadd.f32 %v3196_v22, %v9781_v42  ;;  %v8305_v47 = vadd.f32 %v3199_v8, %v9783_v24  ;;  %v8308_v40 = vadd.f32 %v3201_v11, %v9785_v4  ;;  %v9787_v45 = vld [vmem:[#allocation113_spill] sm:$0xff]  ;;  %v9789_v21 = vld [vmem:[#allocation114_spill] sm:$0xff]  ;;  %v9791_v41 = vld [vmem:[#allocation100_spill] sm:$0xff] }
 0x298   : >> { %9762 = vst [vmem:[#allocation117_spill] sm:$0xff] %v8269_v0  ;;  %v8311_v26 = vadd.f32 %v3204_v43, %v9787_v45  ;;  %v8314_v19 = vadd.f32 %v3206_v55, %v9789_v21  ;;  %v8317_v56 = vadd.f32 %v3209_v12, %v9791_v41  ;;  %v9793_v37 = vld [vmem:[#allocation101_spill] sm:$0xff]  ;;  %v9797_v8 = vld [vmem:[#allocation42_spill] sm:$0xff]  ;;  %v9799_v11 = vld [vmem:[#allocation68_spill] sm:$0xff]  ;;  %v8332_v44 = vadd.f32 %v3221_v50, %v9801_v61 }
 0x299   : >> { %9763 = vst [vmem:[#allocation118_spill] sm:$0xff] %v8272_v32  ;;  %v8320_v58 = vadd.f32 %v3211_v35, %v9793_v37  ;;  %v9795_v22 = vld [vmem:[#allocation41_spill] sm:$0xff]  ;;  %v8326_v2 = vadd.f32 %v3216_v23, %v9797_v8  ;;  %v8329_v38 = vadd.f32 %v3219_v16, %v9799_v11  ;;  %v9803_v43 = vld [vmem:[#allocation44_spill] sm:$0xff]  ;;  %v8338_v18 = vadd.f32 %v3226_v52, %v9805_v6  ;;  %v9810_v35 = vld [vmem:[#allocation46_spill] sm:$0xff] }
 0x29a   : >> { %9764 = vst [vmem:[#allocation119_spill] sm:$0xff] %v8275_v9  ;;  %v8323_v17 = vadd.f32 %v3214_v15, %v9795_v22  ;;  %v8335_v7 = vadd.f32 %v3224_v46, %v9803_v43  ;;  %v9807_v55 = vld [vmem:[#allocation48_spill] sm:$0xff]  ;;  %v8342_v39 = vadd.f32 %v3229_v62, %v9808_v54  ;;  %v8345_v15 = vadd.f32 %v3231_v60, %v9810_v35  ;;  %v9812_v23 = vld [vmem:[#allocation77_spill] sm:$0xff]  ;;  %v9814_v25 = vld [vmem:[#allocation47_spill] sm:$0xff] }
 0x29b   : >> { %9766 = vst [vmem:[#allocation99_spill] sm:$0xff] %v8278_v14  ;;  %v3301_v12 = vperm.slane %v9807_v55, 6  ;;  %v8348_v16 = vadd.f32 %v3234_v5, %v9812_v23  ;;  %v8351_v50 = vadd.f32 %v3236_v48, %v9814_v25  ;;  %v9816_v34 = vld [vmem:[#allocation71_spill] sm:$0xff]  ;;  %v9817_v36 = vld [vmem:[#allocation78_spill] sm:$0xff]  ;;  %v9819_v3 = vld [vmem:[#allocation80_spill] sm:$0xff] }
 0x29c   : >> { %9768 = vst [vmem:[#allocation103_spill] sm:$0xff] %v8281_v59  ;;  %v9818_v52 = vld [vmem:[#allocation79_spill] sm:$0xff]  ;;  %v9820_v51 = vld [vmem:[#allocation85_spill] sm:$0xff]  ;;  %v9821_v42 = vld [vmem:[#allocation86_spill] sm:$0xff] }
 0x29d   : >> { %9770 = vst [vmem:[#allocation104_spill] sm:$0xff] %v8284_v53  ;;  %v3302_v46 = vmul.f32 %v9816_v34, %v3301_v12  ;;  %v3303_v31 = vmul.f32 %v9817_v36, %v3301_v12  ;;  %v3304_v30 = vmul.f32 %v9818_v52, %v3301_v12  ;;  %v3305_v10 = vmul.f32 %v9819_v3, %v3301_v12  ;;  %v9822_v60 = vld [vmem:[#allocation87_spill] sm:$0xff]  ;;  %v9823_v45 = vld [vmem:[#allocation92_spill] sm:$0xff]  ;;  %v9824_v21 = vld [vmem:[#allocation93_spill] sm:$0xff] }
 0x29e   : >> { %9772 = vst [vmem:[#allocation105_spill] sm:$0xff] %v8287_v1  ;;  %v3306_v62 = vmul.f32 %v9820_v51, %v3301_v12  ;;  %v3307_v24 = vmul.f32 %v9821_v42, %v3301_v12  ;;  %v3308_v4 = vmul.f32 %v9822_v60, %v3301_v12  ;;  %v3309_v5 = vmul.f32 %v9823_v45, %v3301_v12  ;;  %v9825_v48 = vld [vmem:[#allocation94_spill] sm:$0xff]  ;;  %v9827_v11 = vld [vmem:[#allocation49_spill] sm:$0xff]  ;;  %v9829_v55 = vld [vmem:[#allocation59_spill] sm:$0xff] }
 0x29f   : >> { %9774 = vst [vmem:[#allocation106_spill] sm:$0xff] %v8290_v20  ;;  %v3310_v41 = vmul.f32 %v9824_v21, %v3301_v12  ;;  %v3311_v37 = vmul.f32 %v9825_v48, %v3301_v12  ;;  %v9826_v22 = vld [vmem:[#allocation102_spill] sm:$0xff]  ;;  %v8367_v61 = vmul.f32 %v9827_v11, %v3301_v12  ;;  %v8373_v54 = vmul.f32 %v9829_v55, %v3301_v12  ;;  %v9831_v25 = vld [vmem:[#allocation60_spill] sm:$0xff]  ;;  %v9833_v3 = vld [vmem:[#allocation51_spill] sm:$0xff] }
 0x2a0   : >> { %9776 = vst [vmem:[#allocation107_spill] sm:$0xff] %v8293_v33  ;;  %v8364_v8 = vmul.f32 %v9826_v22, %v3301_v12  ;;  %v9828_v43 = vld [vmem:[#allocation58_spill] sm:$0xff]  ;;  %v8379_v34 = vmul.f32 %v9831_v25, %v3301_v12  ;;  %v9832_v36 = vld [vmem:[#allocation64_spill] sm:$0xff]  ;;  %v8385_v51 = vmul.f32 %v9833_v3, %v3301_v12  ;;  %v9834_v42 = vld [vmem:[#allocation65_spill] sm:$0xff]  ;;  %v3399_v14 = vrot.slane %v3303_v31, 6 }
 0x2a1   : >> { %9778 = vst [vmem:[#allocation108_spill] sm:$0xff] %v8296_v57  ;;  %v8370_v6 = vmul.f32 %v9828_v43, %v3301_v12  ;;  %v9830_v35 = vld [vmem:[#allocation50_spill] sm:$0xff]  ;;  %v8382_v52 = vmul.f32 %v9832_v36, %v3301_v12  ;;  %v8388_v60 = vmul.f32 %v9834_v42, %v3301_v12  ;;  %v9836_v48 = vld [vmem:[#allocation52_spill] sm:$0xff]  ;;  %v9837_v11 = vld [vmem:[#allocation67_spill] sm:$0xff]  ;;  %v3401_v9 = vrot.slane %v3304_v30, 6 }
 0x2a2   : >> { %9780 = vst [vmem:[#allocation109_spill] sm:$0xff] %v8299_v63  ;;  %v8376_v23 = vmul.f32 %v9830_v35, %v3301_v12  ;;  %v9835_v45 = vld [vmem:[#allocation66_spill] sm:$0xff]  ;;  %v8394_v22 = vmul.f32 %v9836_v48, %v3301_v12  ;;  %v8397_v43 = vmul.f32 %v9837_v11, %v3301_v12  ;;  %v9838_v55 = vld [vmem:[#allocation72_spill] sm:$0xff]  ;;  %v9839_v25 = vld [vmem:[#allocation53_spill] sm:$0xff]  ;;  %v3404_v32 = vrot.slane %v3306_v62, 6 }
 0x2a3   : >> { %9782 = vst [vmem:[#allocation110_spill] sm:$0xff] %v8302_v28  ;;  %v8391_v21 = vmul.f32 %v9835_v45, %v3301_v12  ;;  %v8400_v35 = vmul.f32 %v9838_v55, %v3301_v12  ;;  %v8403_v36 = vmul.f32 %v9839_v25, %v3301_v12  ;;  %v9840_v3 = vld [vmem:[#allocation73_spill] sm:$0xff]  ;;  %v9841_v42 = vld [vmem:[#allocation74_spill] sm:$0xff]  ;;  %v9843_v48 = vld [vmem:[#allocation75_spill] sm:$0xff]  ;;  %v3406_v0 = vrot.slane %v3307_v24, 6 }
 0x2a4   : >> { %9784 = vst [vmem:[#allocation111_spill] sm:$0xff] %v8305_v47  ;;  %v9842_v45 = vld [vmem:[#allocation54_spill] sm:$0xff]  ;;  %v9844_v11 = vld [vmem:[#allocation81_spill] sm:$0xff]  ;;  %v9845_v55 = vld [vmem:[#allocation55_spill] sm:$0xff]  ;;  %v3409_v49 = vrot.slane %v3309_v5, 6  ;;  %v3411_v27 = vrot.slane %v3310_v41, 6 }
 0x2a5   : >> { %9786 = vst [vmem:[#allocation112_spill] sm:$0xff] %v8308_v40  ;;  %v9846_v25 = vld [vmem:[#allocation40_spill] sm:$0xff]  ;;  %v3414_v31 = vrot.slane %v8364_v8, 6  ;;  %v3424_v24 = vrot.slane %v8382_v52, 6  ;;  %v3428_v5 = vrot.slane %v8388_v60, 6  ;;  %v3429_v8 = vrot.slane %v8391_v21, 6 }
 0x2a6   : >> { %9788 = vst [vmem:[#allocation113_spill] sm:$0xff] %v8311_v26  ;;  %v8494_v30 = vsel %vm1827_vm6, %v3409_v49, %v3411_v27 }
 0x2a7   : >> { %9790 = vst [vmem:[#allocation114_spill] sm:$0xff] %v8314_v19  ;;  %v3430_v52 = vsel %vm1827_vm6, %v3428_v5, %v3429_v8 }
 0x2a8   : >> { %9792 = vst [vmem:[#allocation100_spill] sm:$0xff] %v8317_v56 }
 0x2a9   : >> { %9794 = vst [vmem:[#allocation101_spill] sm:$0xff] %v8320_v58 }
 0x2aa   : >> { %9796 = vst [vmem:[#allocation41_spill] sm:$0xff] %v8323_v17 }
 0x2ab   : >> { %9798 = vst [vmem:[#allocation42_spill] sm:$0xff] %v8326_v2 }
 0x2ac   : >> { %9800 = vst [vmem:[#allocation68_spill] sm:$0xff] %v8329_v38 }
 0x2ad   : >> { %9802 = vst [vmem:[#allocation43_spill] sm:$0xff] %v8332_v44  ;;  %v8424_v44 = vmul.f32 %v9846_v25, %v3301_v12  ;;  %v9853_v25 = vld [vmem:[#allocation89_spill] sm:$0xff] }
 0x2ae   : >> { %9804 = vst [vmem:[#allocation44_spill] sm:$0xff] %v8335_v7  ;;  %v8421_v7 = vmul.f32 %v9845_v55, %v3301_v12  ;;  %v9852_v55 = vld [vmem:[#allocation88_spill] sm:$0xff]  ;;  %v8445_v26 = vmul.f32 %v9853_v25, %v3301_v12  ;;  %v9860_v25 = vld [vmem:[#allocation63_spill] sm:$0xff] }
 0x2af   : >> { %9806 = vst [vmem:[#allocation76_spill] sm:$0xff] %v8338_v18  ;;  %v8418_v18 = vmul.f32 %v9844_v11, %v3301_v12  ;;  %v9851_v11 = vld [vmem:[#allocation57_spill] sm:$0xff]  ;;  %v8442_v19 = vmul.f32 %v9852_v55, %v3301_v12  ;;  %v9859_v55 = vld [vmem:[#allocation96_spill] sm:$0xff]  ;;  %v8466_v20 = vmul.f32 %v9860_v25, %v3301_v12 }
 0x2b0   : >> { %9809 = vst [vmem:[#allocation48_spill] sm:$0xff] %v8342_v39  ;;  %v8415_v39 = vmul.f32 %v9843_v48, %v3301_v12  ;;  %v9850_v48 = vld [vmem:[#allocation84_spill] sm:$0xff]  ;;  %v8439_v56 = vmul.f32 %v9851_v11, %v3301_v12  ;;  %v9858_v11 = vld [vmem:[#allocation95_spill] sm:$0xff]  ;;  %v8463_v33 = vmul.f32 %v9859_v55, %v3301_v12  ;;  %v3408_v55 = vrot.slane %v3308_v4, 6 }
 0x2b1   : >> { %9811 = vst [vmem:[#allocation45_spill] sm:$0xff] %v8345_v15  ;;  %v8412_v15 = vmul.f32 %v9842_v45, %v3301_v12  ;;  %v9849_v45 = vld [vmem:[#allocation83_spill] sm:$0xff]  ;;  %v8436_v58 = vmul.f32 %v9850_v48, %v3301_v12  ;;  %v9857_v48 = vld [vmem:[#allocation62_spill] sm:$0xff]  ;;  %v8460_v57 = vmul.f32 %v9858_v11, %v3301_v12  ;;  %v3403_v11 = vrot.slane %v3305_v10, 6 }
 0x2b2   : >> { %9813 = vst [vmem:[#allocation46_spill] sm:$0xff] %v8348_v16  ;;  %v8409_v16 = vmul.f32 %v9841_v42, %v3301_v12  ;;  %v9848_v42 = vld [vmem:[#allocation56_spill] sm:$0xff]  ;;  %v8433_v17 = vmul.f32 %v9849_v45, %v3301_v12  ;;  %v9856_v45 = vld [vmem:[#allocation91_spill] sm:$0xff]  ;;  %v8457_v63 = vmul.f32 %v9857_v48, %v3301_v12  ;;  %v3398_v48 = vrot.slane %v3302_v46, 6 }
 0x2b3   : >> { %9815 = vst [vmem:[#allocation77_spill] sm:$0xff] %v8351_v50  ;;  %v8406_v50 = vmul.f32 %v9840_v3, %v3301_v12  ;;  %v9847_v3 = vld [vmem:[#allocation82_spill] sm:$0xff]  ;;  %v8430_v2 = vmul.f32 %v9848_v42, %v3301_v12  ;;  %v8454_v28 = vmul.f32 %v9856_v45, %v3301_v12  ;;  %v9863_v45 = vld [vmem:[#allocation69_spill] sm:$0xff]  ;;  %v8484_v29 = vsel %vm1827_vm6, %v3403_v11, %v3404_v32 }
 0x2b4   : >> { %v8427_v38 = vmul.f32 %v9847_v3, %v3301_v12  ;;  %v9854_v3 = vld [vmem:[#allocation61_spill] sm:$0xff]  ;;  %v9855_v42 = vld [vmem:[#allocation90_spill] sm:$0xff]  ;;  %v8475_v59 = vmul.f32 %v9863_v45, %v3301_v12  ;;  %v8478_v25 = vsel %vm1827_vm6, %v3398_v48, %v3399_v14  ;;  %v8490_v46 = vsel %vm1827_vm6, %v3408_v55, %v3409_v49 }
 0x2b5   : >> { %v8448_v40 = vmul.f32 %v9854_v3, %v3301_v12  ;;  %v8451_v47 = vmul.f32 %v9855_v42, %v3301_v12  ;;  %v9861_v3 = vld [vmem:[#allocation97_spill] sm:$0xff]  ;;  %v9862_v42 = vld [vmem:[#allocation98_spill] sm:$0xff]  ;;  %v3416_v10 = vrot.slane %v8367_v61, 6  ;;  %v3426_v49 = vrot.slane %v8385_v51, 6 }
 0x2b6   : >> { %v8469_v1 = vmul.f32 %v9861_v3, %v3301_v12  ;;  %v8472_v53 = vmul.f32 %v9862_v42, %v3301_v12  ;;  %v8481_v3 = vsel %vm1827_vm6, %v3399_v14, %v3401_v9  ;;  %v3413_v42 = vrot.slane %v3311_v37, 6 }
 0x2b7   : >> { %v8487_v12 = vsel %vm1827_vm6, %v3404_v32, %v3406_v0  ;;  %v3418_v9 = vrot.slane %v8370_v6, 6  ;;  %v3419_v14 = vrot.slane %v8373_v54, 6  ;;  %v3421_v0 = vrot.slane %v8376_v23, 6 }
 0x2b8   : >> { %v8500_v62 = vsel %vm1827_vm6, %v3413_v42, %v3414_v31  ;;  %v3423_v32 = vrot.slane %v8379_v34, 6  ;;  %v8506_v4 = vsel %vm1827_vm6, %v3414_v31, %v3416_v10  ;;  %v3431_v61 = vrot.slane %v8394_v22, 6 }
 0x2b9   : >> { %v8509_v27 = vsel %vm1827_vm6, %v3418_v9, %v3419_v14  ;;  %v3422_v41 = vsel %vm1827_vm6, %v3419_v14, %v3421_v0  ;;  %v3427_v6 = vsel %vm1827_vm6, %v3424_v24, %v3426_v49  ;;  %v3433_v54 = vrot.slane %v8397_v43, 6 }
 0x2ba   : >> { %v3425_v37 = vsel %vm1827_vm6, %v3423_v32, %v3424_v24  ;;  %v3434_v23 = vrot.slane %v8400_v35, 6  ;;  %v3436_v34 = vrot.slane %v8403_v36, 6  ;;  %v3432_v51 = vsel %vm1827_vm6, %v3429_v8, %v3431_v61 }
 0x2bb   : >> { %v3438_v60 = vrot.slane %v8406_v50, 6  ;;  %v3439_v45 = vrot.slane %v8409_v16, 6  ;;  %v3441_v48 = vrot.slane %v8412_v15, 6  ;;  %v3443_v43 = vrot.slane %v8415_v39, 6 }
 0x2bc   : >> { %v3435_v21 = vsel %vm1827_vm6, %v3433_v54, %v3434_v23  ;;  %v3437_v22 = vsel %vm1827_vm6, %v3434_v23, %v3436_v34  ;;  %v3444_v36 = vrot.slane %v8418_v18, 6  ;;  %v3446_v11 = vrot.slane %v8421_v7, 6  ;;  %v9865_v23 = vld [vmem:[#allocation115_spill] sm:$0xff] }
 0x2bd   : >> { %v3440_v35 = vsel %vm1827_vm6, %v3438_v60, %v3439_v45  ;;  %v3448_v55 = vrot.slane %v8424_v44, 6  ;;  %v3442_v50 = vsel %vm1827_vm6, %v3439_v45, %v3441_v48  ;;  %v3449_v16 = vrot.slane %v8427_v38, 6  ;;  %v9867_v60 = vld [vmem:[#allocation117_spill] sm:$0xff]  ;;  %v9868_v48 = vld [vmem:[#allocation118_spill] sm:$0xff] }
 0x2be   : >> { %v3451_v42 = vrot.slane %v8430_v2, 6  ;;  %v3453_v31 = vrot.slane %v8433_v17, 6  ;;  %v3445_v15 = vsel %vm1827_vm6, %v3443_v43, %v3444_v36  ;;  %v3447_v39 = vsel %vm1827_vm6, %v3444_v36, %v3446_v11  ;;  %v9871_v11 = vld [vmem:[#allocation103_spill] sm:$0xff] }
 0x2bf   : >> { %v3454_v10 = vrot.slane %v8436_v58, 6  ;;  %v3456_v18 = vrot.slane %v8439_v56, 6  ;;  %v3450_v7 = vsel %vm1827_vm6, %v3448_v55, %v3449_v16  ;;  %v3458_v9 = vrot.slane %v8442_v19, 6 }
 0x2c0   : >> { %v3452_v44 = vsel %vm1827_vm6, %v3449_v16, %v3451_v42  ;;  %v3459_v38 = vrot.slane %v8445_v26, 6  ;;  %v3461_v14 = vrot.slane %v8448_v40, 6  ;;  %v3463_v0 = vrot.slane %v8451_v47, 6  ;;  %v9872_v16 = vld [vmem:[#allocation104_spill] sm:$0xff]  ;;  %v9873_v42 = vld [vmem:[#allocation105_spill] sm:$0xff] }
 0x2c1   : >> { %v3455_v2 = vsel %vm1827_vm6, %v3453_v31, %v3454_v10  ;;  %v3457_v17 = vsel %vm1827_vm6, %v3454_v10, %v3456_v18  ;;  %v3464_v56 = vrot.slane %v8454_v28, 6  ;;  %v3466_v32 = vrot.slane %v8457_v63, 6  ;;  %v9875_v18 = vld [vmem:[#allocation107_spill] sm:$0xff] }
 0x2c2   : >> { %v3460_v58 = vsel %vm1827_vm6, %v3458_v9, %v3459_v38  ;;  %v3468_v24 = vrot.slane %v8460_v57, 6  ;;  %v3462_v19 = vsel %vm1827_vm6, %v3459_v38, %v3461_v14  ;;  %v3469_v26 = vrot.slane %v8463_v33, 6  ;;  %v9864_v33 = vld [vmem:[#allocation70_spill] sm:$0xff]  ;;  %v9876_v9 = vld [vmem:[#allocation108_spill] sm:$0xff] }
 0x2c3   : >> { %v3471_v49 = vrot.slane %v8466_v20, 6  ;;  %v3473_v5 = vrot.slane %v8469_v1, 6  ;;  %v3465_v40 = vsel %vm1827_vm6, %v3463_v0, %v3464_v56  ;;  %v3467_v47 = vsel %vm1827_vm6, %v3464_v56, %v3466_v32  ;;  %v9878_v0 = vld [vmem:[#allocation110_spill] sm:$0xff]  ;;  %v9879_v56 = vld [vmem:[#allocation111_spill] sm:$0xff] }
 0x2c4   : >> { %v3474_v8 = vrot.slane %v8472_v53, 6  ;;  %v3476_v28 = vrot.slane %v8475_v59, 6  ;;  %v3470_v63 = vsel %vm1827_vm6, %v3468_v24, %v3469_v26  ;;  %v3510_v61 = vadd.f32 %v8478_v25, %v8253_v13  ;;  %v9866_v53 = vld [vmem:[#allocation116_spill] sm:$0xff]  ;;  %v9869_v13 = vld [vmem:[#allocation119_spill] sm:$0xff] }
 0x2c5   : >> { %v3472_v57 = vsel %vm1827_vm6, %v3469_v26, %v3471_v49  ;;  %v3511_v20 = vadd.f32 %v8481_v3, %v9864_v33  ;;  %v3512_v34 = vadd.f32 %v8484_v29, %v9865_v23  ;;  %v3513_v59 = vadd.f32 %v8487_v12, %v9866_v53  ;;  %v9870_v3 = vld [vmem:[#allocation99_spill] sm:$0xff]  ;;  %v9874_v12 = vld [vmem:[#allocation106_spill] sm:$0xff]  ;;  %v9881_v26 = vld [vmem:[#allocation113_spill] sm:$0xff] }
 0x2c6   : >> { %v3475_v1 = vsel %vm1827_vm6, %v3473_v5, %v3474_v8  ;;  %v3477_v54 = vsel %vm1827_vm6, %v3474_v8, %v3476_v28  ;;  %v3514_v45 = vadd.f32 %v8490_v46, %v9867_v60  ;;  %v3515_v43 = vadd.f32 %v8494_v30, %v9868_v48  ;;  %v9877_v30 = vld [vmem:[#allocation109_spill] sm:$0xff]  ;;  %v9882_v49 = vld [vmem:[#allocation114_spill] sm:$0xff]  ;;  %v9883_v5 = vld [vmem:[#allocation100_spill] sm:$0xff] }
 0x2c7   : >> { %v3516_v25 = vadd.f32 %v8500_v62, %v9869_v13  ;;  %v3517_v36 = vadd.f32 %v8506_v4, %v9870_v3  ;;  %v3518_v55 = vadd.f32 %v8509_v27, %v9871_v11  ;;  %v3519_v29 = vadd.f32 %v3422_v41, %v9872_v16  ;;  %v9880_v4 = vld [vmem:[#allocation112_spill] sm:$0xff]  ;;  %v9884_v8 = vld [vmem:[#allocation101_spill] sm:$0xff]  ;;  %v9886_v33 = vld [vmem:[#allocation42_spill] sm:$0xff] }
 0x2c8   : >> { %v3520_v31 = vadd.f32 %v3425_v37, %v9873_v42  ;;  %v3521_v10 = vadd.f32 %v3427_v6, %v9874_v12  ;;  %v3522_v46 = vadd.f32 %v3430_v52, %v9875_v18  ;;  %v3523_v38 = vadd.f32 %v3432_v51, %v9876_v9  ;;  %v9885_v28 = vld [vmem:[#allocation41_spill] sm:$0xff]  ;;  %v9887_v23 = vld [vmem:[#allocation68_spill] sm:$0xff]  ;;  %v9888_v53 = vld [vmem:[#allocation43_spill] sm:$0xff] }
 0x2c9   : >> { %v3524_v14 = vadd.f32 %v3435_v21, %v9877_v30  ;;  %v3525_v62 = vadd.f32 %v3437_v22, %v9878_v0  ;;  %v3526_v32 = vadd.f32 %v3440_v35, %v9879_v56  ;;  %v3527_v24 = vadd.f32 %v3442_v50, %v9880_v4  ;;  %v9889_v60 = vld [vmem:[#allocation44_spill] sm:$0xff]  ;;  %v9892_v3 = vld [vmem:[#allocation45_spill] sm:$0xff]  ;;  %v9893_v11 = vld [vmem:[#allocation46_spill] sm:$0xff] }
 0x2ca   : >> { %v3528_v27 = vadd.f32 %v3445_v15, %v9881_v26  ;;  %v3529_v41 = vadd.f32 %v3447_v39, %v9882_v49  ;;  %v3530_v37 = vadd.f32 %v3450_v7, %v9883_v5  ;;  %v3531_v6 = vadd.f32 %v3452_v44, %v9884_v8  ;;  %v9890_v48 = vld [vmem:[#allocation76_spill] sm:$0xff]  ;;  %v9894_v16 = vld [vmem:[#allocation77_spill] sm:$0xff]  ;;  %v9895_v42 = vld [vmem:[#allocation39_spill] sm:$0xff] }
 0x2cb   : >> { %v3532_v52 = vadd.f32 %v3455_v2, %v9885_v28  ;;  %v3533_v51 = vadd.f32 %v3457_v17, %v9886_v33  ;;  %v3534_v21 = vadd.f32 %v3460_v58, %v9887_v23  ;;  %v3535_v22 = vadd.f32 %v3462_v19, %v9888_v53  ;;  %v9891_v13 = vld [vmem:[#allocation48_spill] sm:$0xff]  ;;  %v9897_v17 = vld [vmem:[#allocation38_spill] sm:$0xff]  ;;  %v9899_v18 = vld [vmem:[#allocation37_spill] sm:$0xff] }
 0x2cc   : >> { %v3536_v35 = vadd.f32 %v3465_v40, %v9889_v60  ;;  %v3537_v50 = vadd.f32 %v3467_v47, %v9890_v48  ;;  %v3538_v15 = vadd.f32 %v3470_v63, %v9891_v13  ;;  %v3539_v39 = vadd.f32 %v3472_v57, %v9892_v3  ;;  %v9901_v40 = vld [vmem:[#allocation36_spill] sm:$0xff]  ;;  %v9903_v47 = vld [vmem:[#allocation35_spill] sm:$0xff]  ;;  %v9905_v57 = vld [vmem:[#allocation34_spill] sm:$0xff] }
 0x2cd   : >> { %v3540_v7 = vadd.f32 %v3475_v1, %v9893_v11  ;;  %v3541_v44 = vadd.f32 %v3477_v54, %v9894_v16  ;;  %v8607_v2 = vadd.f32 %v9895_v42, %v3510_v61   ;;  %v8610_v16 = vadd.f32 %v9897_v17, %v3511_v20   ;;  %v9907_v9 = vld [vmem:[#allocation33_spill] sm:$0xff]  ;;  %v9909_v61 = vld [vmem:[#allocation32_spill] sm:$0xff]  ;;  %v9911_v20 = vld [vmem:[#allocation31_spill] sm:$0xff] }
 0x2ce   : >> { %v8613_v3 = vadd.f32 %v9899_v18, %v3512_v34   ;;  %v8616_v53 = vadd.f32 %v9901_v40, %v3513_v59   ;;  %v8619_v63 = vadd.f32 %v9903_v47, %v3514_v45   ;;  %v8622_v1 = vadd.f32 %v9905_v57, %v3515_v43   ;;  %v9913_v34 = vld [vmem:[#allocation30_spill] sm:$0xff]  ;;  %v9915_v59 = vld [vmem:[#allocation29_spill] sm:$0xff]  ;;  %v9917_v45 = vld [vmem:[#allocation28_spill] sm:$0xff] }
 0x2cf   : >> { %9896 = vst [vmem:[#allocation5_spill] sm:$0xff] %v8607_v2  ;;  %v8625_v11 = vadd.f32 %v9907_v9, %v3516_v25   ;;  %v8631_v26 = vadd.f32 %v9911_v20, %v3518_v55   ;;  %v8634_v57 = vadd.f32 %v9913_v34, %v3519_v29   ;;  %v8637_v49 = vadd.f32 %v9915_v59, %v3520_v31   ;;  %v9919_v43 = vld [vmem:[#allocation27_spill] sm:$0xff]  ;;  %v9925_v55 = vld [vmem:[#allocation24_spill] sm:$0xff]  ;;  %v9945_v13 = vld [vmem:[#allocation14_spill] sm:$0xff] }
 0x2d0   : >> { %9898 = vst [vmem:[#allocation7_spill] sm:$0xff] %v8610_v16  ;;  %v9902_v30 = vmov %v8616_v53  ;;  %v9904_v0 = vmov %v8619_v63  ;;  %v9906_v56 = vmov %v8622_v1  ;;  %v8628_v63 = vadd.f32 %v9909_v61, %v3517_v36   ;;  %v9921_v1 = vld [vmem:[#allocation26_spill] sm:$0xff]  ;;  %v9923_v36 = vld [vmem:[#allocation25_spill] sm:$0xff]  ;;  %v9927_v29 = vld [vmem:[#allocation23_spill] sm:$0xff] }
 0x2d1   : >> { %9900 = vst [vmem:[#allocation4_spill] sm:$0xff] %v8613_v3  ;;  %v9908_v54 = vmov %v8625_v11  ;;  %v9912_v5 = vmov %v8631_v26  ;;  %v9914_v8 = vmov %v8634_v57  ;;  %v9916_v28 = vmov %v8637_v49  ;;  %v9929_v53 = vld [vmem:[#allocation22_spill] sm:$0xff]  ;;  %v9947_v3 = vld [vmem:[#allocation13_spill] sm:$0xff]  ;;  %v9949_v11 = vld [vmem:[#allocation12_spill] sm:$0xff] }
 0x2d2   : >> { %v9910_v4 = vmov %v8628_v63  ;;  %v8640_v31 = vadd.f32 %v9917_v45, %v3521_v10   ;;  %v8643_v48 = vadd.f32 %v9919_v43, %v3522_v46   ;;  %v8646_v25 = vadd.f32 %v9921_v1, %v3523_v38   ;;  %v9931_v10 = vld [vmem:[#allocation21_spill] sm:$0xff]  ;;  %v9933_v46 = vld [vmem:[#allocation20_spill] sm:$0xff]  ;;  %v9935_v38 = vld [vmem:[#allocation19_spill] sm:$0xff] }
 0x2d3   : >> { %v8649_v61 = vadd.f32 %v9923_v36, %v3524_v14   ;;  %v8652_v23 = vadd.f32 %v9925_v55, %v3525_v62   ;;  %v8658_v45 = vadd.f32 %v9929_v53, %v3527_v24   ;;  %v8667_v26 = vadd.f32 %v9935_v38, %v3530_v37   ;;  %v9937_v14 = vld [vmem:[#allocation18_spill] sm:$0xff]  ;;  %v9939_v62 = vld [vmem:[#allocation17_spill] sm:$0xff]  ;;  %v9944_v24 = vld [vmem:[#allocation15_spill] sm:$0xff] }
 0x2d4   : >> { %v9918_v33 = vmov %v8640_v31  ;;  %v9920_v60 = vmov %v8643_v48  ;;  %v9922_v42 = vmov %v8646_v25  ;;  %v8655_v25 = vadd.f32 %v9927_v29, %v3526_v32   ;;  %v9941_v32 = vld [vmem:[#allocation16_spill] sm:$0xff]  ;;  %v9951_v37 = vld [vmem:[#allocation11_spill] sm:$0xff]  ;;  %v9953_v16 = vld [vmem:[#allocation10_spill] sm:$0xff] }
 0x2d5   : >> { %v9924_v17 = vmov %v8649_v61  ;;  %v9926_v18 = vmov %v8652_v23  ;;  %v9930_v34 = vmov %v8658_v45  ;;  %v8661_v31 = vadd.f32 %v9931_v10, %v3528_v27  }
 0x2d6   : >> { %v9928_v40 = vmov %v8655_v25  ;;  %v8664_v48 = vadd.f32 %v9933_v46, %v3529_v41   ;;  %v9936_v12 = vmov %v8667_v26  ;;  %v8670_v46 = vadd.f32 %v9937_v14, %v3531_v6   ;;  %v9995_v20 = vld [vmem:[#allocation5_spill] sm:$0xff] }
 0x2d7   : >> { %v9932_v59 = vmov %v8661_v31  ;;  %v8673_v9 = vadd.f32 %v9939_v62, %v3532_v52   ;;  %v8676_v36 = vadd.f32 %v9941_v32, %v3533_v51   ;;  %v3566_v19 = vadd.f32 %v9944_v24, %v3534_v21   ;;  %v9955_v52 = vld [vmem:[#allocation9_spill] sm:$0xff]  ;;  %v9958_v51 = vld [vmem:[#allocation8_spill] sm:$0xff] }
 0x2d8   : >> { %v9934_v43 = vmov %v8664_v48  ;;  %v9938_v58 = vmov %v8670_v46  ;;  %v8680_v47 = vadd.f32 %v9945_v13, %v3535_v22   ;;  %v8683_v23 = vadd.f32 %v9947_v3, %v3536_v35   ;;  %v9993_v3 = vld [vmem:[#allocation4_spill] sm:$0xff]  ;;  %v3658_v22 = vld [vmem:[%s9036_s4] sm:$0xf] (%p8703_p4) }
 0x2d9   : >> { %v9940_v55 = vmov %v8673_v9  ;;  %9942 = vst [vmem:[#allocation6_spill] sm:$0xff] %v8676_v36  ;;  %v9943_v29 = vmov %v8676_v36  ;;  %v8686_v49 = vadd.f32 %v9949_v11, %v3537_v50   ;;  %v8689_v13 = vadd.f32 %v9951_v37, %v3538_v15   ;;  %v8814_v50 = vld [vmem:[%s9035_s3] ss:$0 sm:$0xff] (%p8703_p4) }
 0x2da   : >> { %v9946_v27 = vmov %v8680_v47  ;;  %v9948_v41 = vmov %v8683_v23  ;;  %v8692_v35 = vadd.f32 %v9953_v16, %v3539_v39   ;;  %v8695_v15 = vadd.f32 %v9955_v52, %v3540_v7   ;;  %v9994_v16 = vld [vmem:[#allocation7_spill] sm:$0xff] }
 0x2db   : >> { %v9950_v38 = vmov %v8686_v49  ;;  %v9952_v6 = vmov %v8689_v13  ;;  %v8698_v2 = vadd.f32 %v9958_v51, %v3541_v44   ;;  %v9969_v23 = vmov %v9948_v41 }
 0x2dc   : >> { %v9954_v14 = vmov %v8692_v35  ;;  %9956 = vst [vmem:[#allocation3_spill] sm:$0xff] %v8695_v15  ;;  %v9964_v62 = vmov %v8695_v15  ;;  %v9967_v13 = vmov %v9952_v6  ;;  %v9968_v49 = vmov %v9950_v38 }
 0x2dd   : >> { %9959 = vst [vmem:[#allocation120_spill] sm:$0xff] %v8698_v2  ;;  %v9962_v24 = vmov %v8698_v2  ;;  %v9965_v15 = vmov %v9964_v62  ;;  %v9966_v35 = vmov %v9954_v14  ;;  %v9970_v47 = vmov %v9946_v27  ;;  %v9998_v62 = vld [vmem:[#allocation7_spill] sm:$0xff] (%p8703_p4) }
 0x2de   : >> { %v9963_v2 = vmov %v9962_v24  ;;  %v9971_v44 = vmov %v3566_v19  ;;  %v9972_v36 = vmov %v9943_v29  ;;  %v9973_v9 = vmov %v9940_v55  ;;  %v9997_v24 = vld [vmem:[#allocation5_spill] sm:$0xff] (%p8703_p4) }
 0x2df   : >> { %v9974_v46 = vmov %v9938_v58  ;;  %v9975_v26 = vmov %v9936_v12  ;;  %v9976_v37 = vmov %v9934_v43  ;;  %v9977_v51 = vmov %v9932_v59  ;;  %1976 = sbr.rel (!%p8703_p4) target bundleno = 314 (0x13a), region = 87 }
 0x2e0   : >> { %v9978_v45 = vmov %v9930_v34  ;;  %v9979_v25 = vmov %v9928_v40  ;;  %v9980_v21 = vmov %v9926_v18  ;;  %v9981_v61 = vmov %v9924_v17 }
 0x2e1   : >> { %v9982_v52 = vmov %v9922_v42  ;;  %v9983_v48 = vmov %v9920_v60  ;;  %v9984_v31 = vmov %v9918_v33  ;;  %v9985_v39 = vmov %v9916_v28 }
 0x2e2   : >> { %v9986_v57 = vmov %v9914_v8  ;;  %v9987_v10 = vmov %v9912_v5  ;;  %v9988_v63 = vmov %v9910_v4  ;;  %v9989_v11 = vmov %v9908_v54 }
 0x2e3   : >> { %v9990_v1 = vmov %v9906_v56  ;;  %v9991_v32 = vmov %v9904_v0  ;;  %v9992_v53 = vmov %v9902_v30  ;;  %v3712_v7 = vsel (%p8703_p4), %vm1343_vm4, %v3658_v22, 0 }
 0x2e4   : > { %3721 = vmatpush.bf16.msra.mxu0 %v3712_v7  ;;  %4184 = vmatpush.bf16.msra.mxu1 %v3712_v7  ;;  %v3578_v20 = vadd.f32 %v8814_v50, %v9997_v24  ;;  %v3579_v29 = vadd.f32 %v8814_v50, %v9998_v62  ;;  %v3586_v21 = vadd.f32 %v8814_v50, %v9912_v5 }
 0x2e5   : > { %4185 = vmatpush.bf16.msra.mxu2 %v3712_v7  ;;  %4186 = vmatpush.bf16.msra.mxu3 %v3712_v7  ;;  %v3587_v35 = vadd.f32 %v8814_v50, %v9914_v8  ;;  %v3594_v15 = vadd.f32 %v8814_v50, %v9928_v40  ;;  %v3595_v39 = vadd.f32 %v8814_v50, %v9930_v34 }
 0x2e6   : > { %v3610_v44 = vmax.f32 %v3578_v20, 0.0  ;;  %v3611_v2 = vmax.f32 %v3579_v29, 0.0  ;;  %v3618_v47 = vmax.f32 %v3586_v21, 0.0  ;;  %v3602_v63 = vadd.f32 %v8814_v50, %v3566_v19  ;;  %v9999_v19 = vld [vmem:[#allocation4_spill] sm:$0xff] }
 0x2e7   : > { %v3619_v57 = vmax.f32 %v3587_v35, 0.0  ;;  %v3626_v9 = vmax.f32 %v3594_v15, 0.0  ;;  %v3627_v61 = vmax.f32 %v3595_v39, 0.0  ;;  %v3603_v26 = vadd.f32 %v8814_v50, %v9946_v27 }
 0x2e8   : > { %v3642_v5 = vpack.c.bf16 %v3611_v2, %v3610_v44  ;;  %v3634_v49 = vmax.f32 %v3602_v63, 0.0  ;;  %v3580_v36 = vadd.f32 %v8814_v50, %v9999_v19  ;;  %v3581_v23 = vadd.f32 %v8814_v50, %v9902_v30 }
 0x2e9   : > { %v3646_v8 = vpack.c.bf16 %v3619_v57, %v3618_v47  ;;  %v3650_v45 = vpack.c.bf16 %v3627_v61, %v3626_v9  ;;  %v3635_v1 = vmax.f32 %v3603_v26, 0.0  ;;  %v3588_v40 = vadd.f32 %v8814_v50, %v9916_v28  ;;  %v10000_v47 = vld [vmem:[#allocation6_spill] sm:$0xff]  ;;  %v10001_v57 = vld [vmem:[#allocation3_spill] sm:$0xff]  ;;  %v10002_v61 = vld [vmem:[#allocation120_spill] sm:$0xff] }
 0x2ea   : > { %4084 = vmatmul.msk.bf16.vlgmr.msra.gmra.mxu0 %vm273_vm0, %v3642_v5  ;;  %v3589_v53 = vadd.f32 %v8814_v50, %v9918_v33  ;;  %v3596_v34 = vadd.f32 %v8814_v50, %v9932_v59  ;;  %v3597_v10 = vadd.f32 %v8814_v50, %v9934_v43  ;;  %v3604_v31 = vadd.f32 %v8814_v50, %v9948_v41 }
 0x2eb   : > { %4088 = vmatmul.msk.bf16.vlgmr.msra.gmra.mxu1 %vm273_vm0, %v3646_v8  ;;  %4092 = vmatmul.msk.bf16.vlgmr.msra.gmra.mxu2 %vm273_vm0, %v3650_v45  ;;  %v3654_v25 = vpack.c.bf16 %v3635_v1, %v3634_v49  ;;  %v3605_v46 = vadd.f32 %v8814_v50, %v9950_v38  ;;  %v3612_v48 = vmax.f32 %v3580_v36, 0.0  ;;  %v3613_v30 = vmax.f32 %v3581_v23, 0.0  ;;  %v3803_v23 = vld [vmem:[%s4852_s28] sm:$0xff] }
 0x2ec   : > { %v3620_v32 = vmax.f32 %v3588_v40, 0.0  ;;  %v3621_v29 = vmax.f32 %v3589_v53, 0.0  ;;  %v3628_v28 = vmax.f32 %v3596_v34, 0.0  ;;  %v3629_v13 = vmax.f32 %v3597_v10, 0.0  ;;  %v3811_v34 = vld [vmem:[%s4852_s28 + $0x40] sm:$0xff] }
 0x2ed   : > { %4096 = vmatmul.msk.bf16.vlgmr.msra.gmra.mxu3 %vm273_vm0, %v3654_v25  ;;  %v3636_v27 = vmax.f32 %v3604_v31, 0.0  ;;  %v3637_v33 = vmax.f32 %v3605_v46, 0.0  ;;  %v3643_v3 = vpack.c.bf16 %v3613_v30, %v3612_v48  ;;  %v3582_v43 = vadd.f32 %v8814_v50, %v9904_v0  ;;  %v3819_v30 = vld [vmem:[%s4852_s28 + $0x80] sm:$0xff] }
 0x2ee   : > { %v3647_v11 = vpack.c.bf16 %v3621_v29, %v3620_v32  ;;  %v3651_v59 = vpack.c.bf16 %v3629_v13, %v3628_v28  ;;  %v3583_v41 = vadd.f32 %v8814_v50, %v9906_v56  ;;  %v3590_v38 = vadd.f32 %v8814_v50, %v9920_v60  ;;  %v3804_v28 = vld [vmem:[%s4852_s28 + $0x8] sm:$0xff] }
 0x2ef   : > { %v3655_v37 = vpack.c.bf16 %v3637_v33, %v3636_v27  ;;  %v3591_v16 = vadd.f32 %v8814_v50, %v9922_v42  ;;  %v3598_v52 = vadd.f32 %v8814_v50, %v9936_v12  ;;  %v3599_v62 = vadd.f32 %v8814_v50, %v9938_v58  ;;  %v3827_v27 = vld [vmem:[%s4852_s28 + $0xc0] sm:$0xff] }
 0x2f0   : > { %v3606_v51 = vadd.f32 %v8814_v50, %v9952_v6  ;;  %v3607_v0 = vadd.f32 %v8814_v50, %v9954_v14  ;;  %v3614_v24 = vmax.f32 %v3582_v43, 0.0  ;;  %v3615_v56 = vmax.f32 %v3583_v41, 0.0 }
 0x2f1   : > { %v3622_v22 = vmax.f32 %v3590_v38, 0.0  ;;  %v3623_v7 = vmax.f32 %v3591_v16, 0.0  ;;  %v3630_v60 = vmax.f32 %v3598_v52, 0.0  ;;  %v3631_v20 = vmax.f32 %v3599_v62, 0.0  ;;  %v3820_v62 = vld [vmem:[%s4852_s28 + $0x88] sm:$0xff] }
 0x2f2   : > { %v3638_v21 = vmax.f32 %v3606_v51, 0.0  ;;  %v3639_v42 = vmax.f32 %v3607_v0, 0.0  ;;  %v3644_v35 = vpack.c.bf16 %v3615_v56, %v3614_v24  ;;  %v3584_v58 = vadd.f32 %v8814_v50, %v9908_v54  ;;  %v3805_v24 = vld [vmem:[%s4852_s28 + $0x10] sm:$0xff] }
 0x2f3   : > { %v3648_v15 = vpack.c.bf16 %v3623_v7, %v3622_v22  ;;  %v3652_v12 = vpack.c.bf16 %v3631_v20, %v3630_v60  ;;  %v3585_v6 = vadd.f32 %v8814_v50, %v9910_v4  ;;  %v3592_v14 = vadd.f32 %v8814_v50, %v9924_v17  ;;  %v3828_v22 = vld [vmem:[%s4852_s28 + $0xc8] sm:$0xff]  ;;  %v3813_v20 = vld [vmem:[%s4852_s28 + $0x50] sm:$0xff] }
 0x2f4   : > { %v3656_v39 = vpack.c.bf16 %v3639_v42, %v3638_v21  ;;  %v3593_v44 = vadd.f32 %v8814_v50, %v9926_v18  ;;  %v3600_v2 = vadd.f32 %v8814_v50, %v9940_v55  ;;  %v3601_v63 = vadd.f32 %v8814_v50, %v10000_v47 }
 0x2f5   : > { %v3608_v9 = vadd.f32 %v8814_v50, %v10001_v57  ;;  %v3609_v54 = vadd.f32 %v8814_v50, %v10002_v61  ;;  %v3616_v26 = vmax.f32 %v3584_v58, 0.0  ;;  %v3617_v4 = vmax.f32 %v3585_v6, 0.0  ;;  %v8899_v50 = vld [vmem:[%s9037_s5] ss:$0 sm:$0xff]  ;;  %v3821_v6 = vld [vmem:[%s4852_s28 + $0x90] sm:$0xff]  ;;  %v3814_v61 = vld [vmem:[%s4852_s28 + $0x58] sm:$0xff] }
 0x2f6   : > { %v3624_v5 = vmax.f32 %v3592_v14, 0.0  ;;  %v3625_v17 = vmax.f32 %v3593_v44, 0.0  ;;  %v3632_v49 = vmax.f32 %v3600_v2, 0.0  ;;  %v3633_v8 = vmax.f32 %v3601_v63, 0.0  ;;  %v3806_v2 = vld [vmem:[%s4852_s28 + $0x18] sm:$0xff]  ;;  %v3829_v63 = vld [vmem:[%s4852_s28 + $0xd0] sm:$0xff] }
 0x2f7   : > { %v3640_v18 = vmax.f32 %v3608_v9, 0.0  ;;  %v3641_v45 = vmax.f32 %v3609_v54, 0.0  ;;  %v3645_v55 = vpack.c.bf16 %v3617_v4, %v3616_v26 }
 0x2f8   : > { %v3649_v1 = vpack.c.bf16 %v3625_v17, %v3624_v5  ;;  %v3653_v25 = vpack.c.bf16 %v3633_v8, %v3632_v49 }
 0x2f9   : > { %v3657_v19 = vpack.c.bf16 %v3641_v45, %v3640_v18  ;;  %v3822_v18 = vld [vmem:[%s4852_s28 + $0x98] sm:$0xff] }
 0x2fa   : > { %4085 = vmatmul.msk.bf16.gmra.mxu0 %vm273_vm0, %v3643_v3 }
 0x2fb   : > { %4089 = vmatmul.msk.bf16.gmra.mxu1 %vm273_vm0, %v3647_v11  ;;  %4093 = vmatmul.msk.bf16.gmra.mxu2 %vm273_vm0, %v3651_v59  ;;  %v3812_v11 = vld [vmem:[%s4852_s28 + $0x48] sm:$0xff] }
 0x2fd   : > { %4097 = vmatmul.msk.bf16.gmra.mxu3 %vm273_vm0, %v3655_v37 }
 0x30a   : > { %4086 = vmatmul.msk.bf16.gmra.mxu0 %vm273_vm0, %v3644_v35 }
 0x30b   : > { %4090 = vmatmul.msk.bf16.gmra.mxu1 %vm273_vm0, %v3648_v15  ;;  %4094 = vmatmul.msk.bf16.gmra.mxu2 %vm273_vm0, %v3652_v12 }
 0x30d   : > { %4098 = vmatmul.msk.bf16.gmra.mxu3 %vm273_vm0, %v3656_v39 }
 0x31a   : > { %4087 = vmatmul.msk.bf16.gmra.mxu0 %vm273_vm0, %v3645_v55 }
 0x31b   : > { %4091 = vmatmul.msk.bf16.gmra.mxu1 %vm273_vm0, %v3649_v1  ;;  %4095 = vmatmul.msk.bf16.gmra.mxu2 %vm273_vm0, %v3653_v25  ;;  %v3807_v1 = vld [vmem:[%s4852_s28 + $0x20] sm:$0xff] }
 0x31d   : > { %4099 = vmatmul.msk.bf16.gmra.mxu3 %vm273_vm0, %v3657_v19  ;;  %v3830_v19 = vld [vmem:[%s4852_s28 + $0xd8] sm:$0xff] }
 0x367   : > { %v3723_v36 = vpop.f32.mrf.mxu0 }
 0x368   : > { %v3724_v40 = vadd.f32 %v8899_v50, %v3723_v36  ;;  %v3743_v53 = vpop.f32.mrf.mxu1 }
 0x369   : > { %v3744_v10 = vadd.f32 %v8899_v50, %v3743_v53 }
 0x36a   : > { %v3835_v31 = vadd.f32 %v3803_v23, %v3724_v40  ;;  %v3815_v40 = vld [vmem:[%s4852_s28 + $0x60] sm:$0xff] }
 0x36b   : > { %v3843_v46 = vadd.f32 %v3811_v34, %v3744_v10 }
 0x36c   : > { %3868 = vst.msk [vmem:[%s4865_s7] sm:$0xff] %vm3867_vm8, %v3835_v31 }
 0x36d   : > { %3876 = vst.msk [vmem:[%s4865_s7 + $0x40] sm:$0xff] %vm3867_vm8, %v3843_v46 }
 0x36e   : > { %v3763_v48 = vpop.f32.mrf.mxu2 }
 0x36f   : > { %v3764_v32 = vadd.f32 %v8899_v50, %v3763_v48  ;;  %v3725_v29 = vpop.f32.mrf.mxu0 }
 0x370   : > { %v3783_v13 = vpop.f32.mrf.mxu3  ;;  %v3726_v33 = vadd.f32 %v8899_v50, %v3725_v29  ;;  %v3745_v3 = vpop.f32.mrf.mxu1 }
 0x371   : > { %v3851_v59 = vadd.f32 %v3819_v30, %v3764_v32  ;;  %v3784_v37 = vadd.f32 %v8899_v50, %v3783_v13  ;;  %v3746_v43 = vadd.f32 %v8899_v50, %v3745_v3  ;;  %v3823_v32 = vld [vmem:[%s4852_s28 + $0xa0] sm:$0xff]  ;;  %v3808_v13 = vld [vmem:[%s4852_s28 + $0x28] sm:$0xff] }
 0x372   : > { %v3836_v41 = vadd.f32 %v3804_v28, %v3726_v33  ;;  %v3831_v33 = vld [vmem:[%s4852_s28 + $0xe0] sm:$0xff] }
 0x373   : > { %3884 = vst.msk [vmem:[%s4865_s7 + $0x80] sm:$0xff] %vm3867_vm8, %v3851_v59  ;;  %v3859_v38 = vadd.f32 %v3827_v27, %v3784_v37  ;;  %v3844_v16 = vadd.f32 %v3812_v11, %v3746_v43  ;;  %v3816_v59 = vld [vmem:[%s4852_s28 + $0x68] sm:$0xff] }
 0x374   : > { %3869 = vst.msk [vmem:[%s4865_s7 + $0x8] sm:$0xff] %vm3867_vm8, %v3836_v41 }
 0x375   : > { %3892 = vst.msk [vmem:[%s4865_s7 + $0xc0] sm:$0xff] %vm3867_vm8, %v3859_v38 }
 0x376   : > { %3877 = vst.msk [vmem:[%s4865_s7 + $0x48] sm:$0xff] %vm3867_vm8, %v3844_v16  ;;  %v3765_v52 = vpop.f32.mrf.mxu2 }
 0x377   : > { %v3766_v51 = vadd.f32 %v8899_v50, %v3765_v52  ;;  %v3728_v0 = vpop.f32.mrf.mxu0 }
 0x378   : > { %v3785_v56 = vpop.f32.mrf.mxu3  ;;  %v3729_v7 = vadd.f32 %v8899_v50, %v3728_v0  ;;  %v3748_v60 = vpop.f32.mrf.mxu1 }
 0x379   : > { %v3852_v21 = vadd.f32 %v3820_v62, %v3766_v51  ;;  %v3786_v42 = vadd.f32 %v8899_v50, %v3785_v56  ;;  %v3749_v35 = vadd.f32 %v8899_v50, %v3748_v60  ;;  %v3824_v51 = vld [vmem:[%s4852_s28 + $0xa8] sm:$0xff]  ;;  %v3809_v56 = vld [vmem:[%s4852_s28 + $0x30] sm:$0xff] }
 0x37a   : > { %v3837_v15 = vadd.f32 %v3805_v24, %v3729_v7  ;;  %v3832_v7 = vld [vmem:[%s4852_s28 + $0xe8] sm:$0xff] }
 0x37b   : > { %3885 = vst.msk [vmem:[%s4865_s7 + $0x88] sm:$0xff] %vm3867_vm8, %v3852_v21  ;;  %v3860_v12 = vadd.f32 %v3828_v22, %v3786_v42  ;;  %v3845_v39 = vadd.f32 %v3813_v20, %v3749_v35  ;;  %v3817_v21 = vld [vmem:[%s4852_s28 + $0x70] sm:$0xff] }
 0x37c   : > { %3870 = vst.msk [vmem:[%s4865_s7 + $0x10] sm:$0xff] %vm3867_vm8, %v3837_v15 }
 0x37d   : > { %3893 = vst.msk [vmem:[%s4865_s7 + $0xc8] sm:$0xff] %vm3867_vm8, %v3860_v12 }
 0x37e   : > { %3878 = vst.msk [vmem:[%s4865_s7 + $0x50] sm:$0xff] %vm3867_vm8, %v3845_v39  ;;  %v3768_v58 = vpop.f32.mrf.mxu2 }
 0x37f   : > { %v3769_v14 = vadd.f32 %v8899_v50, %v3768_v58  ;;  %v3730_v44 = vpop.f32.mrf.mxu0 }
 0x380   : > { %v3788_v47 = vpop.f32.mrf.mxu3  ;;  %v3731_v57 = vadd.f32 %v8899_v50, %v3730_v44  ;;  %v3750_v9 = vpop.f32.mrf.mxu1 }
 0x381   : > { %v3853_v54 = vadd.f32 %v3821_v6, %v3769_v14  ;;  %v3789_v26 = vadd.f32 %v8899_v50, %v3788_v47  ;;  %v3751_v4 = vadd.f32 %v8899_v50, %v3750_v9  ;;  %v3825_v14 = vld [vmem:[%s4852_s28 + $0xb0] sm:$0xff]  ;;  %v3810_v47 = vld [vmem:[%s4852_s28 + $0x38] sm:$0xff] }
 0x382   : > { %v3838_v5 = vadd.f32 %v3806_v2, %v3731_v57  ;;  %v3833_v57 = vld [vmem:[%s4852_s28 + $0xf0] sm:$0xff] }
 0x383   : > { %3886 = vst.msk [vmem:[%s4865_s7 + $0x90] sm:$0xff] %vm3867_vm8, %v3853_v54  ;;  %v3861_v17 = vadd.f32 %v3829_v63, %v3789_v26  ;;  %v3846_v49 = vadd.f32 %v3814_v61, %v3751_v4  ;;  %v3818_v54 = vld [vmem:[%s4852_s28 + $0x78] sm:$0xff] }
 0x384   : > { %3871 = vst.msk [vmem:[%s4865_s7 + $0x18] sm:$0xff] %vm3867_vm8, %v3838_v5 }
 0x385   : > { %3894 = vst.msk [vmem:[%s4865_s7 + $0xd0] sm:$0xff] %vm3867_vm8, %v3861_v17 }
 0x386   : > { %3879 = vst.msk [vmem:[%s4865_s7 + $0x58] sm:$0xff] %vm3867_vm8, %v3846_v49  ;;  %v3770_v8 = vpop.f32.mrf.mxu2 }
 0x387   : > { %v3771_v45 = vadd.f32 %v8899_v50, %v3770_v8  ;;  %v3733_v55 = vpop.f32.mrf.mxu0 }
 0x388   : > { %v3790_v25 = vpop.f32.mrf.mxu3  ;;  %v3734_v36 = vadd.f32 %v8899_v50, %v3733_v55  ;;  %v3753_v23 = vpop.f32.mrf.mxu1 }
 0x389   : > { %v3854_v53 = vadd.f32 %v3822_v18, %v3771_v45  ;;  %v3791_v34 = vadd.f32 %v8899_v50, %v3790_v25  ;;  %v3754_v10 = vadd.f32 %v8899_v50, %v3753_v23  ;;  %v3826_v45 = vld [vmem:[%s4852_s28 + $0xb8] sm:$0xff] }
 0x38a   : > { %v3839_v31 = vadd.f32 %v3807_v1, %v3734_v36  ;;  %v3834_v25 = vld [vmem:[%s4852_s28 + $0xf8] sm:$0xff] }
 0x38b   : > { %3887 = vst.msk [vmem:[%s4865_s7 + $0x98] sm:$0xff] %vm3867_vm8, %v3854_v53  ;;  %v3862_v46 = vadd.f32 %v3830_v19, %v3791_v34  ;;  %v3847_v48 = vadd.f32 %v3815_v40, %v3754_v10 }
 0x38c   : > { %3872 = vst.msk [vmem:[%s4865_s7 + $0x20] sm:$0xff] %vm3867_vm8, %v3839_v31 }
 0x38d   : > { %3895 = vst.msk [vmem:[%s4865_s7 + $0xd8] sm:$0xff] %vm3867_vm8, %v3862_v46 }
 0x38e   : > { %3880 = vst.msk [vmem:[%s4865_s7 + $0x60] sm:$0xff] %vm3867_vm8, %v3847_v48  ;;  %v3773_v30 = vpop.f32.mrf.mxu2 }
 0x38f   : > { %v3774_v29 = vadd.f32 %v8899_v50, %v3773_v30  ;;  %v3735_v28 = vpop.f32.mrf.mxu0 }
 0x390   : > { %v3793_v27 = vpop.f32.mrf.mxu3  ;;  %v3736_v3 = vadd.f32 %v8899_v50, %v3735_v28  ;;  %v3755_v11 = vpop.f32.mrf.mxu1 }
 0x391   : > { %v3855_v37 = vadd.f32 %v3823_v32, %v3774_v29  ;;  %v3794_v43 = vadd.f32 %v8899_v50, %v3793_v27  ;;  %v3756_v41 = vadd.f32 %v8899_v50, %v3755_v11 }
 0x392   : > { %v3840_v38 = vadd.f32 %v3808_v13, %v3736_v3 }
 0x393   : > { %3888 = vst.msk [vmem:[%s4865_s7 + $0xa0] sm:$0xff] %vm3867_vm8, %v3855_v37  ;;  %v3863_v16 = vadd.f32 %v3831_v33, %v3794_v43  ;;  %v3848_v52 = vadd.f32 %v3816_v59, %v3756_v41 }
 0x394   : > { %3873 = vst.msk [vmem:[%s4865_s7 + $0x28] sm:$0xff] %vm3867_vm8, %v3840_v38 }
 0x395   : > { %3896 = vst.msk [vmem:[%s4865_s7 + $0xe0] sm:$0xff] %vm3867_vm8, %v3863_v16 }
 0x396   : > { %3881 = vst.msk [vmem:[%s4865_s7 + $0x68] sm:$0xff] %vm3867_vm8, %v3848_v52  ;;  %v3775_v62 = vpop.f32.mrf.mxu2 }
 0x397   : > { %v3776_v0 = vadd.f32 %v8899_v50, %v3775_v62  ;;  %v3738_v24 = vpop.f32.mrf.mxu0 }
 0x398   : > { %v3795_v22 = vpop.f32.mrf.mxu3  ;;  %v3739_v60 = vadd.f32 %v8899_v50, %v3738_v24  ;;  %v3758_v20 = vpop.f32.mrf.mxu1 }
 0x399   : > { %v3856_v42 = vadd.f32 %v3824_v51, %v3776_v0  ;;  %v3796_v35 = vadd.f32 %v8899_v50, %v3795_v22  ;;  %v3759_v15 = vadd.f32 %v8899_v50, %v3758_v20 }
 0x39a   : > { %v3841_v12 = vadd.f32 %v3809_v56, %v3739_v60 }
 0x39b   : > { %3889 = vst.msk [vmem:[%s4865_s7 + $0xa8] sm:$0xff] %vm3867_vm8, %v3856_v42  ;;  %v3864_v39 = vadd.f32 %v3832_v7, %v3796_v35  ;;  %v3849_v58 = vadd.f32 %v3817_v21, %v3759_v15 }
 0x39c   : > { %3874 = vst.msk [vmem:[%s4865_s7 + $0x30] sm:$0xff] %vm3867_vm8, %v3841_v12 }
 0x39d   : > { %3897 = vst.msk [vmem:[%s4865_s7 + $0xe8] sm:$0xff] %vm3867_vm8, %v3864_v39 }
 0x39e   : > { %3882 = vst.msk [vmem:[%s4865_s7 + $0x70] sm:$0xff] %vm3867_vm8, %v3849_v58  ;;  %v3778_v6 = vpop.f32.mrf.mxu2 }
 0x39f   : > { %v3779_v44 = vadd.f32 %v8899_v50, %v3778_v6  ;;  %v3740_v2 = vpop.f32.mrf.mxu0 }
 0x3a0   : > { %v3798_v63 = vpop.f32.mrf.mxu3  ;;  %v3741_v9 = vadd.f32 %v8899_v50, %v3740_v2  ;;  %v3760_v61 = vpop.f32.mrf.mxu1 }
 0x3a1   : > { %v3857_v26 = vadd.f32 %v3825_v14, %v3779_v44  ;;  %v3799_v4 = vadd.f32 %v8899_v50, %v3798_v63  ;;  %v3761_v5 = vadd.f32 %v8899_v50, %v3760_v61 }
 0x3a2   : > { %v3842_v17 = vadd.f32 %v3810_v47, %v3741_v9 }
 0x3a3   : > { %3890 = vst.msk [vmem:[%s4865_s7 + $0xb0] sm:$0xff] %vm3867_vm8, %v3857_v26  ;;  %v3865_v49 = vadd.f32 %v3833_v57, %v3799_v4  ;;  %v3850_v8 = vadd.f32 %v3818_v54, %v3761_v5 }
 0x3a4   : > { %3875 = vst.msk [vmem:[%s4865_s7 + $0x38] sm:$0xff] %vm3867_vm8, %v3842_v17 }
 0x3a5   : > { %3898 = vst.msk [vmem:[%s4865_s7 + $0xf0] sm:$0xff] %vm3867_vm8, %v3865_v49 }
 0x3a6   : > { %3883 = vst.msk [vmem:[%s4865_s7 + $0x78] sm:$0xff] %vm3867_vm8, %v3850_v8  ;;  %v3780_v18 = vpop.f32.mrf.mxu2 }
 0x3a7   : > { %v3781_v55 = vadd.f32 %v8899_v50, %v3780_v18 }
 0x3a8   : > { %v3800_v1 = vpop.f32.mrf.mxu3 }
 0x3a9   : > { %v3858_v19 = vadd.f32 %v3826_v45, %v3781_v55  ;;  %v3801_v36 = vadd.f32 %v8899_v50, %v3800_v1 }
 0x3ab   : > { %3891 = vst.msk [vmem:[%s4865_s7 + $0xb8] sm:$0xff] %vm3867_vm8, %v3858_v19  ;;  %v3866_v23 = vadd.f32 %v3834_v25, %v3801_v36 }
 0x3ad   : > { %3899 = vst.msk [vmem:[%s4865_s7 + $0xf8] sm:$0xff] %vm3867_vm8, %v3866_v23 }
 0x3ae PF: > { %s16_s21 = sadd.s32 1, %s4649_s21  }
 0x3af   : > { %p13_p5 = scmp.ge.s32.totalorder %s16_s21, 4  }
 0x3b1   :  { %15 = sbr.rel (!%p13_p5) target bundleno = 1 (0x1), region = 98 }

</bundles_post_ra>
